<compile_context>
chip_gen: v7x
topology: tpu7x:2x2x1
jax: 0.10.0
libtpu: 0.0.40
codegen_flags: <defaults>
</compile_context>

<pallas_src>
import functools

import jax
import jax.numpy as jnp
from jax import lax
from jax.experimental import pallas as pl
from jax.experimental.pallas import tpu as pltpu


NS = 128        # num_s = 2 * num_mid
NN = 64         # num_n = num_mid
NN_PAD = 128    # num_n padded to lane width (zero-padded rows/cols stay zero through the chain)
NSP = NS + NN_PAD


# ----------------------------------------------------------------------------
# Fused GloRe_Unit + masked-average-pool kernel (one grid step = one batch image)
# ----------------------------------------------------------------------------
def _glore_pool_kernel(x_ref, m_ref, wsp_ref, bsp_ref, w1_ref, b1_ref,
                       w2_ref, we_ref, bnsc_ref, bnsh_ref, pooled_ref):
    f32 = jnp.float32
    bf16 = jnp.bfloat16

    x = x_ref[...]                                                      # (C, L) f32
    xb = x.astype(bf16)

    # conv_state + conv_proj fused: [Ws ; Wp_pad] @ x  (+ fused bias)
    sp = jnp.dot(wsp_ref[...], xb, preferred_element_type=f32) + bsp_ref[...]   # (NSP, L)
    s = sp[:NS, :]                                                      # (NS, L)
    p = sp[NS:, :]                                                      # (NN_PAD, L), rows >= NN are 0
    sb = s.astype(bf16)
    pb = p.astype(bf16)

    # x_n_state = s @ p^T : contract the spatial dim (NT matmul, no data transpose)
    z = lax.dot_general(sb, pb, (((1,), (1,)), ((), ())),
                        preferred_element_type=f32)                     # (NS, NN_PAD)

    # GCN: conv1 (node mixing) + residual + ReLU, then conv2 (state mixing)
    h = jnp.dot(z.astype(bf16), w1_ref[...], preferred_element_type=f32) + b1_ref[...] + z
    h = jnp.maximum(h, 0.0)                                             # (NS, NN_PAD)
    r = jnp.dot(w2_ref[...], h.astype(bf16), preferred_element_type=f32)  # (NS, NN_PAD)

    # reverse projection: x_state = r @ p
    xn = jnp.dot(r.astype(bf16), pb, preferred_element_type=f32)        # (NS, L)

    # conv_extend + eval-mode BatchNorm + residual
    y = jnp.dot(we_ref[...], xn.astype(bf16), preferred_element_type=f32)  # (C, L)
    rel = x + y * bnsc_ref[...] + bnsh_ref[...]                         # (C, L)

    # Masked average pool for all objects of this batch image
    # (masks are pre-scaled by 1/L and zeroed for objects of other batches).
    pooled = lax.dot_general(m_ref[...], rel, (((1,), (1,)), ((), ())),
                             preferred_element_type=f32)                # (NOBJ_PAD, C), f32
    pooled_ref[...] = pooled.astype(pooled_ref.dtype)


def glore_masked_pool(x_cl, masks_bz, gp):
    """x_cl: (B, C, L) f32; masks_bz: (B, NOBJ_PAD, L) f32 (already /L and batch-gated).

    Returns per-batch pooled object features (B, NOBJ_PAD, C); sum over B outside."""
    B, C, L = x_cl.shape
    nobj = masks_bz.shape[1]

    return pl.pallas_call(
        _glore_pool_kernel,
        out_shape=jax.ShapeDtypeStruct((B, nobj, C), jnp.float32),
        grid=(B,),
        in_specs=[
            pl.BlockSpec((None, C, L), lambda b: (b, 0, 0)),        # x (channels-first)
            pl.BlockSpec((None, nobj, L), lambda b: (b, 0, 0)),     # batch-gated masks
            pl.BlockSpec((NSP, C), lambda b: (0, 0)),               # [Ws ; Wp_pad]   (bf16)
            pl.BlockSpec((NSP, 1), lambda b: (0, 0)),               # [bs ; bp_pad]
            pl.BlockSpec((NN_PAD, NN_PAD), lambda b: (0, 0)),       # W1^T padded     (bf16)
            pl.BlockSpec((1, NN_PAD), lambda b: (0, 0)),            # b1 padded
            pl.BlockSpec((NS, NS), lambda b: (0, 0)),               # W2              (bf16)
            pl.BlockSpec((C, NS), lambda b: (0, 0)),                # We              (bf16)
            pl.BlockSpec((C, 1), lambda b: (0, 0)),                 # BN scale
            pl.BlockSpec((C, 1), lambda b: (0, 0)),                 # BN shift
        ],
        out_specs=pl.BlockSpec((None, nobj, C), lambda b: (b, 0, 0)),
        compiler_params=pltpu.CompilerParams(
            dimension_semantics=("parallel",),
            vmem_limit_bytes=32 * 1024 * 1024,
        ),
    )(x_cl, masks_bz, gp["Wsp"], gp["bsp"], gp["W1t"], gp["b1r"],
      gp["W2b"], gp["Web"], gp["bn_scale_col"], gp["bn_shift_col"])


# ----------------------------------------------------------------------------
# Mask construction (plain-JAX glue; tiny, data-dependent)
# ----------------------------------------------------------------------------
_BLUR_SIGMA = 1.0
# TODO(synk): torchvision GaussianBlur(7) samples sigma uniformly in [0.1, 2.0] per call;
# a fixed sigma is used here for a deterministic forward.


def _gaussian_blur7(masks, sigma=_BLUR_SIGMA):
    r = 3
    xs = jnp.arange(-r, r + 1, dtype=jnp.float32)
    k1 = jnp.exp(-(xs ** 2) / (2.0 * sigma ** 2))
    k1 = k1 / jnp.sum(k1)
    k2 = jnp.outer(k1, k1)
    m = masks[:, None, :, :]
    m = jnp.pad(m, ((0, 0), (0, 0), (r, r), (r, r)), mode="reflect")
    out = jax.lax.conv_general_dilated(
        m, k2[None, None, :, :], window_strides=(1, 1), padding="VALID",
        dimension_numbers=("NCHW", "OIHW", "NCHW"))
    return out[:, 0]


def _box_masks(bbox_pos, hw):
    H, W = hw
    r0 = jnp.floor(bbox_pos[:, 0] / 256.0 * H).astype(jnp.int32)
    c0 = jnp.floor(bbox_pos[:, 1] / 256.0 * W).astype(jnp.int32)
    r1 = jnp.floor(bbox_pos[:, 2] / 256.0 * H).astype(jnp.int32)
    c1 = jnp.floor(bbox_pos[:, 3] / 256.0 * W).astype(jnp.int32)
    rows = jnp.arange(H)
    cols = jnp.arange(W)
    rm = (rows[None, :] >= r0[:, None]) & (rows[None, :] < r1[:, None])
    cm = (cols[None, :] >= c0[:, None]) & (cols[None, :] < c1[:, None])
    return (rm[:, :, None] & cm[:, None, :]).astype(jnp.float32)


def _make_masks(bbox_pos, hw):
    box = _box_masks(bbox_pos, hw)
    return _gaussian_blur7(box) + box       # == maskfilter(masked) + masked


def _build_masks_bz(bbox_pos, batch_idx, B, hw, nobj_pad):
    """(B, nobj_pad, L) masks: mask_i * [batch_idx_i == b] / L (1/L of AvgPool folded in)."""
    H, W = hw
    L = H * W
    masks = _make_masks(bbox_pos, (H, W)).reshape(-1, L)                      # (num_obj, L)
    num_obj = masks.shape[0]
    onehot = (batch_idx[:, None] == jnp.arange(B)[None, :]).astype(jnp.float32)  # (num_obj, B)
    m = onehot.T[:, :, None] * masks[None, :, :] / float(L)                   # (B, num_obj, L)
    if nobj_pad > num_obj:
        m = jnp.pad(m, ((0, 0), (0, nobj_pad - num_obj), (0, 0)))
    return m


# ----------------------------------------------------------------------------
# Model: parameters + forward
# ----------------------------------------------------------------------------
def init_params(key, cls=40):
    in_chs = (128, 256, 512)
    keys = iter(jax.random.split(key, 64))

    def nrm(shape, std):
        return std * jax.random.normal(next(keys), shape, dtype=jnp.float32)

    params = {"glore": [], "chre": []}
    for cin in in_chs:
        g = {
            "Ws": nrm((NS, cin), 0.02), "bs": nrm((NS,), 0.01),
            "Wp": nrm((NN, cin), 0.02), "bp": nrm((NN,), 0.01),
            "W1": nrm((NN, NN), 0.02), "b1": nrm((NN,), 0.01),
            "W2": nrm((NS, NS), 0.02),
            "We": nrm((cin, NS), 0.02),
            # TODO(synk): eval-mode BatchNorm2d(cin, eps=1e-4) with default running stats;
            # training-mode batch statistics are not implemented.
            "bn_scale": jnp.full((cin,), 1.0 / jnp.sqrt(1.0 + 1e-4), jnp.float32),
            "bn_shift": jnp.zeros((cin,), jnp.float32),
        }
        # Kernel-layout copies: conv_state/conv_proj fused, nn padded to 128 lanes, bf16 weights.
        wp_pad = jnp.zeros((NN_PAD, cin), jnp.float32).at[:NN].set(g["Wp"])
        bp_pad = jnp.zeros((NN_PAD,), jnp.float32).at[:NN].set(g["bp"])
        g["Wsp"] = jnp.concatenate([g["Ws"], wp_pad], axis=0).astype(jnp.bfloat16)   # (NSP, C)
        g["bsp"] = jnp.concatenate([g["bs"], bp_pad]).reshape(NSP, 1)                # f32
        w1t_pad = jnp.zeros((NN_PAD, NN_PAD), jnp.float32).at[:NN, :NN].set(g["W1"].T)
        g["W1t"] = w1t_pad.astype(jnp.bfloat16)
        g["b1r"] = jnp.zeros((1, NN_PAD), jnp.float32).at[0, :NN].set(g["b1"])
        g["W2b"] = g["W2"].astype(jnp.bfloat16)
        g["Web"] = g["We"].astype(jnp.bfloat16)
        g["bn_scale_col"] = g["bn_scale"].reshape(cin, 1)
        g["bn_shift_col"] = g["bn_shift"].reshape(cin, 1)
        params["glore"].append(g)

        params["chre"].append({"Wc": nrm((128, cin), 0.05), "bc": nrm((128,), 0.01)})

    params["Wcls"] = nrm((cls, 128), 0.1)
    params["bcls"] = jnp.zeros((cls,), jnp.float32)
    return params


@jax.jit
def rel_reasoning_forward(params, res1, res2, res3, bbox_pos, batch_idx):
    num_obj = bbox_pos.shape[0]
    nobj_pad = max(8, ((num_obj + 7) // 8) * 8)

    embs = []
    for lvl, x in enumerate((res1, res2, res3)):
        B, C, H, W = x.shape
        L = H * W
        x_cl = x.reshape(B, C, L)                                   # channels-first; free reshape
        m_bz = _build_masks_bz(bbox_pos, batch_idx, B, (H, W), nobj_pad)
        pooled = glore_masked_pool(x_cl, m_bz, params["glore"][lvl])   # (B, nobj_pad, C)
        pooled = pooled.sum(axis=0)                                    # (nobj_pad, C); other-batch rows are 0
        c = params["chre"][lvl]
        pre = pooled @ c["Wc"].T + c["bc"]                             # tiny; plain JAX f32
        embs.append(jnp.where(pre > 0.0, pre, 0.2 * pre))              # LeakyReLU(0.2)

    rel_feat = ((embs[0] + embs[1] + embs[2]) / 3.0)[:num_obj]
    # TODO(synk): Dropout(0.5) is identity in inference mode; training-mode dropout not implemented.
    logits = rel_feat @ params["Wcls"].T + params["bcls"]              # tiny; plain JAX f32
    cls_score = jax.nn.softmax(logits, axis=-1)
    return rel_feat, cls_score


class RelReasoningPallas:
    """JAX/Pallas port of RelReasoning (3x GloRe_Unit + ch_re heads + classifier)."""

    def __init__(self, cls=40, key=None):
        if key is None:
            key = jax.random.PRNGKey(0)
        self.cls = cls
        self.params = init_params(key, cls=cls)

    def __call__(self, res_feat, bbox_pos, split):
        res1, res2, res3 = res_feat
        batch_idx, obj_order = [], []
        for b, s in enumerate(split):
            for i in range(s[0], s[1]):
                batch_idx.append(b)
                obj_order.append(i)
        batch_idx = jnp.asarray(batch_idx, dtype=jnp.int32)
        bboxes = bbox_pos[jnp.asarray(obj_order, dtype=jnp.int32)]
        return rel_reasoning_forward(self.params, res1, res2, res3, bboxes, batch_idx)


# ----------------------------------------------------------------------------
# Pure-JAX reference (torch-structured, f32 matmuls) for validation
# ----------------------------------------------------------------------------
def _reference_forward(params, res_feats, bboxes, batch_idx):
    embs = []
    for lvl, x in enumerate(res_feats):
        g = params["glore"][lvl]
        B, C, H, W = x.shape
        L = H * W
        xr = x.reshape(B, C, L)
        S = jnp.einsum("oc,bcl->bol", g["Ws"], xr) + g["bs"][None, :, None]
        P = jnp.einsum("oc,bcl->bol", g["Wp"], xr) + g["bp"][None, :, None]
        Z = jnp.einsum("bsl,bnl->bsn", S, P)
        Hh = jnp.einsum("bsj,ij->bsi", Z, g["W1"]) + g["b1"][None, None, :] + Z
        Hh = jnp.maximum(Hh, 0.0)
        R = jnp.einsum("st,btn->bsn", g["W2"], Hh)
        Xn = jnp.einsum("bsn,bnl->bsl", R, P)
        Y = jnp.einsum("cs,bsl->bcl", g["We"], Xn)
        Y = Y * g["bn_scale"][None, :, None] + g["bn_shift"][None, :, None]
        rel = xr + Y
        masks = _make_masks(bboxes, (H, W)).reshape(-1, L)
        rel_sel = rel[batch_idx]
        pooled = jnp.mean(rel_sel * masks[:, None, :], axis=-1)
        c = params["chre"][lvl]
        pre = pooled @ c["Wc"].T + c["bc"]
        embs.append(jnp.where(pre > 0.0, pre, 0.2 * pre))
    rel_feat = (embs[0] + embs[1] + embs[2]) / 3.0
    logits = rel_feat @ params["Wcls"].T + params["bcls"]
    return rel_feat, jax.nn.softmax(logits, axis=-1)


if __name__ == "__main__":
    key = jax.random.PRNGKey(0)
    k_params, k1, k2, k3 = jax.random.split(key, 4)

    cls = 40  # stand-in for len(NYU40CLASSES)
    model = RelReasoningPallas(cls=cls, key=k_params)

    B = 2
    res1 = jax.random.normal(k1, (B, 128, 32, 32), dtype=jnp.float32)
    res2 = jax.random.normal(k2, (B, 256, 16, 16), dtype=jnp.float32)
    res3 = jax.random.normal(k3, (B, 512, 8, 8), dtype=jnp.float32)

    bbox_pos = jnp.array([[32.0, 48.0, 160.0, 200.0],
                          [10.0, 20.0, 120.0, 96.0],
                          [64.0, 64.0, 250.0, 250.0]], dtype=jnp.float32)
    split = [(0, 2), (2, 3)]

    rel_feat, cls_score = model((res1, res2, res3), bbox_pos, split)
    jax.block_until_ready((rel_feat, cls_score))

    # Validate against the pure-JAX (f32) reference of the PyTorch forward.
    batch_idx = jnp.array([0, 0, 1], dtype=jnp.int32)
    ref_rel, ref_cls = _reference_forward(model.params, (res1, res2, res3),
                                          bbox_pos, batch_idx)

    assert rel_feat.shape == (3, 128) and cls_score.shape == (3, cls)
    assert bool(jnp.all(jnp.isfinite(rel_feat))) and bool(jnp.all(jnp.isfinite(cls_score)))
    err_rel = float(jnp.max(jnp.abs(rel_feat - ref_rel)))
    err_cls = float(jnp.max(jnp.abs(cls_score - ref_cls)))
    assert err_rel < 2e-2, f"rel_feat mismatch: {err_rel}"
    assert err_cls < 2e-2, f"cls_score mismatch: {err_cls}"
    assert float(jnp.max(jnp.abs(jnp.sum(cls_score, axis=-1) - 1.0))) < 1e-2

    print("KERNEL_OK")
</pallas_src>

<mosaic_0001>
module attributes {stable_mosaic.version = 11 : i64} {
  func.func @_glore_pool_kernel(%arg0: i32, %arg1: memref<1x128x1024xf32, #tpu.memory_space<vmem>>, %arg2: memref<1x8x1024xf32, #tpu.memory_space<vmem>>, %arg3: memref<256x128xbf16, #tpu.memory_space<vmem>>, %arg4: memref<256x1xf32, #tpu.memory_space<vmem>>, %arg5: memref<128x128xbf16, #tpu.memory_space<vmem>>, %arg6: memref<1x128xf32, #tpu.memory_space<vmem>>, %arg7: memref<128x128xbf16, #tpu.memory_space<vmem>>, %arg8: memref<128x128xbf16, #tpu.memory_space<vmem>>, %arg9: memref<128x1xf32, #tpu.memory_space<vmem>>, %arg10: memref<128x1xf32, #tpu.memory_space<vmem>>, %arg11: memref<1x8x128xf32, #tpu.memory_space<vmem>>) attributes {dimension_semantics = [#tpu.dimension_semantics<parallel>], iteration_bounds = array<i64: 2>, scalar_prefetch = 0 : i64, scratch_operands = 0 : i64, tpu.core_type = #tpu.core_type<tc>, window_params = [{transform_indices = @transform_0, window_bounds = array<i64: 1, 128, 1024>}, {transform_indices = @transform_1, window_bounds = array<i64: 1, 8, 1024>}, {pipeline_mode = #tpu.pipeline_mode<synchronous>, transform_indices = @transform_2, window_bounds = array<i64: 256, 128>}, {pipeline_mode = #tpu.pipeline_mode<synchronous>, transform_indices = @transform_3, window_bounds = array<i64: 256, 1>}, {pipeline_mode = #tpu.pipeline_mode<synchronous>, transform_indices = @transform_4, window_bounds = array<i64: 128, 128>}, {pipeline_mode = #tpu.pipeline_mode<synchronous>, transform_indices = @transform_5, window_bounds = array<i64: 1, 128>}, {pipeline_mode = #tpu.pipeline_mode<synchronous>, transform_indices = @transform_6, window_bounds = array<i64: 128, 128>}, {pipeline_mode = #tpu.pipeline_mode<synchronous>, transform_indices = @transform_7, window_bounds = array<i64: 128, 128>}, {pipeline_mode = #tpu.pipeline_mode<synchronous>, transform_indices = @transform_8, window_bounds = array<i64: 128, 1>}, {pipeline_mode = #tpu.pipeline_mode<synchronous>, transform_indices = @transform_9, window_bounds = array<i64: 128, 1>}, {transform_indices = @transform_10, window_bounds = array<i64: 1, 8, 128>}]} {
    %c0 = arith.constant 0 : index
    %c0_0 = arith.constant 0 : index
    %c0_1 = arith.constant 0 : index
    %0 = vector.load %arg1[%c0, %c0_0, %c0_1] : memref<1x128x1024xf32, #tpu.memory_space<vmem>>, vector<1x128x1024xf32>
    %1 = vector.shape_cast %0 : vector<1x128x1024xf32> to vector<128x1024xf32>
    %2 = arith.truncf %1 : vector<128x1024xf32> to vector<128x1024xbf16>
    %c0_2 = arith.constant 0 : index
    %c0_3 = arith.constant 0 : index
    %3 = vector.load %arg3[%c0_2, %c0_3] : memref<256x128xbf16, #tpu.memory_space<vmem>>, vector<256x128xbf16>
    %cst = arith.constant dense<0.000000e+00> : vector<256x1024xf32>
    %4 = tpu.matmul %3, %2, %cst {dimension_numbers = #tpu.dot_dimension_numbers<[1], [0], [0], [1], [0, 0, 1, 1], [], []>} : vector<256x128xbf16>, vector<128x1024xbf16>, vector<256x1024xf32> -> vector<256x1024xf32>
    %c0_4 = arith.constant 0 : index
    %c0_5 = arith.constant 0 : index
    %5 = vector.load %arg4[%c0_4, %c0_5] : memref<256x1xf32, #tpu.memory_space<vmem>>, vector<256x1xf32>
    %6 = vector.broadcast %5 : vector<256x1xf32> to vector<256x1024xf32>
    %7 = arith.addf %4, %6 : vector<256x1024xf32>
    %8 = vector.extract_strided_slice %7 {offsets = [0, 0], sizes = [128, 1024], strides = [1, 1]} : vector<256x1024xf32> to vector<128x1024xf32>
    %9 = vector.extract_strided_slice %7 {offsets = [128, 0], sizes = [128, 1024], strides = [1, 1]} : vector<256x1024xf32> to vector<128x1024xf32>
    %10 = arith.truncf %8 : vector<128x1024xf32> to vector<128x1024xbf16>
    %11 = arith.truncf %9 : vector<128x1024xf32> to vector<128x1024xbf16>
    %cst_6 = arith.constant dense<0.000000e+00> : vector<128x128xf32>
    %12 = tpu.matmul %10, %11, %cst_6 {dimension_numbers = #tpu.dot_dimension_numbers<[1], [1], [0], [0], [0, 0, 1, 0], [], []>} : vector<128x1024xbf16>, vector<128x1024xbf16>, vector<128x128xf32> -> vector<128x128xf32>
    %13 = arith.truncf %12 : vector<128x128xf32> to vector<128x128xbf16>
    %c0_7 = arith.constant 0 : index
    %c0_8 = arith.constant 0 : index
    %14 = vector.load %arg5[%c0_7, %c0_8] : memref<128x128xbf16, #tpu.memory_space<vmem>>, vector<128x128xbf16>
    %cst_9 = arith.constant dense<0.000000e+00> : vector<128x128xf32>
    %15 = tpu.matmul %13, %14, %cst_9 {dimension_numbers = #tpu.dot_dimension_numbers<[1], [0], [0], [1], [0, 0, 1, 1], [], []>} : vector<128x128xbf16>, vector<128x128xbf16>, vector<128x128xf32> -> vector<128x128xf32>
    %c0_10 = arith.constant 0 : index
    %c0_11 = arith.constant 0 : index
    %16 = vector.load %arg6[%c0_10, %c0_11] : memref<1x128xf32, #tpu.memory_space<vmem>>, vector<1x128xf32>
    %17 = vector.broadcast %16 : vector<1x128xf32> to vector<128x128xf32>
    %18 = arith.addf %15, %17 : vector<128x128xf32>
    %19 = arith.addf %18, %12 : vector<128x128xf32>
    %cst_12 = arith.constant 0.000000e+00 : f32
    %20 = vector.broadcast %cst_12 : f32 to vector<128x128xf32>
    %21 = arith.maximumf %19, %20 : vector<128x128xf32>
    %c0_13 = arith.constant 0 : index
    %c0_14 = arith.constant 0 : index
    %22 = vector.load %arg7[%c0_13, %c0_14] : memref<128x128xbf16, #tpu.memory_space<vmem>>, vector<128x128xbf16>
    %23 = arith.truncf %21 : vector<128x128xf32> to vector<128x128xbf16>
    %cst_15 = arith.constant dense<0.000000e+00> : vector<128x128xf32>
    %24 = tpu.matmul %22, %23, %cst_15 {dimension_numbers = #tpu.dot_dimension_numbers<[1], [0], [0], [1], [0, 0, 1, 1], [], []>} : vector<128x128xbf16>, vector<128x128xbf16>, vector<128x128xf32> -> vector<128x128xf32>
    %25 = arith.truncf %24 : vector<128x128xf32> to vector<128x128xbf16>
    %cst_16 = arith.constant dense<0.000000e+00> : vector<128x1024xf32>
    %26 = tpu.matmul %25, %11, %cst_16 {dimension_numbers = #tpu.dot_dimension_numbers<[1], [0], [0], [1], [0, 0, 1, 1], [], []>} : vector<128x128xbf16>, vector<128x1024xbf16>, vector<128x1024xf32> -> vector<128x1024xf32>
    %c0_17 = arith.constant 0 : index
    %c0_18 = arith.constant 0 : index
    %27 = vector.load %arg8[%c0_17, %c0_18] : memref<128x128xbf16, #tpu.memory_space<vmem>>, vector<128x128xbf16>
    %28 = arith.truncf %26 : vector<128x1024xf32> to vector<128x1024xbf16>
    %cst_19 = arith.constant dense<0.000000e+00> : vector<128x1024xf32>
    %29 = tpu.matmul %27, %28, %cst_19 {dimension_numbers = #tpu.dot_dimension_numbers<[1], [0], [0], [1], [0, 0, 1, 1], [], []>} : vector<128x128xbf16>, vector<128x1024xbf16>, vector<128x1024xf32> -> vector<128x1024xf32>
    %c0_20 = arith.constant 0 : index
    %c0_21 = arith.constant 0 : index
    %30 = vector.load %arg9[%c0_20, %c0_21] : memref<128x1xf32, #tpu.memory_space<vmem>>, vector<128x1xf32>
    %31 = vector.broadcast %30 : vector<128x1xf32> to vector<128x1024xf32>
    %32 = arith.mulf %29, %31 : vector<128x1024xf32>
    %33 = arith.addf %1, %32 : vector<128x1024xf32>
    %c0_22 = arith.constant 0 : index
    %c0_23 = arith.constant 0 : index
    %34 = vector.load %arg10[%c0_22, %c0_23] : memref<128x1xf32, #tpu.memory_space<vmem>>, vector<128x1xf32>
    %35 = vector.broadcast %34 : vector<128x1xf32> to vector<128x1024xf32>
    %36 = arith.addf %33, %35 : vector<128x1024xf32>
    %c0_24 = arith.constant 0 : index
    %c0_25 = arith.constant 0 : index
    %c0_26 = arith.constant 0 : index
    %37 = vector.load %arg2[%c0_24, %c0_25, %c0_26] : memref<1x8x1024xf32, #tpu.memory_space<vmem>>, vector<1x8x1024xf32>
    %38 = vector.shape_cast %37 : vector<1x8x1024xf32> to vector<8x1024xf32>
    %cst_27 = arith.constant dense<0.000000e+00> : vector<8x128xf32>
    %39 = tpu.matmul %38, %36, %cst_27 {dimension_numbers = #tpu.dot_dimension_numbers<[1], [1], [0], [0], [0, 0, 1, 0], [], []>} : vector<8x1024xf32>, vector<128x1024xf32>, vector<8x128xf32> -> vector<8x128xf32>
    %c0_28 = arith.constant 0 : index
    %c0_29 = arith.constant 0 : index
    %c0_30 = arith.constant 0 : index
    %40 = vector.load %arg11[%c0_28, %c0_29, %c0_30] : memref<1x8x128xf32, #tpu.memory_space<vmem>>, vector<1x8x128xf32>
    %41 = vector.shape_cast %40 : vector<1x8x128xf32> to vector<8x128xf32>
    %42 = vector.shape_cast %39 : vector<8x128xf32> to vector<1x8x128xf32>
    tpu.vector_store %arg11[%c0_28, %c0_29, %c0_30], %42 {strides = array<i32>} : memref<1x8x128xf32, #tpu.memory_space<vmem>>, vector<1x8x128xf32>,
    return
  }
  func.func @transform_0(%arg0: i32) -> (i32, i32, i32) {
    %c0_i32 = arith.constant 0 : i32
    %c0_i32_0 = arith.constant 0 : i32
    %c0_i32_1 = arith.constant 0 : i32
    return %arg0, %c0_i32, %c0_i32_0 : i32, i32, i32
  }
  func.func @transform_1(%arg0: i32) -> (i32, i32, i32) {
    %c0_i32 = arith.constant 0 : i32
    %c0_i32_0 = arith.constant 0 : i32
    %c0_i32_1 = arith.constant 0 : i32
    return %arg0, %c0_i32, %c0_i32_0 : i32, i32, i32
  }
  func.func @transform_2(%arg0: i32) -> (i32, i32) {
    %c0_i32 = arith.constant 0 : i32
    %c0_i32_0 = arith.constant 0 : i32
    %c0_i32_1 = arith.constant 0 : i32
    return %c0_i32, %c0_i32_0 : i32, i32
  }
  func.func @transform_3(%arg0: i32) -> (i32, i32) {
    %c0_i32 = arith.constant 0 : i32
    %c0_i32_0 = arith.constant 0 : i32
    %c0_i32_1 = arith.constant 0 : i32
    return %c0_i32, %c0_i32_0 : i32, i32
  }
  func.func @transform_4(%arg0: i32) -> (i32, i32) {
    %c0_i32 = arith.constant 0 : i32
    %c0_i32_0 = arith.constant 0 : i32
    %c0_i32_1 = arith.constant 0 : i32
    return %c0_i32, %c0_i32_0 : i32, i32
  }
  func.func @transform_5(%arg0: i32) -> (i32, i32) {
    %c0_i32 = arith.constant 0 : i32
    %c0_i32_0 = arith.constant 0 : i32
    %c0_i32_1 = arith.constant 0 : i32
    return %c0_i32, %c0_i32_0 : i32, i32
  }
  func.func @transform_6(%arg0: i32) -> (i32, i32) {
    %c0_i32 = arith.constant 0 : i32
    %c0_i32_0 = arith.constant 0 : i32
    %c0_i32_1 = arith.constant 0 : i32
    return %c0_i32, %c0_i32_0 : i32, i32
  }
  func.func @transform_7(%arg0: i32) -> (i32, i32) {
    %c0_i32 = arith.constant 0 : i32
    %c0_i32_0 = arith.constant 0 : i32
    %c0_i32_1 = arith.constant 0 : i32
    return %c0_i32, %c0_i32_0 : i32, i32
  }
  func.func @transform_8(%arg0: i32) -> (i32, i32) {
    %c0_i32 = arith.constant 0 : i32
    %c0_i32_0 = arith.constant 0 : i32
    %c0_i32_1 = arith.constant 0 : i32
    return %c0_i32, %c0_i32_0 : i32, i32
  }
  func.func @transform_9(%arg0: i32) -> (i32, i32) {
    %c0_i32 = arith.constant 0 : i32
    %c0_i32_0 = arith.constant 0 : i32
    %c0_i32_1 = arith.constant 0 : i32
    return %c0_i32, %c0_i32_0 : i32, i32
  }
  func.func @transform_10(%arg0: i32) -> (i32, i32, i32) {
    %c0_i32 = arith.constant 0 : i32
    %c0_i32_0 = arith.constant 0 : i32
    %c0_i32_1 = arith.constant 0 : i32
    return %arg0, %c0_i32, %c0_i32_0 : i32, i32, i32
  }
}

module attributes {stable_mosaic.version = 11 : i64} {
  func.func @_glore_pool_kernel(%arg0: i32, %arg1: memref<1x256x256xf32, #tpu.memory_space<vmem>>, %arg2: memref<1x8x256xf32, #tpu.memory_space<vmem>>, %arg3: memref<256x256xbf16, #tpu.memory_space<vmem>>, %arg4: memref<256x1xf32, #tpu.memory_space<vmem>>, %arg5: memref<128x128xbf16, #tpu.memory_space<vmem>>, %arg6: memref<1x128xf32, #tpu.memory_space<vmem>>, %arg7: memref<128x128xbf16, #tpu.memory_space<vmem>>, %arg8: memref<256x128xbf16, #tpu.memory_space<vmem>>, %arg9: memref<256x1xf32, #tpu.memory_space<vmem>>, %arg10: memref<256x1xf32, #tpu.memory_space<vmem>>, %arg11: memref<1x8x256xf32, #tpu.memory_space<vmem>>) attributes {dimension_semantics = [#tpu.dimension_semantics<parallel>], iteration_bounds = array<i64: 2>, scalar_prefetch = 0 : i64, scratch_operands = 0 : i64, tpu.core_type = #tpu.core_type<tc>, window_params = [{transform_indices = @transform_0, window_bounds = array<i64: 1, 256, 256>}, {transform_indices = @transform_1, window_bounds = array<i64: 1, 8, 256>}, {pipeline_mode = #tpu.pipeline_mode<synchronous>, transform_indices = @transform_2, window_bounds = array<i64: 256, 256>}, {pipeline_mode = #tpu.pipeline_mode<synchronous>, transform_indices = @transform_3, window_bounds = array<i64: 256, 1>}, {pipeline_mode = #tpu.pipeline_mode<synchronous>, transform_indices = @transform_4, window_bounds = array<i64: 128, 128>}, {pipeline_mode = #tpu.pipeline_mode<synchronous>, transform_indices = @transform_5, window_bounds = array<i64: 1, 128>}, {pipeline_mode = #tpu.pipeline_mode<synchronous>, transform_indices = @transform_6, window_bounds = array<i64: 128, 128>}, {pipeline_mode = #tpu.pipeline_mode<synchronous>, transform_indices = @transform_7, window_bounds = array<i64: 256, 128>}, {pipeline_mode = #tpu.pipeline_mode<synchronous>, transform_indices = @transform_8, window_bounds = array<i64: 256, 1>}, {pipeline_mode = #tpu.pipeline_mode<synchronous>, transform_indices = @transform_9, window_bounds = array<i64: 256, 1>}, {transform_indices = @transform_10, window_bounds = array<i64: 1, 8, 256>}]} {
    %c0 = arith.constant 0 : index
    %c0_0 = arith.constant 0 : index
    %c0_1 = arith.constant 0 : index
    %0 = vector.load %arg1[%c0, %c0_0, %c0_1] : memref<1x256x256xf32, #tpu.memory_space<vmem>>, vector<1x256x256xf32>
    %1 = vector.shape_cast %0 : vector<1x256x256xf32> to vector<256x256xf32>
    %2 = arith.truncf %1 : vector<256x256xf32> to vector<256x256xbf16>
    %c0_2 = arith.constant 0 : index
    %c0_3 = arith.constant 0 : index
    %3 = vector.load %arg3[%c0_2, %c0_3] : memref<256x256xbf16, #tpu.memory_space<vmem>>, vector<256x256xbf16>
    %cst = arith.constant dense<0.000000e+00> : vector<256x256xf32>
    %4 = tpu.matmul %3, %2, %cst {dimension_numbers = #tpu.dot_dimension_numbers<[1], [0], [0], [1], [0, 0, 1, 1], [], []>} : vector<256x256xbf16>, vector<256x256xbf16>, vector<256x256xf32> -> vector<256x256xf32>
    %c0_4 = arith.constant 0 : index
    %c0_5 = arith.constant 0 : index
    %5 = vector.load %arg4[%c0_4, %c0_5] : memref<256x1xf32, #tpu.memory_space<vmem>>, vector<256x1xf32>
    %6 = vector.broadcast %5 : vector<256x1xf32> to vector<256x256xf32>
    %7 = arith.addf %4, %6 : vector<256x256xf32>
    %8 = vector.extract_strided_slice %7 {offsets = [0, 0], sizes = [128, 256], strides = [1, 1]} : vector<256x256xf32> to vector<128x256xf32>
    %9 = vector.extract_strided_slice %7 {offsets = [128, 0], sizes = [128, 256], strides = [1, 1]} : vector<256x256xf32> to vector<128x256xf32>
    %10 = arith.truncf %8 : vector<128x256xf32> to vector<128x256xbf16>
    %11 = arith.truncf %9 : vector<128x256xf32> to vector<128x256xbf16>
    %cst_6 = arith.constant dense<0.000000e+00> : vector<128x128xf32>
    %12 = tpu.matmul %10, %11, %cst_6 {dimension_numbers = #tpu.dot_dimension_numbers<[1], [1], [0], [0], [0, 0, 1, 0], [], []>} : vector<128x256xbf16>, vector<128x256xbf16>, vector<128x128xf32> -> vector<128x128xf32>
    %13 = arith.truncf %12 : vector<128x128xf32> to vector<128x128xbf16>
    %c0_7 = arith.constant 0 : index
    %c0_8 = arith.constant 0 : index
    %14 = vector.load %arg5[%c0_7, %c0_8] : memref<128x128xbf16, #tpu.memory_space<vmem>>, vector<128x128xbf16>
    %cst_9 = arith.constant dense<0.000000e+00> : vector<128x128xf32>
    %15 = tpu.matmul %13, %14, %cst_9 {dimension_numbers = #tpu.dot_dimension_numbers<[1], [0], [0], [1], [0, 0, 1, 1], [], []>} : vector<128x128xbf16>, vector<128x128xbf16>, vector<128x128xf32> -> vector<128x128xf32>
    %c0_10 = arith.constant 0 : index
    %c0_11 = arith.constant 0 : index
    %16 = vector.load %arg6[%c0_10, %c0_11] : memref<1x128xf32, #tpu.memory_space<vmem>>, vector<1x128xf32>
    %17 = vector.broadcast %16 : vector<1x128xf32> to vector<128x128xf32>
    %18 = arith.addf %15, %17 : vector<128x128xf32>
    %19 = arith.addf %18, %12 : vector<128x128xf32>
    %cst_12 = arith.constant 0.000000e+00 : f32
    %20 = vector.broadcast %cst_12 : f32 to vector<128x128xf32>
    %21 = arith.maximumf %19, %20 : vector<128x128xf32>
    %c0_13 = arith.constant 0 : index
    %c0_14 = arith.constant 0 : index
    %22 = vector.load %arg7[%c0_13, %c0_14] : memref<128x128xbf16, #tpu.memory_space<vmem>>, vector<128x128xbf16>
    %23 = arith.truncf %21 : vector<128x128xf32> to vector<128x128xbf16>
    %cst_15 = arith.constant dense<0.000000e+00> : vector<128x128xf32>
    %24 = tpu.matmul %22, %23, %cst_15 {dimension_numbers = #tpu.dot_dimension_numbers<[1], [0], [0], [1], [0, 0, 1, 1], [], []>} : vector<128x128xbf16>, vector<128x128xbf16>, vector<128x128xf32> -> vector<128x128xf32>
    %25 = arith.truncf %24 : vector<128x128xf32> to vector<128x128xbf16>
    %cst_16 = arith.constant dense<0.000000e+00> : vector<128x256xf32>
    %26 = tpu.matmul %25, %11, %cst_16 {dimension_numbers = #tpu.dot_dimension_numbers<[1], [0], [0], [1], [0, 0, 1, 1], [], []>} : vector<128x128xbf16>, vector<128x256xbf16>, vector<128x256xf32> -> vector<128x256xf32>
    %c0_17 = arith.constant 0 : index
    %c0_18 = arith.constant 0 : index
    %27 = vector.load %arg8[%c0_17, %c0_18] : memref<256x128xbf16, #tpu.memory_space<vmem>>, vector<256x128xbf16>
    %28 = arith.truncf %26 : vector<128x256xf32> to vector<128x256xbf16>
    %cst_19 = arith.constant dense<0.000000e+00> : vector<256x256xf32>
    %29 = tpu.matmul %27, %28, %cst_19 {dimension_numbers = #tpu.dot_dimension_numbers<[1], [0], [0], [1], [0, 0, 1, 1], [], []>} : vector<256x128xbf16>, vector<128x256xbf16>, vector<256x256xf32> -> vector<256x256xf32>
    %c0_20 = arith.constant 0 : index
    %c0_21 = arith.constant 0 : index
    %30 = vector.load %arg9[%c0_20, %c0_21] : memref<256x1xf32, #tpu.memory_space<vmem>>, vector<256x1xf32>
    %31 = vector.broadcast %30 : vector<256x1xf32> to vector<256x256xf32>
    %32 = arith.mulf %29, %31 : vector<256x256xf32>
    %33 = arith.addf %1, %32 : vector<256x256xf32>
    %c0_22 = arith.constant 0 : index
    %c0_23 = arith.constant 0 : index
    %34 = vector.load %arg10[%c0_22, %c0_23] : memref<256x1xf32, #tpu.memory_space<vmem>>, vector<256x1xf32>
    %35 = vector.broadcast %34 : vector<256x1xf32> to vector<256x256xf32>
    %36 = arith.addf %33, %35 : vector<256x256xf32>
    %c0_24 = arith.constant 0 : index
    %c0_25 = arith.constant 0 : index
    %c0_26 = arith.constant 0 : index
    %37 = vector.load %arg2[%c0_24, %c0_25, %c0_26] : memref<1x8x256xf32, #tpu.memory_space<vmem>>, vector<1x8x256xf32>
    %38 = vector.shape_cast %37 : vector<1x8x256xf32> to vector<8x256xf32>
    %cst_27 = arith.constant dense<0.000000e+00> : vector<8x256xf32>
    %39 = tpu.matmul %38, %36, %cst_27 {dimension_numbers = #tpu.dot_dimension_numbers<[1], [1], [0], [0], [0, 0, 1, 0], [], []>} : vector<8x256xf32>, vector<256x256xf32>, vector<8x256xf32> -> vector<8x256xf32>
    %c0_28 = arith.constant 0 : index
    %c0_29 = arith.constant 0 : index
    %c0_30 = arith.constant 0 : index
    %40 = vector.load %arg11[%c0_28, %c0_29, %c0_30] : memref<1x8x256xf32, #tpu.memory_space<vmem>>, vector<1x8x256xf32>
    %41 = vector.shape_cast %40 : vector<1x8x256xf32> to vector<8x256xf32>
    %42 = vector.shape_cast %39 : vector<8x256xf32> to vector<1x8x256xf32>
    tpu.vector_store %arg11[%c0_28, %c0_29, %c0_30], %42 {strides = array<i32>} : memref<1x8x256xf32, #tpu.memory_space<vmem>>, vector<1x8x256xf32>,
    return
  }
  func.func @transform_0(%arg0: i32) -> (i32, i32, i32) {
    %c0_i32 = arith.constant 0 : i32
    %c0_i32_0 = arith.constant 0 : i32
    %c0_i32_1 = arith.constant 0 : i32
    return %arg0, %c0_i32, %c0_i32_0 : i32, i32, i32
  }
  func.func @transform_1(%arg0: i32) -> (i32, i32, i32) {
    %c0_i32 = arith.constant 0 : i32
    %c0_i32_0 = arith.constant 0 : i32
    %c0_i32_1 = arith.constant 0 : i32
    return %arg0, %c0_i32, %c0_i32_0 : i32, i32, i32
  }
  func.func @transform_2(%arg0: i32) -> (i32, i32) {
    %c0_i32 = arith.constant 0 : i32
    %c0_i32_0 = arith.constant 0 : i32
    %c0_i32_1 = arith.constant 0 : i32
    return %c0_i32, %c0_i32_0 : i32, i32
  }
  func.func @transform_3(%arg0: i32) -> (i32, i32) {
    %c0_i32 = arith.constant 0 : i32
    %c0_i32_0 = arith.constant 0 : i32
    %c0_i32_1 = arith.constant 0 : i32
    return %c0_i32, %c0_i32_0 : i32, i32
  }
  func.func @transform_4(%arg0: i32) -> (i32, i32) {
    %c0_i32 = arith.constant 0 : i32
    %c0_i32_0 = arith.constant 0 : i32
    %c0_i32_1 = arith.constant 0 : i32
    return %c0_i32, %c0_i32_0 : i32, i32
  }
  func.func @transform_5(%arg0: i32) -> (i32, i32) {
    %c0_i32 = arith.constant 0 : i32
    %c0_i32_0 = arith.constant 0 : i32
    %c0_i32_1 = arith.constant 0 : i32
    return %c0_i32, %c0_i32_0 : i32, i32
  }
  func.func @transform_6(%arg0: i32) -> (i32, i32) {
    %c0_i32 = arith.constant 0 : i32
    %c0_i32_0 = arith.constant 0 : i32
    %c0_i32_1 = arith.constant 0 : i32
    return %c0_i32, %c0_i32_0 : i32, i32
  }
  func.func @transform_7(%arg0: i32) -> (i32, i32) {
    %c0_i32 = arith.constant 0 : i32
    %c0_i32_0 = arith.constant 0 : i32
    %c0_i32_1 = arith.constant 0 : i32
    return %c0_i32, %c0_i32_0 : i32, i32
  }
  func.func @transform_8(%arg0: i32) -> (i32, i32) {
    %c0_i32 = arith.constant 0 : i32
    %c0_i32_0 = arith.constant 0 : i32
    %c0_i32_1 = arith.constant 0 : i32
    return %c0_i32, %c0_i32_0 : i32, i32
  }
  func.func @transform_9(%arg0: i32) -> (i32, i32) {
    %c0_i32 = arith.constant 0 : i32
    %c0_i32_0 = arith.constant 0 : i32
    %c0_i32_1 = arith.constant 0 : i32
    return %c0_i32, %c0_i32_0 : i32, i32
  }
  func.func @transform_10(%arg0: i32) -> (i32, i32, i32) {
    %c0_i32 = arith.constant 0 : i32
    %c0_i32_0 = arith.constant 0 : i32
    %c0_i32_1 = arith.constant 0 : i32
    return %arg0, %c0_i32, %c0_i32_0 : i32, i32, i32
  }
}

module attributes {stable_mosaic.version = 11 : i64} {
  func.func @_glore_pool_kernel(%arg0: i32, %arg1: memref<1x512x64xf32, #tpu.memory_space<vmem>>, %arg2: memref<1x8x64xf32, #tpu.memory_space<vmem>>, %arg3: memref<256x512xbf16, #tpu.memory_space<vmem>>, %arg4: memref<256x1xf32, #tpu.memory_space<vmem>>, %arg5: memref<128x128xbf16, #tpu.memory_space<vmem>>, %arg6: memref<1x128xf32, #tpu.memory_space<vmem>>, %arg7: memref<128x128xbf16, #tpu.memory_space<vmem>>, %arg8: memref<512x128xbf16, #tpu.memory_space<vmem>>, %arg9: memref<512x1xf32, #tpu.memory_space<vmem>>, %arg10: memref<512x1xf32, #tpu.memory_space<vmem>>, %arg11: memref<1x8x512xf32, #tpu.memory_space<vmem>>) attributes {dimension_semantics = [#tpu.dimension_semantics<parallel>], iteration_bounds = array<i64: 2>, scalar_prefetch = 0 : i64, scratch_operands = 0 : i64, tpu.core_type = #tpu.core_type<tc>, window_params = [{transform_indices = @transform_0, window_bounds = array<i64: 1, 512, 64>}, {transform_indices = @transform_1, window_bounds = array<i64: 1, 8, 64>}, {pipeline_mode = #tpu.pipeline_mode<synchronous>, transform_indices = @transform_2, window_bounds = array<i64: 256, 512>}, {pipeline_mode = #tpu.pipeline_mode<synchronous>, transform_indices = @transform_3, window_bounds = array<i64: 256, 1>}, {pipeline_mode = #tpu.pipeline_mode<synchronous>, transform_indices = @transform_4, window_bounds = array<i64: 128, 128>}, {pipeline_mode = #tpu.pipeline_mode<synchronous>, transform_indices = @transform_5, window_bounds = array<i64: 1, 128>}, {pipeline_mode = #tpu.pipeline_mode<synchronous>, transform_indices = @transform_6, window_bounds = array<i64: 128, 128>}, {pipeline_mode = #tpu.pipeline_mode<synchronous>, transform_indices = @transform_7, window_bounds = array<i64: 512, 128>}, {pipeline_mode = #tpu.pipeline_mode<synchronous>, transform_indices = @transform_8, window_bounds = array<i64: 512, 1>}, {pipeline_mode = #tpu.pipeline_mode<synchronous>, transform_indices = @transform_9, window_bounds = array<i64: 512, 1>}, {transform_indices = @transform_10, window_bounds = array<i64: 1, 8, 512>}]} {
    %c0 = arith.constant 0 : index
    %c0_0 = arith.constant 0 : index
    %c0_1 = arith.constant 0 : index
    %0 = vector.load %arg1[%c0, %c0_0, %c0_1] : memref<1x512x64xf32, #tpu.memory_space<vmem>>, vector<1x512x64xf32>
    %1 = vector.shape_cast %0 : vector<1x512x64xf32> to vector<512x64xf32>
    %2 = arith.truncf %1 : vector<512x64xf32> to vector<512x64xbf16>
    %c0_2 = arith.constant 0 : index
    %c0_3 = arith.constant 0 : index
    %3 = vector.load %arg3[%c0_2, %c0_3] : memref<256x512xbf16, #tpu.memory_space<vmem>>, vector<256x512xbf16>
    %cst = arith.constant dense<0.000000e+00> : vector<256x64xf32>
    %4 = tpu.matmul %3, %2, %cst {dimension_numbers = #tpu.dot_dimension_numbers<[1], [0], [0], [1], [0, 0, 1, 1], [], []>} : vector<256x512xbf16>, vector<512x64xbf16>, vector<256x64xf32> -> vector<256x64xf32>
    %c0_4 = arith.constant 0 : index
    %c0_5 = arith.constant 0 : index
    %5 = vector.load %arg4[%c0_4, %c0_5] : memref<256x1xf32, #tpu.memory_space<vmem>>, vector<256x1xf32>
    %6 = vector.broadcast %5 : vector<256x1xf32> to vector<256x64xf32>
    %7 = arith.addf %4, %6 : vector<256x64xf32>
    %8 = vector.extract_strided_slice %7 {offsets = [0, 0], sizes = [128, 64], strides = [1, 1]} : vector<256x64xf32> to vector<128x64xf32>
    %9 = vector.extract_strided_slice %7 {offsets = [128, 0], sizes = [128, 64], strides = [1, 1]} : vector<256x64xf32> to vector<128x64xf32>
    %10 = arith.truncf %8 : vector<128x64xf32> to vector<128x64xbf16>
    %11 = arith.truncf %9 : vector<128x64xf32> to vector<128x64xbf16>
    %cst_6 = arith.constant dense<0.000000e+00> : vector<128x128xf32>
    %12 = tpu.matmul %10, %11, %cst_6 {dimension_numbers = #tpu.dot_dimension_numbers<[1], [1], [0], [0], [0, 0, 1, 0], [], []>} : vector<128x64xbf16>, vector<128x64xbf16>, vector<128x128xf32> -> vector<128x128xf32>
    %13 = arith.truncf %12 : vector<128x128xf32> to vector<128x128xbf16>
    %c0_7 = arith.constant 0 : index
    %c0_8 = arith.constant 0 : index
    %14 = vector.load %arg5[%c0_7, %c0_8] : memref<128x128xbf16, #tpu.memory_space<vmem>>, vector<128x128xbf16>
    %cst_9 = arith.constant dense<0.000000e+00> : vector<128x128xf32>
    %15 = tpu.matmul %13, %14, %cst_9 {dimension_numbers = #tpu.dot_dimension_numbers<[1], [0], [0], [1], [0, 0, 1, 1], [], []>} : vector<128x128xbf16>, vector<128x128xbf16>, vector<128x128xf32> -> vector<128x128xf32>
    %c0_10 = arith.constant 0 : index
    %c0_11 = arith.constant 0 : index
    %16 = vector.load %arg6[%c0_10, %c0_11] : memref<1x128xf32, #tpu.memory_space<vmem>>, vector<1x128xf32>
    %17 = vector.broadcast %16 : vector<1x128xf32> to vector<128x128xf32>
    %18 = arith.addf %15, %17 : vector<128x128xf32>
    %19 = arith.addf %18, %12 : vector<128x128xf32>
    %cst_12 = arith.constant 0.000000e+00 : f32
    %20 = vector.broadcast %cst_12 : f32 to vector<128x128xf32>
    %21 = arith.maximumf %19, %20 : vector<128x128xf32>
    %c0_13 = arith.constant 0 : index
    %c0_14 = arith.constant 0 : index
    %22 = vector.load %arg7[%c0_13, %c0_14] : memref<128x128xbf16, #tpu.memory_space<vmem>>, vector<128x128xbf16>
    %23 = arith.truncf %21 : vector<128x128xf32> to vector<128x128xbf16>
    %cst_15 = arith.constant dense<0.000000e+00> : vector<128x128xf32>
    %24 = tpu.matmul %22, %23, %cst_15 {dimension_numbers = #tpu.dot_dimension_numbers<[1], [0], [0], [1], [0, 0, 1, 1], [], []>} : vector<128x128xbf16>, vector<128x128xbf16>, vector<128x128xf32> -> vector<128x128xf32>
    %25 = arith.truncf %24 : vector<128x128xf32> to vector<128x128xbf16>
    %cst_16 = arith.constant dense<0.000000e+00> : vector<128x64xf32>
    %26 = tpu.matmul %25, %11, %cst_16 {dimension_numbers = #tpu.dot_dimension_numbers<[1], [0], [0], [1], [0, 0, 1, 1], [], []>} : vector<128x128xbf16>, vector<128x64xbf16>, vector<128x64xf32> -> vector<128x64xf32>
    %c0_17 = arith.constant 0 : index
    %c0_18 = arith.constant 0 : index
    %27 = vector.load %arg8[%c0_17, %c0_18] : memref<512x128xbf16, #tpu.memory_space<vmem>>, vector<512x128xbf16>
    %28 = arith.truncf %26 : vector<128x64xf32> to vector<128x64xbf16>
    %cst_19 = arith.constant dense<0.000000e+00> : vector<512x64xf32>
    %29 = tpu.matmul %27, %28, %cst_19 {dimension_numbers = #tpu.dot_dimension_numbers<[1], [0], [0], [1], [0, 0, 1, 1], [], []>} : vector<512x128xbf16>, vector<128x64xbf16>, vector<512x64xf32> -> vector<512x64xf32>
    %c0_20 = arith.constant 0 : index
    %c0_21 = arith.constant 0 : index
    %30 = vector.load %arg9[%c0_20, %c0_21] : memref<512x1xf32, #tpu.memory_space<vmem>>, vector<512x1xf32>
    %31 = vector.broadcast %30 : vector<512x1xf32> to vector<512x64xf32>
    %32 = arith.mulf %29, %31 : vector<512x64xf32>
    %33 = arith.addf %1, %32 : vector<512x64xf32>
    %c0_22 = arith.constant 0 : index
    %c0_23 = arith.constant 0 : index
    %34 = vector.load %arg10[%c0_22, %c0_23] : memref<512x1xf32, #tpu.memory_space<vmem>>, vector<512x1xf32>
    %35 = vector.broadcast %34 : vector<512x1xf32> to vector<512x64xf32>
    %36 = arith.addf %33, %35 : vector<512x64xf32>
    %c0_24 = arith.constant 0 : index
    %c0_25 = arith.constant 0 : index
    %c0_26 = arith.constant 0 : index
    %37 = vector.load %arg2[%c0_24, %c0_25, %c0_26] : memref<1x8x64xf32, #tpu.memory_space<vmem>>, vector<1x8x64xf32>
    %38 = vector.shape_cast %37 : vector<1x8x64xf32> to vector<8x64xf32>
    %cst_27 = arith.constant dense<0.000000e+00> : vector<8x512xf32>
    %39 = tpu.matmul %38, %36, %cst_27 {dimension_numbers = #tpu.dot_dimension_numbers<[1], [1], [0], [0], [0, 0, 1, 0], [], []>} : vector<8x64xf32>, vector<512x64xf32>, vector<8x512xf32> -> vector<8x512xf32>
    %c0_28 = arith.constant 0 : index
    %c0_29 = arith.constant 0 : index
    %c0_30 = arith.constant 0 : index
    %40 = vector.load %arg11[%c0_28, %c0_29, %c0_30] : memref<1x8x512xf32, #tpu.memory_space<vmem>>, vector<1x8x512xf32>
    %41 = vector.shape_cast %40 : vector<1x8x512xf32> to vector<8x512xf32>
    %42 = vector.shape_cast %39 : vector<8x512xf32> to vector<1x8x512xf32>
    tpu.vector_store %arg11[%c0_28, %c0_29, %c0_30], %42 {strides = array<i32>} : memref<1x8x512xf32, #tpu.memory_space<vmem>>, vector<1x8x512xf32>,
    return
  }
  func.func @transform_0(%arg0: i32) -> (i32, i32, i32) {
    %c0_i32 = arith.constant 0 : i32
    %c0_i32_0 = arith.constant 0 : i32
    %c0_i32_1 = arith.constant 0 : i32
    return %arg0, %c0_i32, %c0_i32_0 : i32, i32, i32
  }
  func.func @transform_1(%arg0: i32) -> (i32, i32, i32) {
    %c0_i32 = arith.constant 0 : i32
    %c0_i32_0 = arith.constant 0 : i32
    %c0_i32_1 = arith.constant 0 : i32
    return %arg0, %c0_i32, %c0_i32_0 : i32, i32, i32
  }
  func.func @transform_2(%arg0: i32) -> (i32, i32) {
    %c0_i32 = arith.constant 0 : i32
    %c0_i32_0 = arith.constant 0 : i32
    %c0_i32_1 = arith.constant 0 : i32
    return %c0_i32, %c0_i32_0 : i32, i32
  }
  func.func @transform_3(%arg0: i32) -> (i32, i32) {
    %c0_i32 = arith.constant 0 : i32
    %c0_i32_0 = arith.constant 0 : i32
    %c0_i32_1 = arith.constant 0 : i32
    return %c0_i32, %c0_i32_0 : i32, i32
  }
  func.func @transform_4(%arg0: i32) -> (i32, i32) {
    %c0_i32 = arith.constant 0 : i32
    %c0_i32_0 = arith.constant 0 : i32
    %c0_i32_1 = arith.constant 0 : i32
    return %c0_i32, %c0_i32_0 : i32, i32
  }
  func.func @transform_5(%arg0: i32) -> (i32, i32) {
    %c0_i32 = arith.constant 0 : i32
    %c0_i32_0 = arith.constant 0 : i32
    %c0_i32_1 = arith.constant 0 : i32
    return %c0_i32, %c0_i32_0 : i32, i32
  }
  func.func @transform_6(%arg0: i32) -> (i32, i32) {
    %c0_i32 = arith.constant 0 : i32
    %c0_i32_0 = arith.constant 0 : i32
    %c0_i32_1 = arith.constant 0 : i32
    return %c0_i32, %c0_i32_0 : i32, i32
  }
  func.func @transform_7(%arg0: i32) -> (i32, i32) {
    %c0_i32 = arith.constant 0 : i32
    %c0_i32_0 = arith.constant 0 : i32
    %c0_i32_1 = arith.constant 0 : i32
    return %c0_i32, %c0_i32_0 : i32, i32
  }
  func.func @transform_8(%arg0: i32) -> (i32, i32) {
    %c0_i32 = arith.constant 0 : i32
    %c0_i32_0 = arith.constant 0 : i32
    %c0_i32_1 = arith.constant 0 : i32
    return %c0_i32, %c0_i32_0 : i32, i32
  }
  func.func @transform_9(%arg0: i32) -> (i32, i32) {
    %c0_i32 = arith.constant 0 : i32
    %c0_i32_0 = arith.constant 0 : i32
    %c0_i32_1 = arith.constant 0 : i32
    return %c0_i32, %c0_i32_0 : i32, i32
  }
  func.func @transform_10(%arg0: i32) -> (i32, i32, i32) {
    %c0_i32 = arith.constant 0 : i32
    %c0_i32_0 = arith.constant 0 : i32
    %c0_i32_1 = arith.constant 0 : i32
    return %arg0, %c0_i32, %c0_i32_0 : i32, i32, i32
  }
}

</mosaic_0001>

<bundles_post_ra>
// kernel: rel_reasoning_forward.3
= control target key start
LH: loop header
LB: loop body
LE: loop exit
PB: predicated region body
PF: predicated region fallthrough
CT: control target
= control target key end

     0   :  { %s5174_s13 = smov 0   ;;  %s7985_s0 = inlined_call_operand.vmem [shape: f32[2,128,1024], index: 0, kind: input, shape index: {}]   ;;  %s7986_s1 = inlined_call_operand.vmem [shape: f32[2,8,1024], index: 1, kind: input, shape index: {}]   ;;  %s7987_s2 = inlined_call_operand.vmem [shape: bf16[256,128], index: 2, kind: input, shape index: {}]   ;;  %s7988_s3 = inlined_call_operand.vmem [shape: f32[256,1], index: 3, kind: input, shape index: {}]   ;;  %s7989_s4 = inlined_call_operand.vmem [shape: bf16[128,128], index: 4, kind: input, shape index: {}]   ;;  %s7990_s5 = inlined_call_operand.vmem [shape: f32[1,128], index: 5, kind: input, shape index: {}]   ;;  %s7991_s6 = inlined_call_operand.vmem [shape: bf16[128,128], index: 6, kind: input, shape index: {}]   ;;  %s7992_s7 = inlined_call_operand.vmem [shape: bf16[128,128], index: 7, kind: input, shape index: {}]   ;;  %s7993_s8 = inlined_call_operand.vmem [shape: f32[128,1], index: 8, kind: input, shape index: {}]   ;;  %s7994_s9 = inlined_call_operand.vmem [shape: f32[128,1], index: 9, kind: input, shape index: {}]   ;;  %s7995_s10 = inlined_call_operand.vmem [shape: f32[2,8,128], index: 10, kind: output, shape index: {}]  }
   0x1 LB: > { %s4526_s14 = sadd.s32 4294967295, %s5116_s13   ;;  %p4530_p0 = scmp.ge.s32.totalorder %s5116_s13, 1  ;;  %s5116_s13 = sphi %s5174_s13, %s20_s13  }
   0x2   : > { %p322_p1 = scmp.lt.s32.totalorder %s5116_s13, 3 }
   0x4   : > { %p323_p2 = pnand %p4530_p0, %p322_p1 }
   0x6   : > { %326 = sbr.rel (%p323_p2) target bundleno = 2347 (0x92b), region = 60 }
   0xd   : > { %p364_p3 = scmp.lt.s32.totalorder %s4526_s14, 1  ;;  %v7996_v0 = vmov 0  }
   0xe   : > { %923 = vmatprep.mubr.bf16.mxu0 %v7996_v0  ;;  %1196 = vmatprep.mubr.bf16.mxu1 %v7996_v0 }
   0xf   : > { %s8442_s14 = smov (!%p364_p3, %s4526_s14), 1  ;;  %4932 = vset.pattern.permute.xlu0 %v7996_v0  ;;  %4933 = vset.pattern.permute.xlu1 %v7996_v0 }
  0x10   : > { %s4579_s15 = sshll.u32 %s8442_s14, 10  ;;  %s4580_s24 = sshll.u32 %s8442_s14, 6 }
  0x11   : > { %s5192_s18 = scalar_lea.vmem %s7985_s0, %s4579_s15  ;;  %s7395_s27 = scalar_lea.vmem %s7986_s1, %s4580_s24 }
  0x12   : > { %v380_v1 = vld [vmem:[%s5192_s18 + $0x8] sm:$0xff]  ;;  %v382_v3 = vld [vmem:[%s5192_s18 + $0x18] sm:$0xff]  ;;  %v379_v6 = vld [vmem:[%s5192_s18] sm:$0xff] }
  0x13   : > { %v388_v2 = vld [vmem:[%s5192_s18 + $0x48] sm:$0xff]  ;;  %v390_v5 = vld [vmem:[%s5192_s18 + $0x58] sm:$0xff]  ;;  %v387_v7 = vld [vmem:[%s5192_s18 + $0x40] sm:$0xff] }
  0x14   : > { %v508_v4 = vpack.c.bf16 %v388_v2, %v380_v1  ;;  %v5200_v8 = vpack.c.bf16 %v390_v5, %v382_v3  ;;  %v507_v9 = vpack.c.bf16 %v387_v7, %v379_v6  ;;  %v381_v10 = vld [vmem:[%s5192_s18 + $0x10] sm:$0xff]  ;;  %v396_v12 = vld [vmem:[%s5192_s18 + $0x88] sm:$0xff]  ;;  %v398_v15 = vld [vmem:[%s5192_s18 + $0x98] sm:$0xff] }
  0x15   : > { %v389_v11 = vld [vmem:[%s5192_s18 + $0x50] sm:$0xff]  ;;  %v404_v14 = vld [vmem:[%s5192_s18 + $0xc8] sm:$0xff]  ;;  %v406_v16 = vld [vmem:[%s5192_s18 + $0xd8] sm:$0xff] }
  0x16   : > { %891 = vmatprep.subr.bf16.mxu0 %v508_v4  ;;  %v5205_v13 = vpack.c.bf16 %v389_v11, %v381_v10  ;;  %4805 = vmatprep.subr.bf16.mxu1 %v5200_v8  ;;  %v516_v17 = vpack.c.bf16 %v404_v14, %v396_v12  ;;  %v5211_v18 = vpack.c.bf16 %v406_v16, %v398_v15  ;;  %v395_v19 = vld [vmem:[%s5192_s18 + $0x80] sm:$0xff]  ;;  %v397_v21 = vld [vmem:[%s5192_s18 + $0x90] sm:$0xff]  ;;  %v412_v24 = vld [vmem:[%s5192_s18 + $0x108] sm:$0xff] }
  0x17   : > { %892 = vmatpush1.bf16.msra.mxu0 %v507_v9  ;;  %v403_v20 = vld [vmem:[%s5192_s18 + $0xc0] sm:$0xff]  ;;  %v405_v23 = vld [vmem:[%s5192_s18 + $0xd0] sm:$0xff]  ;;  %v420_v25 = vld [vmem:[%s5192_s18 + $0x148] sm:$0xff] }
  0x18   : > { %4813 = vmatpush1.bf16.msra.mxu1 %v5205_v13  ;;  %v515_v22 = vpack.c.bf16 %v403_v20, %v395_v19  ;;  %893 = vmatprep.subr.bf16.mxu0 %v516_v17  ;;  %v5221_v26 = vpack.c.bf16 %v405_v23, %v397_v21  ;;  %v524_v27 = vpack.c.bf16 %v420_v25, %v412_v24  ;;  %v414_v28 = vld [vmem:[%s5192_s18 + $0x118] sm:$0xff]  ;;  %v411_v30 = vld [vmem:[%s5192_s18 + $0x100] sm:$0xff]  ;;  %v413_v33 = vld [vmem:[%s5192_s18 + $0x110] sm:$0xff] }
  0x19   : > { %4806 = vmatprep.subr.bf16.mxu1 %v5211_v18  ;;  %v422_v29 = vld [vmem:[%s5192_s18 + $0x158] sm:$0xff]  ;;  %v419_v32 = vld [vmem:[%s5192_s18 + $0x140] sm:$0xff]  ;;  %v421_v34 = vld [vmem:[%s5192_s18 + $0x150] sm:$0xff] }
  0x1a   : > { %v5226_v31 = vpack.c.bf16 %v422_v29, %v414_v28  ;;  %v523_v35 = vpack.c.bf16 %v419_v32, %v411_v30  ;;  %v428_v36 = vld [vmem:[%s5192_s18 + $0x188] sm:$0xff]  ;;  %v430_v38 = vld [vmem:[%s5192_s18 + $0x198] sm:$0xff]  ;;  %v5235_v39 = vpack.c.bf16 %v421_v34, %v413_v33  ;;  %v427_v42 = vld [vmem:[%s5192_s18 + $0x180] sm:$0xff] }
  0x1b   : > { %894 = vmatpush1.bf16.msra.mxu0 %v515_v22  ;;  %v436_v37 = vld [vmem:[%s5192_s18 + $0x1c8] sm:$0xff]  ;;  %v438_v41 = vld [vmem:[%s5192_s18 + $0x1d8] sm:$0xff]  ;;  %v435_v43 = vld [vmem:[%s5192_s18 + $0x1c0] sm:$0xff] }
  0x1c   : > { %4814 = vmatpush1.bf16.msra.mxu1 %v5221_v26  ;;  %895 = vmatprep.subr.bf16.mxu0 %v524_v27  ;;  %v532_v40 = vpack.c.bf16 %v436_v37, %v428_v36  ;;  %v5241_v44 = vpack.c.bf16 %v438_v41, %v430_v38  ;;  %v429_v45 = vld [vmem:[%s5192_s18 + $0x190] sm:$0xff]  ;;  %v444_v47 = vld [vmem:[%s5192_s18 + $0x208] sm:$0xff]  ;;  %v446_v49 = vld [vmem:[%s5192_s18 + $0x218] sm:$0xff]  ;;  %v531_v51 = vpack.c.bf16 %v435_v43, %v427_v42 }
  0x1d   : > { %4807 = vmatprep.subr.bf16.mxu1 %v5226_v31  ;;  %v437_v46 = vld [vmem:[%s5192_s18 + $0x1d0] sm:$0xff]  ;;  %v452_v48 = vld [vmem:[%s5192_s18 + $0x248] sm:$0xff]  ;;  %v454_v50 = vld [vmem:[%s5192_s18 + $0x258] sm:$0xff] }
  0x1e   : > { %v5250_v52 = vpack.c.bf16 %v437_v46, %v429_v45  ;;  %v540_v53 = vpack.c.bf16 %v452_v48, %v444_v47  ;;  %v443_v54 = vld [vmem:[%s5192_s18 + $0x200] sm:$0xff]  ;;  %v445_v56 = vld [vmem:[%s5192_s18 + $0x210] sm:$0xff]  ;;  %v5256_v57 = vpack.c.bf16 %v454_v50, %v446_v49  ;;  %v460_v59 = vld [vmem:[%s5192_s18 + $0x288] sm:$0xff] }
  0x1f   : > { %896 = vmatpush1.bf16.msra.mxu0 %v523_v35  ;;  %v451_v55 = vld [vmem:[%s5192_s18 + $0x240] sm:$0xff]  ;;  %v453_v58 = vld [vmem:[%s5192_s18 + $0x250] sm:$0xff]  ;;  %v468_v60 = vld [vmem:[%s5192_s18 + $0x2c8] sm:$0xff] }
  0x20   : > { %4815 = vmatpush1.bf16.msra.mxu1 %v5235_v39  ;;  %897 = vmatprep.subr.bf16.mxu0 %v532_v40  ;;  %v462_v61 = vld [vmem:[%s5192_s18 + $0x298] sm:$0xff]  ;;  %v539_v63 = vpack.c.bf16 %v451_v55, %v443_v54  ;;  %v459_v1 = vld [vmem:[%s5192_s18 + $0x280] sm:$0xff]  ;;  %v5265_v2 = vpack.c.bf16 %v453_v58, %v445_v56  ;;  %v548_v3 = vpack.c.bf16 %v468_v60, %v460_v59  ;;  %v461_v5 = vld [vmem:[%s5192_s18 + $0x290] sm:$0xff] }
  0x21   : > { %4808 = vmatprep.subr.bf16.mxu1 %v5241_v44  ;;  %v470_v62 = vld [vmem:[%s5192_s18 + $0x2d8] sm:$0xff]  ;;  %v467_v4 = vld [vmem:[%s5192_s18 + $0x2c0] sm:$0xff]  ;;  %v469_v6 = vld [vmem:[%s5192_s18 + $0x2d0] sm:$0xff] }
  0x22   : > { %v5271_v7 = vpack.c.bf16 %v470_v62, %v462_v61  ;;  %v476_v9 = vld [vmem:[%s5192_s18 + $0x308] sm:$0xff]  ;;  %v478_v11 = vld [vmem:[%s5192_s18 + $0x318] sm:$0xff]  ;;  %v475_v14 = vld [vmem:[%s5192_s18 + $0x300] sm:$0xff]  ;;  %v547_v16 = vpack.c.bf16 %v467_v4, %v459_v1  ;;  %v5283_v21 = vpack.c.bf16 %v469_v6, %v461_v5 }
  0x23   : > { %898 = vmatpush1.bf16.msra.mxu0 %v531_v51  ;;  %v484_v10 = vld [vmem:[%s5192_s18 + $0x348] sm:$0xff]  ;;  %v486_v12 = vld [vmem:[%s5192_s18 + $0x358] sm:$0xff]  ;;  %v483_v15 = vld [vmem:[%s5192_s18 + $0x340] sm:$0xff] }
  0x24   : > { %4816 = vmatpush1.bf16.msra.mxu1 %v5250_v52  ;;  %899 = vmatprep.subr.bf16.mxu0 %v540_v53  ;;  %v477_v17 = vld [vmem:[%s5192_s18 + $0x310] sm:$0xff]  ;;  %v492_v20 = vld [vmem:[%s5192_s18 + $0x388] sm:$0xff]  ;;  %v556_v22 = vpack.c.bf16 %v484_v10, %v476_v9  ;;  %v494_v24 = vld [vmem:[%s5192_s18 + $0x398] sm:$0xff]  ;;  %v5288_v25 = vpack.c.bf16 %v486_v12, %v478_v11  ;;  %v555_v30 = vpack.c.bf16 %v483_v15, %v475_v14 }
  0x25   : > { %4809 = vmatprep.subr.bf16.mxu1 %v5256_v57  ;;  %v485_v19 = vld [vmem:[%s5192_s18 + $0x350] sm:$0xff]  ;;  %v500_v23 = vld [vmem:[%s5192_s18 + $0x3c8] sm:$0xff]  ;;  %v502_v27 = vld [vmem:[%s5192_s18 + $0x3d8] sm:$0xff] }
  0x26   : > { %v491_v28 = vld [vmem:[%s5192_s18 + $0x380] sm:$0xff]  ;;  %v5297_v33 = vpack.c.bf16 %v485_v19, %v477_v17  ;;  %v564_v34 = vpack.c.bf16 %v500_v23, %v492_v20  ;;  %v620_v35 = vld [vmem:[%s7988_s3 + $0x88] sm:$0xff]  ;;  %v5303_v36 = vpack.c.bf16 %v502_v27, %v494_v24  ;;  %v493_v37 = vld [vmem:[%s5192_s18 + $0x390] sm:$0xff] }
  0x27   : > { %900 = vmatpush1.bf16.msra.mxu0 %v539_v63  ;;  %v619_v29 = vld [vmem:[%s7988_s3 + $0x80] sm:$0xff]  ;;  %v501_v38 = vld [vmem:[%s5192_s18 + $0x3d0] sm:$0xff]  ;;  %v386_v40 = vld [vmem:[%s5192_s18 + $0x38] sm:$0xff] }
  0x28   : > { %4817 = vmatpush1.bf16.msra.mxu1 %v5265_v2  ;;  %901 = vmatprep.subr.bf16.mxu0 %v548_v3  ;;  %v499_v32 = vld [vmem:[%s5192_s18 + $0x3c0] sm:$0xff]  ;;  %v394_v41 = vld [vmem:[%s5192_s18 + $0x78] sm:$0xff]  ;;  %v5310_v43 = vpack.c.bf16 %v501_v38, %v493_v37  ;;  %v385_v48 = vld [vmem:[%s5192_s18 + $0x30] sm:$0xff] }
  0x29   : > { %4810 = vmatprep.subr.bf16.mxu1 %v5271_v7  ;;  %717 = vperm.xlu0 %4932, %v619_v29   ;;  %v563_v42 = vpack.c.bf16 %v499_v32, %v491_v28  ;;  %v623_v45 = vld [vmem:[%s7988_s3 + $0xa0] sm:$0xff]  ;;  %v514_v47 = vpack.c.bf16 %v394_v41, %v386_v40  ;;  %v393_v49 = vld [vmem:[%s5192_s18 + $0x70] sm:$0xff]  ;;  %v402_v51 = vld [vmem:[%s5192_s18 + $0xb8] sm:$0xff] }
  0x2a   : > { %v5319_v46 = vld [vmem:[%s7987_s2] sm:$0xff]   ;;  %v410_v53 = vld [vmem:[%s5192_s18 + $0xf8] sm:$0xff]  ;;  %v621_v54 = vld [vmem:[%s7988_s3 + $0x90] sm:$0xff]  ;;  %v513_v55 = vpack.c.bf16 %v393_v49, %v385_v48 }
  0x2b   : > { %902 = vmatpush1.bf16.msra.mxu0 %v547_v16  ;;  %v5326_v50 = vld [vmem:[%s7987_s2 + $0x40] sm:$0xff]   ;;  %v401_v56 = vld [vmem:[%s5192_s18 + $0xb0] sm:$0xff]  ;;  %727 = vperm.xlu1 %4933, %v621_v54   ;;  %v522_v59 = vpack.c.bf16 %v410_v53, %v402_v51  ;;  %v418_v61 = vld [vmem:[%s5192_s18 + $0x138] sm:$0xff] }
  0x2c   : > { %4818 = vmatpush1.bf16.msra.mxu1 %v5283_v21  ;;  %903 = vmatprep.subr.bf16.mxu0 %v556_v22  ;;  %v409_v58 = vld [vmem:[%s5192_s18 + $0xf0] sm:$0xff]  ;;  %v622_v62 = vld [vmem:[%s7988_s3 + $0x98] sm:$0xff]  ;;  %v5354_v1 = vld [vmem:[%s7987_s2 + $0x8] sm:$0xff]  }
  0x2d   : > { %4811 = vmatprep.subr.bf16.mxu1 %v5288_v25  ;;  %722 = vperm.xlu0 %4932, %v620_v35   ;;  %v625_v60 = vld [vmem:[%s7988_s3 + $0xb0] sm:$0xff]  ;;  %v521_v63 = vpack.c.bf16 %v409_v58, %v401_v56  ;;  %v5361_v5 = vld [vmem:[%s7987_s2 + $0x48] sm:$0xff]   ;;  %v442_v6 = vld [vmem:[%s5192_s18 + $0x1f8] sm:$0xff] }
  0x2e   : > { %v417_v3 = vld [vmem:[%s5192_s18 + $0x130] sm:$0xff]  ;;  %v627_v10 = vld [vmem:[%s7988_s3 + $0xc0] sm:$0xff]  ;;  %v624_v15 = vld [vmem:[%s7988_s3 + $0xa8] sm:$0xff] }
  0x2f   : > { %904 = vmatpush1.bf16.msra.mxu0 %v555_v30  ;;  %v425_v4 = vld [vmem:[%s5192_s18 + $0x170] sm:$0xff]  ;;  %732 = vperm.xlu1 %4933, %v622_v62   ;;  %v466_v24 = vld [vmem:[%s5192_s18 + $0x2b8] sm:$0xff]  ;;  %v628_v40 = vld [vmem:[%s7988_s3 + $0xc8] sm:$0xff] }
  0x30   : > { %4819 = vmatpush1.bf16.msra.mxu1 %v5297_v33  ;;  %905 = vmatprep.subr.bf16.mxu0 %v564_v34  ;;  %v529_v9 = vpack.c.bf16 %v425_v4, %v417_v3  ;;  %v433_v12 = vld [vmem:[%s5192_s18 + $0x1b0] sm:$0xff]  ;;  %v474_v27 = vld [vmem:[%s5192_s18 + $0x2f8] sm:$0xff]  ;;  %v603_v54 = vld [vmem:[%s7988_s3] sm:$0xff] }
  0x31   : > { %4812 = vmatprep.subr.bf16.mxu1 %v5303_v36  ;;  %737 = vperm.xlu0 %4932, %v623_v45   ;;  %v441_v14 = vld [vmem:[%s5192_s18 + $0x1f0] sm:$0xff]  ;;  %v626_v29 = vld [vmem:[%s7988_s3 + $0xb8] sm:$0xff]  ;;  %v554_v30 = vpack.c.bf16 %v474_v27, %v466_v24  ;;  %v632_v58 = vld [vmem:[%s7988_s3 + $0xe8] sm:$0xff] }
  0x32   : > { %v5385_v16 = vld [vmem:[%s7987_s2 + $0x10] sm:$0xff]   ;;  %v537_v17 = vpack.c.bf16 %v441_v14, %v433_v12  ;;  %v490_v35 = vld [vmem:[%s5192_s18 + $0x378] sm:$0xff]  ;;  %v384_v62 = vld [vmem:[%s5192_s18 + $0x28] sm:$0xff] }
  0x33   : > { %906 = vmatpush1.bf16.msra.mxu0 %v563_v42  ;;  %v629_v19 = vld [vmem:[%s7988_s3 + $0xd0] sm:$0xff]  ;;  %742 = vperm.xlu1 %4933, %v624_v15   ;;  %v5418_v37 = vld [vmem:[%s7987_s2 + $0x18] sm:$0xff]   ;;  %v5491_v3 = vld [vmem:[%s7987_s2 + $0x68] sm:$0xff]  }
  0x34   : > { %4820 = vmatpush1.bf16.msra.mxu1 %v5310_v43  ;;  %1084 = vmatprep.subr.bf16.mxu0 %v5200_v8  ;;  %v426_v8 = vld [vmem:[%s5192_s18 + $0x178] sm:$0xff]  ;;  %v449_v22 = vld [vmem:[%s5192_s18 + $0x230] sm:$0xff]  ;;  %v604_v4 = vld [vmem:[%s7988_s3 + $0x8] sm:$0xff] }
  0x35   : > { %1470 = vmatprep.subr.bf16.mxu1 %v514_v47  ;;  %747 = vperm.xlu0 %4932, %v625_v60   ;;  %v457_v23 = vld [vmem:[%s5192_s18 + $0x270] sm:$0xff]  ;;  %v5432_v48 = vld [vmem:[%s7987_s2 + $0x58] sm:$0xff]   ;;  %v615_v12 = vld [vmem:[%s7988_s3 + $0x60] sm:$0xff] }
  0x36   : > { %924 = vmatmul.mubr.bf16.vlgmr.msra.gmra.mrb[0].mxu0 %v5319_v46  ;;  %v545_v28 = vpack.c.bf16 %v457_v23, %v449_v22  ;;  %v465_v32 = vld [vmem:[%s5192_s18 + $0x2b0] sm:$0xff]  ;;  %v498_v49 = vld [vmem:[%s5192_s18 + $0x3b8] sm:$0xff]  ;;  %v3948_v22 = vld [vmem:[%s7994_s9] sm:$0xff] }
  0x37   : > { %1197 = vmatmul.mubr.bf16.vlgmr.msra.gmra.mrb[0].mxu1 %v5326_v50  ;;  %1085 = vmatpush1.bf16.msra.mxu0 %v5205_v13  ;;  %v530_v13 = vpack.c.bf16 %v426_v8, %v418_v61  ;;  %v473_v34 = vld [vmem:[%s5192_s18 + $0x2f0] sm:$0xff]  ;;  %v506_v51 = vld [vmem:[%s5192_s18 + $0x3f8] sm:$0xff]  ;;  %v5465_v61 = vld [vmem:[%s7987_s2 + $0x60] sm:$0xff]  }
  0x38   : > { %933 = vmatprep.mubr.bf16.mxu0 %v7996_v0  ;;  %1206 = vmatprep.mubr.bf16.mxu1 %v7996_v0  ;;  %v553_v38 = vpack.c.bf16 %v473_v34, %v465_v32  ;;  %v633_v41 = vld [vmem:[%s7988_s3 + $0xf0] sm:$0xff]  ;;  %v634_v8 = vld [vmem:[%s7988_s3 + $0xf8] sm:$0xff]  ;;  %v3597_v27 = vld [vmem:[%s7993_s8 + $0x8] sm:$0xff] }
  0x39   : > { %1086 = vmatprep.subr.bf16.mxu0 %v5211_v18  ;;  %1471 = vmatpush1.bf16.msra.mxu1 %v513_v55  ;;  %v434_v18 = vld [vmem:[%s5192_s18 + $0x1b8] sm:$0xff]  ;;  %v481_v45 = vld [vmem:[%s5192_s18 + $0x330] sm:$0xff]  ;;  %v570_v55 = vpack.c.bf16 %v506_v51, %v498_v49  ;;  %v3952_v32 = vld [vmem:[%s7994_s9 + $0x20] sm:$0xff] }
  0x3a   : > { %1472 = vmatprep.subr.bf16.mxu1 %v522_v59  ;;  %v538_v11 = vpack.c.bf16 %v442_v6, %v434_v18  ;;  %757 = vperm.xlu0 %4932, %v627_v10   ;;  %v489_v47 = vld [vmem:[%s5192_s18 + $0x370] sm:$0xff]  ;;  %v5456_v59 = vld [vmem:[%s7987_s2 + $0x20] sm:$0xff]   ;;  %v606_v6 = vld [vmem:[%s7988_s3 + $0x18] sm:$0xff] }
  0x3b   : > { %1087 = vmatpush1.bf16.msra.mxu0 %v5221_v26  ;;  %v450_v26 = vld [vmem:[%s5192_s18 + $0x238] sm:$0xff]  ;;  %752 = vperm.xlu1 %4933, %v626_v29   ;;  %v561_v53 = vpack.c.bf16 %v489_v47, %v481_v45  ;;  %v497_v56 = vld [vmem:[%s5192_s18 + $0x3b0] sm:$0xff]  ;;  %v3949_v29 = vld [vmem:[%s7994_s9 + $0x8] sm:$0xff] }
  0x3c   : > { %1088 = vmatprep.subr.bf16.mxu0 %v5226_v31  ;;  %v458_v31 = vld [vmem:[%s5192_s18 + $0x278] sm:$0xff]  ;;  %v605_v60 = vld [vmem:[%s7988_s3 + $0x10] sm:$0xff]  ;;  %v3956_v45 = vld [vmem:[%s7994_s9 + $0x40] sm:$0xff] }
  0x3d   : > { %1473 = vmatpush1.bf16.msra.mxu1 %v521_v63  ;;  %v546_v20 = vpack.c.bf16 %v458_v31, %v450_v26  ;;  %v392_v63 = vld [vmem:[%s5192_s18 + $0x68] sm:$0xff]  ;;  %v5523_v10 = vld [vmem:[%s7987_s2 + $0x70] sm:$0xff]   ;;  %v5538_v14 = vld [vmem:[%s7987_s2 + $0x38] sm:$0xff]  }
  0x3e   : > { %934 = vmatmul.mubr.bf16.gmra.mrb[4].mxu0 %v5354_v1  ;;  %1474 = vmatprep.subr.bf16.mxu1 %v530_v13  ;;  %v609_v13 = vld [vmem:[%s7988_s3 + $0x30] sm:$0xff]  ;;  %v512_v18 = vpack.c.bf16 %v392_v63, %v384_v62  ;;  %v612_v31 = vld [vmem:[%s7988_s3 + $0x48] sm:$0xff]  ;;  %v5549_v15 = vld [vmem:[%s7987_s2 + $0x78] sm:$0xff]  }
  0x3f   : > { %1207 = vmatmul.mubr.bf16.gmra.mrb[4].mxu1 %v5361_v5  ;;  %943 = vmatprep.mubr.bf16.mxu0 %v7996_v0  ;;  %v617_v26 = vld [vmem:[%s7988_s3 + $0x70] sm:$0xff]  ;;  %v618_v23 = vld [vmem:[%s7988_s3 + $0x78] sm:$0xff]  ;;  %v3605_v51 = vld [vmem:[%s7993_s8 + $0x48] sm:$0xff] }
  0x40   : > { %1216 = vmatprep.mubr.bf16.mxu1 %v7996_v0  ;;  %1089 = vmatpush1.bf16.msra.mxu0 %v5235_v39  ;;  %v5395_v39 = vld [vmem:[%s7987_s2 + $0x50] sm:$0xff]   ;;  %v3951_v34 = vld [vmem:[%s7994_s9 + $0x18] sm:$0xff]  ;;  %v391_v62 = vld [vmem:[%s5192_s18 + $0x60] sm:$0xff] }
  0x41   : > { %1475 = vmatpush1.bf16.msra.mxu1 %v529_v9  ;;  %1090 = vmatprep.subr.bf16.mxu0 %v5241_v44  ;;  %v631_v44 = vld [vmem:[%s7988_s3 + $0xe0] sm:$0xff]  ;;  %v3598_v24 = vld [vmem:[%s7993_s8 + $0x10] sm:$0xff]  ;;  %v3955_v47 = vld [vmem:[%s7994_s9 + $0x38] sm:$0xff] }
  0x42   : > { %1476 = vmatprep.subr.bf16.mxu1 %v538_v11  ;;  %767 = vperm.xlu0 %4932, %v629_v19   ;;  %v611_v9 = vld [vmem:[%s7988_s3 + $0x40] sm:$0xff]  ;;  %v610_v11 = vld [vmem:[%s7988_s3 + $0x38] sm:$0xff]  ;;  %v3606_v49 = vld [vmem:[%s7993_s8 + $0x50] sm:$0xff] }
  0x43   : > { %762 = vperm.xlu1 %4933, %v628_v40   ;;  %v3596_v19 = vld [vmem:[%s7993_s8] sm:$0xff]  ;;  %v3953_v40 = vld [vmem:[%s7994_s9 + $0x28] sm:$0xff]  ;;  %v3611_v63 = vld [vmem:[%s7993_s8 + $0x78] sm:$0xff] }
  0x44   : > { %1091 = vmatpush1.bf16.msra.mxu0 %v5250_v52  ;;  %v482_v52 = vld [vmem:[%s5192_s18 + $0x338] sm:$0xff] }
  0x45   : > { %1477 = vmatpush1.bf16.msra.mxu1 %v537_v17  ;;  %v562_v42 = vpack.c.bf16 %v490_v35, %v482_v52  ;;  %1092 = vmatprep.subr.bf16.mxu0 %v5256_v57  ;;  %v630_v57 = vld [vmem:[%s7988_s3 + $0xd8] sm:$0xff]  ;;  %v3602_v52 = vld [vmem:[%s7993_s8 + $0x30] sm:$0xff]  ;;  %v3601_v35 = vld [vmem:[%s7993_s8 + $0x28] sm:$0xff] }
  0x46   : > { %944 = vmatmul.mubr.bf16.gmra.mrb[8].mxu0 %v5385_v16  ;;  %1478 = vmatprep.subr.bf16.mxu1 %v546_v20  ;;  %v614_v17 = vld [vmem:[%s7988_s3 + $0x58] sm:$0xff]  ;;  %v616_v20 = vld [vmem:[%s7988_s3 + $0x68] sm:$0xff] }
  0x47   : > { %1217 = vmatmul.mubr.bf16.gmra.mrb[8].mxu1 %v5395_v39  ;;  %953 = vmatprep.mubr.bf16.mxu0 %v7996_v0 }
  0x48   : > { %1226 = vmatprep.mubr.bf16.mxu1 %v7996_v0  ;;  %777 = vperm.xlu0 %4932, %v631_v44   ;;  %v3600_v44 = vld [vmem:[%s7993_s8 + $0x20] sm:$0xff] }
  0x49   : > { %1479 = vmatpush1.bf16.msra.mxu1 %v545_v28  ;;  %1093 = vmatpush1.bf16.msra.mxu0 %v5265_v2  ;;  %v505_v2 = vld [vmem:[%s5192_s18 + $0x3f0] sm:$0xff] }
  0x4a   : > { %1480 = vmatprep.subr.bf16.mxu1 %v554_v30  ;;  %1094 = vmatprep.subr.bf16.mxu0 %v5271_v7  ;;  %v569_v7 = vpack.c.bf16 %v505_v2, %v497_v56  ;;  %v3950_v28 = vld [vmem:[%s7994_s9 + $0x10] sm:$0xff]  ;;  %v3599_v30 = vld [vmem:[%s7993_s8 + $0x18] sm:$0xff]  ;;  %v3960_v56 = vld [vmem:[%s7994_s9 + $0x60] sm:$0xff] }
  0x4b   : > { %772 = vperm.xlu1 %4933, %v630_v57   ;;  %v3957_v57 = vld [vmem:[%s7994_s9 + $0x48] sm:$0xff]  ;;  %v3959_v2 = vld [vmem:[%s7994_s9 + $0x58] sm:$0xff] }
  0x4c   : > { %787 = vperm.xlu0 %4932, %v633_v41   ;;  %v3604_v41 = vld [vmem:[%s7993_s8 + $0x40] sm:$0xff] }
  0x4d   : > { %1481 = vmatpush1.bf16.msra.mxu1 %v553_v38  ;;  %1095 = vmatpush1.bf16.msra.mxu0 %v5283_v21  ;;  %v607_v21 = vld [vmem:[%s7988_s3 + $0x20] sm:$0xff]  ;;  %v3954_v38 = vld [vmem:[%s7994_s9 + $0x30] sm:$0xff] }
  0x4e   : > { %954 = vmatmul.mubr.bf16.gmra.mrb[12].mxu0 %v5418_v37  ;;  %1482 = vmatprep.subr.bf16.mxu1 %v562_v42  ;;  %v3603_v42 = vld [vmem:[%s7993_s8 + $0x38] sm:$0xff] }
  0x4f   : > { %1227 = vmatmul.mubr.bf16.gmra.mrb[12].mxu1 %v5432_v48  ;;  %963 = vmatprep.mubr.bf16.mxu0 %v7996_v0 }
  0x50   : > { %1236 = vmatprep.mubr.bf16.mxu1 %v7996_v0  ;;  %637 = vperm.xlu0 %4932, %v603_v54   ;;  %v3608_v54 = vld [vmem:[%s7993_s8 + $0x60] sm:$0xff] }
  0x51   : > { %1483 = vmatpush1.bf16.msra.mxu1 %v561_v53  ;;  %1096 = vmatprep.subr.bf16.mxu0 %v5288_v25  ;;  %v5483_v25 = vld [vmem:[%s7987_s2 + $0x28] sm:$0xff]   ;;  %v3958_v53 = vld [vmem:[%s7994_s9 + $0x50] sm:$0xff] }
  0x52   : > { %1484 = vmatprep.subr.bf16.mxu1 %v570_v55  ;;  %782 = vperm.xlu1 %4933, %v632_v58   ;;  %v3607_v55 = vld [vmem:[%s7993_s8 + $0x58] sm:$0xff]  ;;  %v3609_v58 = vld [vmem:[%s7993_s8 + $0x68] sm:$0xff] }
  0x53   : > { %1097 = vmatpush1.bf16.msra.mxu0 %v5297_v33  ;;  %v5512_v33 = vld [vmem:[%s7987_s2 + $0x30] sm:$0xff]  }
  0x54   : > { %647 = vperm.xlu0 %4932, %v605_v60   ;;  %1098 = vmatprep.subr.bf16.mxu0 %v5303_v36  ;;  %v613_v36 = vld [vmem:[%s7988_s3 + $0x50] sm:$0xff] }
  0x55   : > { %1485 = vmatpush1.bf16.msra.mxu1 %v569_v7  ;;  %v3610_v7 = vld [vmem:[%s7993_s8 + $0x70] sm:$0xff] }
  0x56   : > { %964 = vmatmul.mubr.bf16.gmra.mrb[16].mxu0 %v5456_v59  ;;  %792 = vperm.xlu1 %4933, %v634_v8   ;;  %v3962_v60 = vld [vmem:[%s7994_s9 + $0x70] sm:$0xff]  ;;  %v3961_v8 = vld [vmem:[%s7994_s9 + $0x68] sm:$0xff] }
  0x57   : > { %1237 = vmatmul.mubr.bf16.gmra.mrb[16].mxu1 %v5465_v61  ;;  %973 = vmatprep.mubr.bf16.mxu0 %v7996_v0 }
  0x58   : > { %1246 = vmatprep.mubr.bf16.mxu1 %v7996_v0  ;;  %657 = vperm.xlu0 %4932, %v607_v21   ;;  %v383_v21 = vld [vmem:[%s5192_s18 + $0x20] sm:$0xff] }
  0x59   : > { %1099 = vmatpush1.bf16.msra.mxu0 %v5310_v43  ;;  %v608_v43 = vld [vmem:[%s7988_s3 + $0x28] sm:$0xff] }
  0x5a   : > { %642 = vperm.xlu1 %4933, %v604_v4   ;;  %1277 = vmatprep.subr.bf16.mxu0 %v512_v18  ;;  %v408_v4 = vld [vmem:[%s5192_s18 + $0xe8] sm:$0xff]  ;;  %v511_v18 = vpack.c.bf16 %v391_v62, %v383_v21 }
  0x5c   : > { %667 = vperm.xlu0 %4932, %v609_v13   ;;  %v400_v13 = vld [vmem:[%s5192_s18 + $0xa8] sm:$0xff] }
  0x5e   : > { %974 = vmatmul.mubr.bf16.gmra.mrb[20].mxu0 %v5483_v25  ;;  %652 = vperm.xlu1 %4933, %v606_v6   ;;  %v399_v6 = vld [vmem:[%s5192_s18 + $0xa0] sm:$0xff] }
  0x5f   : > { %1247 = vmatmul.mubr.bf16.gmra.mrb[20].mxu1 %v5491_v3  ;;  %983 = vmatprep.mubr.bf16.mxu0 %v7996_v0 }
  0x60   : > { %1256 = vmatprep.mubr.bf16.mxu1 %v7996_v0  ;;  %677 = vperm.xlu0 %4932, %v611_v9   ;;  %v407_v9 = vld [vmem:[%s5192_s18 + $0xe0] sm:$0xff] }
  0x62   : > { %662 = vperm.xlu1 %4933, %v608_v43   ;;  %v416_v43 = vld [vmem:[%s5192_s18 + $0x128] sm:$0xff] }
  0x64   : > { %687 = vperm.xlu0 %4932, %v613_v36   ;;  %v520_v36 = vpack.c.bf16 %v408_v4, %v400_v13 }
  0x66   : > { %984 = vmatmul.mubr.bf16.gmra.mrb[24].mxu0 %v5512_v33  ;;  %672 = vperm.xlu1 %4933, %v610_v11   ;;  %v424_v11 = vld [vmem:[%s5192_s18 + $0x168] sm:$0xff] }
  0x67   : > { %1257 = vmatmul.mubr.bf16.gmra.mrb[24].mxu1 %v5523_v10  ;;  %993 = vmatprep.mubr.bf16.mxu0 %v7996_v0 }
  0x68   : > { %1266 = vmatprep.mubr.bf16.mxu1 %v7996_v0  ;;  %697 = vperm.xlu0 %4932, %v615_v12   ;;  %v3963_v12 = vld [vmem:[%s7994_s9 + $0x78] sm:$0xff] }
  0x6a   : > { %682 = vperm.xlu1 %4933, %v612_v31   ;;  %v528_v31 = vpack.c.bf16 %v424_v11, %v416_v43 }
  0x6c   : > { %707 = vperm.xlu0 %4932, %v617_v26   ;;  %v519_v26 = vpack.c.bf16 %v407_v9, %v399_v6 }
  0x6e   : > { %994 = vmatmul.mubr.bf16.gmra.mrb[28].mxu0 %v5538_v14  ;;  %692 = vperm.xlu1 %4933, %v614_v17   ;;  %v415_v17 = vld [vmem:[%s5192_s18 + $0x120] sm:$0xff] }
  0x6f   : > { %1267 = vmatmul.mubr.bf16.gmra.mrb[28].mxu1 %v5549_v15  ;;  %1003 = vmatprep.mubr.bf16.mxu0 %v7996_v0 }
  0x70   : > { %1502 = vmatprep.mubr.bf16.mxu1 %v7996_v0  ;;  %3614 = vperm.xlu0 %4932, %v3596_v19   ;;  %v423_v19 = vld [vmem:[%s5192_s18 + $0x160] sm:$0xff] }
  0x72   : > { %702 = vperm.xlu1 %4933, %v616_v20   ;;  %v432_v20 = vld [vmem:[%s5192_s18 + $0x1a8] sm:$0xff] }
  0x74   : > { %3966 = vperm.xlu0 %4932, %v3948_v22   ;;  %v440_v22 = vld [vmem:[%s5192_s18 + $0x1e8] sm:$0xff] }
  0x76   : > { %1004 = vmatmul.mubr.bf16.gmra.mrb[32].mxu0 %v5326_v50  ;;  %712 = vperm.xlu1 %4933, %v618_v23   ;;  %v536_v23 = vpack.c.bf16 %v440_v22, %v432_v20 }
  0x77   : > { %1503 = vmatmul.mubr.bf16.vlgmr.msra.gmra.mrb[32].mxu1 %v5319_v46  ;;  %1013 = vmatprep.mubr.bf16.mxu0 %v7996_v0 }
  0x78   : > { %1512 = vmatprep.mubr.bf16.mxu1 %v7996_v0  ;;  %3624 = vperm.xlu0 %4932, %v3598_v24   ;;  %v431_v24 = vld [vmem:[%s5192_s18 + $0x1a0] sm:$0xff] }
  0x7a   : > { %3619 = vperm.xlu1 %4933, %v3597_v27   ;;  %v439_v27 = vld [vmem:[%s5192_s18 + $0x1e0] sm:$0xff] }
  0x7c   : > { %3976 = vperm.xlu0 %4932, %v3950_v28   ;;  %v448_v28 = vld [vmem:[%s5192_s18 + $0x228] sm:$0xff] }
  0x7e   : > { %1014 = vmatmul.mubr.bf16.gmra.mrb[36].mxu0 %v5361_v5  ;;  %3971 = vperm.xlu1 %4933, %v3949_v29   ;;  %v456_v29 = vld [vmem:[%s5192_s18 + $0x268] sm:$0xff] }
  0x7f   : > { %1513 = vmatmul.mubr.bf16.gmra.mrb[36].mxu1 %v5354_v1  ;;  %1023 = vmatprep.mubr.bf16.mxu0 %v7996_v0 }
  0x80   : > { %1522 = vmatprep.mubr.bf16.mxu1 %v7996_v0  ;;  %3634 = vperm.xlu0 %4932, %v3600_v44   ;;  %v535_v44 = vpack.c.bf16 %v439_v27, %v431_v24 }
  0x82   : > { %3629 = vperm.xlu1 %4933, %v3599_v30   ;;  %v544_v30 = vpack.c.bf16 %v456_v29, %v448_v28 }
  0x84   : > { %3986 = vperm.xlu0 %4932, %v3952_v32   ;;  %v447_v32 = vld [vmem:[%s5192_s18 + $0x220] sm:$0xff] }
  0x86   : > { %1024 = vmatmul.mubr.bf16.gmra.mrb[40].mxu0 %v5395_v39  ;;  %3981 = vperm.xlu1 %4933, %v3951_v34   ;;  %v455_v34 = vld [vmem:[%s5192_s18 + $0x260] sm:$0xff] }
  0x87   : > { %1523 = vmatmul.mubr.bf16.gmra.mrb[40].mxu1 %v5385_v16  ;;  %1033 = vmatprep.mubr.bf16.mxu0 %v7996_v0 }
  0x88   : > { %1532 = vmatprep.mubr.bf16.mxu1 %v7996_v0  ;;  %3644 = vperm.xlu0 %4932, %v3602_v52   ;;  %v464_v52 = vld [vmem:[%s5192_s18 + $0x2a8] sm:$0xff] }
  0x8a   : > { %3639 = vperm.xlu1 %4933, %v3601_v35   ;;  %v472_v35 = vld [vmem:[%s5192_s18 + $0x2e8] sm:$0xff] }
  0x8c   : > { %3996 = vperm.xlu0 %4932, %v3954_v38   ;;  %v543_v38 = vpack.c.bf16 %v455_v34, %v447_v32 }
  0x8e   : > { %1034 = vmatmul.mubr.bf16.gmra.mrb[44].mxu0 %v5432_v48  ;;  %3991 = vperm.xlu1 %4933, %v3953_v40   ;;  %v463_v40 = vld [vmem:[%s5192_s18 + $0x2a0] sm:$0xff] }
  0x8f   : > { %1533 = vmatmul.mubr.bf16.gmra.mrb[44].mxu1 %v5418_v37  ;;  %1043 = vmatprep.mubr.bf16.mxu0 %v7996_v0 }
  0x90   : > { %1542 = vmatprep.mubr.bf16.mxu1 %v7996_v0  ;;  %3654 = vperm.xlu0 %4932, %v3604_v41   ;;  %v471_v41 = vld [vmem:[%s5192_s18 + $0x2e0] sm:$0xff] }
  0x92   : > { %3649 = vperm.xlu1 %4933, %v3603_v42   ;;  %v480_v42 = vld [vmem:[%s5192_s18 + $0x328] sm:$0xff] }
  0x94   : > { %4006 = vperm.xlu0 %4932, %v3956_v45   ;;  %v488_v45 = vld [vmem:[%s5192_s18 + $0x368] sm:$0xff] }
  0x96   : > { %1044 = vmatmul.mubr.bf16.gmra.mrb[48].mxu0 %v5465_v61  ;;  %4001 = vperm.xlu1 %4933, %v3955_v47   ;;  %v551_v47 = vpack.c.bf16 %v471_v41, %v463_v40 }
  0x97   : > { %1543 = vmatmul.mubr.bf16.gmra.mrb[48].mxu1 %v5456_v59  ;;  %1053 = vmatprep.mubr.bf16.mxu0 %v7996_v0 }
  0x98   : > { %1552 = vmatprep.mubr.bf16.mxu1 %v7996_v0  ;;  %3664 = vperm.xlu0 %4932, %v3606_v49   ;;  %v560_v49 = vpack.c.bf16 %v488_v45, %v480_v42 }
  0x9a   : > { %3659 = vperm.xlu1 %4933, %v3605_v51   ;;  %v479_v51 = vld [vmem:[%s5192_s18 + $0x320] sm:$0xff] }
  0x9c   : > { %4016 = vperm.xlu0 %4932, %v3958_v53   ;;  %v487_v53 = vld [vmem:[%s5192_s18 + $0x360] sm:$0xff] }
  0x9e   : > { %1054 = vmatmul.mubr.bf16.gmra.mrb[52].mxu0 %v5491_v3  ;;  %4011 = vperm.xlu1 %4933, %v3957_v57   ;;  %v496_v57 = vld [vmem:[%s5192_s18 + $0x3a8] sm:$0xff] }
  0x9f   : > { %1553 = vmatmul.mubr.bf16.gmra.mrb[52].mxu1 %v5483_v25  ;;  %1063 = vmatprep.mubr.bf16.mxu0 %v7996_v0 }
  0xa0   : > { %1562 = vmatprep.mubr.bf16.mxu1 %v7996_v0  ;;  %3674 = vperm.xlu0 %4932, %v3608_v54   ;;  %v504_v54 = vld [vmem:[%s5192_s18 + $0x3e8] sm:$0xff] }
  0xa2   : > { %3669 = vperm.xlu1 %4933, %v3607_v55   ;;  %v559_v55 = vpack.c.bf16 %v487_v53, %v479_v51 }
  0xa4   : > { %4026 = vperm.xlu0 %4932, %v3960_v56   ;;  %v568_v56 = vpack.c.bf16 %v504_v54, %v496_v57 }
  0xa6   : > { %1064 = vmatmul.mubr.bf16.gmra.mrb[56].mxu0 %v5523_v10  ;;  %4021 = vperm.xlu1 %4933, %v3959_v2   ;;  %v495_v2 = vld [vmem:[%s5192_s18 + $0x3a0] sm:$0xff] }
  0xa7   : > { %1563 = vmatmul.mubr.bf16.gmra.mrb[56].mxu1 %v5512_v33  ;;  %1073 = vmatprep.mubr.bf16.mxu0 %v7996_v0 }
  0xa8   : > { %1572 = vmatprep.mubr.bf16.mxu1 %v7996_v0  ;;  %3684 = vperm.xlu0 %4932, %v3610_v7   ;;  %v503_v7 = vld [vmem:[%s5192_s18 + $0x3e0] sm:$0xff] }
  0xaa   : > { %3679 = vperm.xlu1 %4933, %v3609_v58   ;;  %v5741_v58 = vpop.permute.xlu0 %717 }
  0xab   : > { %8130 = vst [vmem:[#allocation2_spill] sm:$0xff] %v5741_v58 }
  0xac   : > { %4036 = vperm.xlu0 %4932, %v3962_v60   ;;  %v5744_v60 = vpop.permute.xlu1 %727 }
  0xad   : > { %8131 = vst [vmem:[#allocation3_spill] sm:$0xff] %v5744_v60 }
  0xae   : > { %1074 = vmatmul.mubr.bf16.gmra.mrb[60].mxu0 %v5549_v15  ;;  %4031 = vperm.xlu1 %4933, %v3961_v8  }
  0xaf   : > { %1573 = vmatmul.mubr.bf16.gmra.mrb[60].mxu1 %v5538_v14  ;;  %1116 = vmatprep.mubr.bf16.mxu0 %v7996_v0 }
  0xb0   : > { %1582 = vmatprep.mubr.bf16.mxu1 %v7996_v0  ;;  %v5750_v8 = vpop.permute.xlu1 %732 }
  0xb1   : > { %8133 = vst [vmem:[#allocation5_spill] sm:$0xff] %v5750_v8 }
  0xb2   : > { %3689 = vperm.xlu1 %4933, %v3611_v63  }
  0xb4   : > { %v5756_v21 = vpop.permute.xlu1 %742 }
  0xb5   : > { %8135 = vst [vmem:[#allocation7_spill] sm:$0xff] %v5756_v21 }
  0xb6   : > { %1117 = vmatmul.mubr.bf16.vlgmr.msra.gmra.mrb[64].mxu0 %v5319_v46  ;;  %4041 = vperm.xlu1 %4933, %v3963_v12  }
  0xb7   : > { %1583 = vmatmul.mubr.bf16.gmra.mrb[64].mxu1 %v5326_v50  ;;  %1278 = vmatpush1.bf16.msra.mxu0 %v511_v18  ;;  %v527_v50 = vpack.c.bf16 %v423_v19, %v415_v17 }
  0xb8   : > { %1126 = vmatprep.mubr.bf16.mxu0 %v7996_v0  ;;  %1592 = vmatprep.mubr.bf16.mxu1 %v7996_v0 }
  0xb9   : > { %1279 = vmatprep.subr.bf16.mxu0 %v520_v36 }
  0xbb   : > { %1280 = vmatpush1.bf16.msra.mxu0 %v519_v26 }
  0xbc   : > { %1281 = vmatprep.subr.bf16.mxu0 %v528_v31 }
  0xbe   : > { %1127 = vmatmul.mubr.bf16.gmra.mrb[68].mxu0 %v5354_v1 }
  0xbf   : > { %1593 = vmatmul.mubr.bf16.gmra.mrb[68].mxu1 %v5361_v5  ;;  %1136 = vmatprep.mubr.bf16.mxu0 %v7996_v0  ;;  %v552_v5 = vpack.c.bf16 %v472_v35, %v464_v52 }
  0xc0   : > { %1602 = vmatprep.mubr.bf16.mxu1 %v7996_v0  ;;  %1282 = vmatpush1.bf16.msra.mxu0 %v527_v50 }
  0xc1   : > { %1283 = vmatprep.subr.bf16.mxu0 %v536_v23 }
  0xc4   : > { %1284 = vmatpush1.bf16.msra.mxu0 %v535_v44 }
  0xc5   : > { %1285 = vmatprep.subr.bf16.mxu0 %v544_v30 }
  0xc6   : > { %1137 = vmatmul.mubr.bf16.gmra.mrb[72].mxu0 %v5385_v16 }
  0xc7   : > { %1603 = vmatmul.mubr.bf16.gmra.mrb[72].mxu1 %v5395_v39  ;;  %1146 = vmatprep.mubr.bf16.mxu0 %v7996_v0  ;;  %v567_v39 = vpack.c.bf16 %v503_v7, %v495_v2 }
  0xc8   : > { %1612 = vmatprep.mubr.bf16.mxu1 %v7996_v0  ;;  %1286 = vmatpush1.bf16.msra.mxu0 %v543_v38 }
  0xc9   : > { %1287 = vmatprep.subr.bf16.mxu0 %v552_v5 }
  0xcc   : > { %1288 = vmatpush1.bf16.msra.mxu0 %v551_v47 }
  0xcd   : > { %1289 = vmatprep.subr.bf16.mxu0 %v560_v49 }
  0xce   : > { %1147 = vmatmul.mubr.bf16.gmra.mrb[76].mxu0 %v5418_v37 }
  0xcf   : > { %1613 = vmatmul.mubr.bf16.gmra.mrb[76].mxu1 %v5432_v48  ;;  %1156 = vmatprep.mubr.bf16.mxu0 %v7996_v0  ;;  %v5746_v48 = vpop.permute.xlu0 %722 }
  0xd0   : > { %1622 = vmatprep.mubr.bf16.mxu1 %v7996_v0  ;;  %1290 = vmatpush1.bf16.msra.mxu0 %v559_v55  ;;  %8132 = vst [vmem:[#allocation4_spill] sm:$0xff] %v5746_v48 }
  0xd1   : > { %1291 = vmatprep.subr.bf16.mxu0 %v568_v56 }
  0xd4   : > { %1292 = vmatpush1.bf16.msra.mxu0 %v567_v39 }
  0xd6   : > { %1157 = vmatmul.mubr.bf16.gmra.mrb[80].mxu0 %v5456_v59 }
  0xd7   : > { %1623 = vmatmul.mubr.bf16.gmra.mrb[80].mxu1 %v5465_v61  ;;  %1166 = vmatprep.mubr.bf16.mxu0 %v7996_v0  ;;  %v5754_v61 = vpop.permute.xlu0 %737 }
  0xd8   : > { %1632 = vmatprep.mubr.bf16.mxu1 %v7996_v0  ;;  %8134 = vst [vmem:[#allocation6_spill] sm:$0xff] %v5754_v61 }
  0xdb   : > { %v5762_v62 = vpop.permute.xlu0 %747 }
  0xdc   : > { %8136 = vst [vmem:[#allocation8_spill] sm:$0xff] %v5762_v62 }
  0xde   : > { %1167 = vmatmul.mubr.bf16.gmra.mrb[84].mxu0 %v5483_v25 }
  0xdf   : > { %1633 = vmatmul.mubr.bf16.gmra.mrb[84].mxu1 %v5491_v3  ;;  %1176 = vmatprep.mubr.bf16.mxu0 %v7996_v0  ;;  %v5764_v3 = vpop.permute.xlu1 %752  ;;  %v5769_v63 = vpop.permute.xlu0 %757 }
  0xe0   : > { %1642 = vmatprep.mubr.bf16.mxu1 %v7996_v0  ;;  %8137 = vst [vmem:[#allocation9_spill] sm:$0xff] %v5764_v3  ;;  %8138 = vst [vmem:[#allocation10_spill] sm:$0xff] %v5769_v63 }
  0xe3   : > { %v5771_v13 = vpop.permute.xlu1 %762  ;;  %v5773_v4 = vpop.permute.xlu0 %767 }
  0xe4   : > { %8139 = vst [vmem:[#allocation11_spill] sm:$0xff] %v5771_v13  ;;  %8140 = vst [vmem:[#allocation12_spill] sm:$0xff] %v5773_v4 }
  0xe6   : > { %1177 = vmatmul.mubr.bf16.gmra.mrb[88].mxu0 %v5512_v33 }
  0xe7   : > { %1643 = vmatmul.mubr.bf16.gmra.mrb[88].mxu1 %v5523_v10  ;;  %1186 = vmatprep.mubr.bf16.mxu0 %v7996_v0  ;;  %v5776_v10 = vpop.permute.xlu1 %772  ;;  %v5779_v18 = vpop.permute.xlu0 %777 }
  0xe8   : > { %1652 = vmatprep.mubr.bf16.mxu1 %v7996_v0  ;;  %8141 = vst [vmem:[#allocation13_spill] sm:$0xff] %v5776_v10 }
  0xeb   : > { %v5781_v6 = vpop.permute.xlu1 %782 }
  0xec   : > { %8142 = vst [vmem:[#allocation14_spill] sm:$0xff] %v5781_v6 }
  0xee   : > { %1187 = vmatmul.mubr.bf16.gmra.mrb[92].mxu0 %v5538_v14 }
  0xef   : > { %1653 = vmatmul.mubr.bf16.gmra.mrb[92].mxu1 %v5549_v15  ;;  %1309 = vmatprep.mubr.bf16.mxu0 %v7996_v0  ;;  %v5785_v15 = vpop.permute.xlu0 %787  ;;  %v5787_v9 = vpop.permute.xlu1 %792 }
  0xf3   : > { %v5793_v36 = vpop.permute.xlu1 %642 }
  0xf6   : > { %1310 = vmatmul.mubr.bf16.vlgmr.msra.gmra.mrb[96].mxu0 %v5319_v46  ;;  %v5791_v46 = vpop.permute.xlu0 %637 }
  0xf7   : > { %1319 = vmatprep.mubr.bf16.mxu0 %v7996_v0  ;;  %v5823_v52 = vpop.permute.xlu1 %652 }
  0xfa   : > { %v5819_v32 = vpop.permute.xlu0 %647 }
  0xfe   : > { %1320 = vmatmul.mubr.bf16.gmra.mrb[100].mxu0 %v5354_v1 }
  0xff   : > { %1329 = vmatprep.mubr.bf16.mxu0 %v7996_v0 }
 0x106   : > { %1330 = vmatmul.mubr.bf16.gmra.mrb[104].mxu0 %v5385_v16 }
 0x107   : > { %1339 = vmatprep.mubr.bf16.mxu0 %v7996_v0 }
 0x109   : > { %v925_v43 = vpop.f32.mrb[0].mxu0 }
 0x10a   : > { %v927_v11 = vpop.f32.mrb[1].mxu0  ;;  %v1198_v12 = vpop.f32.mrb[0].mxu1  ;;  %v5797_v17 = vadd.f32 %v925_v43, %v5791_v46 }
 0x10b   : > { %v929_v26 = vpop.f32.mrb[2].mxu0  ;;  %v1199_v1 = vadd.f32 %v1198_v12, %v5741_v58  ;;  %v1200_v31 = vpop.f32.mrb[1].mxu1  ;;  %v5804_v50 = vadd.f32 %v927_v11, %v5791_v46 }
 0x10c   : > { %v5800_v19 = vadd.f32 %v929_v26, %v5793_v36  ;;  %v931_v16 = vpop.f32.mrb[3].mxu0  ;;  %v1201_v20 = vadd.f32 %v1200_v31, %v5741_v58  ;;  %v1202_v22 = vpop.f32.mrb[2].mxu1 }
 0x10d   : > { %v5807_v23 = vadd.f32 %v931_v16, %v5793_v36  ;;  %v1203_v24 = vadd.f32 %v1202_v22, %v5746_v48  ;;  %v1204_v27 = vpop.f32.mrb[3].mxu1  ;;  %v5849_v43 = vpop.permute.xlu0 %657 }
 0x10e   : > { %1340 = vmatmul.mubr.bf16.gmra.mrb[108].mxu0 %v5418_v37  ;;  %v1205_v29 = vadd.f32 %v1204_v27, %v5746_v48  ;;  %v5853_v12 = vpop.permute.xlu1 %662 }
 0x10f   : > { %1349 = vmatprep.mubr.bf16.mxu0 %v7996_v0  ;;  %v5815_v44 = vpack.c.bf16 %v1203_v24, %v1199_v1 }
 0x110   : > { %v5821_v34 = vpack.c.bf16 %v1205_v29, %v1201_v20 }
 0x111   : > { %8143 = vst [vmem:[#allocation15_spill] sm:$0xff] %v5815_v44  ;;  %v935_v35 = vpop.f32.mrb[4].mxu0 }
 0x112   : > { %8144 = vst [vmem:[#allocation16_spill] sm:$0xff] %v5821_v34  ;;  %v937_v38 = vpop.f32.mrb[5].mxu0  ;;  %v1208_v5 = vpop.f32.mrb[4].mxu1  ;;  %v5827_v42 = vadd.f32 %v935_v35, %v5819_v32 }
 0x113   : > { %v939_v40 = vpop.f32.mrb[6].mxu0  ;;  %v1209_v37 = vadd.f32 %v1208_v5, %v5744_v60  ;;  %v1210_v41 = vpop.f32.mrb[5].mxu1  ;;  %v5834_v53 = vadd.f32 %v937_v38, %v5819_v32 }
 0x114   : > { %v5830_v45 = vadd.f32 %v939_v40, %v5823_v52  ;;  %v941_v47 = vpop.f32.mrb[7].mxu0  ;;  %v1211_v49 = vadd.f32 %v1210_v41, %v5744_v60  ;;  %v1212_v51 = vpop.f32.mrb[6].mxu1 }
 0x115   : > { %v5837_v57 = vadd.f32 %v941_v47, %v5823_v52  ;;  %v1213_v54 = vadd.f32 %v1212_v51, %v5750_v8  ;;  %v1214_v55 = vpop.f32.mrb[7].mxu1 }
 0x116   : > { %1350 = vmatmul.mubr.bf16.gmra.mrb[112].mxu0 %v5456_v59  ;;  %v1215_v56 = vadd.f32 %v1214_v55, %v5750_v8 }
 0x117   : > { %1359 = vmatprep.mubr.bf16.mxu0 %v7996_v0  ;;  %v5845_v7 = vpack.c.bf16 %v1213_v54, %v1209_v37  ;;  %v5879_v54 = vpop.permute.xlu0 %667 }
 0x118   : > { %v5851_v11 = vpack.c.bf16 %v1215_v56, %v1211_v49  ;;  %v5883_v56 = vpop.permute.xlu1 %672 }
 0x119   : > { %8145 = vst [vmem:[#allocation17_spill] sm:$0xff] %v5845_v7  ;;  %v945_v26 = vpop.f32.mrb[8].mxu0 }
 0x11a   : > { %8146 = vst [vmem:[#allocation18_spill] sm:$0xff] %v5851_v11  ;;  %v947_v59 = vpop.f32.mrb[9].mxu0  ;;  %v1218_v1 = vpop.f32.mrb[8].mxu1  ;;  %v5857_v22 = vadd.f32 %v945_v26, %v5849_v43 }
 0x11b   : > { %v949_v31 = vpop.f32.mrb[10].mxu0  ;;  %v1219_v16 = vadd.f32 %v1218_v1, %v5754_v61  ;;  %v1220_v20 = vpop.f32.mrb[9].mxu1  ;;  %v5864_v38 = vadd.f32 %v947_v59, %v5849_v43 }
 0x11c   : > { %8147 = vst [vmem:[#allocation19_spill] sm:$0xff] %v5857_v22  ;;  %v5860_v24 = vadd.f32 %v949_v31, %v5853_v12  ;;  %v951_v27 = vpop.f32.mrb[11].mxu0  ;;  %v1221_v29 = vadd.f32 %v1220_v20, %v5754_v61  ;;  %v1222_v35 = vpop.f32.mrb[10].mxu1 }
 0x11d   : > { %8149 = vst [vmem:[#allocation21_spill] sm:$0xff] %v5864_v38  ;;  %v5867_v5 = vadd.f32 %v951_v27, %v5853_v12  ;;  %v1223_v40 = vadd.f32 %v1222_v35, %v5756_v21  ;;  %v1224_v37 = vpop.f32.mrb[11].mxu1  ;;  %v5909_v51 = vpop.permute.xlu0 %677 }
 0x11e   : > { %8148 = vst [vmem:[#allocation20_spill] sm:$0xff] %v5860_v24  ;;  %1360 = vmatmul.mubr.bf16.gmra.mrb[116].mxu0 %v5483_v25  ;;  %v1225_v41 = vadd.f32 %v1224_v37, %v5756_v21 }
 0x11f   : > { %1369 = vmatprep.mubr.bf16.mxu0 %v7996_v0  ;;  %v5875_v49 = vpack.c.bf16 %v1223_v40, %v1219_v16 }
 0x120   : > { %v5881_v55 = vpack.c.bf16 %v1225_v41, %v1221_v29 }
 0x121   : > { %8150 = vst [vmem:[#allocation22_spill] sm:$0xff] %v5875_v49  ;;  %v955_v26 = vpop.f32.mrb[12].mxu0 }
 0x122   : > { %8151 = vst [vmem:[#allocation23_spill] sm:$0xff] %v5881_v55  ;;  %v957_v25 = vpop.f32.mrb[13].mxu0  ;;  %v1228_v59 = vpop.f32.mrb[12].mxu1  ;;  %v5887_v27 = vadd.f32 %v955_v26, %v5879_v54 }
 0x123   : > { %v959_v1 = vpop.f32.mrb[14].mxu0  ;;  %v1229_v31 = vadd.f32 %v1228_v59, %v5762_v62  ;;  %v1230_v20 = vpop.f32.mrb[13].mxu1  ;;  %v5894_v37 = vadd.f32 %v957_v25, %v5879_v54 }
 0x124   : > { %8152 = vst [vmem:[#allocation24_spill] sm:$0xff] %v5887_v27  ;;  %v5890_v16 = vadd.f32 %v959_v1, %v5883_v56  ;;  %v961_v35 = vpop.f32.mrb[15].mxu0  ;;  %v1231_v40 = vadd.f32 %v1230_v20, %v5762_v62  ;;  %v1232_v29 = vpop.f32.mrb[14].mxu1  ;;  %v8162_v27 = vmov 0  }
 0x125   : > { %8154 = vst [vmem:[#allocation26_spill] sm:$0xff] %v5894_v37  ;;  %v5897_v41 = vadd.f32 %v961_v35, %v5883_v56  ;;  %v1233_v47 = vadd.f32 %v1232_v29, %v5764_v3  ;;  %v1234_v59 = vpop.f32.mrb[15].mxu1  ;;  %v5913_v29 = vpop.permute.xlu1 %682 }
 0x126   : > { %8153 = vst [vmem:[#allocation25_spill] sm:$0xff] %v5890_v16  ;;  %1370 = vmatmul.mubr.bf16.gmra.mrb[120].mxu0 %v5512_v33  ;;  %v1235_v26 = vadd.f32 %v1234_v59, %v5764_v3  ;;  %v5939_v16 = vpop.permute.xlu0 %687 }
 0x127   : > { %8155 = vst [vmem:[#allocation27_spill] sm:$0xff] %v5897_v41  ;;  %1379 = vmatprep.mubr.bf16.mxu0 %v7996_v0  ;;  %v5905_v20 = vpack.c.bf16 %v1233_v47, %v1229_v31  ;;  %8164 = vst [vmem:[#allocation35_spill] sm:$0xff] %v5939_v16 }
 0x128   : > { %v5911_v35 = vpack.c.bf16 %v1235_v26, %v1231_v40 }
 0x129   : > { %8156 = vst [vmem:[#allocation28_spill] sm:$0xff] %v5905_v20  ;;  %v965_v2 = vpop.f32.mrb[16].mxu0 }
 0x12a   : > { %8157 = vst [vmem:[#allocation29_spill] sm:$0xff] %v5911_v35  ;;  %v967_v33 = vpop.f32.mrb[17].mxu0  ;;  %v1238_v39 = vpop.f32.mrb[16].mxu1  ;;  %v5917_v30 = vadd.f32 %v965_v2, %v5909_v51 }
 0x12b   : > { %v969_v59 = vpop.f32.mrb[18].mxu0  ;;  %v1239_v28 = vadd.f32 %v1238_v39, %v5769_v63  ;;  %v1240_v1 = vpop.f32.mrb[17].mxu1  ;;  %v5924_v26 = vadd.f32 %v967_v33, %v5909_v51 }
 0x12c   : > { %8158 = vst [vmem:[#allocation30_spill] sm:$0xff] %v5917_v30  ;;  %v5920_v47 = vadd.f32 %v969_v59, %v5913_v29  ;;  %v971_v31 = vpop.f32.mrb[19].mxu0  ;;  %v1241_v25 = vadd.f32 %v1240_v1, %v5769_v63  ;;  %v1242_v40 = vpop.f32.mrb[18].mxu1 }
 0x12d   : > { %8160 = vst [vmem:[#allocation32_spill] sm:$0xff] %v5924_v26  ;;  %v5927_v0 = vadd.f32 %v971_v31, %v5913_v29  ;;  %v1243_v20 = vadd.f32 %v1242_v40, %v5771_v13  ;;  %v1244_v39 = vpop.f32.mrb[19].mxu1  ;;  %v5943_v40 = vpop.permute.xlu1 %692 }
 0x12e   : > { %8159 = vst [vmem:[#allocation31_spill] sm:$0xff] %v5920_v47  ;;  %1380 = vmatmul.mubr.bf16.gmra.mrb[124].mxu0 %v5538_v14  ;;  %v1245_v2 = vadd.f32 %v1244_v39, %v5771_v13  ;;  %8166 = vst [vmem:[#allocation37_spill] sm:$0xff] %v5943_v40 }
 0x12f   : > { %8161 = vst [vmem:[#allocation33_spill] sm:$0xff] %v5927_v0  ;;  %1389 = vmatprep.mubr.bf16.mxu0 %v8162_v27  ;;  %v5935_v1 = vpack.c.bf16 %v1243_v20, %v1239_v28 }
 0x130   : > { %v5941_v31 = vpack.c.bf16 %v1245_v2, %v1241_v25 }
 0x131   : > { %8163 = vst [vmem:[#allocation34_spill] sm:$0xff] %v5935_v1  ;;  %v975_v35 = vpop.f32.mrb[20].mxu0  ;;  %v5975_v26 = vpop.permute.xlu1 %702 }
 0x132   : > { %8165 = vst [vmem:[#allocation36_spill] sm:$0xff] %v5941_v31  ;;  %v977_v14 = vpop.f32.mrb[21].mxu0  ;;  %v1248_v49 = vpop.f32.mrb[20].mxu1  ;;  %v5947_v30 = vadd.f32 %v975_v35, %v5939_v16  ;;  %v4974_v35 = vld [vmem:[%s7987_s2 + $0x40] sm:$0xff]   ;;  %8173 = vst [vmem:[#allocation44_spill] sm:$0xff] %v5975_v26 }
 0x133   : > { %v979_v39 = vpop.f32.mrb[22].mxu0  ;;  %v1249_v37 = vadd.f32 %v1248_v49, %v5773_v4  ;;  %v1250_v59 = vpop.f32.mrb[21].mxu1  ;;  %v5954_v2 = vadd.f32 %v977_v14, %v5939_v16 }
 0x134   : > { %8167 = vst [vmem:[#allocation38_spill] sm:$0xff] %v5947_v30  ;;  %v5950_v28 = vadd.f32 %v979_v39, %v5943_v40  ;;  %v981_v20 = vpop.f32.mrb[23].mxu0  ;;  %v1251_v33 = vadd.f32 %v1250_v59, %v5773_v4  ;;  %v1252_v25 = vpop.f32.mrb[22].mxu1 }
 0x135   : > { %8169 = vst [vmem:[#allocation40_spill] sm:$0xff] %v5954_v2  ;;  %v5957_v1 = vadd.f32 %v981_v20, %v5943_v40  ;;  %v1253_v47 = vadd.f32 %v1252_v25, %v5776_v10  ;;  %v1254_v49 = vpop.f32.mrb[23].mxu1  ;;  %v5971_v31 = vpop.permute.xlu0 %697 }
 0x136   : > { %8168 = vst [vmem:[#allocation39_spill] sm:$0xff] %v5950_v28  ;;  %1390 = vmatmul.mubr.bf16.gmra.mrb[128].mxu0 %v4974_v35  ;;  %v1255_v39 = vadd.f32 %v1254_v49, %v5776_v10  ;;  %v6007_v2 = vpop.permute.xlu1 %712 }
 0x137   : > { %8170 = vst [vmem:[#allocation41_spill] sm:$0xff] %v5957_v1  ;;  %1399 = vmatprep.mubr.bf16.mxu0 %v8162_v27  ;;  %v5967_v14 = vpack.c.bf16 %v1253_v47, %v1249_v37 }
 0x138   : > { %v5973_v25 = vpack.c.bf16 %v1255_v39, %v1251_v33 }
 0x139   : > { %8171 = vst [vmem:[#allocation42_spill] sm:$0xff] %v5967_v14  ;;  %v985_v0 = vpop.f32.mrb[24].mxu0 }
 0x13a   : > { %8172 = vst [vmem:[#allocation43_spill] sm:$0xff] %v5973_v25  ;;  %v987_v35 = vpop.f32.mrb[25].mxu0  ;;  %v1258_v41 = vpop.f32.mrb[24].mxu1  ;;  %v5979_v30 = vadd.f32 %v985_v0, %v5971_v31  ;;  %v4975_v0 = vld [vmem:[%s7987_s2 + $0x48] sm:$0xff]  }
 0x13b   : > { %v989_v49 = vpop.f32.mrb[26].mxu0  ;;  %v1259_v22 = vadd.f32 %v1258_v41, %v5779_v18  ;;  %v1260_v59 = vpop.f32.mrb[25].mxu1  ;;  %v5986_v39 = vadd.f32 %v987_v35, %v5971_v31 }
 0x13c   : > { %8174 = vst [vmem:[#allocation45_spill] sm:$0xff] %v5979_v30  ;;  %v5982_v37 = vadd.f32 %v989_v49, %v5975_v26  ;;  %v991_v47 = vpop.f32.mrb[27].mxu0  ;;  %v1261_v20 = vadd.f32 %v1260_v59, %v5779_v18  ;;  %v1262_v33 = vpop.f32.mrb[26].mxu1 }
 0x13d   : > { %8176 = vst [vmem:[#allocation47_spill] sm:$0xff] %v5986_v39  ;;  %v5989_v14 = vadd.f32 %v991_v47, %v5975_v26  ;;  %v1263_v28 = vadd.f32 %v1262_v33, %v5781_v6  ;;  %v1264_v41 = vpop.f32.mrb[27].mxu1  ;;  %v6003_v47 = vpop.permute.xlu0 %707 }
 0x13e   : > { %8175 = vst [vmem:[#allocation46_spill] sm:$0xff] %v5982_v37  ;;  %1400 = vmatmul.mubr.bf16.gmra.mrb[132].mxu0 %v4975_v0  ;;  %v1265_v49 = vadd.f32 %v1264_v41, %v5781_v6 }
 0x13f   : > { %8177 = vst [vmem:[#allocation48_spill] sm:$0xff] %v5989_v14  ;;  %v5998_v25 = vpack.c.bf16 %v1263_v28, %v1259_v22  ;;  %1409 = vmatprep.mubr.bf16.mxu0 %v8162_v27 }
 0x140   : > { %v6005_v33 = vpack.c.bf16 %v1265_v49, %v1261_v20 }
 0x141   : > { %8178 = vst [vmem:[#allocation49_spill] sm:$0xff] %v5998_v25  ;;  %v995_v1 = vpop.f32.mrb[28].mxu0 }
 0x142   : > { %8179 = vst [vmem:[#allocation50_spill] sm:$0xff] %v6005_v33  ;;  %v997_v0 = vpop.f32.mrb[29].mxu0  ;;  %v1268_v24 = vpop.f32.mrb[28].mxu1  ;;  %v6011_v22 = vadd.f32 %v995_v1, %v6003_v47  ;;  %v4976_v1 = vld [vmem:[%s7987_s2 + $0x50] sm:$0xff]  }
 0x143   : > { %v999_v41 = vpop.f32.mrb[30].mxu0  ;;  %v1269_v55 = vadd.f32 %v1268_v24, %v5785_v15  ;;  %v1270_v59 = vpop.f32.mrb[29].mxu1  ;;  %v6018_v49 = vadd.f32 %v997_v0, %v6003_v47 }
 0x144   : > { %8180 = vst [vmem:[#allocation51_spill] sm:$0xff] %v6011_v22  ;;  %v6014_v28 = vadd.f32 %v999_v41, %v6007_v2  ;;  %v1001_v35 = vpop.f32.mrb[31].mxu0  ;;  %v1271_v25 = vadd.f32 %v1270_v59, %v5785_v15  ;;  %v1272_v20 = vpop.f32.mrb[30].mxu1 }
 0x145   : > { %v6021_v30 = vadd.f32 %v1001_v35, %v6007_v2  ;;  %v1273_v37 = vadd.f32 %v1272_v20, %v5787_v9  ;;  %v1274_v24 = vpop.f32.mrb[31].mxu1 }
 0x146   : > { %8181 = vst [vmem:[#allocation52_spill] sm:$0xff] %v6014_v28  ;;  %1410 = vmatmul.mubr.bf16.gmra.mrb[136].mxu0 %v4976_v1  ;;  %v1275_v41 = vadd.f32 %v1274_v24, %v5787_v9 }
 0x147   : > { %v6030_v33 = vpack.c.bf16 %v1273_v37, %v1269_v55  ;;  %1419 = vmatprep.mubr.bf16.mxu0 %v8162_v27 }
 0x148   : > { %v6035_v0 = vpack.c.bf16 %v1275_v41, %v1271_v25 }
 0x149   : > { %8182 = vst [vmem:[#allocation53_spill] sm:$0xff] %v6030_v33  ;;  %v1005_v20 = vpop.f32.mrb[32].mxu0 }
 0x14a   : > { %8183 = vst [vmem:[#allocation54_spill] sm:$0xff] %v6035_v0  ;;  %v1504_v39 = vpop.f32.mrb[32].mxu1  ;;  %v1007_v14 = vpop.f32.mrb[33].mxu0  ;;  %v1006_v24 = vadd.f32 %v1005_v20, %v5741_v58 }
 0x14b   : > { %v1506_v7 = vpop.f32.mrb[33].mxu1  ;;  %v1009_v38 = vpop.f32.mrb[34].mxu0  ;;  %v6038_v1 = vadd.f32 %v1504_v39, %v5791_v46  ;;  %v1008_v25 = vadd.f32 %v1007_v14, %v5741_v58 }
 0x14c   : > { %v1010_v55 = vadd.f32 %v1009_v38, %v5746_v48  ;;  %v1508_v37 = vpop.f32.mrb[34].mxu1  ;;  %v1011_v59 = vpop.f32.mrb[35].mxu0  ;;  %v6043_v33 = vadd.f32 %v1506_v7, %v5791_v46  ;;  %v4977_v38 = vld [vmem:[%s7987_s2 + $0x58] sm:$0xff]  }
 0x14d   : > { %8184 = vst [vmem:[#allocation55_spill] sm:$0xff] %v6038_v1  ;;  %v6047_v41 = vadd.f32 %v1508_v37, %v5793_v36  ;;  %v1012_v35 = vadd.f32 %v1011_v59, %v5746_v48  ;;  %v1510_v22 = vpop.f32.mrb[35].mxu1 }
 0x14e   : > { %8185 = vst [vmem:[#allocation56_spill] sm:$0xff] %v6043_v33  ;;  %v6050_v28 = vpack.c.bf16 %v1010_v55, %v1006_v24  ;;  %v6053_v39 = vadd.f32 %v1510_v22, %v5793_v36  ;;  %1420 = vmatmul.mubr.bf16.gmra.mrb[140].mxu0 %v4977_v38 }
 0x14f   : > { %8186 = vst [vmem:[#allocation57_spill] sm:$0xff] %v6047_v41  ;;  %v6060_v14 = vpack.c.bf16 %v1012_v35, %v1008_v25  ;;  %1429 = vmatprep.mubr.bf16.mxu0 %v8162_v27 }
 0x150   : > { %8187 = vst [vmem:[#allocation58_spill] sm:$0xff] %v6050_v28  ;;  %8188 = vst [vmem:[#allocation59_spill] sm:$0xff] %v6053_v39 }
 0x151   : > { %8189 = vst [vmem:[#allocation60_spill] sm:$0xff] %v6060_v14  ;;  %v1015_v20 = vpop.f32.mrb[36].mxu0  ;;  %1791 = vmatprep.subr.bf16.mxu0 %v6060_v14 }
 0x152   : > { %v1514_v22 = vpop.f32.mrb[36].mxu1  ;;  %v1017_v24 = vpop.f32.mrb[37].mxu0  ;;  %1792 = vmatpush1.bf16.xpose.msra.mxu0 %v6050_v28  ;;  %v1016_v35 = vadd.f32 %v1015_v20, %v5744_v60  ;;  %v4978_v20 = vld [vmem:[%s7987_s2 + $0x60] sm:$0xff]  }
 0x153   : > { %v6068_v55 = vadd.f32 %v1514_v22, %v5819_v32  ;;  %v1516_v37 = vpop.f32.mrb[37].mxu1  ;;  %v1019_v38 = vpop.f32.mrb[38].mxu0  ;;  %v1018_v14 = vadd.f32 %v1017_v24, %v5744_v60 }
 0x154   : > { %v6072_v25 = vadd.f32 %v1516_v37, %v5819_v32  ;;  %v1020_v7 = vadd.f32 %v1019_v38, %v5750_v8  ;;  %v1518_v59 = vpop.f32.mrb[38].mxu1  ;;  %v1021_v1 = vpop.f32.mrb[39].mxu0 }
 0x155   : > { %8190 = vst [vmem:[#allocation61_spill] sm:$0xff] %v6068_v55  ;;  %v6077_v41 = vadd.f32 %v1518_v59, %v5823_v52  ;;  %v1022_v28 = vadd.f32 %v1021_v1, %v5750_v8  ;;  %v1520_v22 = vpop.f32.mrb[39].mxu1 }
 0x156   : > { %8191 = vst [vmem:[#allocation62_spill] sm:$0xff] %v6072_v25  ;;  %v6080_v33 = vpack.c.bf16 %v1020_v7, %v1016_v35  ;;  %v6083_v39 = vadd.f32 %v1520_v22, %v5823_v52  ;;  %1430 = vmatmul.mubr.bf16.gmra.mrb[144].mxu0 %v4978_v20 }
 0x157   : > { %8192 = vst [vmem:[#allocation63_spill] sm:$0xff] %v6077_v41  ;;  %v6090_v24 = vpack.c.bf16 %v1022_v28, %v1018_v14  ;;  %1439 = vmatprep.mubr.bf16.mxu0 %v8162_v27 }
 0x158   : > { %8193 = vst [vmem:[#allocation64_spill] sm:$0xff] %v6080_v33  ;;  %8194 = vst [vmem:[#allocation65_spill] sm:$0xff] %v6083_v39 }
 0x159   : > { %8195 = vst [vmem:[#allocation66_spill] sm:$0xff] %v6090_v24  ;;  %v1025_v7 = vpop.f32.mrb[40].mxu0  ;;  %1793 = vmatprep.subr.bf16.mxu0 %v6090_v24 }
 0x15a   : > { %v1524_v59 = vpop.f32.mrb[40].mxu1  ;;  %v1027_v38 = vpop.f32.mrb[41].mxu0  ;;  %1794 = vmatpush1.bf16.xpose.msra.mxu0 %v6080_v33  ;;  %v1026_v28 = vadd.f32 %v1025_v7, %v5754_v61  ;;  %v4979_v7 = vld [vmem:[%s7987_s2 + $0x68] sm:$0xff]  }
 0x15b   : > { %v6098_v35 = vadd.f32 %v1524_v59, %v5849_v43  ;;  %v1526_v22 = vpop.f32.mrb[41].mxu1  ;;  %v1029_v20 = vpop.f32.mrb[42].mxu0  ;;  %v1028_v24 = vadd.f32 %v1027_v38, %v5754_v61 }
 0x15c   : > { %v6102_v14 = vadd.f32 %v1526_v22, %v5849_v43  ;;  %v1030_v37 = vadd.f32 %v1029_v20, %v5756_v21  ;;  %v1528_v1 = vpop.f32.mrb[42].mxu1  ;;  %v1031_v55 = vpop.f32.mrb[43].mxu0 }
 0x15d   : > { %8196 = vst [vmem:[#allocation67_spill] sm:$0xff] %v6098_v35  ;;  %v6107_v41 = vadd.f32 %v1528_v1, %v5853_v12  ;;  %v1032_v33 = vadd.f32 %v1031_v55, %v5756_v21  ;;  %v1530_v59 = vpop.f32.mrb[43].mxu1 }
 0x15e   : > { %8197 = vst [vmem:[#allocation68_spill] sm:$0xff] %v6102_v14  ;;  %v6110_v25 = vpack.c.bf16 %v1030_v37, %v1026_v28  ;;  %v6113_v39 = vadd.f32 %v1530_v59, %v5853_v12  ;;  %1440 = vmatmul.mubr.bf16.gmra.mrb[148].mxu0 %v4979_v7 }
 0x15f   : > { %8198 = vst [vmem:[#allocation69_spill] sm:$0xff] %v6107_v41  ;;  %v6120_v38 = vpack.c.bf16 %v1032_v33, %v1028_v24  ;;  %1449 = vmatprep.mubr.bf16.mxu0 %v8162_v27 }
 0x160   : > { %8199 = vst [vmem:[#allocation70_spill] sm:$0xff] %v6110_v25  ;;  %8200 = vst [vmem:[#allocation71_spill] sm:$0xff] %v6113_v39 }
 0x161   : > { %8201 = vst [vmem:[#allocation72_spill] sm:$0xff] %v6120_v38  ;;  %v1035_v37 = vpop.f32.mrb[44].mxu0  ;;  %1795 = vmatprep.subr.bf16.mxu0 %v6120_v38 }
 0x162   : > { %v1534_v1 = vpop.f32.mrb[44].mxu1  ;;  %v1037_v20 = vpop.f32.mrb[45].mxu0  ;;  %1796 = vmatpush1.bf16.xpose.msra.mxu0 %v6110_v25  ;;  %v1036_v33 = vadd.f32 %v1035_v37, %v5762_v62  ;;  %v4980_v37 = vld [vmem:[%s7987_s2 + $0x70] sm:$0xff]  }
 0x163   : > { %v6128_v28 = vadd.f32 %v1534_v1, %v5879_v54  ;;  %v1536_v59 = vpop.f32.mrb[45].mxu1  ;;  %v1039_v7 = vpop.f32.mrb[46].mxu0  ;;  %v1038_v38 = vadd.f32 %v1037_v20, %v5762_v62 }
 0x164   : > { %v6132_v24 = vadd.f32 %v1536_v59, %v5879_v54  ;;  %v1040_v22 = vadd.f32 %v1039_v7, %v5764_v3  ;;  %v1538_v55 = vpop.f32.mrb[46].mxu1  ;;  %v1041_v35 = vpop.f32.mrb[47].mxu0 }
 0x165   : > { %8202 = vst [vmem:[#allocation73_spill] sm:$0xff] %v6128_v28  ;;  %v6137_v41 = vadd.f32 %v1538_v55, %v5883_v56  ;;  %v1042_v25 = vadd.f32 %v1041_v35, %v5764_v3  ;;  %v1540_v1 = vpop.f32.mrb[47].mxu1 }
 0x166   : > { %8203 = vst [vmem:[#allocation74_spill] sm:$0xff] %v6132_v24  ;;  %v6140_v14 = vpack.c.bf16 %v1040_v22, %v1036_v33  ;;  %v6143_v39 = vadd.f32 %v1540_v1, %v5883_v56  ;;  %1450 = vmatmul.mubr.bf16.gmra.mrb[152].mxu0 %v4980_v37 }
 0x167   : > { %8204 = vst [vmem:[#allocation75_spill] sm:$0xff] %v6137_v41  ;;  %v6150_v20 = vpack.c.bf16 %v1042_v25, %v1038_v38  ;;  %1459 = vmatprep.mubr.bf16.mxu0 %v8162_v27 }
 0x168   : > { %8205 = vst [vmem:[#allocation76_spill] sm:$0xff] %v6140_v14  ;;  %8206 = vst [vmem:[#allocation77_spill] sm:$0xff] %v6143_v39 }
 0x169   : > { %8207 = vst [vmem:[#allocation78_spill] sm:$0xff] %v6150_v20  ;;  %v1045_v22 = vpop.f32.mrb[48].mxu0  ;;  %1797 = vmatprep.subr.bf16.mxu0 %v6150_v20 }
 0x16a   : > { %v1544_v55 = vpop.f32.mrb[48].mxu1  ;;  %v1047_v7 = vpop.f32.mrb[49].mxu0  ;;  %1798 = vmatpush1.bf16.xpose.msra.mxu0 %v6140_v14  ;;  %v1046_v25 = vadd.f32 %v1045_v22, %v5769_v63  ;;  %v4981_v22 = vld [vmem:[%s7987_s2 + $0x78] sm:$0xff]  }
 0x16b   : > { %v6158_v33 = vadd.f32 %v1544_v55, %v5909_v51  ;;  %v1546_v1 = vpop.f32.mrb[49].mxu1  ;;  %v1049_v37 = vpop.f32.mrb[50].mxu0  ;;  %v1048_v20 = vadd.f32 %v1047_v7, %v5769_v63 }
 0x16c   : > { %v6162_v38 = vadd.f32 %v1546_v1, %v5909_v51  ;;  %v1050_v59 = vadd.f32 %v1049_v37, %v5771_v13  ;;  %v1548_v35 = vpop.f32.mrb[50].mxu1  ;;  %v1051_v27 = vpop.f32.mrb[51].mxu0 }
 0x16d   : > { %8208 = vst [vmem:[#allocation79_spill] sm:$0xff] %v6158_v33  ;;  %v6167_v28 = vadd.f32 %v1548_v35, %v5913_v29  ;;  %v1052_v14 = vadd.f32 %v1051_v27, %v5771_v13  ;;  %v1550_v55 = vpop.f32.mrb[51].mxu1  ;;  %v8214_v35 = vpack.c.bf16 %v5807_v23, %v5804_v50 }
 0x16e   : > { %8209 = vst [vmem:[#allocation80_spill] sm:$0xff] %v6162_v38  ;;  %v6170_v41 = vpack.c.bf16 %v1050_v59, %v1046_v25  ;;  %v6173_v24 = vadd.f32 %v1550_v55, %v5913_v29  ;;  %1460 = vmatmul.mubr.bf16.gmra.mrb[156].mxu0 %v4981_v22 }
 0x16f   : > { %8210 = vst [vmem:[#allocation81_spill] sm:$0xff] %v6167_v28  ;;  %v6180_v7 = vpack.c.bf16 %v1052_v14, %v1048_v20  ;;  %1823 = vmatprep.mubr.bf16.mxu0 %v8214_v35 }
 0x170   : > { %8211 = vst [vmem:[#allocation82_spill] sm:$0xff] %v6170_v41  ;;  %8212 = vst [vmem:[#allocation83_spill] sm:$0xff] %v6173_v24 }
 0x171   : > { %8213 = vst [vmem:[#allocation84_spill] sm:$0xff] %v6180_v7  ;;  %v1055_v59 = vpop.f32.mrb[52].mxu0  ;;  %1799 = vmatprep.subr.bf16.mxu0 %v6180_v7 }
 0x172   : > { %v1554_v37 = vpop.f32.mrb[52].mxu1  ;;  %v1057_v25 = vpop.f32.mrb[53].mxu0  ;;  %1800 = vmatpush1.bf16.xpose.msra.mxu0 %v6170_v41  ;;  %v1056_v20 = vadd.f32 %v1055_v59, %v5773_v4 }
 0x173   : > { %v6190_v55 = vadd.f32 %v1554_v37, %v5939_v16  ;;  %v1556_v22 = vpop.f32.mrb[53].mxu1  ;;  %v1059_v14 = vpop.f32.mrb[54].mxu0  ;;  %v1058_v27 = vadd.f32 %v1057_v25, %v5773_v4 }
 0x174   : > { %v6194_v50 = vadd.f32 %v1556_v22, %v5939_v16  ;;  %v1060_v23 = vadd.f32 %v1059_v14, %v5776_v10  ;;  %v1558_v35 = vpop.f32.mrb[54].mxu1  ;;  %v1061_v1 = vpop.f32.mrb[55].mxu0 }
 0x175   : > { %8215 = vst [vmem:[#allocation85_spill] sm:$0xff] %v6190_v55  ;;  %v6199_v7 = vadd.f32 %v1558_v35, %v5943_v40  ;;  %v1062_v41 = vadd.f32 %v1061_v1, %v5776_v10  ;;  %v1560_v37 = vpop.f32.mrb[55].mxu1 }
 0x176   : > { %8216 = vst [vmem:[#allocation86_spill] sm:$0xff] %v6194_v50  ;;  %v6202_v33 = vpack.c.bf16 %v1060_v23, %v1056_v20  ;;  %v6205_v28 = vadd.f32 %v1560_v37, %v5943_v40 }
 0x177   : > { %8217 = vst [vmem:[#allocation87_spill] sm:$0xff] %v6199_v7  ;;  %v6209_v22 = vpack.c.bf16 %v1062_v41, %v1058_v27 }
 0x178   : > { %8218 = vst [vmem:[#allocation88_spill] sm:$0xff] %v6202_v33  ;;  %8219 = vst [vmem:[#allocation89_spill] sm:$0xff] %v6205_v28 }
 0x179   : > { %8220 = vst [vmem:[#allocation90_spill] sm:$0xff] %v6209_v22  ;;  %v1065_v25 = vpop.f32.mrb[56].mxu0  ;;  %1801 = vmatprep.subr.bf16.mxu0 %v6209_v22 }
 0x17a   : > { %v1564_v35 = vpop.f32.mrb[56].mxu1  ;;  %v1067_v38 = vpop.f32.mrb[57].mxu0  ;;  %1802 = vmatpush1.bf16.xpose.msra.mxu0 %v6202_v33  ;;  %v1066_v37 = vadd.f32 %v1065_v25, %v5779_v18 }
 0x17b   : > { %v6216_v1 = vadd.f32 %v1564_v35, %v5971_v31  ;;  %v1566_v20 = vpop.f32.mrb[57].mxu1  ;;  %v1069_v23 = vpop.f32.mrb[58].mxu0  ;;  %v1068_v22 = vadd.f32 %v1067_v38, %v5779_v18 }
 0x17c   : > { %v6220_v41 = vadd.f32 %v1566_v20, %v5971_v31  ;;  %v1070_v27 = vadd.f32 %v1069_v23, %v5781_v6  ;;  %v1568_v59 = vpop.f32.mrb[58].mxu1  ;;  %v1071_v14 = vpop.f32.mrb[59].mxu0 }
 0x17d   : > { %8221 = vst [vmem:[#allocation91_spill] sm:$0xff] %v6216_v1  ;;  %v6225_v55 = vadd.f32 %v1568_v59, %v5975_v26  ;;  %v1072_v33 = vadd.f32 %v1071_v14, %v5781_v6  ;;  %v1570_v35 = vpop.f32.mrb[59].mxu1 }
 0x17e   : > { %8222 = vst [vmem:[#allocation92_spill] sm:$0xff] %v6220_v41  ;;  %v6228_v7 = vpack.c.bf16 %v1070_v27, %v1066_v37  ;;  %v6231_v50 = vadd.f32 %v1570_v35, %v5975_v26 }
 0x17f   : > { %8223 = vst [vmem:[#allocation93_spill] sm:$0xff] %v6225_v55  ;;  %v6235_v20 = vpack.c.bf16 %v1072_v33, %v1068_v22 }
 0x180   : > { %8224 = vst [vmem:[#allocation94_spill] sm:$0xff] %v6228_v7  ;;  %8225 = vst [vmem:[#allocation95_spill] sm:$0xff] %v6231_v50 }
 0x181   : > { %8226 = vst [vmem:[#allocation96_spill] sm:$0xff] %v6235_v20  ;;  %v1075_v38 = vpop.f32.mrb[60].mxu0  ;;  %1803 = vmatprep.subr.bf16.mxu0 %v6235_v20 }
 0x182   : > { %v1574_v59 = vpop.f32.mrb[60].mxu1  ;;  %v1077_v28 = vpop.f32.mrb[61].mxu0  ;;  %1804 = vmatpush1.bf16.xpose.msra.mxu0 %v6228_v7  ;;  %v1076_v35 = vadd.f32 %v1075_v38, %v5785_v15 }
 0x183   : > { %v6242_v14 = vadd.f32 %v1574_v59, %v6003_v47  ;;  %v1576_v37 = vpop.f32.mrb[61].mxu1  ;;  %v1079_v27 = vpop.f32.mrb[62].mxu0  ;;  %v1078_v20 = vadd.f32 %v1077_v28, %v5785_v15 }
 0x184   : > { %v6246_v33 = vadd.f32 %v1576_v37, %v6003_v47  ;;  %v1080_v22 = vadd.f32 %v1079_v27, %v5787_v9  ;;  %v1578_v25 = vpop.f32.mrb[62].mxu1  ;;  %v1081_v23 = vpop.f32.mrb[63].mxu0 }
 0x185   : > { %8227 = vst [vmem:[#allocation97_spill] sm:$0xff] %v6242_v14  ;;  %v6251_v1 = vadd.f32 %v1578_v25, %v6007_v2  ;;  %v1082_v7 = vadd.f32 %v1081_v23, %v5787_v9  ;;  %v1580_v59 = vpop.f32.mrb[63].mxu1 }
 0x186   : > { %8228 = vst [vmem:[#allocation98_spill] sm:$0xff] %v6246_v33  ;;  %v6254_v55 = vpack.c.bf16 %v1080_v22, %v1076_v35  ;;  %v6257_v41 = vadd.f32 %v1580_v59, %v6007_v2 }
 0x187   : > { %8229 = vst [vmem:[#allocation99_spill] sm:$0xff] %v6251_v1  ;;  %v6261_v37 = vpack.c.bf16 %v1082_v7, %v1078_v20 }
 0x188   : > { %8230 = vst [vmem:[#allocation100_spill] sm:$0xff] %v6254_v55  ;;  %8231 = vst [vmem:[#allocation101_spill] sm:$0xff] %v6257_v41 }
 0x189   : > { %8232 = vst [vmem:[#allocation102_spill] sm:$0xff] %v6261_v37  ;;  %v1118_v28 = vpop.f32.mrb[64].mxu0  ;;  %1805 = vmatprep.subr.bf16.mxu0 %v6261_v37 }
 0x18a   : > { %v1584_v25 = vpop.f32.mrb[64].mxu1  ;;  %v1120_v50 = vpop.f32.mrb[65].mxu0  ;;  %1806 = vmatpush1.bf16.xpose.msra.mxu0 %v6254_v55  ;;  %v6269_v22 = vadd.f32 %v1118_v28, %v5791_v46 }
 0x18b   : > { %v1586_v23 = vpop.f32.mrb[65].mxu1  ;;  %v1122_v35 = vpop.f32.mrb[66].mxu0  ;;  %1888 = vmatprep.subr.bf16.mxu0 %v5821_v34  ;;  %v1585_v38 = vadd.f32 %v1584_v25, %v5741_v58  ;;  %v6276_v27 = vadd.f32 %v1120_v50, %v5791_v46 }
 0x18c   : > { %v6272_v7 = vadd.f32 %v1122_v35, %v5793_v36  ;;  %v1588_v20 = vpop.f32.mrb[66].mxu1  ;;  %v1124_v59 = vpop.f32.mrb[67].mxu0  ;;  %v1587_v34 = vadd.f32 %v1586_v23, %v5741_v58  ;;  %v8236_v23 = vpack.c.bf16 %v5837_v57, %v5834_v53 }
 0x18d   : > { %v1589_v37 = vadd.f32 %v1588_v20, %v5746_v48  ;;  %v6280_v55 = vadd.f32 %v1124_v59, %v5793_v36  ;;  %v1590_v14 = vpop.f32.mrb[67].mxu1  ;;  %v8235_v20 = vpack.c.bf16 %v5800_v19, %v5797_v17 }
 0x18e   : > { %v1591_v35 = vadd.f32 %v1590_v14, %v5746_v48 }
 0x18f   : > { %v6286_v1 = vpack.c.bf16 %v1589_v37, %v1585_v38 }
 0x190   : > { %v6290_v50 = vpack.c.bf16 %v1591_v35, %v1587_v34 }
 0x191   : > { %8233 = vst [vmem:[#allocation103_spill] sm:$0xff] %v6286_v1  ;;  %v1128_v33 = vpop.f32.mrb[68].mxu0  ;;  %1824 = vmatmul.mubr.bf16.vlgmr.msra.gmra.mrb[160].mxu0 %v8235_v20 }
 0x192   : > { %8234 = vst [vmem:[#allocation104_spill] sm:$0xff] %v6290_v50  ;;  %v1594_v59 = vpop.f32.mrb[68].mxu1  ;;  %v1130_v41 = vpop.f32.mrb[69].mxu0  ;;  %1831 = vmatprep.mubr.bf16.mxu0 %v8236_v23  ;;  %1889 = vmatpush1.bf16.xpose.msra.mxu0 %v5815_v44  ;;  %v6301_v34 = vadd.f32 %v1128_v33, %v5819_v32  ;;  %v8242_v33 = vld [vmem:[#allocation17_spill] sm:$0xff]  ;;  %v8250_v50 = vld [vmem:[#allocation26_spill] sm:$0xff] }
 0x193   : > { %v1596_v14 = vpop.f32.mrb[69].mxu1  ;;  %v1132_v38 = vpop.f32.mrb[70].mxu0  ;;  %1890 = vmatprep.subr.bf16.mxu0 %v5851_v11  ;;  %v1595_v35 = vadd.f32 %v1594_v59, %v5744_v60  ;;  %v6308_v20 = vadd.f32 %v1130_v41, %v5819_v32 }
 0x194   : > { %v6304_v37 = vadd.f32 %v1132_v38, %v5823_v52  ;;  %v1598_v17 = vpop.f32.mrb[70].mxu1  ;;  %v1134_v19 = vpop.f32.mrb[71].mxu0  ;;  %v1597_v28 = vadd.f32 %v1596_v14, %v5744_v60  ;;  %v8240_v14 = vld [vmem:[#allocation21_spill] sm:$0xff] }
 0x195   : > { %v1599_v53 = vadd.f32 %v1598_v17, %v5750_v8  ;;  %v6312_v57 = vadd.f32 %v1134_v19, %v5823_v52  ;;  %v1600_v23 = vpop.f32.mrb[71].mxu1  ;;  %v8239_v17 = vpack.c.bf16 %v5830_v45, %v5827_v42  ;;  %v8241_v24 = vpack.c.bf16 %v5867_v5, %v8240_v14 }
 0x196   : > { %v1601_v38 = vadd.f32 %v1600_v23, %v5750_v8  ;;  %v8243_v23 = vld [vmem:[#allocation23_spill] sm:$0xff] }
 0x197   : > { %v6318_v25 = vpack.c.bf16 %v1599_v53, %v1595_v35 }
 0x198   : > { %v6322_v41 = vpack.c.bf16 %v1601_v38, %v1597_v28 }
 0x199   : > { %8237 = vst [vmem:[#allocation105_spill] sm:$0xff] %v6318_v25  ;;  %v1138_v11 = vpop.f32.mrb[72].mxu0  ;;  %1832 = vmatmul.mubr.bf16.gmra.mrb[164].mxu0 %v8239_v17  ;;  %v8247_v25 = vld [vmem:[#allocation19_spill] sm:$0xff] }
 0x19a   : > { %8238 = vst [vmem:[#allocation106_spill] sm:$0xff] %v6322_v41  ;;  %v1604_v19 = vpop.f32.mrb[72].mxu1  ;;  %v1140_v44 = vpop.f32.mrb[73].mxu0  ;;  %1839 = vmatprep.mubr.bf16.mxu0 %v8241_v24  ;;  %1891 = vmatpush1.bf16.xpose.msra.mxu0 %v8242_v33  ;;  %v6333_v28 = vadd.f32 %v1138_v11, %v5849_v43  ;;  %v8252_v11 = vld [vmem:[#allocation22_spill] sm:$0xff] }
 0x19b   : > { %v1606_v35 = vpop.f32.mrb[73].mxu1  ;;  %v1142_v53 = vpop.f32.mrb[74].mxu0  ;;  %1892 = vmatprep.subr.bf16.mxu0 %v8243_v23  ;;  %v1605_v17 = vadd.f32 %v1604_v19, %v5754_v61  ;;  %v6340_v59 = vadd.f32 %v1140_v44, %v5849_v43 }
 0x19c   : > { %v6336_v38 = vadd.f32 %v1142_v53, %v5853_v12  ;;  %v1608_v42 = vpop.f32.mrb[74].mxu1  ;;  %v1144_v45 = vpop.f32.mrb[75].mxu0  ;;  %v1607_v23 = vadd.f32 %v1606_v35, %v5754_v61  ;;  %v8249_v35 = vld [vmem:[#allocation27_spill] sm:$0xff] }
 0x19d   : > { %v1609_v5 = vadd.f32 %v1608_v42, %v5756_v21  ;;  %v6344_v24 = vadd.f32 %v1144_v45, %v5853_v12  ;;  %v1610_v14 = vpop.f32.mrb[75].mxu1  ;;  %v8246_v42 = vld [vmem:[#allocation20_spill] sm:$0xff]  ;;  %v8251_v61 = vpack.c.bf16 %v8249_v35, %v8250_v50 }
 0x19e   : > { %v1611_v53 = vadd.f32 %v1610_v14, %v5756_v21  ;;  %v8248_v45 = vpack.c.bf16 %v8246_v42, %v8247_v25  ;;  %v8253_v14 = vld [vmem:[#allocation29_spill] sm:$0xff] }
 0x19f   : > { %v6350_v33 = vpack.c.bf16 %v1609_v5, %v1605_v17 }
 0x1a0   : > { %v6354_v44 = vpack.c.bf16 %v1611_v53, %v1607_v23 }
 0x1a1   : > { %8244 = vst [vmem:[#allocation21_spill] sm:$0xff] %v6350_v33  ;;  %v1148_v39 = vpop.f32.mrb[76].mxu0  ;;  %1840 = vmatmul.mubr.bf16.gmra.mrb[168].mxu0 %v8248_v45 }
 0x1a2   : > { %8245 = vst [vmem:[#allocation107_spill] sm:$0xff] %v6354_v44  ;;  %v1614_v41 = vpop.f32.mrb[76].mxu1  ;;  %v1150_v1 = vpop.f32.mrb[77].mxu0  ;;  %1847 = vmatprep.mubr.bf16.mxu0 %v8251_v61  ;;  %1893 = vmatpush1.bf16.xpose.msra.mxu0 %v8252_v11  ;;  %v6365_v23 = vadd.f32 %v1148_v39, %v5879_v54  ;;  %v8257_v44 = vld [vmem:[#allocation24_spill] sm:$0xff] }
 0x1a3   : > { %v1616_v17 = vpop.f32.mrb[77].mxu1  ;;  %v1152_v5 = vpop.f32.mrb[78].mxu0  ;;  %1894 = vmatprep.subr.bf16.mxu0 %v8253_v14  ;;  %v1615_v45 = vadd.f32 %v1614_v41, %v5762_v62  ;;  %v6372_v19 = vadd.f32 %v1150_v1, %v5879_v54  ;;  %v8262_v39 = vld [vmem:[#allocation28_spill] sm:$0xff] }
 0x1a4   : > { %v6368_v53 = vadd.f32 %v1152_v5, %v5883_v56  ;;  %v1618_v25 = vpop.f32.mrb[78].mxu1  ;;  %v1154_v42 = vpop.f32.mrb[79].mxu0  ;;  %v1617_v14 = vadd.f32 %v1616_v17, %v5762_v62  ;;  %v8259_v17 = vld [vmem:[#allocation33_spill] sm:$0xff]  ;;  %v8260_v62 = vld [vmem:[#allocation32_spill] sm:$0xff] }
 0x1a5   : > { %v1619_v61 = vadd.f32 %v1618_v25, %v5764_v3  ;;  %v6376_v50 = vadd.f32 %v1154_v42, %v5883_v56  ;;  %v1620_v35 = vpop.f32.mrb[79].mxu1  ;;  %v8256_v25 = vld [vmem:[#allocation25_spill] sm:$0xff]  ;;  %v8261_v60 = vpack.c.bf16 %v8259_v17, %v8260_v62 }
 0x1a6   : > { %v1621_v5 = vadd.f32 %v1620_v35, %v5764_v3  ;;  %v8258_v42 = vpack.c.bf16 %v8256_v25, %v8257_v44  ;;  %v8263_v35 = vld [vmem:[#allocation36_spill] sm:$0xff] }
 0x1a7   : > { %v6382_v11 = vpack.c.bf16 %v1619_v61, %v1615_v45 }
 0x1a8   : > { %v6386_v1 = vpack.c.bf16 %v1621_v5, %v1617_v14 }
 0x1a9   : > { %8254 = vst [vmem:[#allocation20_spill] sm:$0xff] %v6382_v11  ;;  %v1158_v33 = vpop.f32.mrb[80].mxu0  ;;  %1848 = vmatmul.mubr.bf16.gmra.mrb[172].mxu0 %v8258_v42 }
 0x1aa   : > { %8255 = vst [vmem:[#allocation19_spill] sm:$0xff] %v6386_v1  ;;  %v1624_v21 = vpop.f32.mrb[80].mxu1  ;;  %v1160_v8 = vpop.f32.mrb[81].mxu0  ;;  %1855 = vmatprep.mubr.bf16.mxu0 %v8261_v60  ;;  %1895 = vmatpush1.bf16.xpose.msra.mxu0 %v8262_v39  ;;  %v6397_v14 = vadd.f32 %v1158_v33, %v5909_v51  ;;  %v8267_v1 = vld [vmem:[#allocation30_spill] sm:$0xff] }
 0x1ab   : > { %v1626_v45 = vpop.f32.mrb[81].mxu1  ;;  %v1162_v61 = vpop.f32.mrb[82].mxu0  ;;  %1896 = vmatprep.subr.bf16.mxu0 %v8263_v35  ;;  %v1625_v42 = vadd.f32 %v1624_v21, %v5769_v63  ;;  %v6404_v41 = vadd.f32 %v1160_v8, %v5909_v51  ;;  %v8272_v33 = vld [vmem:[#allocation34_spill] sm:$0xff] }
 0x1ac   : > { %v6400_v5 = vadd.f32 %v1162_v61, %v5913_v29  ;;  %v1628_v44 = vpop.f32.mrb[82].mxu1  ;;  %v1164_v25 = vpop.f32.mrb[83].mxu0  ;;  %v1627_v35 = vadd.f32 %v1626_v45, %v5769_v63  ;;  %v8269_v45 = vld [vmem:[#allocation41_spill] sm:$0xff]  ;;  %v8270_v63 = vld [vmem:[#allocation40_spill] sm:$0xff] }
 0x1ad   : > { %v1629_v60 = vadd.f32 %v1628_v44, %v5771_v13  ;;  %v6408_v62 = vadd.f32 %v1164_v25, %v5913_v29  ;;  %v1630_v17 = vpop.f32.mrb[83].mxu1  ;;  %v8266_v44 = vld [vmem:[#allocation31_spill] sm:$0xff]  ;;  %v8271_v58 = vpack.c.bf16 %v8269_v45, %v8270_v63 }
 0x1ae   : > { %v1631_v61 = vadd.f32 %v1630_v17, %v5771_v13  ;;  %v8268_v25 = vpack.c.bf16 %v8266_v44, %v8267_v1  ;;  %v8273_v17 = vld [vmem:[#allocation43_spill] sm:$0xff] }
 0x1af   : > { %v6414_v39 = vpack.c.bf16 %v1629_v60, %v1625_v42 }
 0x1b0   : > { %v6418_v8 = vpack.c.bf16 %v1631_v61, %v1627_v35 }
 0x1b1   : > { %8264 = vst [vmem:[#allocation27_spill] sm:$0xff] %v6414_v39  ;;  %v1168_v11 = vpop.f32.mrb[84].mxu0  ;;  %1856 = vmatmul.mubr.bf16.gmra.mrb[176].mxu0 %v8268_v25 }
 0x1b2   : > { %8265 = vst [vmem:[#allocation26_spill] sm:$0xff] %v6418_v8  ;;  %v1634_v3 = vpop.f32.mrb[84].mxu1  ;;  %v1170_v48 = vpop.f32.mrb[85].mxu0  ;;  %1863 = vmatprep.mubr.bf16.mxu0 %v8271_v58  ;;  %1897 = vmatpush1.bf16.xpose.msra.mxu0 %v8272_v33  ;;  %v6429_v35 = vadd.f32 %v1168_v11, %v5939_v16  ;;  %v8277_v8 = vld [vmem:[#allocation38_spill] sm:$0xff] }
 0x1b3   : > { %v1636_v42 = vpop.f32.mrb[85].mxu1  ;;  %v1172_v60 = vpop.f32.mrb[86].mxu0  ;;  %1898 = vmatprep.subr.bf16.mxu0 %v8273_v17  ;;  %v1635_v25 = vadd.f32 %v1634_v3, %v5773_v4  ;;  %v6436_v21 = vadd.f32 %v1170_v48, %v5939_v16  ;;  %v8282_v11 = vld [vmem:[#allocation42_spill] sm:$0xff] }
 0x1b4   : > { %v6432_v61 = vadd.f32 %v1172_v60, %v5943_v40  ;;  %v1638_v1 = vpop.f32.mrb[86].mxu1  ;;  %v1174_v44 = vpop.f32.mrb[87].mxu0  ;;  %v1637_v17 = vadd.f32 %v1636_v42, %v5773_v4  ;;  %v8279_v42 = vld [vmem:[#allocation48_spill] sm:$0xff]  ;;  %v8280_v4 = vld [vmem:[#allocation47_spill] sm:$0xff] }
 0x1b5   : > { %v1639_v58 = vadd.f32 %v1638_v1, %v5776_v10  ;;  %v6440_v63 = vadd.f32 %v1174_v44, %v5943_v40  ;;  %v1640_v45 = vpop.f32.mrb[87].mxu1  ;;  %v8276_v1 = vld [vmem:[#allocation39_spill] sm:$0xff]  ;;  %v8281_v16 = vpack.c.bf16 %v8279_v42, %v8280_v4 }
 0x1b6   : > { %v1641_v60 = vadd.f32 %v1640_v45, %v5776_v10  ;;  %v8278_v44 = vpack.c.bf16 %v8276_v1, %v8277_v8  ;;  %v8283_v45 = vld [vmem:[#allocation50_spill] sm:$0xff] }
 0x1b7   : > { %v6446_v33 = vpack.c.bf16 %v1639_v58, %v1635_v25 }
 0x1b8   : > { %v6450_v48 = vpack.c.bf16 %v1641_v60, %v1637_v17 }
 0x1b9   : > { %8274 = vst [vmem:[#allocation25_spill] sm:$0xff] %v6446_v33  ;;  %v1178_v39 = vpop.f32.mrb[88].mxu0  ;;  %1864 = vmatmul.mubr.bf16.gmra.mrb[180].mxu0 %v8278_v44 }
 0x1ba   : > { %8275 = vst [vmem:[#allocation24_spill] sm:$0xff] %v6450_v48  ;;  %v1644_v13 = vpop.f32.mrb[88].mxu1  ;;  %v1180_v40 = vpop.f32.mrb[89].mxu0  ;;  %1871 = vmatprep.mubr.bf16.mxu0 %v8281_v16  ;;  %1899 = vmatpush1.bf16.xpose.msra.mxu0 %v8282_v11  ;;  %v6461_v17 = vadd.f32 %v1178_v39, %v5971_v31  ;;  %v8287_v48 = vld [vmem:[#allocation45_spill] sm:$0xff] }
 0x1bb   : > { %v1646_v25 = vpop.f32.mrb[89].mxu1  ;;  %v1182_v58 = vpop.f32.mrb[90].mxu0  ;;  %1900 = vmatprep.subr.bf16.mxu0 %v8283_v45  ;;  %v1645_v44 = vadd.f32 %v1644_v13, %v5779_v18  ;;  %v6468_v3 = vadd.f32 %v1180_v40, %v5971_v31  ;;  %v8290_v39 = vld [vmem:[#allocation49_spill] sm:$0xff] }
 0x1bc   : > { %v6464_v60 = vadd.f32 %v1182_v58, %v5975_v26  ;;  %v1648_v8 = vpop.f32.mrb[90].mxu1  ;;  %v1184_v1 = vpop.f32.mrb[91].mxu0  ;;  %v1647_v45 = vadd.f32 %v1646_v25, %v5779_v18  ;;  %v8289_v25 = vpack.c.bf16 %v6021_v30, %v6018_v49 }
 0x1bd   : > { %v1649_v4 = vadd.f32 %v1648_v8, %v5781_v6  ;;  %v6472_v16 = vadd.f32 %v1184_v1, %v5975_v26  ;;  %v1650_v42 = vpop.f32.mrb[91].mxu1  ;;  %v8286_v8 = vld [vmem:[#allocation46_spill] sm:$0xff] }
 0x1be   : > { %v1651_v58 = vadd.f32 %v1650_v42, %v5781_v6  ;;  %v8288_v1 = vpack.c.bf16 %v8286_v8, %v8287_v48  ;;  %v8294_v6 = vld [vmem:[#allocation53_spill] sm:$0xff] }
 0x1bf   : > { %v6478_v11 = vpack.c.bf16 %v1649_v4, %v1645_v44 }
 0x1c0   : > { %v6482_v40 = vpack.c.bf16 %v1651_v58, %v1647_v45 }
 0x1c1   : > { %8284 = vst [vmem:[#allocation33_spill] sm:$0xff] %v6478_v11  ;;  %v1188_v33 = vpop.f32.mrb[92].mxu0  ;;  %1872 = vmatmul.mubr.bf16.gmra.mrb[184].mxu0 %v8288_v1  ;;  %v8292_v11 = vld [vmem:[#allocation51_spill] sm:$0xff] }
 0x1c2   : > { %8285 = vst [vmem:[#allocation32_spill] sm:$0xff] %v6482_v40  ;;  %v1654_v10 = vpop.f32.mrb[92].mxu1  ;;  %v1190_v26 = vpop.f32.mrb[93].mxu0  ;;  %1879 = vmatprep.mubr.bf16.mxu0 %v8289_v25  ;;  %1901 = vmatpush1.bf16.xpose.msra.mxu0 %v8290_v39  ;;  %v6493_v45 = vadd.f32 %v1188_v33, %v6003_v47 }
 0x1c3   : > { %v1656_v44 = vpop.f32.mrb[93].mxu1  ;;  %v1192_v4 = vpop.f32.mrb[94].mxu0  ;;  %1902 = vmatprep.subr.bf16.mxu0 %v6035_v0  ;;  %v1655_v8 = vadd.f32 %v1654_v10, %v5785_v15  ;;  %v6500_v1 = vadd.f32 %v1190_v26, %v6003_v47 }
 0x1c4   : > { %v6496_v42 = vadd.f32 %v1192_v4, %v6007_v2  ;;  %v1658_v48 = vpop.f32.mrb[94].mxu1  ;;  %v1194_v58 = vpop.f32.mrb[95].mxu0  ;;  %v1657_v13 = vadd.f32 %v1656_v44, %v5785_v15  ;;  %v8295_v44 = vpack.c.bf16 %v6280_v55, %v6276_v27 }
 0x1c5   : > { %v1659_v30 = vadd.f32 %v1658_v48, %v5787_v9  ;;  %v6504_v49 = vadd.f32 %v1194_v58, %v6007_v2  ;;  %v1660_v25 = vpop.f32.mrb[95].mxu1  ;;  %v8291_v48 = vld [vmem:[#allocation52_spill] sm:$0xff] }
 0x1c6   : > { %v1721_v33 = vpack.c.bf16 %v6496_v42, %v6493_v45  ;;  %v1661_v4 = vadd.f32 %v1660_v25, %v5787_v9  ;;  %v8293_v58 = vpack.c.bf16 %v8291_v48, %v8292_v11 }
 0x1c7   : > { %v6510_v0 = vpack.c.bf16 %v1659_v30, %v1655_v8  ;;  %v1722_v10 = vpack.c.bf16 %v6504_v49, %v6500_v1 }
 0x1c8   : > { %v6514_v26 = vpack.c.bf16 %v1661_v4, %v1657_v13 }
 0x1c9   : > { %v1311_v39 = vpop.f32.mrb[96].mxu0  ;;  %1880 = vmatmul.mubr.bf16.gmra.mrb[188].mxu0 %v8293_v58 }
 0x1ca   : > { %v1313_v40 = vpop.f32.mrb[97].mxu0  ;;  %1903 = vmatpush1.bf16.xpose.msra.mxu0 %v8294_v6  ;;  %1920 = vmatprep.mubr.bf16.mxu0 %v8295_v44  ;;  %v6524_v8 = vadd.f32 %v1311_v39, %v5791_v46  ;;  %v8296_v39 = vpack.c.bf16 %v6272_v7, %v6269_v22  ;;  %v8297_v44 = vpack.c.bf16 %v6312_v57, %v6308_v20 }
 0x1cb   : > { %v1315_v25 = vpop.f32.mrb[98].mxu0  ;;  %v6530_v4 = vadd.f32 %v1313_v40, %v5791_v46  ;;  %v8298_v57 = vpack.c.bf16 %v6304_v37, %v6301_v34  ;;  %v8323_v34 = vld [vmem:[#allocation13_spill] sm:$0xff] }
 0x1cc   : > { %v6527_v30 = vadd.f32 %v1315_v25, %v5793_v36  ;;  %v1317_v13 = vpop.f32.mrb[99].mxu0 }
 0x1cd   : > { %v6533_v11 = vadd.f32 %v1317_v13, %v5793_v36 }
 0x1cf   : > { %v1668_v55 = vpack.c.bf16 %v6533_v11, %v6530_v4  ;;  %v8314_v4 = vld [vmem:[#allocation3_spill] sm:$0xff] }
 0x1d1   : > { %v1321_v27 = vpop.f32.mrb[100].mxu0  ;;  %1921 = vmatmul.mubr.bf16.vlgmr.msra.gmra.mrb[160].mxu0 %v8296_v39  ;;  %v8299_v39 = vpack.c.bf16 %v6344_v24, %v6340_v59  ;;  %v8300_v24 = vpack.c.bf16 %v6336_v38, %v6333_v28  ;;  %v8321_v28 = vld [vmem:[#allocation11_spill] sm:$0xff] }
 0x1d2   : > { %v1323_v58 = vpop.f32.mrb[101].mxu0  ;;  %1928 = vmatprep.mubr.bf16.mxu0 %v8297_v44  ;;  %v6546_v36 = vadd.f32 %v1321_v27, %v5819_v32 }
 0x1d3   : > { %v1325_v46 = vpop.f32.mrb[102].mxu0  ;;  %v6552_v13 = vadd.f32 %v1323_v58, %v5819_v32 }
 0x1d4   : > { %v6549_v40 = vadd.f32 %v1325_v46, %v5823_v52  ;;  %v1327_v25 = vpop.f32.mrb[103].mxu0 }
 0x1d5   : > { %v6555_v48 = vadd.f32 %v1327_v25, %v5823_v52 }
 0x1d7   : > { %v1676_v7 = vpack.c.bf16 %v6555_v48, %v6552_v13  ;;  %v4955_v48 = vld [vmem:[%s7989_s4 + $0x28] sm:$0xff]  }
 0x1d9   : > { %v1331_v20 = vpop.f32.mrb[104].mxu0  ;;  %1929 = vmatmul.mubr.bf16.gmra.mrb[164].mxu0 %v8298_v57  ;;  %v8301_v57 = vpack.c.bf16 %v6376_v50, %v6372_v19  ;;  %v8302_v50 = vpack.c.bf16 %v6368_v53, %v6365_v23 }
 0x1da   : > { %v1333_v27 = vpop.f32.mrb[105].mxu0  ;;  %1936 = vmatprep.mubr.bf16.mxu0 %v8299_v39  ;;  %v6568_v52 = vadd.f32 %v1331_v20, %v5849_v43 }
 0x1db   : > { %v1335_v32 = vpop.f32.mrb[106].mxu0  ;;  %v6574_v46 = vadd.f32 %v1333_v27, %v5849_v43 }
 0x1dc   : > { %v6571_v58 = vadd.f32 %v1335_v32, %v5853_v12  ;;  %v1337_v44 = vpop.f32.mrb[107].mxu0 }
 0x1dd   : > { %v6577_v25 = vadd.f32 %v1337_v44, %v5853_v12 }
 0x1df   : > { %v8330_v13 = vpack.c.bf16 %v6577_v25, %v6574_v46 }
 0x1e1   : > { %v1341_v59 = vpop.f32.mrb[108].mxu0  ;;  %1937 = vmatmul.mubr.bf16.gmra.mrb[168].mxu0 %v8300_v24  ;;  %v8303_v24 = vpack.c.bf16 %v6408_v62, %v6404_v41  ;;  %v8304_v62 = vpack.c.bf16 %v6400_v5, %v6397_v14 }
 0x1e2   : > { %v1343_v20 = vpop.f32.mrb[109].mxu0  ;;  %1944 = vmatprep.mubr.bf16.mxu0 %v8301_v57  ;;  %v6590_v12 = vadd.f32 %v1341_v59, %v5879_v54 }
 0x1e3   : > { %v1345_v43 = vpop.f32.mrb[110].mxu0  ;;  %v6596_v32 = vadd.f32 %v1343_v20, %v5879_v54 }
 0x1e4   : > { %v6593_v27 = vadd.f32 %v1345_v43, %v5883_v56  ;;  %v1347_v39 = vpop.f32.mrb[111].mxu0 }
 0x1e5   : > { %v6599_v44 = vadd.f32 %v1347_v39, %v5883_v56 }
 0x1e6   : > { %v8337_v46 = vpack.c.bf16 %v6593_v27, %v6590_v12  ;;  %v8344_v12 = vld [vmem:[#allocation24_spill] sm:$0xff] }
 0x1e9   : > { %v1351_v19 = vpop.f32.mrb[112].mxu0  ;;  %1945 = vmatmul.mubr.bf16.gmra.mrb[172].mxu0 %v8302_v50  ;;  %v8305_v50 = vpack.c.bf16 %v6440_v63, %v6436_v21  ;;  %v8308_v63 = vpack.c.bf16 %v6432_v61, %v6429_v35  ;;  %v8319_v61 = vld [vmem:[#allocation9_spill] sm:$0xff] }
 0x1ea   : > { %v1353_v59 = vpop.f32.mrb[113].mxu0  ;;  %1952 = vmatprep.mubr.bf16.mxu0 %v8303_v24  ;;  %v6612_v56 = vadd.f32 %v1351_v19, %v5909_v51  ;;  %v8307_v24 = vld [vmem:[#allocation37_spill] sm:$0xff] }
 0x1eb   : > { %v1355_v54 = vpop.f32.mrb[114].mxu0  ;;  %v6618_v43 = vadd.f32 %v1353_v59, %v5909_v51  ;;  %v8306_v59 = vld [vmem:[#allocation35_spill] sm:$0xff] }
 0x1ec   : > { %v6615_v20 = vadd.f32 %v1355_v54, %v5913_v29  ;;  %v1357_v57 = vpop.f32.mrb[115].mxu0 }
 0x1ed   : > { %v6621_v39 = vadd.f32 %v1357_v57, %v5913_v29 }
 0x1ef   : > { %v8338_v25 = vpack.c.bf16 %v6621_v39, %v6618_v43  ;;  %v8347_v39 = vld [vmem:[#allocation25_spill] sm:$0xff] }
 0x1f1   : > { %v1361_v41 = vpop.f32.mrb[116].mxu0  ;;  %1953 = vmatmul.mubr.bf16.gmra.mrb[176].mxu0 %v8304_v62  ;;  %v8309_v62 = vpack.c.bf16 %v6472_v16, %v6468_v3  ;;  %v8311_v16 = vpack.c.bf16 %v6464_v60, %v6461_v17  ;;  %v8317_v60 = vld [vmem:[#allocation7_spill] sm:$0xff] }
 0x1f2   : > { %v1363_v19 = vpop.f32.mrb[117].mxu0  ;;  %1960 = vmatprep.mubr.bf16.mxu0 %v8305_v50  ;;  %v6634_v29 = vadd.f32 %v1361_v41, %v8306_v59 }
 0x1f3   : > { %v1365_v51 = vpop.f32.mrb[118].mxu0  ;;  %v6640_v23 = vadd.f32 %v1363_v19, %v8306_v59 }
 0x1f4   : > { %v6637_v54 = vadd.f32 %v1365_v51, %v8307_v24  ;;  %v1367_v57 = vpop.f32.mrb[119].mxu0  ;;  %v8310_v51 = vld [vmem:[#allocation44_spill] sm:$0xff] }
 0x1f5   : > { %v6643_v53 = vadd.f32 %v1367_v57, %v8307_v24 }
 0x1f6   : > { %v8345_v27 = vpack.c.bf16 %v6637_v54, %v6634_v29  ;;  %v8353_v54 = vld [vmem:[#allocation59_spill] sm:$0xff] }
 0x1f9   : > { %v1371_v21 = vpop.f32.mrb[120].mxu0  ;;  %1961 = vmatmul.mubr.bf16.gmra.mrb[180].mxu0 %v8308_v63 }
 0x1fa   : > { %v1373_v41 = vpop.f32.mrb[121].mxu0  ;;  %1968 = vmatprep.mubr.bf16.mxu0 %v8309_v62  ;;  %v6656_v50 = vadd.f32 %v1371_v21, %v5971_v31 }
 0x1fb   : > { %v1375_v19 = vpop.f32.mrb[122].mxu0  ;;  %v6662_v57 = vadd.f32 %v1373_v41, %v5971_v31 }
 0x1fc   : > { %v6659_v59 = vadd.f32 %v1375_v19, %v8310_v51  ;;  %v1377_v24 = vpop.f32.mrb[123].mxu0 }
 0x1fd   : > { %v6665_v14 = vadd.f32 %v1377_v24, %v8310_v51  ;;  %v8313_v24 = vld [vmem:[#allocation4_spill] sm:$0xff] }
 0x1ff   : > { %v8346_v43 = vpack.c.bf16 %v6665_v14, %v6662_v57  ;;  %v8354_v14 = vld [vmem:[#allocation56_spill] sm:$0xff] }
 0x200   : > { %v8355_v57 = vpack.c.bf16 %v8353_v54, %v8354_v14  ;;  %v8401_v14 = vmov 0  }
 0x201   : > { %v1381_v3 = vpop.f32.mrb[124].mxu0  ;;  %1969 = vmatmul.mubr.bf16.gmra.mrb[184].mxu0 %v8311_v16 }
 0x202   : > { %v1383_v21 = vpop.f32.mrb[125].mxu0  ;;  %1976 = vmatprep.mubr.bf16.mxu0 %v1722_v10  ;;  %v6678_v63 = vadd.f32 %v1381_v3, %v6003_v47  ;;  %v8312_v10 = vld [vmem:[#allocation2_spill] sm:$0xff] }
 0x203   : > { %v1385_v31 = vpop.f32.mrb[126].mxu0  ;;  %v6684_v19 = vadd.f32 %v1383_v21, %v6003_v47 }
 0x204   : > { %v6681_v41 = vadd.f32 %v1385_v31, %v6007_v2  ;;  %v1387_v62 = vpop.f32.mrb[127].mxu0 }
 0x205   : > { %v6687_v51 = vadd.f32 %v1387_v62, %v6007_v2 }
 0x206   : > { %v8352_v29 = vpack.c.bf16 %v6681_v41, %v6678_v63  ;;  %v8362_v63 = vld [vmem:[#allocation63_spill] sm:$0xff]  ;;  %v8363_v41 = vld [vmem:[#allocation61_spill] sm:$0xff] }
 0x209   : > { %v1391_v1 = vpop.f32.mrb[128].mxu0  ;;  %1977 = vmatmul.mubr.bf16.gmra.mrb[188].mxu0 %v1721_v33 }
 0x20a   : > { %v1393_v49 = vpop.f32.mrb[129].mxu0  ;;  %2017 = vmatprep.mubr.bf16.mxu0 %v1668_v55  ;;  %v1392_v2 = vadd.f32 %v1391_v1, %v8312_v10  ;;  %v8315_v55 = vld [vmem:[#allocation5_spill] sm:$0xff] }
 0x20b   : > { %v1395_v47 = vpop.f32.mrb[130].mxu0  ;;  %v1394_v21 = vadd.f32 %v1393_v49, %v8312_v10 }
 0x20c   : > { %v1396_v3 = vadd.f32 %v1395_v47, %v8313_v24  ;;  %v1397_v16 = vpop.f32.mrb[131].mxu0 }
 0x20d   : > { %v1398_v31 = vadd.f32 %v1397_v16, %v8313_v24 }
 0x20e   : > { %v6703_v62 = vpack.c.bf16 %v1396_v3, %v1392_v2 }
 0x20f   : > { %v6705_v17 = vpack.c.bf16 %v1398_v31, %v1394_v21  ;;  %v8316_v31 = vld [vmem:[#allocation6_spill] sm:$0xff] }
 0x211   : > { %v1401_v45 = vpop.f32.mrb[132].mxu0  ;;  %1985 = vmatprep.subr.bf16.mxu0 %v6705_v17 }
 0x212   : > { %v1403_v42 = vpop.f32.mrb[133].mxu0  ;;  %1986 = vmatpush1.bf16.xpose.msra.mxu0 %v6703_v62  ;;  %v1402_v11 = vadd.f32 %v1401_v45, %v8314_v4 }
 0x213   : > { %v1405_v33 = vpop.f32.mrb[134].mxu0  ;;  %v1404_v49 = vadd.f32 %v1403_v42, %v8314_v4 }
 0x214   : > { %v1406_v1 = vadd.f32 %v1405_v33, %v8315_v55  ;;  %v1407_v47 = vpop.f32.mrb[135].mxu0 }
 0x215   : > { %v1408_v10 = vadd.f32 %v1407_v47, %v8315_v55 }
 0x216   : > { %v6713_v2 = vpack.c.bf16 %v1406_v1, %v1402_v11 }
 0x217   : > { %v6715_v24 = vpack.c.bf16 %v1408_v10, %v1404_v49  ;;  %v8318_v10 = vld [vmem:[#allocation8_spill] sm:$0xff] }
 0x219   : > { %v1411_v3 = vpop.f32.mrb[136].mxu0  ;;  %1987 = vmatprep.subr.bf16.mxu0 %v6715_v24 }
 0x21a   : > { %v1413_v16 = vpop.f32.mrb[137].mxu0  ;;  %1988 = vmatpush1.bf16.xpose.msra.mxu0 %v6713_v2  ;;  %v1412_v45 = vadd.f32 %v1411_v3, %v8316_v31 }
 0x21b   : > { %v1415_v21 = vpop.f32.mrb[138].mxu0  ;;  %v1414_v42 = vadd.f32 %v1413_v16, %v8316_v31 }
 0x21c   : > { %v1416_v33 = vadd.f32 %v1415_v21, %v8317_v60  ;;  %v1417_v35 = vpop.f32.mrb[139].mxu0 }
 0x21d   : > { %v1418_v4 = vadd.f32 %v1417_v35, %v8317_v60 }
 0x21e   : > { %v6723_v11 = vpack.c.bf16 %v1416_v33, %v1412_v45 }
 0x21f   : > { %v6725_v55 = vpack.c.bf16 %v1418_v4, %v1414_v42  ;;  %v8320_v4 = vld [vmem:[#allocation10_spill] sm:$0xff] }
 0x221   : > { %v1421_v1 = vpop.f32.mrb[140].mxu0  ;;  %1989 = vmatprep.subr.bf16.mxu0 %v6725_v55 }
 0x222   : > { %v1423_v47 = vpop.f32.mrb[141].mxu0  ;;  %1990 = vmatpush1.bf16.xpose.msra.mxu0 %v6723_v11  ;;  %v1422_v3 = vadd.f32 %v1421_v1, %v8318_v10 }
 0x223   : > { %v1425_v49 = vpop.f32.mrb[142].mxu0  ;;  %v1424_v16 = vadd.f32 %v1423_v47, %v8318_v10 }
 0x224   : > { %v1426_v21 = vadd.f32 %v1425_v49, %v8319_v61  ;;  %v1427_v5 = vpop.f32.mrb[143].mxu0 }
 0x225   : > { %v1428_v35 = vadd.f32 %v1427_v5, %v8319_v61 }
 0x226   : > { %v6733_v60 = vpack.c.bf16 %v1426_v21, %v1422_v3 }
 0x227   : > { %v6735_v31 = vpack.c.bf16 %v1428_v35, %v1424_v16  ;;  %v8322_v35 = vld [vmem:[#allocation12_spill] sm:$0xff] }
 0x229   : > { %v1431_v45 = vpop.f32.mrb[144].mxu0  ;;  %1991 = vmatprep.subr.bf16.mxu0 %v6735_v31 }
 0x22a   : > { %v1433_v33 = vpop.f32.mrb[145].mxu0  ;;  %1992 = vmatpush1.bf16.xpose.msra.mxu0 %v6733_v60  ;;  %v1432_v1 = vadd.f32 %v1431_v45, %v8320_v4 }
 0x22b   : > { %v1435_v42 = vpop.f32.mrb[146].mxu0  ;;  %v1434_v47 = vadd.f32 %v1433_v33, %v8320_v4 }
 0x22c   : > { %v1436_v49 = vadd.f32 %v1435_v42, %v8321_v28  ;;  %v1437_v38 = vpop.f32.mrb[147].mxu0 }
 0x22d   : > { %v1438_v5 = vadd.f32 %v1437_v38, %v8321_v28 }
 0x22e   : > { %v6743_v61 = vpack.c.bf16 %v1436_v49, %v1432_v1 }
 0x22f   : > { %v6745_v10 = vpack.c.bf16 %v1438_v5, %v1434_v47 }
 0x231   : > { %v1441_v3 = vpop.f32.mrb[148].mxu0  ;;  %1993 = vmatprep.subr.bf16.mxu0 %v6745_v10 }
 0x232   : > { %v1443_v21 = vpop.f32.mrb[149].mxu0  ;;  %1994 = vmatpush1.bf16.xpose.msra.mxu0 %v6743_v61  ;;  %v1442_v45 = vadd.f32 %v1441_v3, %v8322_v35  ;;  %v8324_v3 = vld [vmem:[#allocation14_spill] sm:$0xff] }
 0x233   : > { %v1445_v16 = vpop.f32.mrb[150].mxu0  ;;  %v1444_v33 = vadd.f32 %v1443_v21, %v8322_v35 }
 0x234   : > { %v1446_v42 = vadd.f32 %v1445_v16, %v8323_v34  ;;  %v1447_v37 = vpop.f32.mrb[151].mxu0 }
 0x235   : > { %v1448_v28 = vadd.f32 %v1447_v37, %v8323_v34 }
 0x236   : > { %v6753_v38 = vpack.c.bf16 %v1446_v42, %v1442_v45 }
 0x237   : > { %v6755_v4 = vpack.c.bf16 %v1448_v28, %v1444_v33 }
 0x239   : > { %v1451_v1 = vpop.f32.mrb[152].mxu0  ;;  %1995 = vmatprep.subr.bf16.mxu0 %v6755_v4 }
 0x23a   : > { %v1453_v49 = vpop.f32.mrb[153].mxu0  ;;  %1996 = vmatpush1.bf16.xpose.msra.mxu0 %v6753_v38  ;;  %v1452_v5 = vadd.f32 %v1451_v1, %v5779_v18 }
 0x23b   : > { %v1455_v47 = vpop.f32.mrb[154].mxu0  ;;  %v1454_v21 = vadd.f32 %v1453_v49, %v5779_v18 }
 0x23c   : > { %v1456_v16 = vadd.f32 %v1455_v47, %v8324_v3  ;;  %v1457_v22 = vpop.f32.mrb[155].mxu0 }
 0x23d   : > { %v1458_v34 = vadd.f32 %v1457_v22, %v8324_v3  ;;  %v4950_v3 = vld [vmem:[%s7989_s4] sm:$0xff]  }
 0x23e   : > { %v6763_v37 = vpack.c.bf16 %v1456_v16, %v1452_v5  ;;  %v4951_v16 = vld [vmem:[%s7989_s4 + $0x8] sm:$0xff]   ;;  %4613 = vmatprep.subr.bf16.mxu1 %v4950_v3 }
 0x23f   : > { %v6765_v35 = vpack.c.bf16 %v1458_v34, %v1454_v21  ;;  %v8325_v21 = vld [vmem:[#allocation104_spill] sm:$0xff]  ;;  %4614 = vmatpush3.bf16.msra.mxu1 %v4950_v3  ;;  %v4953_v34 = vld [vmem:[%s7989_s4 + $0x18] sm:$0xff]   ;;  %v8364_v3 = vpack.c.bf16 %v8362_v63, %v8363_v41 }
 0x240   : > { %4615 = vmatprep.subr.bf16.mxu1 %v4951_v16 }
 0x241   : > { %v1461_v45 = vpop.f32.mrb[156].mxu0  ;;  %1997 = vmatprep.subr.bf16.mxu0 %v6765_v35 }
 0x242   : > { %v1463_v42 = vpop.f32.mrb[157].mxu0  ;;  %1998 = vmatpush1.bf16.xpose.msra.mxu0 %v6763_v37  ;;  %v1462_v28 = vadd.f32 %v1461_v45, %v5785_v15  ;;  %v8327_v45 = vld [vmem:[#allocation103_spill] sm:$0xff] }
 0x243   : > { %v1465_v33 = vpop.f32.mrb[158].mxu0  ;;  %v1464_v18 = vadd.f32 %v1463_v42, %v5785_v15  ;;  %v4952_v15 = vld [vmem:[%s7989_s4 + $0x10] sm:$0xff]   ;;  %4616 = vmatpush3.bf16.msra.mxu1 %v4951_v16  ;;  %v8328_v42 = vld [vmem:[#allocation106_spill] sm:$0xff]  ;;  %v8365_v16 = vld [vmem:[#allocation71_spill] sm:$0xff] }
 0x244   : > { %v1466_v1 = vadd.f32 %v1465_v33, %v5787_v9  ;;  %v1467_v47 = vpop.f32.mrb[159].mxu0  ;;  %4617 = vmatprep.subr.bf16.mxu1 %v4952_v15  ;;  %v8332_v33 = vld [vmem:[#allocation107_spill] sm:$0xff] }
 0x245   : > { %v1468_v22 = vadd.f32 %v1467_v47, %v5787_v9  ;;  %v8326_v9 = vpack.c.bf16 %v6527_v30, %v6524_v8  ;;  %v4954_v8 = vld [vmem:[%s7989_s4 + $0x20] sm:$0xff]   ;;  %v8329_v30 = vpack.c.bf16 %v6549_v40, %v6546_v36  ;;  %v8333_v36 = vpack.c.bf16 %v6571_v58, %v6568_v52  ;;  %v8339_v47 = vld [vmem:[#allocation20_spill] sm:$0xff] }
 0x246   : > { %v6773_v49 = vpack.c.bf16 %v1466_v1, %v1462_v28  ;;  %v8334_v40 = vpack.c.bf16 %v6599_v44, %v6596_v32  ;;  %v8335_v28 = vld [vmem:[#allocation21_spill] sm:$0xff]  ;;  %v8336_v1 = vld [vmem:[#allocation19_spill] sm:$0xff]  ;;  %v8340_v52 = vld [vmem:[#allocation26_spill] sm:$0xff]  ;;  %v8341_v58 = vpack.c.bf16 %v6615_v20, %v6612_v56  ;;  %v8342_v32 = vpack.c.bf16 %v6643_v53, %v6640_v23 }
 0x247   : > { %v6775_v5 = vpack.c.bf16 %v1468_v22, %v1464_v18  ;;  %4618 = vmatpush3.bf16.msra.mxu1 %v4952_v15  ;;  %v8343_v44 = vld [vmem:[#allocation27_spill] sm:$0xff]  ;;  %v8348_v56 = vld [vmem:[#allocation32_spill] sm:$0xff]  ;;  %v8349_v20 = vpack.c.bf16 %v6659_v59, %v6656_v50  ;;  %v8350_v23 = vpack.c.bf16 %v6687_v51, %v6684_v19  ;;  %v8351_v53 = vld [vmem:[#allocation33_spill] sm:$0xff] }
 0x248   : > { %4619 = vmatprep.subr.bf16.mxu1 %v4953_v34  ;;  %v8356_v50 = vld [vmem:[#allocation57_spill] sm:$0xff]  ;;  %v8357_v59 = vld [vmem:[#allocation55_spill] sm:$0xff]  ;;  %v8360_v18 = vld [vmem:[#allocation62_spill] sm:$0xff] }
 0x249   : > { %1999 = vmatprep.subr.bf16.mxu0 %v6775_v5  ;;  %v8358_v19 = vpack.c.bf16 %v8356_v50, %v8357_v59  ;;  %v8359_v51 = vld [vmem:[#allocation65_spill] sm:$0xff] }
 0x24a   : > { %2000 = vmatpush1.bf16.xpose.msra.mxu0 %v6773_v49  ;;  %v8361_v22 = vpack.c.bf16 %v8359_v51, %v8360_v18  ;;  %v4957_v50 = vld [vmem:[%s7989_s4 + $0x38] sm:$0xff]  }
 0x24b   : > { %2082 = vmatprep.subr.bf16.mxu0 %v8325_v21  ;;  %4620 = vmatpush3.bf16.msra.mxu1 %v4953_v34  ;;  %v8369_v34 = vld [vmem:[#allocation67_spill] sm:$0xff] }
 0x24c   : > { %4621 = vmatprep.subr.bf16.mxu1 %v4954_v8 }
 0x24f   : > { %4622 = vmatpush3.bf16.msra.mxu1 %v4954_v8  ;;  %v8372_v8 = vld [vmem:[#allocation74_spill] sm:$0xff] }
 0x250   : > { %4623 = vmatprep.subr.bf16.mxu1 %v4955_v48 }
 0x251   : > { %2018 = vmatmul.mubr.bf16.vlgmr.msra.gmra.mrb[160].mxu0 %v8326_v9  ;;  %v8368_v9 = vld [vmem:[#allocation69_spill] sm:$0xff] }
 0x252   : > { %2025 = vmatprep.mubr.bf16.mxu0 %v1676_v7  ;;  %2083 = vmatpush1.bf16.xpose.msra.mxu0 %v8327_v45  ;;  %v8331_v7 = vld [vmem:[#allocation105_spill] sm:$0xff] }
 0x253   : > { %2084 = vmatprep.subr.bf16.mxu0 %v8328_v42  ;;  %4624 = vmatpush3.bf16.msra.mxu1 %v4955_v48  ;;  %v8374_v48 = vld [vmem:[#allocation75_spill] sm:$0xff] }
 0x259   : > { %2026 = vmatmul.mubr.bf16.gmra.mrb[164].mxu0 %v8329_v30 }
 0x25a   : > { %2033 = vmatprep.mubr.bf16.mxu0 %v8330_v13  ;;  %2085 = vmatpush1.bf16.xpose.msra.mxu0 %v8331_v7  ;;  %v8375_v13 = vld [vmem:[#allocation73_spill] sm:$0xff] }
 0x25b   : > { %2086 = vmatprep.subr.bf16.mxu0 %v8332_v33 }
 0x261   : > { %2034 = vmatmul.mubr.bf16.gmra.mrb[168].mxu0 %v8333_v36  ;;  %v8378_v36 = vld [vmem:[#allocation80_spill] sm:$0xff] }
 0x262   : > { %2041 = vmatprep.mubr.bf16.mxu0 %v8334_v40  ;;  %2087 = vmatpush1.bf16.xpose.msra.mxu0 %v8335_v28 }
 0x263   : > { %2088 = vmatprep.subr.bf16.mxu0 %v8336_v1 }
 0x269   : > { %2042 = vmatmul.mubr.bf16.gmra.mrb[172].mxu0 %v8337_v46 }
 0x26a   : > { %2049 = vmatprep.mubr.bf16.mxu0 %v8338_v25  ;;  %2089 = vmatpush1.bf16.xpose.msra.mxu0 %v8339_v47  ;;  %v8383_v25 = vld [vmem:[#allocation89_spill] sm:$0xff] }
 0x26b   : > { %2090 = vmatprep.subr.bf16.mxu0 %v8340_v52 }
 0x271   : > { %2050 = vmatmul.mubr.bf16.gmra.mrb[176].mxu0 %v8341_v58  ;;  %v8386_v58 = vld [vmem:[#allocation87_spill] sm:$0xff] }
 0x272   : > { %2057 = vmatprep.mubr.bf16.mxu0 %v8342_v32  ;;  %2091 = vmatpush1.bf16.xpose.msra.mxu0 %v8343_v44  ;;  %v8387_v32 = vld [vmem:[#allocation85_spill] sm:$0xff] }
 0x273   : > { %2092 = vmatprep.subr.bf16.mxu0 %v8344_v12 }
 0x279   : > { %2058 = vmatmul.mubr.bf16.gmra.mrb[180].mxu0 %v8345_v27  ;;  %v8390_v27 = vld [vmem:[#allocation92_spill] sm:$0xff] }
 0x27a   : > { %2065 = vmatprep.mubr.bf16.mxu0 %v8346_v43  ;;  %2093 = vmatpush1.bf16.xpose.msra.mxu0 %v8347_v39 }
 0x27b   : > { %2094 = vmatprep.subr.bf16.mxu0 %v8348_v56 }
 0x281   : > { %2066 = vmatmul.mubr.bf16.gmra.mrb[184].mxu0 %v8349_v20  ;;  %v8396_v20 = vld [vmem:[#allocation98_spill] sm:$0xff] }
 0x282   : > { %2073 = vmatprep.mubr.bf16.mxu0 %v8350_v23  ;;  %2095 = vmatpush1.bf16.xpose.msra.mxu0 %v8351_v53 }
 0x283   : > { %2096 = vmatprep.subr.bf16.mxu0 %v6514_v26 }
 0x289   : > { %2074 = vmatmul.mubr.bf16.gmra.mrb[188].mxu0 %v8352_v29  ;;  %v8399_v29 = vld [vmem:[#allocation97_spill] sm:$0xff] }
 0x28a   : > { %2097 = vmatpush1.bf16.xpose.msra.mxu0 %v6510_v0  ;;  %2114 = vmatprep.mubr.bf16.mxu0 %v8355_v57  ;;  %v4956_v57 = vld [vmem:[%s7989_s4 + $0x30] sm:$0xff]  }
 0x28b   : > { %2903 = vmatprep.subr.bf16.mxu0 %v8325_v21  ;;  %v8366_v21 = vld [vmem:[#allocation68_spill] sm:$0xff]  ;;  %4625 = vmatprep.subr.bf16.mxu1 %v4956_v57 }
 0x28c   : > { %v8367_v15 = vpack.c.bf16 %v8365_v16, %v8366_v21  ;;  %4626 = vmatpush3.bf16.msra.mxu1 %v4956_v57 }
 0x28d   : > { %4627 = vmatprep.subr.bf16.mxu1 %v4957_v50 }
 0x290   : > { %4628 = vmatpush3.bf16.msra.mxu1 %v4957_v50 }
 0x291   : > { %2115 = vmatmul.mubr.bf16.vlgmr.msra.gmra.mrb[160].mxu0 %v8358_v19 }
 0x292   : > { %2122 = vmatprep.mubr.bf16.mxu0 %v8361_v22  ;;  %2904 = vmatpush1.bf16.msra.mxu0 %v8327_v45  ;;  %v8370_v45 = vpack.c.bf16 %v8368_v9, %v8369_v34 }
 0x293   : > { %2905 = vmatprep.subr.bf16.mxu0 %v8328_v42  ;;  %v8371_v42 = vld [vmem:[#allocation77_spill] sm:$0xff] }
 0x294   : > { %v8373_v30 = vpack.c.bf16 %v8371_v42, %v8372_v8 }
 0x296   : > { %2906 = vmatpush1.bf16.msra.mxu0 %v8331_v7  ;;  %v8376_v7 = vpack.c.bf16 %v8374_v48, %v8375_v13 }
 0x297   : > { %2907 = vmatprep.subr.bf16.mxu0 %v8332_v33  ;;  %v8377_v33 = vld [vmem:[#allocation83_spill] sm:$0xff] }
 0x298   : > { %v8379_v40 = vpack.c.bf16 %v8377_v33, %v8378_v36 }
 0x299   : > { %2123 = vmatmul.mubr.bf16.gmra.mrb[164].mxu0 %v8364_v3 }
 0x29a   : > { %2130 = vmatprep.mubr.bf16.mxu0 %v8367_v15  ;;  %2908 = vmatpush1.bf16.msra.mxu0 %v8335_v28  ;;  %v8380_v28 = vld [vmem:[#allocation81_spill] sm:$0xff] }
 0x29b   : > { %2909 = vmatprep.subr.bf16.mxu0 %v8336_v1  ;;  %v8381_v1 = vld [vmem:[#allocation79_spill] sm:$0xff] }
 0x29c   : > { %v8382_v46 = vpack.c.bf16 %v8380_v28, %v8381_v1 }
 0x29e   : > { %2910 = vmatpush1.bf16.msra.mxu0 %v8339_v47  ;;  %v8384_v47 = vld [vmem:[#allocation86_spill] sm:$0xff] }
 0x29f   : > { %2911 = vmatprep.subr.bf16.mxu0 %v8340_v52  ;;  %v8385_v52 = vpack.c.bf16 %v8383_v25, %v8384_v47 }
 0x2a1   : > { %2131 = vmatmul.mubr.bf16.gmra.mrb[168].mxu0 %v8370_v45 }
 0x2a2   : > { %2138 = vmatprep.mubr.bf16.mxu0 %v8373_v30  ;;  %2912 = vmatpush1.bf16.msra.mxu0 %v8343_v44  ;;  %v8388_v44 = vpack.c.bf16 %v8386_v58, %v8387_v32 }
 0x2a3   : > { %2913 = vmatprep.subr.bf16.mxu0 %v8344_v12  ;;  %v8389_v12 = vld [vmem:[#allocation95_spill] sm:$0xff] }
 0x2a4   : > { %v8391_v43 = vpack.c.bf16 %v8389_v12, %v8390_v27 }
 0x2a6   : > { %2914 = vmatpush1.bf16.msra.mxu0 %v8347_v39  ;;  %v8392_v39 = vld [vmem:[#allocation93_spill] sm:$0xff] }
 0x2a7   : > { %2915 = vmatprep.subr.bf16.mxu0 %v8348_v56 }
 0x2a9   : > { %2139 = vmatmul.mubr.bf16.gmra.mrb[172].mxu0 %v8376_v7 }
 0x2aa   : > { %2146 = vmatprep.mubr.bf16.mxu0 %v8379_v40  ;;  %2916 = vmatpush1.bf16.msra.mxu0 %v8351_v53  ;;  %v8398_v53 = vld [vmem:[#allocation99_spill] sm:$0xff] }
 0x2ab   : > { %2917 = vmatprep.subr.bf16.mxu0 %v6514_v26  ;;  %v8393_v26 = vld [vmem:[#allocation91_spill] sm:$0xff]  ;;  %v8400_v54 = vpack.c.bf16 %v8398_v53, %v8399_v29  ;;  %v6968_v53 = vld [vmem:[%s7990_s5] ss:$0 sm:$0xff] }
 0x2ac   : > { %v8394_v56 = vpack.c.bf16 %v8392_v39, %v8393_v26 }
 0x2ae   : > { %2918 = vmatpush1.bf16.msra.mxu0 %v6510_v0  ;;  %v8395_v0 = vld [vmem:[#allocation101_spill] sm:$0xff] }
 0x2af   : > { %v8397_v23 = vpack.c.bf16 %v8395_v0, %v8396_v20 }
 0x2b1   : > { %2147 = vmatmul.mubr.bf16.gmra.mrb[176].mxu0 %v8382_v46 }
 0x2b2   : > { %2154 = vmatprep.mubr.bf16.mxu0 %v8385_v52 }
 0x2b9   : > { %2155 = vmatmul.mubr.bf16.gmra.mrb[180].mxu0 %v8388_v44 }
 0x2ba   : > { %2162 = vmatprep.mubr.bf16.mxu0 %v8391_v43 }
 0x2c1   : > { %2163 = vmatmul.mubr.bf16.gmra.mrb[184].mxu0 %v8394_v56 }
 0x2c2   : > { %2170 = vmatprep.mubr.bf16.mxu0 %v8397_v23  ;;  %v4958_v23 = vld [vmem:[%s7991_s6] sm:$0xff]  }
 0x2c9   : > { %2171 = vmatmul.mubr.bf16.gmra.mrb[188].mxu0 %v8400_v54 }
 0x2ca   : > { %2935 = vmatprep.mubr.bf16.mxu0 %v8401_v14 }
 0x364   : > { %v2116_v59 = vpop.f32.mrb[160].mxu0 }
 0x365   : > { %v2118_v19 = vpop.f32.mrb[161].mxu0 }
 0x366   : > { %v2119_v51 = vpop.f32.mrb[162].mxu0 }
 0x367   : > { %v2179_v18 = vpack.c.bf16 %v2119_v51, %v2116_v59  ;;  %v2121_v22 = vpop.f32.mrb[163].mxu0 }
 0x369   : > { %4629 = vmatprep.mubr.bf16.mxu1 %v2179_v18 }
 0x36c   : > { %v2124_v63 = vpop.f32.mrb[164].mxu0 }
 0x36d   : > { %v2126_v41 = vpop.f32.mrb[165].mxu0 }
 0x36e   : > { %v2127_v3 = vpop.f32.mrb[166].mxu0 }
 0x36f   : > { %v2180_v16 = vpack.c.bf16 %v2127_v3, %v2124_v63  ;;  %v2129_v21 = vpop.f32.mrb[167].mxu0 }
 0x371   : > { %4630 = vmatmul.mubr.bf16.vlgmr.msra.gmra.mrb[96].mxu1 %v2180_v16 }
 0x374   : > { %v6929_v15 = vpop.f32.mrb[168].mxu0 }
 0x375   : > { %v2134_v9 = vpop.f32.mrb[169].mxu0 }
 0x376   : > { %v6931_v34 = vpop.f32.mrb[170].mxu0 }
 0x377   : > { %v2181_v45 = vpack.c.bf16 %v6931_v34, %v6929_v15  ;;  %v2137_v42 = vpop.f32.mrb[171].mxu0 }
 0x379   : > { %4633 = vmatprep.mubr.bf16.mxu1 %v2181_v45 }
 0x37c   : > { %v2140_v8 = vpop.f32.mrb[172].mxu0 }
 0x37d   : > { %v2142_v30 = vpop.f32.mrb[173].mxu0 }
 0x37e   : > { %v6935_v48 = vpop.f32.mrb[174].mxu0 }
 0x37f   : > { %v2182_v13 = vpack.c.bf16 %v6935_v48, %v2140_v8  ;;  %v2145_v7 = vpop.f32.mrb[175].mxu0 }
 0x381   : > { %4634 = vmatmul.mubr.bf16.gmra.mrb[100].mxu1 %v2182_v13 }
 0x384   : > { %v6938_v33 = vpop.f32.mrb[176].mxu0 }
 0x385   : > { %v2150_v36 = vpop.f32.mrb[177].mxu0 }
 0x386   : > { %v6940_v40 = vpop.f32.mrb[178].mxu0 }
 0x387   : > { %v2183_v28 = vpack.c.bf16 %v6940_v40, %v6938_v33  ;;  %v2153_v1 = vpop.f32.mrb[179].mxu0 }
 0x389   : > { %4637 = vmatprep.mubr.bf16.mxu1 %v2183_v28 }
 0x38c   : > { %v6944_v46 = vpop.f32.mrb[180].mxu0 }
 0x38d   : > { %v2158_v25 = vpop.f32.mrb[181].mxu0 }
 0x38e   : > { %v6946_v47 = vpop.f32.mrb[182].mxu0 }
 0x38f   : > { %v2184_v52 = vpack.c.bf16 %v6946_v47, %v6944_v46  ;;  %v2161_v58 = vpop.f32.mrb[183].mxu0 }
 0x391   : > { %4638 = vmatmul.mubr.bf16.gmra.mrb[104].mxu1 %v2184_v52 }
 0x394   : > { %v6950_v32 = vpop.f32.mrb[184].mxu0 }
 0x395   : > { %v2166_v44 = vpop.f32.mrb[185].mxu0 }
 0x396   : > { %v6952_v12 = vpop.f32.mrb[186].mxu0 }
 0x397   : > { %v2185_v27 = vpack.c.bf16 %v6952_v12, %v6950_v32  ;;  %v2169_v43 = vpop.f32.mrb[187].mxu0 }
 0x399   : > { %4641 = vmatprep.mubr.bf16.mxu1 %v2185_v27 }
 0x39c   : > { %v6956_v39 = vpop.f32.mrb[188].mxu0 }
 0x39d   : > { %v2174_v26 = vpop.f32.mrb[189].mxu0 }
 0x39e   : > { %v6958_v56 = vpop.f32.mrb[190].mxu0 }
 0x39f   : > { %v2186_v0 = vpack.c.bf16 %v6958_v56, %v6956_v39  ;;  %v2177_v20 = vpop.f32.mrb[191].mxu0 }
 0x3a1   : > { %4642 = vmatmul.mubr.bf16.gmra.mrb[108].mxu1 %v2186_v0 }
 0x3a2   : > { %4661 = vmatprep.mubr.bf16.mxu1 %v4958_v23 }
 0x444   : > { %v4631_v29 = vpop.f32.mrb[96].mxu1 }
 0x445   : > { %v2301_v54 = vadd.f32 %v4631_v29, %v6968_v53  ;;  %v2292_v57 = vpop.f32.mrb[97].mxu1 }
 0x446   : > { %v2293_v50 = vadd.f32 %v6968_v53, %v2292_v57  ;;  %v4632_v19 = vpop.f32.mrb[98].mxu1 }
 0x447   : > { %v2357_v18 = vadd.f32 %v2301_v54, %v2124_v63  ;;  %v2304_v22 = vadd.f32 %v4632_v19, %v6968_v53  ;;  %v2295_v41 = vpop.f32.mrb[99].mxu1 }
 0x448   : > { %v2355_v16 = vadd.f32 %v2293_v50, %v2116_v59  ;;  %v2296_v21 = vadd.f32 %v6968_v53, %v2295_v41 }
 0x449   : > { %v2358_v9 = vadd.f32 %v2304_v22, %v2127_v3  ;;  %v2373_v42 = vmax.f32 %v2357_v18, 0.0 }
 0x44a   : > { %v2356_v45 = vadd.f32 %v2296_v21, %v2119_v51  ;;  %v2371_v13 = vmax.f32 %v2355_v16, 0.0 }
 0x44b   : > { %v2374_v30 = vmax.f32 %v2358_v9, 0.0 }
 0x44c   : > { %v2372_v7 = vmax.f32 %v2356_v45, 0.0 }
 0x44d   : > { %v2404_v36 = vpack.c.bf16 %v2374_v30, %v2373_v42 }
 0x44e   : > { %v2403_v28 = vpack.c.bf16 %v2372_v7, %v2371_v13 }
 0x450   : > { %4645 = vmatprep.subr.bf16.mxu1 %v2403_v28 }
 0x451   : > { %4646 = vmatpush3.bf16.msra.mxu1 %v2403_v28 }
 0x452   : > { %4647 = vmatprep.subr.bf16.mxu1 %v2404_v36 }
 0x454   : > { %v4635_v1 = vpop.f32.mrb[100].mxu1 }
 0x455   : > { %v2317_v63 = vadd.f32 %v4635_v1, %v6968_v53  ;;  %v2308_v25 = vpop.f32.mrb[101].mxu1  ;;  %4648 = vmatpush3.bf16.msra.mxu1 %v2404_v36 }
 0x456   : > { %v2309_v59 = vadd.f32 %v6968_v53, %v2308_v25  ;;  %v4636_v52 = vpop.f32.mrb[102].mxu1 }
 0x457   : > { %v2361_v58 = vadd.f32 %v2317_v63, %v2140_v8  ;;  %v2320_v51 = vadd.f32 %v4636_v52, %v6968_v53  ;;  %v2311_v3 = vpop.f32.mrb[103].mxu1 }
 0x458   : > { %v2359_v44 = vadd.f32 %v2309_v59, %v6929_v15  ;;  %v2312_v27 = vadd.f32 %v6968_v53, %v2311_v3 }
 0x459   : > { %v2362_v43 = vadd.f32 %v2320_v51, %v6935_v48  ;;  %v2377_v0 = vmax.f32 %v2361_v58, 0.0 }
 0x45a   : > { %v2360_v26 = vadd.f32 %v2312_v27, %v6931_v34  ;;  %v2375_v23 = vmax.f32 %v2359_v44, 0.0 }
 0x45b   : > { %v2378_v20 = vmax.f32 %v2362_v43, 0.0 }
 0x45c   : > { %v2376_v29 = vmax.f32 %v2360_v26, 0.0 }
 0x45d   : > { %v2406_v54 = vpack.c.bf16 %v2378_v20, %v2377_v0  ;;  %v4961_v20 = vld [vmem:[%s7991_s6 + $0x18] sm:$0xff]  }
 0x45e   : > { %v2405_v57 = vpack.c.bf16 %v2376_v29, %v2375_v23  ;;  %v8405_v23 = vld [vmem:[#allocation64_spill] sm:$0xff]  ;;  %v4962_v29 = vld [vmem:[%s7991_s6 + $0x20] sm:$0xff]  }
 0x460   : > { %4649 = vmatprep.subr.bf16.mxu1 %v2405_v57 }
 0x461   : > { %4650 = vmatpush3.bf16.msra.mxu1 %v2405_v57  ;;  %v8407_v57 = vld [vmem:[#allocation70_spill] sm:$0xff] }
 0x462   : > { %4651 = vmatprep.subr.bf16.mxu1 %v2406_v54 }
 0x464   : > { %v4639_v8 = vpop.f32.mrb[104].mxu1 }
 0x465   : > { %v2333_v50 = vadd.f32 %v4639_v8, %v6968_v53  ;;  %v2324_v19 = vpop.f32.mrb[105].mxu1  ;;  %4652 = vmatpush3.bf16.msra.mxu1 %v2406_v54  ;;  %v8406_v54 = vld [vmem:[#allocation72_spill] sm:$0xff]  ;;  %v8408_v8 = vld [vmem:[#allocation78_spill] sm:$0xff] }
 0x466   : > { %v2325_v15 = vadd.f32 %v6968_v53, %v2324_v19  ;;  %v4640_v18 = vpop.f32.mrb[106].mxu1  ;;  %v8409_v19 = vld [vmem:[#allocation76_spill] sm:$0xff] }
 0x467   : > { %v2365_v48 = vadd.f32 %v2333_v50, %v6944_v46  ;;  %v2336_v34 = vadd.f32 %v4640_v18, %v6968_v53  ;;  %v2327_v22 = vpop.f32.mrb[107].mxu1  ;;  %v4963_v50 = vld [vmem:[%s7991_s6 + $0x28] sm:$0xff]   ;;  %v8410_v18 = vld [vmem:[#allocation84_spill] sm:$0xff] }
 0x468   : > { %v2363_v41 = vadd.f32 %v2325_v15, %v6938_v33  ;;  %v2328_v16 = vadd.f32 %v6968_v53, %v2327_v22  ;;  %v4964_v15 = vld [vmem:[%s7991_s6 + $0x30] sm:$0xff]   ;;  %v4965_v22 = vld [vmem:[%s7991_s6 + $0x38] sm:$0xff]  }
 0x469   : > { %v2366_v21 = vadd.f32 %v2336_v34, %v6946_v47  ;;  %v2381_v45 = vmax.f32 %v2365_v48, 0.0  ;;  %v8411_v48 = vld [vmem:[#allocation82_spill] sm:$0xff] }
 0x46a   : > { %v2364_v9 = vadd.f32 %v2328_v16, %v6940_v40  ;;  %v2379_v30 = vmax.f32 %v2363_v41, 0.0  ;;  %v8412_v34 = vld [vmem:[#allocation90_spill] sm:$0xff]  ;;  %v8413_v41 = vld [vmem:[#allocation88_spill] sm:$0xff] }
 0x46b   : > { %v2382_v42 = vmax.f32 %v2366_v21, 0.0  ;;  %v8414_v16 = vld [vmem:[#allocation96_spill] sm:$0xff]  ;;  %v8415_v21 = vld [vmem:[#allocation94_spill] sm:$0xff] }
 0x46c   : > { %v2380_v13 = vmax.f32 %v2364_v9, 0.0  ;;  %v8416_v9 = vld [vmem:[#allocation102_spill] sm:$0xff] }
 0x46d   : > { %v2408_v7 = vpack.c.bf16 %v2382_v42, %v2381_v45  ;;  %v8417_v45 = vld [vmem:[#allocation100_spill] sm:$0xff] }
 0x46e   : > { %v2407_v36 = vpack.c.bf16 %v2380_v13, %v2379_v30  ;;  %v8418_v42 = vld [vmem:[#allocation16_spill] sm:$0xff] }
 0x470   : > { %4653 = vmatprep.subr.bf16.mxu1 %v2407_v36 }
 0x471   : > { %4654 = vmatpush3.bf16.msra.mxu1 %v2407_v36 }
 0x472   : > { %4655 = vmatprep.subr.bf16.mxu1 %v2408_v7 }
 0x474   : > { %v4643_v46 = vpop.f32.mrb[108].mxu1 }
 0x475   : > { %v2349_v28 = vadd.f32 %v4643_v46, %v6968_v53  ;;  %v2340_v1 = vpop.f32.mrb[109].mxu1  ;;  %4656 = vmatpush3.bf16.msra.mxu1 %v2408_v7 }
 0x476   : > { %v2341_v33 = vadd.f32 %v6968_v53, %v2340_v1  ;;  %v4644_v63 = vpop.f32.mrb[110].mxu1  ;;  %v8419_v1 = vld [vmem:[#allocation15_spill] sm:$0xff] }
 0x477   : > { %v2369_v47 = vadd.f32 %v2349_v28, %v6956_v39  ;;  %v2352_v40 = vadd.f32 %v4644_v63, %v6968_v53  ;;  %v2343_v25 = vpop.f32.mrb[111].mxu1  ;;  %v4959_v39 = vld [vmem:[%s7991_s6 + $0x8] sm:$0xff]  }
 0x478   : > { %v2367_v59 = vadd.f32 %v2341_v33, %v6950_v32  ;;  %v2344_v52 = vadd.f32 %v6968_v53, %v2343_v25  ;;  %v4960_v32 = vld [vmem:[%s7991_s6 + $0x10] sm:$0xff]   ;;  %v8404_v53 = vld [vmem:[#allocation66_spill] sm:$0xff]  ;;  %v8421_v25 = vld [vmem:[#allocation17_spill] sm:$0xff] }
 0x479   : > { %v2370_v58 = vadd.f32 %v2352_v40, %v6958_v56  ;;  %v2385_v3 = vmax.f32 %v2369_v47, 0.0  ;;  %v8402_v56 = vld [vmem:[#allocation60_spill] sm:$0xff]  ;;  %v8420_v33 = vld [vmem:[#allocation18_spill] sm:$0xff] }
 0x47a   : > { %v2368_v51 = vadd.f32 %v2344_v52, %v6952_v12  ;;  %v2383_v27 = vmax.f32 %v2367_v59, 0.0  ;;  %v8403_v12 = vld [vmem:[#allocation58_spill] sm:$0xff] }
 0x47b   : > { %v2386_v44 = vmax.f32 %v2370_v58, 0.0  ;;  %v8422_v58 = vld [vmem:[#allocation23_spill] sm:$0xff] }
 0x47c   : > { %v2384_v43 = vmax.f32 %v2368_v51, 0.0 }
 0x47d   : > { %v2410_v26 = vpack.c.bf16 %v2386_v44, %v2385_v3  ;;  %v8423_v3 = vld [vmem:[#allocation22_spill] sm:$0xff]  ;;  %v8424_v44 = vld [vmem:[#allocation29_spill] sm:$0xff] }
 0x47e   : > { %v2409_v0 = vpack.c.bf16 %v2384_v43, %v2383_v27 }
 0x480   : > { %4657 = vmatprep.subr.bf16.mxu1 %v2409_v0 }
 0x481   : > { %4658 = vmatpush3.bf16.msra.mxu1 %v2409_v0  ;;  %v8425_v0 = vld [vmem:[#allocation28_spill] sm:$0xff] }
 0x482   : > { %4659 = vmatprep.subr.bf16.mxu1 %v2410_v26 }
 0x485   : > { %4660 = vmatpush3.bf16.msra.mxu1 %v2410_v26 }
 0x486   : > { %2564 = vmatprep.subr.bf16.mxu1 %v8402_v56  ;;  %v8426_v56 = vld [vmem:[#allocation36_spill] sm:$0xff] }
 0x488   : > { %4662 = vmatmul.mubr.bf16.vlgmr.msra.gmra.mrb[112].mxu1 %v4959_v39 }
 0x489   : > { %2565 = vmatpush1.bf16.msra.mxu1 %v8403_v12  ;;  %4665 = vmatprep.mubr.bf16.mxu1 %v4960_v32 }
 0x48a   : > { %2566 = vmatprep.subr.bf16.mxu1 %v8404_v53  ;;  %v8427_v53 = vld [vmem:[#allocation34_spill] sm:$0xff] }
 0x48d   : > { %2567 = vmatpush1.bf16.msra.mxu1 %v8405_v23 }
 0x48e   : > { %2568 = vmatprep.subr.bf16.mxu1 %v8406_v54 }
 0x490   : > { %4666 = vmatmul.mubr.bf16.gmra.mrb[116].mxu1 %v4961_v20  ;;  %v8428_v20 = vld [vmem:[#allocation43_spill] sm:$0xff] }
 0x491   : > { %2569 = vmatpush1.bf16.msra.mxu1 %v8407_v57  ;;  %4669 = vmatprep.mubr.bf16.mxu1 %v4962_v29  ;;  %v8429_v57 = vld [vmem:[#allocation42_spill] sm:$0xff] }
 0x492   : > { %2570 = vmatprep.subr.bf16.mxu1 %v8408_v8 }
 0x495   : > { %2571 = vmatpush1.bf16.msra.mxu1 %v8409_v19  ;;  %v8430_v19 = vld [vmem:[#allocation50_spill] sm:$0xff] }
 0x496   : > { %2572 = vmatprep.subr.bf16.mxu1 %v8410_v18  ;;  %v8431_v18 = vld [vmem:[#allocation49_spill] sm:$0xff] }
 0x498   : > { %4670 = vmatmul.mubr.bf16.gmra.mrb[120].mxu1 %v4963_v50 }
 0x499   : > { %2573 = vmatpush1.bf16.msra.mxu1 %v8411_v48  ;;  %4673 = vmatprep.mubr.bf16.mxu1 %v4964_v15  ;;  %v8432_v48 = vld [vmem:[#allocation54_spill] sm:$0xff] }
 0x49a   : > { %2574 = vmatprep.subr.bf16.mxu1 %v8412_v34 }
 0x49d   : > { %2575 = vmatpush1.bf16.msra.mxu1 %v8413_v41 }
 0x49e   : > { %2576 = vmatprep.subr.bf16.mxu1 %v8414_v16 }
 0x4a0   : > { %4674 = vmatmul.mubr.bf16.gmra.mrb[124].mxu1 %v4965_v22 }
 0x4a1   : > { %2577 = vmatpush1.bf16.msra.mxu1 %v8415_v21  ;;  %2596 = vmatprep.mubr.bf16.mxu1 %v8401_v14 }
 0x4a2   : > { %2578 = vmatprep.subr.bf16.mxu1 %v8416_v9 }
 0x4a5   : > { %2579 = vmatpush1.bf16.msra.mxu1 %v8417_v45 }
 0x4a6   : > { %2677 = vmatprep.subr.bf16.mxu1 %v8418_v42 }
 0x55b   : > { %v4663_v30 = vpop.f32.mrb[112].mxu1 }
 0x55c   : > { %v2493_v13 = vpop.f32.mrb[113].mxu1 }
 0x55d   : > { %v4664_v7 = vpop.f32.mrb[114].mxu1 }
 0x55e   : > { %v7036_v36 = vpack.c.bf16 %v4664_v7, %v4663_v30  ;;  %v2496_v46 = vpop.f32.mrb[115].mxu1 }
 0x55f   : > { %v7038_v28 = vpack.c.bf16 %v2496_v46, %v2493_v13 }
 0x561   : > { %2597 = vmatmul.mubr.bf16.vlgmr.msra.gmra.mrb[128].mxu1 %v7038_v28  ;;  %2936 = vmatmul.mubr.bf16.vlgmr.msra.gmra.mrb[192].mxu0 %v7038_v28 }
 0x562   : > { %2678 = vmatpush1.bf16.msra.mxu1 %v8419_v1  ;;  %2606 = vmatprep.mubr.bf16.mxu1 %v8401_v14 }
 0x563   : > { %2679 = vmatprep.subr.bf16.mxu1 %v8420_v33  ;;  %v4667_v63 = vpop.f32.mrb[116].mxu1  ;;  %2945 = vmatprep.mubr.bf16.mxu0 %v8401_v14 }
 0x564   : > { %v2509_v47 = vpop.f32.mrb[117].mxu1 }
 0x565   : > { %v4668_v40 = vpop.f32.mrb[118].mxu1 }
 0x566   : > { %2680 = vmatpush1.bf16.msra.mxu1 %v8421_v25  ;;  %v7047_v59 = vpack.c.bf16 %v4668_v40, %v4667_v63  ;;  %v2512_v52 = vpop.f32.mrb[119].mxu1 }
 0x567   : > { %2681 = vmatprep.subr.bf16.mxu1 %v8422_v58  ;;  %v7050_v51 = vpack.c.bf16 %v2512_v52, %v2509_v47 }
 0x569   : > { %2607 = vmatmul.mubr.bf16.gmra.mrb[132].mxu1 %v7036_v36  ;;  %2946 = vmatmul.mubr.bf16.gmra.mrb[196].mxu0 %v7036_v36 }
 0x56a   : > { %2682 = vmatpush1.bf16.msra.mxu1 %v8423_v3  ;;  %2616 = vmatprep.mubr.bf16.mxu1 %v8401_v14 }
 0x56b   : > { %2683 = vmatprep.subr.bf16.mxu1 %v8424_v44  ;;  %2955 = vmatprep.mubr.bf16.mxu0 %v8401_v14  ;;  %v4671_v27 = vpop.f32.mrb[120].mxu1 }
 0x56c   : > { %v2525_v43 = vpop.f32.mrb[121].mxu1 }
 0x56d   : > { %v4672_v26 = vpop.f32.mrb[122].mxu1 }
 0x56e   : > { %2684 = vmatpush1.bf16.msra.mxu1 %v8425_v0  ;;  %v7059_v39 = vpack.c.bf16 %v4672_v26, %v4671_v27  ;;  %v2528_v32 = vpop.f32.mrb[123].mxu1 }
 0x56f   : > { %2685 = vmatprep.subr.bf16.mxu1 %v8426_v56  ;;  %v7062_v12 = vpack.c.bf16 %v2528_v32, %v2525_v43 }
 0x571   : > { %2617 = vmatmul.mubr.bf16.gmra.mrb[136].mxu1 %v7050_v51  ;;  %2956 = vmatmul.mubr.bf16.gmra.mrb[200].mxu0 %v7050_v51 }
 0x572   : > { %2686 = vmatpush1.bf16.msra.mxu1 %v8427_v53  ;;  %2626 = vmatprep.mubr.bf16.mxu1 %v8401_v14 }
 0x573   : > { %2687 = vmatprep.subr.bf16.mxu1 %v8428_v20  ;;  %2965 = vmatprep.mubr.bf16.mxu0 %v8401_v14  ;;  %v4675_v23 = vpop.f32.mrb[124].mxu1 }
 0x574   : > { %v2541_v29 = vpop.f32.mrb[125].mxu1 }
 0x575   : > { %v4676_v54 = vpop.f32.mrb[126].mxu1 }
 0x576   : > { %2688 = vmatpush1.bf16.msra.mxu1 %v8429_v57  ;;  %v7071_v8 = vpack.c.bf16 %v4676_v54, %v4675_v23  ;;  %v2544_v50 = vpop.f32.mrb[127].mxu1 }
 0x577   : > { %2689 = vmatprep.subr.bf16.mxu1 %v8430_v19  ;;  %v7074_v15 = vpack.c.bf16 %v2544_v50, %v2541_v29 }
 0x579   : > { %2627 = vmatmul.mubr.bf16.gmra.mrb[140].mxu1 %v7047_v59  ;;  %2966 = vmatmul.mubr.bf16.gmra.mrb[204].mxu0 %v7047_v59 }
 0x57a   : > { %2690 = vmatpush1.bf16.msra.mxu1 %v8431_v18  ;;  %2636 = vmatprep.mubr.bf16.mxu1 %v8401_v14 }
 0x57b   : > { %2691 = vmatprep.subr.bf16.mxu1 %v8432_v48  ;;  %2975 = vmatprep.mubr.bf16.mxu0 %v8401_v14 }
 0x57e   : > { %2692 = vmatpush1.bf16.msra.mxu1 %v8294_v6 }
 0x57f   : > { %2790 = vmatprep.subr.bf16.mxu1 %v6705_v17 }
 0x581   : > { %2637 = vmatmul.mubr.bf16.gmra.mrb[144].mxu1 %v7062_v12  ;;  %2976 = vmatmul.mubr.bf16.gmra.mrb[208].mxu0 %v7062_v12 }
 0x582   : > { %2646 = vmatprep.mubr.bf16.mxu1 %v8401_v14  ;;  %2985 = vmatprep.mubr.bf16.mxu0 %v8401_v14 }
 0x589   : > { %2647 = vmatmul.mubr.bf16.gmra.mrb[148].mxu1 %v7059_v39  ;;  %2986 = vmatmul.mubr.bf16.gmra.mrb[212].mxu0 %v7059_v39 }
 0x58a   : > { %2656 = vmatprep.mubr.bf16.mxu1 %v8401_v14  ;;  %2995 = vmatprep.mubr.bf16.mxu0 %v8401_v14 }
 0x591   : > { %2657 = vmatmul.mubr.bf16.gmra.mrb[152].mxu1 %v7074_v15  ;;  %2996 = vmatmul.mubr.bf16.gmra.mrb[216].mxu0 %v7074_v15 }
 0x592   : > { %2666 = vmatprep.mubr.bf16.mxu1 %v8401_v14  ;;  %3005 = vmatprep.mubr.bf16.mxu0 %v8401_v14 }
 0x599   : > { %2667 = vmatmul.mubr.bf16.gmra.mrb[156].mxu1 %v7071_v8  ;;  %3006 = vmatmul.mubr.bf16.gmra.mrb[220].mxu0 %v7071_v8 }
 0x59a   : > { %2709 = vmatprep.mubr.bf16.mxu1 %v8401_v14  ;;  %3289 = vmatprep.mubr.bf16.mxu0 %v8401_v14 }
 0x5a1   : > { %2710 = vmatmul.mubr.bf16.vlgmr.msra.gmra.mrb[160].mxu1 %v7038_v28 }
 0x5a2   : > { %2791 = vmatpush1.bf16.msra.mxu1 %v6703_v62  ;;  %2719 = vmatprep.mubr.bf16.mxu1 %v8401_v14 }
 0x5a3   : > { %2792 = vmatprep.subr.bf16.mxu1 %v6715_v24 }
 0x5a6   : > { %2793 = vmatpush1.bf16.msra.mxu1 %v6713_v2 }
 0x5a7   : > { %2794 = vmatprep.subr.bf16.mxu1 %v6725_v55 }
 0x5a9   : > { %2720 = vmatmul.mubr.bf16.gmra.mrb[164].mxu1 %v7036_v36 }
 0x5aa   : > { %2795 = vmatpush1.bf16.msra.mxu1 %v6723_v11  ;;  %2729 = vmatprep.mubr.bf16.mxu1 %v8401_v14 }
 0x5ab   : > { %2796 = vmatprep.subr.bf16.mxu1 %v6735_v31 }
 0x5ae   : > { %2797 = vmatpush1.bf16.msra.mxu1 %v6733_v60 }
 0x5af   : > { %2798 = vmatprep.subr.bf16.mxu1 %v6745_v10 }
 0x5b1   : > { %2730 = vmatmul.mubr.bf16.gmra.mrb[168].mxu1 %v7050_v51 }
 0x5b2   : > { %2799 = vmatpush1.bf16.msra.mxu1 %v6743_v61  ;;  %2739 = vmatprep.mubr.bf16.mxu1 %v8401_v14 }
 0x5b3   : > { %2800 = vmatprep.subr.bf16.mxu1 %v6755_v4 }
 0x5b6   : > { %2801 = vmatpush1.bf16.msra.mxu1 %v6753_v38 }
 0x5b7   : > { %2802 = vmatprep.subr.bf16.mxu1 %v6765_v35 }
 0x5b9   : > { %2740 = vmatmul.mubr.bf16.gmra.mrb[172].mxu1 %v7047_v59 }
 0x5ba   : > { %2803 = vmatpush1.bf16.msra.mxu1 %v6763_v37  ;;  %2749 = vmatprep.mubr.bf16.mxu1 %v8401_v14 }
 0x5bb   : > { %2804 = vmatprep.subr.bf16.mxu1 %v6775_v5 }
 0x5be   : > { %2805 = vmatpush1.bf16.msra.mxu1 %v6773_v49 }
 0x5c1   : > { %2750 = vmatmul.mubr.bf16.gmra.mrb[176].mxu1 %v7062_v12 }
 0x5c2   : > { %2759 = vmatprep.mubr.bf16.mxu1 %v8401_v14 }
 0x5c9   : > { %2760 = vmatmul.mubr.bf16.gmra.mrb[180].mxu1 %v7059_v39 }
 0x5ca   : > { %2769 = vmatprep.mubr.bf16.mxu1 %v8401_v14 }
 0x5d1   : > { %2770 = vmatmul.mubr.bf16.gmra.mrb[184].mxu1 %v7074_v15 }
 0x5d2   : > { %2779 = vmatprep.mubr.bf16.mxu1 %v8401_v14 }
 0x5d9   : > { %2780 = vmatmul.mubr.bf16.gmra.mrb[188].mxu1 %v7071_v8 }
 0x5da   : > { %2822 = vmatprep.mubr.bf16.mxu1 %v8401_v14 }
 0x5e1   : > { %2823 = vmatmul.mubr.bf16.vlgmr.msra.gmra.mrb[192].mxu1 %v7038_v28 }
 0x5e2   : > { %2832 = vmatprep.mubr.bf16.mxu1 %v8401_v14 }
 0x5e9   : > { %2833 = vmatmul.mubr.bf16.gmra.mrb[196].mxu1 %v7036_v36 }
 0x5ea   : > { %2842 = vmatprep.mubr.bf16.mxu1 %v8401_v14 }
 0x5f1   : > { %2843 = vmatmul.mubr.bf16.gmra.mrb[200].mxu1 %v7050_v51 }
 0x5f2   : > { %2852 = vmatprep.mubr.bf16.mxu1 %v8401_v14 }
 0x5f9   : > { %2853 = vmatmul.mubr.bf16.gmra.mrb[204].mxu1 %v7047_v59 }
 0x5fa   : > { %2862 = vmatprep.mubr.bf16.mxu1 %v8401_v14 }
 0x601   : > { %2863 = vmatmul.mubr.bf16.gmra.mrb[208].mxu1 %v7062_v12 }
 0x602   : > { %2872 = vmatprep.mubr.bf16.mxu1 %v8401_v14 }
 0x609   : > { %2873 = vmatmul.mubr.bf16.gmra.mrb[212].mxu1 %v7059_v39 }
 0x60a   : > { %2882 = vmatprep.mubr.bf16.mxu1 %v8401_v14 }
 0x611   : > { %2883 = vmatmul.mubr.bf16.gmra.mrb[216].mxu1 %v7074_v15 }
 0x612   : > { %2892 = vmatprep.mubr.bf16.mxu1 %v8401_v14 }
 0x619   : > { %2893 = vmatmul.mubr.bf16.gmra.mrb[220].mxu1 %v7071_v8 }
 0x61a   : > { %3176 = vmatprep.mubr.bf16.mxu1 %v8401_v14 }
 0x634   : > { %v2598_v6 = vpop.f32.mrb[128].mxu1  ;;  %v7147_v17 = vpop.f32.mrb[192].mxu0 }
 0x635   : > { %v2600_v62 = vpop.f32.mrb[129].mxu1  ;;  %v7149_v2 = vpop.f32.mrb[193].mxu0 }
 0x636   : > { %v2602_v24 = vpop.f32.mrb[130].mxu1  ;;  %v7151_v11 = vpop.f32.mrb[194].mxu0 }
 0x637   : > { %v3032_v55 = vpack.c.bf16 %v2602_v24, %v2598_v6  ;;  %v3038_v60 = vpack.c.bf16 %v7151_v11, %v7147_v17  ;;  %v2604_v31 = vpop.f32.mrb[131].mxu1  ;;  %v7155_v61 = vpop.f32.mrb[195].mxu0 }
 0x638   : > { %v3033_v10 = vpack.c.bf16 %v2604_v31, %v2600_v62  ;;  %v3039_v38 = vpack.c.bf16 %v7155_v61, %v7149_v2 }
 0x63a   : > { %3144 = vmatprep.subr.bf16.mxu1 %v3033_v10 }
 0x63b   : > { %3145 = vmatpush1.bf16.msra.mxu1 %v3032_v55 }
 0x63c   : > { %v2608_v4 = vpop.f32.mrb[132].mxu1  ;;  %v7159_v37 = vpop.f32.mrb[196].mxu0 }
 0x63d   : > { %v2610_v35 = vpop.f32.mrb[133].mxu1  ;;  %v7161_v49 = vpop.f32.mrb[197].mxu0 }
 0x63e   : > { %v2612_v5 = vpop.f32.mrb[134].mxu1  ;;  %v7163_v34 = vpop.f32.mrb[198].mxu0 }
 0x63f   : > { %v3040_v22 = vpack.c.bf16 %v2612_v5, %v2608_v4  ;;  %v3046_v41 = vpack.c.bf16 %v7163_v34, %v7159_v37  ;;  %v2614_v16 = vpop.f32.mrb[135].mxu1  ;;  %v7167_v21 = vpop.f32.mrb[199].mxu0 }
 0x640   : > { %v3041_v9 = vpack.c.bf16 %v2614_v16, %v2610_v35  ;;  %v3047_v45 = vpack.c.bf16 %v7167_v21, %v7161_v49 }
 0x642   : > { %3146 = vmatprep.subr.bf16.mxu1 %v3041_v9 }
 0x643   : > { %3147 = vmatpush1.bf16.msra.mxu1 %v3040_v22 }
 0x644   : > { %v2618_v42 = vpop.f32.mrb[136].mxu1  ;;  %v7171_v30 = vpop.f32.mrb[200].mxu0 }
 0x645   : > { %v2620_v13 = vpop.f32.mrb[137].mxu1  ;;  %v7173_v7 = vpop.f32.mrb[201].mxu0 }
 0x646   : > { %v2622_v36 = vpop.f32.mrb[138].mxu1  ;;  %v7175_v46 = vpop.f32.mrb[202].mxu0 }
 0x647   : > { %v3048_v28 = vpack.c.bf16 %v2622_v36, %v2618_v42  ;;  %v3054_v1 = vpack.c.bf16 %v7175_v46, %v7171_v30  ;;  %v2624_v33 = vpop.f32.mrb[139].mxu1  ;;  %v7179_v63 = vpop.f32.mrb[203].mxu0 }
 0x648   : > { %v3049_v47 = vpack.c.bf16 %v2624_v33, %v2620_v13  ;;  %v3055_v40 = vpack.c.bf16 %v7179_v63, %v7173_v7 }
 0x64a   : > { %3148 = vmatprep.subr.bf16.mxu1 %v3049_v47 }
 0x64b   : > { %3149 = vmatpush1.bf16.msra.mxu1 %v3048_v28 }
 0x64c   : > { %v2628_v25 = vpop.f32.mrb[140].mxu1  ;;  %v7183_v59 = vpop.f32.mrb[204].mxu0 }
 0x64d   : > { %v2630_v52 = vpop.f32.mrb[141].mxu1  ;;  %v7185_v58 = vpop.f32.mrb[205].mxu0 }
 0x64e   : > { %v2632_v51 = vpop.f32.mrb[142].mxu1  ;;  %v7187_v3 = vpop.f32.mrb[206].mxu0 }
 0x64f   : > { %v3056_v44 = vpack.c.bf16 %v2632_v51, %v2628_v25  ;;  %v3062_v27 = vpack.c.bf16 %v7187_v3, %v7183_v59  ;;  %v2634_v43 = vpop.f32.mrb[143].mxu1  ;;  %v7191_v26 = vpop.f32.mrb[207].mxu0 }
 0x650   : > { %v3057_v0 = vpack.c.bf16 %v2634_v43, %v2630_v52  ;;  %v3063_v39 = vpack.c.bf16 %v7191_v26, %v7185_v58 }
 0x652   : > { %3150 = vmatprep.subr.bf16.mxu1 %v3057_v0 }
 0x653   : > { %3151 = vmatpush1.bf16.msra.mxu1 %v3056_v44 }
 0x654   : > { %v2638_v32 = vpop.f32.mrb[144].mxu1  ;;  %v7195_v56 = vpop.f32.mrb[208].mxu0 }
 0x655   : > { %v2640_v12 = vpop.f32.mrb[145].mxu1  ;;  %v7197_v53 = vpop.f32.mrb[209].mxu0 }
 0x656   : > { %v2642_v20 = vpop.f32.mrb[146].mxu1  ;;  %v7199_v23 = vpop.f32.mrb[210].mxu0 }
 0x657   : > { %v3064_v29 = vpack.c.bf16 %v2642_v20, %v2638_v32  ;;  %v3070_v54 = vpack.c.bf16 %v7199_v23, %v7195_v56  ;;  %v2644_v57 = vpop.f32.mrb[147].mxu1  ;;  %v7203_v8 = vpop.f32.mrb[211].mxu0 }
 0x658   : > { %v3065_v50 = vpack.c.bf16 %v2644_v57, %v2640_v12  ;;  %v3071_v19 = vpack.c.bf16 %v7203_v8, %v7197_v53 }
 0x65a   : > { %3152 = vmatprep.subr.bf16.mxu1 %v3065_v50 }
 0x65b   : > { %3153 = vmatpush1.bf16.msra.mxu1 %v3064_v29 }
 0x65c   : > { %v2648_v15 = vpop.f32.mrb[148].mxu1  ;;  %v7207_v18 = vpop.f32.mrb[212].mxu0 }
 0x65d   : > { %v2650_v48 = vpop.f32.mrb[149].mxu1  ;;  %v7209_v6 = vpop.f32.mrb[213].mxu0 }
 0x65e   : > { %v2652_v62 = vpop.f32.mrb[150].mxu1  ;;  %v7211_v24 = vpop.f32.mrb[214].mxu0 }
 0x65f   : > { %v3072_v55 = vpack.c.bf16 %v2652_v62, %v2648_v15  ;;  %v3078_v31 = vpack.c.bf16 %v7211_v24, %v7207_v18  ;;  %v2654_v10 = vpop.f32.mrb[151].mxu1  ;;  %v7215_v4 = vpop.f32.mrb[215].mxu0 }
 0x660   : > { %v3073_v35 = vpack.c.bf16 %v2654_v10, %v2650_v48  ;;  %v3079_v5 = vpack.c.bf16 %v7215_v4, %v7209_v6 }
 0x662   : > { %3154 = vmatprep.subr.bf16.mxu1 %v3073_v35 }
 0x663   : > { %3155 = vmatpush1.bf16.msra.mxu1 %v3072_v55  ;;  %v7246_v55 = vld [vmem:[%s7992_s7] sm:$0xff]  }
 0x664   : > { %v2658_v22 = vpop.f32.mrb[152].mxu1  ;;  %v7219_v16 = vpop.f32.mrb[216].mxu0 }
 0x665   : > { %v2660_v9 = vpop.f32.mrb[153].mxu1  ;;  %v7221_v42 = vpop.f32.mrb[217].mxu0 }
 0x666   : > { %v2662_v13 = vpop.f32.mrb[154].mxu1  ;;  %v7223_v36 = vpop.f32.mrb[218].mxu0 }
 0x667   : > { %v3080_v28 = vpack.c.bf16 %v2662_v13, %v2658_v22  ;;  %v2664_v47 = vpop.f32.mrb[155].mxu1  ;;  %v7227_v25 = vpop.f32.mrb[219].mxu0  ;;  %v8434_v59 = vpack.c.bf16 %v7223_v36, %v7219_v16 }
 0x668   : > { %v3081_v52 = vpack.c.bf16 %v2664_v47, %v2660_v9  ;;  %v7253_v47 = vld [vmem:[%s7992_s7 + $0x8] sm:$0xff]   ;;  %v8433_v7 = vpack.c.bf16 %v7227_v25, %v7221_v42 }
 0x66a   : > { %3156 = vmatprep.subr.bf16.mxu1 %v3081_v52 }
 0x66b   : > { %3157 = vmatpush1.bf16.msra.mxu1 %v3080_v28 }
 0x66c   : > { %v2668_v44 = vpop.f32.mrb[156].mxu1  ;;  %v7231_v43 = vpop.f32.mrb[220].mxu0 }
 0x66d   : > { %v2670_v0 = vpop.f32.mrb[157].mxu1  ;;  %v7233_v32 = vpop.f32.mrb[221].mxu0 }
 0x66e   : > { %v2672_v12 = vpop.f32.mrb[158].mxu1  ;;  %v7235_v20 = vpop.f32.mrb[222].mxu0 }
 0x66f   : > { %v3088_v29 = vpack.c.bf16 %v2672_v12, %v2668_v44  ;;  %v2674_v50 = vpop.f32.mrb[159].mxu1  ;;  %v7239_v15 = vpop.f32.mrb[223].mxu0 }
 0x670   : > { %v3089_v48 = vpack.c.bf16 %v2674_v50, %v2670_v0  ;;  %v8435_v3 = vpack.c.bf16 %v7239_v15, %v7233_v32 }
 0x672   : > { %3158 = vmatprep.subr.bf16.mxu1 %v3089_v48  ;;  %v7260_v48 = vld [vmem:[%s7992_s7 + $0x10] sm:$0xff]  }
 0x673   : > { %3159 = vmatpush1.bf16.msra.mxu1 %v3088_v29 }
 0x674   : > { %v2711_v10 = vpop.f32.mrb[160].mxu1 }
 0x675   : > { %v2713_v35 = vpop.f32.mrb[161].mxu1 }
 0x676   : > { %v2715_v22 = vpop.f32.mrb[162].mxu1  ;;  %3177 = vmatmul.mubr.bf16.vlgmr.msra.gmra.mrb[224].mxu1 %v7246_v55 }
 0x677   : > { %v3034_v9 = vpack.c.bf16 %v2715_v22, %v2711_v10  ;;  %v2717_v13 = vpop.f32.mrb[163].mxu1  ;;  %3186 = vmatprep.mubr.bf16.mxu1 %v8401_v14 }
 0x678   : > { %v3035_v28 = vpack.c.bf16 %v2717_v13, %v2713_v35 }
 0x67a   : > { %3257 = vmatprep.subr.bf16.mxu0 %v3035_v28 }
 0x67b   : > { %3258 = vmatpush1.bf16.msra.mxu0 %v3034_v9 }
 0x67c   : > { %v2721_v52 = vpop.f32.mrb[164].mxu1 }
 0x67d   : > { %v2723_v44 = vpop.f32.mrb[165].mxu1 }
 0x67e   : > { %v2725_v0 = vpop.f32.mrb[166].mxu1  ;;  %3187 = vmatmul.mubr.bf16.gmra.mrb[228].mxu1 %v7253_v47 }
 0x67f   : > { %v3042_v12 = vpack.c.bf16 %v2725_v0, %v2721_v52  ;;  %v2727_v29 = vpop.f32.mrb[167].mxu1  ;;  %3196 = vmatprep.mubr.bf16.mxu1 %v8401_v14  ;;  %v7267_v52 = vld [vmem:[%s7992_s7 + $0x18] sm:$0xff]  }
 0x680   : > { %v3043_v50 = vpack.c.bf16 %v2727_v29, %v2723_v44 }
 0x682   : > { %3259 = vmatprep.subr.bf16.mxu0 %v3043_v50 }
 0x683   : > { %3260 = vmatpush1.bf16.msra.mxu0 %v3042_v12 }
 0x684   : > { %v2731_v10 = vpop.f32.mrb[168].mxu1 }
 0x685   : > { %v2733_v35 = vpop.f32.mrb[169].mxu1 }
 0x686   : > { %v2735_v22 = vpop.f32.mrb[170].mxu1  ;;  %3197 = vmatmul.mubr.bf16.gmra.mrb[232].mxu1 %v7260_v48 }
 0x687   : > { %v3050_v9 = vpack.c.bf16 %v2735_v22, %v2731_v10  ;;  %v2737_v13 = vpop.f32.mrb[171].mxu1  ;;  %3206 = vmatprep.mubr.bf16.mxu1 %v8401_v14 }
 0x688   : > { %v3051_v28 = vpack.c.bf16 %v2737_v13, %v2733_v35  ;;  %v7274_v35 = vld [vmem:[%s7992_s7 + $0x20] sm:$0xff]  }
 0x68a   : > { %3261 = vmatprep.subr.bf16.mxu0 %v3051_v28 }
 0x68b   : > { %3262 = vmatpush1.bf16.msra.mxu0 %v3050_v9 }
 0x68c   : > { %v2741_v44 = vpop.f32.mrb[172].mxu1 }
 0x68d   : > { %v2743_v0 = vpop.f32.mrb[173].mxu1 }
 0x68e   : > { %v2745_v12 = vpop.f32.mrb[174].mxu1  ;;  %3207 = vmatmul.mubr.bf16.gmra.mrb[236].mxu1 %v7267_v52 }
 0x68f   : > { %v3058_v29 = vpack.c.bf16 %v2745_v12, %v2741_v44  ;;  %v2747_v50 = vpop.f32.mrb[175].mxu1  ;;  %3216 = vmatprep.mubr.bf16.mxu1 %v8401_v14 }
 0x690   : > { %v3059_v10 = vpack.c.bf16 %v2747_v50, %v2743_v0  ;;  %v7281_v0 = vld [vmem:[%s7992_s7 + $0x28] sm:$0xff]  }
 0x692   : > { %3263 = vmatprep.subr.bf16.mxu0 %v3059_v10 }
 0x693   : > { %3264 = vmatpush1.bf16.msra.mxu0 %v3058_v29 }
 0x694   : > { %v2751_v22 = vpop.f32.mrb[176].mxu1 }
 0x695   : > { %v2753_v13 = vpop.f32.mrb[177].mxu1 }
 0x696   : > { %v2755_v9 = vpop.f32.mrb[178].mxu1  ;;  %3217 = vmatmul.mubr.bf16.gmra.mrb[240].mxu1 %v7274_v35 }
 0x697   : > { %v3066_v28 = vpack.c.bf16 %v2755_v9, %v2751_v22  ;;  %v2757_v57 = vpop.f32.mrb[179].mxu1  ;;  %3226 = vmatprep.mubr.bf16.mxu1 %v8401_v14 }
 0x698   : > { %v3067_v44 = vpack.c.bf16 %v2757_v57, %v2753_v13  ;;  %v7288_v57 = vld [vmem:[%s7992_s7 + $0x30] sm:$0xff]  }
 0x69a   : > { %3265 = vmatprep.subr.bf16.mxu0 %v3067_v44 }
 0x69b   : > { %3266 = vmatpush1.bf16.msra.mxu0 %v3066_v28 }
 0x69c   : > { %v2761_v12 = vpop.f32.mrb[180].mxu1 }
 0x69d   : > { %v2763_v50 = vpop.f32.mrb[181].mxu1 }
 0x69e   : > { %v2765_v29 = vpop.f32.mrb[182].mxu1  ;;  %3227 = vmatmul.mubr.bf16.gmra.mrb[244].mxu1 %v7281_v0 }
 0x69f   : > { %v3074_v10 = vpack.c.bf16 %v2765_v29, %v2761_v12  ;;  %v2767_v62 = vpop.f32.mrb[183].mxu1  ;;  %3236 = vmatprep.mubr.bf16.mxu1 %v8401_v14 }
 0x6a0   : > { %v3075_v22 = vpack.c.bf16 %v2767_v62, %v2763_v50  ;;  %v7295_v62 = vld [vmem:[%s7992_s7 + $0x38] sm:$0xff]  }
 0x6a2   : > { %3267 = vmatprep.subr.bf16.mxu0 %v3075_v22 }
 0x6a3   : > { %3268 = vmatpush1.bf16.msra.mxu0 %v3074_v10 }
 0x6a4   : > { %v2771_v13 = vpop.f32.mrb[184].mxu1 }
 0x6a5   : > { %v2773_v9 = vpop.f32.mrb[185].mxu1 }
 0x6a6   : > { %v2775_v28 = vpop.f32.mrb[186].mxu1  ;;  %3237 = vmatmul.mubr.bf16.gmra.mrb[248].mxu1 %v7288_v57 }
 0x6a7   : > { %v3082_v44 = vpack.c.bf16 %v2775_v28, %v2771_v13  ;;  %v2777_v33 = vpop.f32.mrb[187].mxu1  ;;  %3246 = vmatprep.mubr.bf16.mxu1 %v8401_v14 }
 0x6a8   : > { %v3083_v12 = vpack.c.bf16 %v2777_v33, %v2773_v9 }
 0x6aa   : > { %3269 = vmatprep.subr.bf16.mxu0 %v3083_v12 }
 0x6ab   : > { %3270 = vmatpush1.bf16.msra.mxu0 %v3082_v44 }
 0x6ac   : > { %v2781_v50 = vpop.f32.mrb[188].mxu1 }
 0x6ad   : > { %v2783_v29 = vpop.f32.mrb[189].mxu1 }
 0x6ae   : > { %v2785_v10 = vpop.f32.mrb[190].mxu1  ;;  %3247 = vmatmul.mubr.bf16.gmra.mrb[252].mxu1 %v7295_v62 }
 0x6af   : > { %v3090_v22 = vpack.c.bf16 %v2785_v10, %v2781_v50  ;;  %v2787_v51 = vpop.f32.mrb[191].mxu1  ;;  %3402 = vmatprep.mubr.bf16.mxu1 %v8401_v14 }
 0x6b0   : > { %v3091_v13 = vpack.c.bf16 %v2787_v51, %v2783_v29 }
 0x6b2   : > { %3271 = vmatprep.subr.bf16.mxu0 %v3091_v13 }
 0x6b3   : > { %3272 = vmatpush1.bf16.msra.mxu0 %v3090_v22 }
 0x6b4   : > { %v2824_v33 = vpop.f32.mrb[192].mxu1  ;;  %3483 = vmatprep.subr.bf16.mxu0 %v3039_v38 }
 0x6b5   : > { %v2826_v9 = vpop.f32.mrb[193].mxu1 }
 0x6b6   : > { %v2828_v28 = vpop.f32.mrb[194].mxu1  ;;  %3290 = vmatmul.mubr.bf16.vlgmr.msra.gmra.mrb[224].mxu0 %v7246_v55 }
 0x6b7   : > { %v3036_v44 = vpack.c.bf16 %v2828_v28, %v2824_v33  ;;  %v2830_v12 = vpop.f32.mrb[195].mxu1  ;;  %3484 = vmatpush1.bf16.msra.mxu0 %v3038_v60  ;;  %3299 = vmatprep.mubr.bf16.mxu0 %v8401_v14 }
 0x6b8   : > { %v3037_v51 = vpack.c.bf16 %v2830_v12, %v2826_v9  ;;  %3485 = vmatprep.subr.bf16.mxu0 %v3047_v45 }
 0x6ba   : > { %3370 = vmatprep.subr.bf16.mxu1 %v3037_v51 }
 0x6bb   : > { %3371 = vmatpush1.bf16.msra.mxu1 %v3036_v44  ;;  %3486 = vmatpush1.bf16.msra.mxu0 %v3046_v41 }
 0x6bc   : > { %v2834_v2 = vpop.f32.mrb[196].mxu1  ;;  %3487 = vmatprep.subr.bf16.mxu0 %v3055_v40 }
 0x6bd   : > { %v2836_v17 = vpop.f32.mrb[197].mxu1 }
 0x6be   : > { %v2838_v11 = vpop.f32.mrb[198].mxu1  ;;  %3300 = vmatmul.mubr.bf16.gmra.mrb[228].mxu0 %v7253_v47 }
 0x6bf   : > { %v3044_v60 = vpack.c.bf16 %v2838_v11, %v2834_v2  ;;  %v2840_v61 = vpop.f32.mrb[199].mxu1  ;;  %3488 = vmatpush1.bf16.msra.mxu0 %v3054_v1  ;;  %3309 = vmatprep.mubr.bf16.mxu0 %v8401_v14  ;;  %v4982_v2 = vld [vmem:[%s5192_s18] sm:$0xff] }
 0x6c0   : > { %v3045_v38 = vpack.c.bf16 %v2840_v61, %v2836_v17  ;;  %3489 = vmatprep.subr.bf16.mxu0 %v3063_v39  ;;  %v4983_v61 = vld [vmem:[%s5192_s18 + $0x8] sm:$0xff] }
 0x6c2   : > { %3372 = vmatprep.subr.bf16.mxu1 %v3045_v38 }
 0x6c3   : > { %3373 = vmatpush1.bf16.msra.mxu1 %v3044_v60  ;;  %3490 = vmatpush1.bf16.msra.mxu0 %v3062_v27  ;;  %v8436_v27 = vpack.c.bf16 %v7235_v20, %v7231_v43 }
 0x6c4   : > { %v2844_v37 = vpop.f32.mrb[200].mxu1  ;;  %3491 = vmatprep.subr.bf16.mxu0 %v3071_v19 }
 0x6c5   : > { %v2846_v49 = vpop.f32.mrb[201].mxu1 }
 0x6c6   : > { %v2848_v34 = vpop.f32.mrb[202].mxu1  ;;  %3310 = vmatmul.mubr.bf16.gmra.mrb[232].mxu0 %v7260_v48 }
 0x6c7   : > { %v3052_v41 = vpack.c.bf16 %v2848_v34, %v2844_v37  ;;  %v2850_v21 = vpop.f32.mrb[203].mxu1  ;;  %3492 = vmatpush1.bf16.msra.mxu0 %v3070_v54  ;;  %3319 = vmatprep.mubr.bf16.mxu0 %v8401_v14 }
 0x6c8   : > { %v3053_v45 = vpack.c.bf16 %v2850_v21, %v2846_v49  ;;  %3493 = vmatprep.subr.bf16.mxu0 %v3079_v5  ;;  %v4984_v49 = vld [vmem:[%s5192_s18 + $0x40] sm:$0xff] }
 0x6ca   : > { %3374 = vmatprep.subr.bf16.mxu1 %v3053_v45 }
 0x6cb   : > { %3375 = vmatpush1.bf16.msra.mxu1 %v3052_v41  ;;  %3494 = vmatpush1.bf16.msra.mxu0 %v3078_v31  ;;  %v4985_v41 = vld [vmem:[%s5192_s18 + $0x48] sm:$0xff] }
 0x6cc   : > { %v2854_v30 = vpop.f32.mrb[204].mxu1  ;;  %3495 = vmatprep.subr.bf16.mxu0 %v8433_v7 }
 0x6cd   : > { %v2856_v46 = vpop.f32.mrb[205].mxu1 }
 0x6ce   : > { %v2858_v1 = vpop.f32.mrb[206].mxu1  ;;  %3320 = vmatmul.mubr.bf16.gmra.mrb[236].mxu0 %v7267_v52 }
 0x6cf   : > { %v3060_v63 = vpack.c.bf16 %v2858_v1, %v2854_v30  ;;  %v2860_v40 = vpop.f32.mrb[207].mxu1  ;;  %3496 = vmatpush1.bf16.msra.mxu0 %v8434_v59  ;;  %3329 = vmatprep.mubr.bf16.mxu0 %v8401_v14 }
 0x6d0   : > { %v3061_v58 = vpack.c.bf16 %v2860_v40, %v2856_v46  ;;  %3497 = vmatprep.subr.bf16.mxu0 %v8435_v3 }
 0x6d2   : > { %3376 = vmatprep.subr.bf16.mxu1 %v3061_v58 }
 0x6d3   : > { %3377 = vmatpush1.bf16.msra.mxu1 %v3060_v63  ;;  %3498 = vmatpush1.bf16.msra.mxu0 %v8436_v27 }
 0x6d4   : > { %v2864_v26 = vpop.f32.mrb[208].mxu1 }
 0x6d5   : > { %v2866_v39 = vpop.f32.mrb[209].mxu1 }
 0x6d6   : > { %v2868_v56 = vpop.f32.mrb[210].mxu1  ;;  %3330 = vmatmul.mubr.bf16.gmra.mrb[240].mxu0 %v7274_v35 }
 0x6d7   : > { %v3068_v53 = vpack.c.bf16 %v2868_v56, %v2864_v26  ;;  %v2870_v23 = vpop.f32.mrb[211].mxu1  ;;  %3339 = vmatprep.mubr.bf16.mxu0 %v8401_v14  ;;  %v4986_v56 = vld [vmem:[%s5192_s18 + $0x80] sm:$0xff] }
 0x6d8   : > { %v3069_v54 = vpack.c.bf16 %v2870_v23, %v2866_v39 }
 0x6da   : > { %3378 = vmatprep.subr.bf16.mxu1 %v3069_v54 }
 0x6db   : > { %3379 = vmatpush1.bf16.msra.mxu1 %v3068_v53 }
 0x6dc   : > { %v2874_v8 = vpop.f32.mrb[212].mxu1 }
 0x6dd   : > { %v2876_v19 = vpop.f32.mrb[213].mxu1 }
 0x6de   : > { %v2878_v18 = vpop.f32.mrb[214].mxu1  ;;  %3340 = vmatmul.mubr.bf16.gmra.mrb[244].mxu0 %v7281_v0 }
 0x6df   : > { %v3076_v6 = vpack.c.bf16 %v2878_v18, %v2874_v8  ;;  %v2880_v24 = vpop.f32.mrb[215].mxu1  ;;  %3349 = vmatprep.mubr.bf16.mxu0 %v8401_v14  ;;  %v4987_v8 = vld [vmem:[%s5192_s18 + $0x88] sm:$0xff] }
 0x6e0   : > { %v3077_v31 = vpack.c.bf16 %v2880_v24, %v2876_v19  ;;  %v4988_v24 = vld [vmem:[%s5192_s18 + $0xc0] sm:$0xff] }
 0x6e2   : > { %3380 = vmatprep.subr.bf16.mxu1 %v3077_v31 }
 0x6e3   : > { %3381 = vmatpush1.bf16.msra.mxu1 %v3076_v6 }
 0x6e4   : > { %v2884_v4 = vpop.f32.mrb[216].mxu1 }
 0x6e5   : > { %v2886_v5 = vpop.f32.mrb[217].mxu1 }
 0x6e6   : > { %v2888_v16 = vpop.f32.mrb[218].mxu1  ;;  %3350 = vmatmul.mubr.bf16.gmra.mrb[248].mxu0 %v7288_v57 }
 0x6e7   : > { %v3084_v42 = vpack.c.bf16 %v2888_v16, %v2884_v4  ;;  %v2890_v36 = vpop.f32.mrb[219].mxu1  ;;  %3359 = vmatprep.mubr.bf16.mxu0 %v8401_v14 }
 0x6e8   : > { %v3085_v25 = vpack.c.bf16 %v2890_v36, %v2886_v5  ;;  %v4989_v5 = vld [vmem:[%s5192_s18 + $0xc8] sm:$0xff] }
 0x6ea   : > { %3382 = vmatprep.subr.bf16.mxu1 %v3085_v25 }
 0x6eb   : > { %3383 = vmatpush1.bf16.msra.mxu1 %v3084_v42 }
 0x6ec   : > { %v2894_v43 = vpop.f32.mrb[220].mxu1 }
 0x6ed   : > { %v2896_v32 = vpop.f32.mrb[221].mxu1 }
 0x6ee   : > { %v2898_v20 = vpop.f32.mrb[222].mxu1  ;;  %3360 = vmatmul.mubr.bf16.gmra.mrb[252].mxu0 %v7295_v62 }
 0x6ef   : > { %v3092_v15 = vpack.c.bf16 %v2898_v20, %v2894_v43  ;;  %v2900_v50 = vpop.f32.mrb[223].mxu1  ;;  %3515 = vmatprep.mubr.bf16.mxu0 %v8401_v14 }
 0x6f0   : > { %v3093_v29 = vpack.c.bf16 %v2900_v50, %v2896_v32 }
 0x6f2   : > { %3384 = vmatprep.subr.bf16.mxu1 %v3093_v29 }
 0x6f3   : > { %3385 = vmatpush1.bf16.msra.mxu1 %v3092_v15 }
 0x6f6   : > { %3403 = vmatmul.mubr.bf16.vlgmr.msra.gmra.mrb[0].mxu1 %v7246_v55  ;;  %3516 = vmatmul.mubr.bf16.vlgmr.msra.gmra.mrb[0].mxu0 %v7246_v55  ;;  %v7397_v55 = vpop.permute.xlu0 %3614 }
 0x6f7   : > { %3412 = vmatprep.mubr.bf16.mxu1 %v8401_v14  ;;  %3525 = vmatprep.mubr.bf16.mxu0 %v8401_v14 }
 0x6fe   : > { %3413 = vmatmul.mubr.bf16.gmra.mrb[4].mxu1 %v7253_v47  ;;  %3526 = vmatmul.mubr.bf16.gmra.mrb[4].mxu0 %v7253_v47  ;;  %v4173_v47 = vld [vmem:[%s7395_s27 + $0x8] sm:$0xff] }
 0x6ff   : > { %3422 = vmatprep.mubr.bf16.mxu1 %v8401_v14  ;;  %3535 = vmatprep.mubr.bf16.mxu0 %v8401_v14 }
 0x706   : > { %3423 = vmatmul.mubr.bf16.gmra.mrb[8].mxu1 %v7260_v48  ;;  %3536 = vmatmul.mubr.bf16.gmra.mrb[8].mxu0 %v7260_v48  ;;  %v7400_v48 = vpop.permute.xlu1 %3619 }
 0x707   : > { %3432 = vmatprep.mubr.bf16.mxu1 %v8401_v14  ;;  %3545 = vmatprep.mubr.bf16.mxu0 %v8401_v14 }
 0x70e   : > { %3433 = vmatmul.mubr.bf16.gmra.mrb[12].mxu1 %v7267_v52  ;;  %3546 = vmatmul.mubr.bf16.gmra.mrb[12].mxu0 %v7267_v52  ;;  %v7404_v52 = vpop.permute.xlu0 %3966 }
 0x70f   : > { %3442 = vmatprep.mubr.bf16.mxu1 %v8401_v14  ;;  %3555 = vmatprep.mubr.bf16.mxu0 %v8401_v14 }
 0x716   : > { %3443 = vmatmul.mubr.bf16.gmra.mrb[16].mxu1 %v7274_v35  ;;  %3556 = vmatmul.mubr.bf16.gmra.mrb[16].mxu0 %v7274_v35  ;;  %v7408_v35 = vpop.permute.xlu0 %3624 }
 0x717   : > { %3452 = vmatprep.mubr.bf16.mxu1 %v8401_v14  ;;  %3565 = vmatprep.mubr.bf16.mxu0 %v8401_v14 }
 0x71e   : > { %3453 = vmatmul.mubr.bf16.gmra.mrb[20].mxu1 %v7281_v0  ;;  %3566 = vmatmul.mubr.bf16.gmra.mrb[20].mxu0 %v7281_v0 }
 0x71f   : > { %3462 = vmatprep.mubr.bf16.mxu1 %v8401_v14  ;;  %3575 = vmatprep.mubr.bf16.mxu0 %v8401_v14 }
 0x726   : > { %3463 = vmatmul.mubr.bf16.gmra.mrb[24].mxu1 %v7288_v57  ;;  %3576 = vmatmul.mubr.bf16.gmra.mrb[24].mxu0 %v7288_v57  ;;  %v7412_v57 = vpop.permute.xlu0 %3976 }
 0x727   : > { %3472 = vmatprep.mubr.bf16.mxu1 %v8401_v14  ;;  %3585 = vmatprep.mubr.bf16.mxu0 %v8401_v14  ;;  %v7406_v14 = vpop.permute.xlu1 %3971 }
 0x72a   : > { %v7416_v22 = vpop.permute.xlu0 %3634 }
 0x72b   : > { %v7410_v0 = vpop.permute.xlu1 %3629 }
 0x72e   : > { %3473 = vmatmul.mubr.bf16.gmra.mrb[28].mxu1 %v7295_v62  ;;  %3586 = vmatmul.mubr.bf16.gmra.mrb[28].mxu0 %v7295_v62  ;;  %v7420_v33 = vpop.permute.xlu0 %3986 }
 0x72f   : > { %4244 = vmatprep.mubr.f32.mxu1 %v4173_v47  ;;  %v7414_v10 = vpop.permute.xlu1 %3981 }
 0x732   : > { %v7432_v45 = vpop.permute.xlu0 %3644 }
 0x733   : > { %v7418_v13 = vpop.permute.xlu1 %3639 }
 0x736   : > { %v7446_v6 = vpop.permute.xlu0 %3996 }
 0x737   : > { %v7423_v44 = vpop.permute.xlu1 %3991 }
 0x73b   : > { %v7436_v46 = vpop.permute.xlu1 %3649 }
 0x73f   : > { %v7449_v4 = vpop.permute.xlu1 %4001 }
 0x749   : > { %v3178_v62 = vpop.f32.mrb[224].mxu1 }
 0x74a   : > { %v3692_v9 = vmul.f32 %v7397_v55, %v3178_v62  ;;  %v3180_v28 = vpop.f32.mrb[225].mxu1 }
 0x74b   : > { %v3693_v12 = vmul.f32 %v7397_v55, %v3180_v28  ;;  %v3182_v51 = vpop.f32.mrb[226].mxu1  ;;  %v4990_v28 = vld [vmem:[%s5192_s18 + $0x100] sm:$0xff] }
 0x74c   : > { %v3820_v17 = vadd.f32 %v4982_v2, %v3692_v9  ;;  %v3700_v11 = vmul.f32 %v7400_v48, %v3182_v51  ;;  %v3184_v60 = vpop.f32.mrb[227].mxu1  ;;  %v7458_v9 = vpop.permute.xlu0 %3654 }
 0x74d   : > { %v3821_v38 = vadd.f32 %v4983_v61, %v3693_v12  ;;  %v3701_v37 = vmul.f32 %v7400_v48, %v3184_v60 }
 0x74e   : > { %v3828_v34 = vadd.f32 %v4984_v49, %v3700_v11  ;;  %v4044_v30 = vadd.f32 %v7404_v52, %v3820_v17  ;;  %v7462_v17 = vpop.permute.xlu1 %3659  ;;  %v4991_v11 = vld [vmem:[%s5192_s18 + $0x108] sm:$0xff] }
 0x74f   : > { %v3829_v21 = vadd.f32 %v4985_v41, %v3701_v37  ;;  %v4045_v1 = vadd.f32 %v7404_v52, %v3821_v38  ;;  %v4992_v38 = vld [vmem:[%s5192_s18 + $0x140] sm:$0xff]  ;;  %v4993_v49 = vld [vmem:[%s5192_s18 + $0x148] sm:$0xff] }
 0x750   : > { %v4052_v7 = vadd.f32 %v7406_v14, %v3828_v34 }
 0x751   : > { %v4053_v63 = vadd.f32 %v7406_v14, %v3829_v21  ;;  %v3188_v40 = vpop.f32.mrb[228].mxu1 }
 0x752   : > { %v4679_v59 = vpack.c.bf16 %v4052_v7, %v4044_v30  ;;  %v3708_v58 = vmul.f32 %v7408_v35, %v3188_v40  ;;  %v3190_v3 = vpop.f32.mrb[229].mxu1 }
 0x753   : > { %v3709_v27 = vmul.f32 %v7408_v35, %v3190_v3  ;;  %v3192_v26 = vpop.f32.mrb[230].mxu1  ;;  %v4677_v39 = vpack.c.bf16 %v4053_v63, %v4045_v1  ;;  %v7472_v63 = vpop.permute.xlu0 %4006 }
 0x754   : > { %v3836_v53 = vadd.f32 %v4986_v56, %v3708_v58  ;;  %v3716_v23 = vmul.f32 %v7410_v0, %v3192_v26  ;;  %v3194_v54 = vpop.f32.mrb[231].mxu1  ;;  %v7475_v3 = vpop.permute.xlu1 %4011  ;;  %v4994_v56 = vld [vmem:[%s5192_s18 + $0x180] sm:$0xff] }
 0x755   : > { %v3837_v19 = vadd.f32 %v4987_v8, %v3709_v27  ;;  %v3717_v18 = vmul.f32 %v7410_v0, %v3194_v54  ;;  %4678 = vmatprep.subr.bf16.mxu1 %v4677_v39  ;;  %v4995_v8 = vld [vmem:[%s5192_s18 + $0x188] sm:$0xff] }
 0x756   : > { %v3844_v31 = vadd.f32 %v4988_v24, %v3716_v23  ;;  %4680 = vmatpush1.bf16.xpose.msra.mxu1 %v4679_v59  ;;  %v4060_v42 = vadd.f32 %v7412_v57, %v3836_v53  ;;  %v4996_v24 = vld [vmem:[%s5192_s18 + $0x1c0] sm:$0xff] }
 0x757   : > { %v3845_v16 = vadd.f32 %v4989_v5, %v3717_v18  ;;  %v4061_v25 = vadd.f32 %v7412_v57, %v3837_v19  ;;  %v4997_v5 = vld [vmem:[%s5192_s18 + $0x1c8] sm:$0xff] }
 0x758   : > { %v4068_v36 = vadd.f32 %v7414_v10, %v3844_v31 }
 0x759   : > { %v4069_v43 = vadd.f32 %v7414_v10, %v3845_v16  ;;  %v3198_v32 = vpop.f32.mrb[232].mxu1 }
 0x75a   : > { %v4683_v20 = vpack.c.bf16 %v4068_v36, %v4060_v42  ;;  %v3724_v15 = vmul.f32 %v7416_v22, %v3198_v32  ;;  %v3200_v50 = vpop.f32.mrb[233].mxu1  ;;  %v7484_v42 = vpop.permute.xlu0 %3664 }
 0x75b   : > { %v3725_v29 = vmul.f32 %v7416_v22, %v3200_v50  ;;  %v3202_v47 = vpop.f32.mrb[234].mxu1  ;;  %v4681_v62 = vpack.c.bf16 %v4069_v43, %v4061_v25  ;;  %v7488_v43 = vpop.permute.xlu1 %3669 }
 0x75c   : > { %v3852_v12 = vadd.f32 %v4990_v28, %v3724_v15  ;;  %v3732_v51 = vmul.f32 %v7418_v13, %v3202_v47  ;;  %v3204_v2 = vpop.f32.mrb[235].mxu1 }
 0x75d   : > { %v3853_v60 = vadd.f32 %v4991_v11, %v3725_v29  ;;  %v3733_v61 = vmul.f32 %v7418_v13, %v3204_v2  ;;  %4682 = vmatprep.subr.bf16.mxu1 %v4681_v62 }
 0x75e   : > { %v3860_v37 = vadd.f32 %v4992_v38, %v3732_v51  ;;  %4684 = vmatpush1.bf16.xpose.msra.mxu1 %v4683_v20  ;;  %v4076_v41 = vadd.f32 %v7420_v33, %v3852_v12  ;;  %v4998_v51 = vld [vmem:[%s5192_s18 + $0x200] sm:$0xff] }
 0x75f   : > { %v3861_v34 = vadd.f32 %v4993_v49, %v3733_v61  ;;  %v4077_v30 = vadd.f32 %v7420_v33, %v3853_v60  ;;  %v4999_v61 = vld [vmem:[%s5192_s18 + $0x208] sm:$0xff]  ;;  %v7498_v49 = vpop.permute.xlu0 %4016 }
 0x760   : > { %v4084_v21 = vadd.f32 %v7423_v44, %v3860_v37 }
 0x761   : > { %v4085_v7 = vadd.f32 %v7423_v44, %v3861_v34  ;;  %v3208_v1 = vpop.f32.mrb[236].mxu1  ;;  %v5000_v34 = vld [vmem:[%s5192_s18 + $0x240] sm:$0xff] }
 0x762   : > { %v4687_v40 = vpack.c.bf16 %v4084_v21, %v4076_v41  ;;  %v3740_v59 = vmul.f32 %v7432_v45, %v3208_v1  ;;  %v3210_v58 = vpop.f32.mrb[237].mxu1  ;;  %v7501_v21 = vpop.permute.xlu1 %4021 }
 0x763   : > { %v3741_v27 = vmul.f32 %v7432_v45, %v3210_v58  ;;  %v3212_v26 = vpop.f32.mrb[238].mxu1  ;;  %v4685_v39 = vpack.c.bf16 %v4085_v7, %v4077_v30  ;;  %v5001_v30 = vld [vmem:[%s5192_s18 + $0x248] sm:$0xff] }
 0x764   : > { %v3868_v53 = vadd.f32 %v4994_v56, %v3740_v59  ;;  %v3748_v23 = vmul.f32 %v7436_v46, %v3212_v26  ;;  %v3214_v54 = vpop.f32.mrb[239].mxu1 }
 0x765   : > { %v3869_v19 = vadd.f32 %v4995_v8, %v3741_v27  ;;  %v3749_v18 = vmul.f32 %v7436_v46, %v3214_v54  ;;  %4686 = vmatprep.subr.bf16.mxu1 %v4685_v39  ;;  %v7510_v8 = vpop.permute.xlu0 %3674 }
 0x766   : > { %v3876_v31 = vadd.f32 %v4996_v24, %v3748_v23  ;;  %4688 = vmatpush1.bf16.xpose.msra.mxu1 %v4687_v40  ;;  %v4092_v36 = vadd.f32 %v7446_v6, %v3868_v53 }
 0x767   : > { %v3877_v16 = vadd.f32 %v4997_v5, %v3749_v18  ;;  %v4093_v32 = vadd.f32 %v7446_v6, %v3869_v19  ;;  %v5002_v19 = vld [vmem:[%s5192_s18 + $0x280] sm:$0xff]  ;;  %v7514_v5 = vpop.permute.xlu1 %3679 }
 0x768   : > { %v4100_v25 = vadd.f32 %v7449_v4, %v3876_v31 }
 0x769   : > { %v4101_v20 = vadd.f32 %v7449_v4, %v3877_v16  ;;  %v3218_v15 = vpop.f32.mrb[240].mxu1  ;;  %v5003_v16 = vld [vmem:[%s5192_s18 + $0x288] sm:$0xff] }
 0x76a   : > { %v4691_v50 = vpack.c.bf16 %v4100_v25, %v4092_v36  ;;  %v3756_v29 = vmul.f32 %v7458_v9, %v3218_v15  ;;  %v3220_v47 = vpop.f32.mrb[241].mxu1  ;;  %v5005_v15 = vld [vmem:[%s5192_s18 + $0x2c8] sm:$0xff] }
 0x76b   : > { %v3757_v62 = vmul.f32 %v7458_v9, %v3220_v47  ;;  %v3222_v28 = vpop.f32.mrb[242].mxu1  ;;  %v4689_v12 = vpack.c.bf16 %v4101_v20, %v4093_v32  ;;  %v5004_v32 = vld [vmem:[%s5192_s18 + $0x2c0] sm:$0xff] }
 0x76c   : > { %v3884_v2 = vadd.f32 %v4998_v51, %v3756_v29  ;;  %v3764_v11 = vmul.f32 %v7462_v17, %v3222_v28  ;;  %v3224_v60 = vpop.f32.mrb[243].mxu1  ;;  %v7524_v51 = vpop.permute.xlu0 %4026 }
 0x76d   : > { %v3885_v38 = vadd.f32 %v4999_v61, %v3757_v62  ;;  %v3765_v37 = vmul.f32 %v7462_v17, %v3224_v60  ;;  %4690 = vmatprep.subr.bf16.mxu1 %v4689_v12  ;;  %v7527_v61 = vpop.permute.xlu1 %4031 }
 0x76e   : > { %v3892_v41 = vadd.f32 %v5000_v34, %v3764_v11  ;;  %4692 = vmatpush1.bf16.xpose.msra.mxu1 %v4691_v50  ;;  %v4108_v1 = vadd.f32 %v7472_v63, %v3884_v2 }
 0x76f   : > { %v3893_v7 = vadd.f32 %v5001_v30, %v3765_v37  ;;  %v4109_v59 = vadd.f32 %v7472_v63, %v3885_v38 }
 0x770   : > { %v4116_v40 = vadd.f32 %v7475_v3, %v3892_v41  ;;  %v5006_v41 = vld [vmem:[%s5192_s18 + $0x300] sm:$0xff] }
 0x771   : > { %v4117_v58 = vadd.f32 %v7475_v3, %v3893_v7  ;;  %v3228_v27 = vpop.f32.mrb[244].mxu1 }
 0x772   : > { %v4695_v26 = vpack.c.bf16 %v4116_v40, %v4108_v1  ;;  %v3772_v39 = vmul.f32 %v7484_v42, %v3228_v27  ;;  %v3230_v56 = vpop.f32.mrb[245].mxu1  ;;  %v5007_v40 = vld [vmem:[%s5192_s18 + $0x308] sm:$0xff]  ;;  %v5008_v27 = vld [vmem:[%s5192_s18 + $0x340] sm:$0xff] }
 0x773   : > { %v3773_v53 = vmul.f32 %v7484_v42, %v3230_v56  ;;  %v3232_v23 = vpop.f32.mrb[246].mxu1  ;;  %v4693_v54 = vpack.c.bf16 %v4117_v58, %v4109_v59 }
 0x774   : > { %v3900_v18 = vadd.f32 %v5002_v19, %v3772_v39  ;;  %v3780_v24 = vmul.f32 %v7488_v43, %v3232_v23  ;;  %v3234_v31 = vpop.f32.mrb[247].mxu1  ;;  %v5009_v39 = vld [vmem:[%s5192_s18 + $0x348] sm:$0xff]  ;;  %v7540_v19 = vpop.permute.xlu1 %3689 }
 0x775   : > { %v3901_v36 = vadd.f32 %v5003_v16, %v3773_v53  ;;  %v3781_v25 = vmul.f32 %v7488_v43, %v3234_v31  ;;  %4694 = vmatprep.subr.bf16.mxu1 %v4693_v54  ;;  %v7536_v53 = vpop.permute.xlu0 %3684 }
 0x776   : > { %v3908_v20 = vadd.f32 %v5004_v32, %v3780_v24  ;;  %4696 = vmatpush1.bf16.xpose.msra.mxu1 %v4695_v26  ;;  %v4124_v29 = vadd.f32 %v7498_v49, %v3900_v18 }
 0x777   : > { %v3909_v50 = vadd.f32 %v5005_v15, %v3781_v25  ;;  %v4125_v62 = vadd.f32 %v7498_v49, %v3901_v36 }
 0x778   : > { %v4132_v47 = vadd.f32 %v7501_v21, %v3908_v20 }
 0x779   : > { %v4133_v28 = vadd.f32 %v7501_v21, %v3909_v50  ;;  %v3238_v12 = vpop.f32.mrb[248].mxu1  ;;  %v5010_v50 = vld [vmem:[%s5192_s18 + $0x380] sm:$0xff] }
 0x77a   : > { %v4699_v2 = vpack.c.bf16 %v4132_v47, %v4124_v29  ;;  %v3788_v11 = vmul.f32 %v7510_v8, %v3238_v12  ;;  %v3240_v60 = vpop.f32.mrb[249].mxu1 }
 0x77b   : > { %v3789_v38 = vmul.f32 %v7510_v8, %v3240_v60  ;;  %v3242_v37 = vpop.f32.mrb[250].mxu1  ;;  %v4697_v34 = vpack.c.bf16 %v4133_v28, %v4125_v62  ;;  %v5011_v28 = vld [vmem:[%s5192_s18 + $0x388] sm:$0xff] }
 0x77c   : > { %v3916_v30 = vadd.f32 %v5006_v41, %v3788_v11  ;;  %v3796_v7 = vmul.f32 %v7514_v5, %v3242_v37  ;;  %v3244_v1 = vpop.f32.mrb[251].mxu1  ;;  %v5012_v11 = vld [vmem:[%s5192_s18 + $0x3c0] sm:$0xff]  ;;  %v7553_v37 = vpop.permute.xlu1 %4041 }
 0x77d   : > { %v3917_v59 = vadd.f32 %v5007_v40, %v3789_v38  ;;  %v3797_v58 = vmul.f32 %v7514_v5, %v3244_v1  ;;  %4698 = vmatprep.subr.bf16.mxu1 %v4697_v34  ;;  %v7551_v38 = vpop.permute.xlu0 %4036  ;;  %v5013_v34 = vld [vmem:[%s5192_s18 + $0x3c8] sm:$0xff] }
 0x77e   : > { %v3924_v26 = vadd.f32 %v5008_v27, %v3796_v7  ;;  %4700 = vmatpush1.bf16.xpose.msra.mxu1 %v4699_v2  ;;  %v4140_v23 = vadd.f32 %v7524_v51, %v3916_v30 }
 0x77f   : > { %v3925_v56 = vadd.f32 %v5009_v39, %v3797_v58  ;;  %v4141_v18 = vadd.f32 %v7524_v51, %v3917_v59 }
 0x780   : > { %v4148_v54 = vadd.f32 %v7527_v61, %v3924_v26 }
 0x781   : > { %v4149_v24 = vadd.f32 %v7527_v61, %v3925_v56  ;;  %v3248_v31 = vpop.f32.mrb[252].mxu1 }
 0x782   : > { %v4703_v16 = vpack.c.bf16 %v4148_v54, %v4140_v23  ;;  %v3804_v36 = vmul.f32 %v7536_v53, %v3248_v31  ;;  %v3250_v25 = vpop.f32.mrb[253].mxu1  ;;  %v5014_v54 = vld [vmem:[%s5192_s18 + $0x10] sm:$0xff] }
 0x783   : > { %v3805_v32 = vmul.f32 %v7536_v53, %v3250_v25  ;;  %v3252_v20 = vpop.f32.mrb[254].mxu1  ;;  %v4701_v15 = vpack.c.bf16 %v4149_v24, %v4141_v18 }
 0x784   : > { %v3932_v29 = vadd.f32 %v5010_v50, %v3804_v36  ;;  %v3812_v47 = vmul.f32 %v7540_v19, %v3252_v20  ;;  %v3254_v62 = vpop.f32.mrb[255].mxu1 }
 0x785   : > { %v3933_v12 = vadd.f32 %v5011_v28, %v3805_v32  ;;  %v3813_v2 = vmul.f32 %v7540_v19, %v3254_v62  ;;  %4702 = vmatprep.subr.bf16.mxu1 %v4701_v15  ;;  %v5016_v32 = vld [vmem:[%s5192_s18 + $0x50] sm:$0xff]  ;;  %v5017_v15 = vld [vmem:[%s5192_s18 + $0x58] sm:$0xff] }
 0x786   : > { %v3940_v60 = vadd.f32 %v5012_v11, %v3812_v47  ;;  %4704 = vmatpush1.bf16.xpose.msra.mxu1 %v4703_v16  ;;  %v4156_v30 = vadd.f32 %v7551_v38, %v3932_v29  ;;  %v5015_v16 = vld [vmem:[%s5192_s18 + $0x18] sm:$0xff] }
 0x787   : > { %v3941_v41 = vadd.f32 %v5013_v34, %v3813_v2  ;;  %v4157_v1 = vadd.f32 %v7551_v38, %v3933_v12  ;;  %v4172_v34 = vld [vmem:[%s7395_s27] sm:$0xff] }
 0x788   : > { %v4164_v7 = vadd.f32 %v7553_v37, %v3940_v60 }
 0x789   : > { %v4165_v40 = vadd.f32 %v7553_v37, %v3941_v41  ;;  %v3291_v59 = vpop.f32.mrb[224].mxu0 }
 0x78a   : > { %v4707_v58 = vpack.c.bf16 %v4164_v7, %v4156_v30  ;;  %v3694_v27 = vmul.f32 %v7397_v55, %v3291_v59  ;;  %v3293_v26 = vpop.f32.mrb[225].mxu0 }
 0x78b   : > { %v3695_v39 = vmul.f32 %v7397_v55, %v3293_v26  ;;  %v3295_v56 = vpop.f32.mrb[226].mxu0  ;;  %v4705_v23 = vpack.c.bf16 %v4165_v40, %v4157_v1  ;;  %v4175_v1 = vld [vmem:[%s7395_s27 + $0x18] sm:$0xff]  ;;  %v5018_v40 = vld [vmem:[%s5192_s18 + $0x90] sm:$0xff] }
 0x78c   : > { %v3822_v18 = vadd.f32 %v5014_v54, %v3694_v27  ;;  %v3702_v24 = vmul.f32 %v7400_v48, %v3295_v56  ;;  %v3297_v31 = vpop.f32.mrb[227].mxu0  ;;  %v5019_v26 = vld [vmem:[%s5192_s18 + $0x98] sm:$0xff] }
 0x78d   : > { %v3823_v36 = vadd.f32 %v5015_v16, %v3695_v39  ;;  %v3703_v25 = vmul.f32 %v7400_v48, %v3297_v31  ;;  %4706 = vmatprep.subr.bf16.mxu1 %v4705_v23  ;;  %v5020_v23 = vld [vmem:[%s5192_s18 + $0xd0] sm:$0xff] }
 0x78e   : > { %v3830_v20 = vadd.f32 %v5016_v32, %v3702_v24  ;;  %4708 = vmatpush1.bf16.xpose.msra.mxu1 %v4707_v58  ;;  %v4046_v29 = vadd.f32 %v7404_v52, %v3822_v18  ;;  %v5021_v18 = vld [vmem:[%s5192_s18 + $0xd8] sm:$0xff] }
 0x78f   : > { %v3831_v50 = vadd.f32 %v5017_v15, %v3703_v25  ;;  %v4047_v62 = vadd.f32 %v7404_v52, %v3823_v36 }
 0x790   : > { %v4054_v47 = vadd.f32 %v7406_v14, %v3830_v20 }
 0x791   : > { %v4055_v28 = vadd.f32 %v7406_v14, %v3831_v50  ;;  %v3301_v12 = vpop.f32.mrb[228].mxu0 }
 0x792   : > { %v4711_v2 = vpack.c.bf16 %v4054_v47, %v4046_v29  ;;  %v3710_v11 = vmul.f32 %v7408_v35, %v3301_v12  ;;  %v3303_v60 = vpop.f32.mrb[229].mxu0 }
 0x793   : > { %v3711_v41 = vmul.f32 %v7408_v35, %v3303_v60  ;;  %v3305_v30 = vpop.f32.mrb[230].mxu0  ;;  %v4709_v7 = vpack.c.bf16 %v4055_v28, %v4047_v62  ;;  %v5022_v28 = vld [vmem:[%s5192_s18 + $0x110] sm:$0xff]  ;;  %v5023_v60 = vld [vmem:[%s5192_s18 + $0x118] sm:$0xff] }
 0x794   : > { %v3838_v59 = vadd.f32 %v5018_v40, %v3710_v11  ;;  %v3718_v58 = vmul.f32 %v7410_v0, %v3305_v30  ;;  %v3307_v27 = vpop.f32.mrb[231].mxu0  ;;  %v5024_v30 = vld [vmem:[%s5192_s18 + $0x150] sm:$0xff] }
 0x795   : > { %v3839_v39 = vadd.f32 %v5019_v26, %v3711_v41  ;;  %v3719_v56 = vmul.f32 %v7410_v0, %v3307_v27  ;;  %4710 = vmatprep.subr.bf16.mxu1 %v4709_v7  ;;  %4245 = vmatmul.mubr.f32.vlgmr.msra.gmra.mrb[32].mxu1 %v4172_v34 }
 0x796   : > { %v3846_v54 = vadd.f32 %v5020_v23, %v3718_v58  ;;  %4712 = vmatpush1.bf16.xpose.msra.mxu1 %v4711_v2  ;;  %4314 = vmatprep.mubr.f32.mxu1 %v4175_v1  ;;  %v4062_v31 = vadd.f32 %v7412_v57, %v3838_v59  ;;  %v5025_v1 = vld [vmem:[%s5192_s18 + $0x158] sm:$0xff] }
 0x797   : > { %v3847_v24 = vadd.f32 %v5021_v18, %v3719_v56  ;;  %v4063_v36 = vadd.f32 %v7412_v57, %v3839_v39 }
 0x798   : > { %v4070_v16 = vadd.f32 %v7414_v10, %v3846_v54 }
 0x799   : > { %v4071_v25 = vadd.f32 %v7414_v10, %v3847_v24  ;;  %v3311_v32 = vpop.f32.mrb[232].mxu0 }
 0x79a   : > { %v4715_v20 = vpack.c.bf16 %v4070_v16, %v4062_v31  ;;  %v3726_v15 = vmul.f32 %v7416_v22, %v3311_v32  ;;  %v3313_v50 = vpop.f32.mrb[233].mxu0  ;;  %v5026_v16 = vld [vmem:[%s5192_s18 + $0x190] sm:$0xff] }
 0x79b   : > { %v3727_v29 = vmul.f32 %v7416_v22, %v3313_v50  ;;  %v3315_v47 = vpop.f32.mrb[234].mxu0  ;;  %v4713_v62 = vpack.c.bf16 %v4071_v25, %v4063_v36 }
 0x79c   : > { %v3854_v12 = vadd.f32 %v5022_v28, %v3726_v15  ;;  %v3734_v2 = vmul.f32 %v7418_v13, %v3315_v47  ;;  %v3317_v11 = vpop.f32.mrb[235].mxu0 }
 0x79d   : > { %v3855_v34 = vadd.f32 %v5023_v60, %v3727_v29  ;;  %v3735_v41 = vmul.f32 %v7418_v13, %v3317_v11  ;;  %4714 = vmatprep.subr.bf16.mxu1 %v4713_v62  ;;  %v5028_v29 = vld [vmem:[%s5192_s18 + $0x1d0] sm:$0xff]  ;;  %v5029_v62 = vld [vmem:[%s5192_s18 + $0x1d8] sm:$0xff] }
 0x79e   : > { %v3862_v7 = vadd.f32 %v5024_v30, %v3734_v2  ;;  %4716 = vmatpush1.bf16.xpose.msra.mxu1 %v4715_v20  ;;  %v4078_v59 = vadd.f32 %v7420_v33, %v3854_v12  ;;  %v5027_v20 = vld [vmem:[%s5192_s18 + $0x198] sm:$0xff] }
 0x79f   : > { %v3863_v40 = vadd.f32 %v5025_v1, %v3735_v41  ;;  %v4079_v27 = vadd.f32 %v7420_v33, %v3855_v34 }
 0x7a0   : > { %v4086_v58 = vadd.f32 %v7423_v44, %v3862_v7 }
 0x7a1   : > { %v4087_v26 = vadd.f32 %v7423_v44, %v3863_v40  ;;  %v3321_v39 = vpop.f32.mrb[236].mxu0 }
 0x7a2   : > { %v4719_v56 = vpack.c.bf16 %v4086_v58, %v4078_v59  ;;  %v3742_v23 = vmul.f32 %v7432_v45, %v3321_v39  ;;  %v3323_v54 = vpop.f32.mrb[237].mxu0  ;;  %v5030_v58 = vld [vmem:[%s5192_s18 + $0x210] sm:$0xff] }
 0x7a3   : > { %v3743_v18 = vmul.f32 %v7432_v45, %v3323_v54  ;;  %v3325_v24 = vpop.f32.mrb[238].mxu0  ;;  %v4717_v31 = vpack.c.bf16 %v4087_v26, %v4079_v27 }
 0x7a4   : > { %v3870_v36 = vadd.f32 %v5026_v16, %v3742_v23  ;;  %v3750_v25 = vmul.f32 %v7436_v46, %v3325_v24  ;;  %v3327_v32 = vpop.f32.mrb[239].mxu0 }
 0x7a5   : > { %v3871_v15 = vadd.f32 %v5027_v20, %v3743_v18  ;;  %v3751_v50 = vmul.f32 %v7436_v46, %v3327_v32  ;;  %4718 = vmatprep.subr.bf16.mxu1 %v4717_v31  ;;  %v5032_v18 = vld [vmem:[%s5192_s18 + $0x250] sm:$0xff]  ;;  %v5033_v31 = vld [vmem:[%s5192_s18 + $0x258] sm:$0xff] }
 0x7a6   : > { %v3878_v47 = vadd.f32 %v5028_v29, %v3750_v25  ;;  %4720 = vmatpush1.bf16.xpose.msra.mxu1 %v4719_v56  ;;  %v4094_v12 = vadd.f32 %v7446_v6, %v3870_v36  ;;  %v5031_v56 = vld [vmem:[%s5192_s18 + $0x218] sm:$0xff] }
 0x7a7   : > { %v3879_v28 = vadd.f32 %v5029_v62, %v3751_v50  ;;  %v4095_v11 = vadd.f32 %v7446_v6, %v3871_v15 }
 0x7a8   : > { %v4102_v2 = vadd.f32 %v7449_v4, %v3878_v47 }
 0x7a9   : > { %v4103_v60 = vadd.f32 %v7449_v4, %v3879_v28  ;;  %v3331_v34 = vpop.f32.mrb[240].mxu0 }
 0x7aa   : > { %v4723_v41 = vpack.c.bf16 %v4102_v2, %v4094_v12  ;;  %v3758_v30 = vmul.f32 %v7458_v9, %v3331_v34  ;;  %v3333_v7 = vpop.f32.mrb[241].mxu0  ;;  %v5034_v2 = vld [vmem:[%s5192_s18 + $0x290] sm:$0xff] }
 0x7ab   : > { %v3759_v1 = vmul.f32 %v7458_v9, %v3333_v7  ;;  %v3335_v40 = vpop.f32.mrb[242].mxu0  ;;  %v4721_v59 = vpack.c.bf16 %v4103_v60, %v4095_v11 }
 0x7ac   : > { %v3886_v27 = vadd.f32 %v5030_v58, %v3758_v30  ;;  %v3766_v26 = vmul.f32 %v7462_v17, %v3335_v40  ;;  %v3337_v39 = vpop.f32.mrb[243].mxu0 }
 0x7ad   : > { %v3887_v23 = vadd.f32 %v5031_v56, %v3759_v1  ;;  %v3767_v54 = vmul.f32 %v7462_v17, %v3337_v39  ;;  %4722 = vmatprep.subr.bf16.mxu1 %v4721_v59  ;;  %v5036_v1 = vld [vmem:[%s5192_s18 + $0x2d0] sm:$0xff]  ;;  %v5037_v59 = vld [vmem:[%s5192_s18 + $0x2d8] sm:$0xff] }
 0x7ae   : > { %v3894_v24 = vadd.f32 %v5032_v18, %v3766_v26  ;;  %4724 = vmatpush1.bf16.xpose.msra.mxu1 %v4723_v41  ;;  %v4110_v36 = vadd.f32 %v7472_v63, %v3886_v27  ;;  %v5035_v41 = vld [vmem:[%s5192_s18 + $0x298] sm:$0xff] }
 0x7af   : > { %v3895_v16 = vadd.f32 %v5033_v31, %v3767_v54  ;;  %v4111_v32 = vadd.f32 %v7472_v63, %v3887_v23 }
 0x7b0   : > { %v4118_v25 = vadd.f32 %v7475_v3, %v3894_v24 }
 0x7b1   : > { %v4119_v20 = vadd.f32 %v7475_v3, %v3895_v16  ;;  %v3341_v15 = vpop.f32.mrb[244].mxu0 }
 0x7b2   : > { %v4727_v50 = vpack.c.bf16 %v4118_v25, %v4110_v36  ;;  %v3774_v29 = vmul.f32 %v7484_v42, %v3341_v15  ;;  %v3343_v47 = vpop.f32.mrb[245].mxu0  ;;  %v5038_v25 = vld [vmem:[%s5192_s18 + $0x310] sm:$0xff] }
 0x7b3   : > { %v3775_v62 = vmul.f32 %v7484_v42, %v3343_v47  ;;  %v3345_v28 = vpop.f32.mrb[246].mxu0  ;;  %v4725_v12 = vpack.c.bf16 %v4119_v20, %v4111_v32 }
 0x7b4   : > { %v3902_v11 = vadd.f32 %v5034_v2, %v3774_v29  ;;  %v3782_v60 = vmul.f32 %v7488_v43, %v3345_v28  ;;  %v3347_v34 = vpop.f32.mrb[247].mxu0 }
 0x7b5   : > { %v3903_v30 = vadd.f32 %v5035_v41, %v3775_v62  ;;  %v3783_v7 = vmul.f32 %v7488_v43, %v3347_v34  ;;  %4726 = vmatprep.subr.bf16.mxu1 %v4725_v12  ;;  %v5040_v62 = vld [vmem:[%s5192_s18 + $0x350] sm:$0xff]  ;;  %v5041_v12 = vld [vmem:[%s5192_s18 + $0x358] sm:$0xff] }
 0x7b6   : > { %v3910_v40 = vadd.f32 %v5036_v1, %v3782_v60  ;;  %4728 = vmatpush1.bf16.xpose.msra.mxu1 %v4727_v50  ;;  %v4126_v27 = vadd.f32 %v7498_v49, %v3902_v11  ;;  %v5039_v50 = vld [vmem:[%s5192_s18 + $0x318] sm:$0xff] }
 0x7b7   : > { %v3911_v58 = vadd.f32 %v5037_v59, %v3783_v7  ;;  %v4127_v39 = vadd.f32 %v7498_v49, %v3903_v30 }
 0x7b8   : > { %v4134_v26 = vadd.f32 %v7501_v21, %v3910_v40 }
 0x7b9   : > { %v4135_v56 = vadd.f32 %v7501_v21, %v3911_v58  ;;  %v3351_v23 = vpop.f32.mrb[248].mxu0 }
 0x7ba   : > { %v4731_v54 = vpack.c.bf16 %v4134_v26, %v4126_v27  ;;  %v3790_v18 = vmul.f32 %v7510_v8, %v3351_v23  ;;  %v3353_v24 = vpop.f32.mrb[249].mxu0  ;;  %v5042_v26 = vld [vmem:[%s5192_s18 + $0x390] sm:$0xff] }
 0x7bb   : > { %v3791_v31 = vmul.f32 %v7510_v8, %v3353_v24  ;;  %v3355_v16 = vpop.f32.mrb[250].mxu0  ;;  %v4729_v36 = vpack.c.bf16 %v4135_v56, %v4127_v39 }
 0x7bc   : > { %v3918_v32 = vadd.f32 %v5038_v25, %v3790_v18  ;;  %v3798_v20 = vmul.f32 %v7514_v5, %v3355_v16  ;;  %v3357_v15 = vpop.f32.mrb[251].mxu0 }
 0x7bd   : > { %v3919_v29 = vadd.f32 %v5039_v50, %v3791_v31  ;;  %v3799_v47 = vmul.f32 %v7514_v5, %v3357_v15  ;;  %4730 = vmatprep.subr.bf16.mxu1 %v4729_v36  ;;  %v5044_v31 = vld [vmem:[%s5192_s18 + $0x3d0] sm:$0xff]  ;;  %v5045_v36 = vld [vmem:[%s5192_s18 + $0x3d8] sm:$0xff] }
 0x7be   : > { %v3926_v28 = vadd.f32 %v5040_v62, %v3798_v20  ;;  %4732 = vmatpush1.bf16.xpose.msra.mxu1 %v4731_v54  ;;  %v4142_v11 = vadd.f32 %v7524_v51, %v3918_v32  ;;  %v5043_v54 = vld [vmem:[%s5192_s18 + $0x398] sm:$0xff] }
 0x7bf   : > { %v3927_v2 = vadd.f32 %v5041_v12, %v3799_v47  ;;  %v4143_v34 = vadd.f32 %v7524_v51, %v3919_v29 }
 0x7c0   : > { %v4150_v60 = vadd.f32 %v7527_v61, %v3926_v28 }
 0x7c1   : > { %v4151_v41 = vadd.f32 %v7527_v61, %v3927_v2  ;;  %v3361_v30 = vpop.f32.mrb[252].mxu0 }
 0x7c2   : > { %v4735_v7 = vpack.c.bf16 %v4150_v60, %v4142_v11  ;;  %v3806_v1 = vmul.f32 %v7536_v53, %v3361_v30  ;;  %v3363_v40 = vpop.f32.mrb[253].mxu0 }
 0x7c3   : > { %v3807_v59 = vmul.f32 %v7536_v53, %v3363_v40  ;;  %v3365_v58 = vpop.f32.mrb[254].mxu0  ;;  %v4733_v27 = vpack.c.bf16 %v4151_v41, %v4143_v34 }
 0x7c4   : > { %v3934_v39 = vadd.f32 %v5042_v26, %v3806_v1  ;;  %v3814_v56 = vmul.f32 %v7540_v19, %v3365_v58  ;;  %v3367_v23 = vpop.f32.mrb[255].mxu0  ;;  %v5046_v1 = vld [vmem:[%s5192_s18 + $0x20] sm:$0xff] }
 0x7c5   : > { %v3935_v18 = vadd.f32 %v5043_v54, %v3807_v59  ;;  %v3815_v24 = vmul.f32 %v7540_v19, %v3367_v23  ;;  %4734 = vmatprep.subr.bf16.mxu1 %v4733_v27  ;;  %v5047_v59 = vld [vmem:[%s5192_s18 + $0x30] sm:$0xff]  ;;  %v5048_v23 = vld [vmem:[%s5192_s18 + $0x28] sm:$0xff] }
 0x7c6   : > { %v3942_v16 = vadd.f32 %v5044_v31, %v3814_v56  ;;  %4736 = vmatpush1.bf16.xpose.msra.mxu1 %v4735_v7  ;;  %v4158_v32 = vadd.f32 %v7551_v38, %v3934_v39 }
 0x7c7   : > { %v3943_v25 = vadd.f32 %v5045_v36, %v3815_v24  ;;  %v4159_v15 = vadd.f32 %v7551_v38, %v3935_v18 }
 0x7c8   : > { %v4166_v20 = vadd.f32 %v7553_v37, %v3942_v16  ;;  %v5050_v16 = vld [vmem:[%s5192_s18 + $0x60] sm:$0xff] }
 0x7c9   : > { %v4167_v50 = vadd.f32 %v7553_v37, %v3943_v25  ;;  %v3404_v29 = vpop.f32.mrb[0].mxu1  ;;  %v3517_v47 = vpop.f32.mrb[0].mxu0  ;;  %v5051_v25 = vld [vmem:[%s5192_s18 + $0x70] sm:$0xff] }
 0x7ca   : > { %v4739_v62 = vpack.c.bf16 %v4166_v20, %v4158_v32  ;;  %v3696_v28 = vmul.f32 %v7397_v55, %v3404_v29  ;;  %v3698_v12 = vmul.f32 %v7397_v55, %v3517_v47  ;;  %v3406_v2 = vpop.f32.mrb[1].mxu1  ;;  %v3519_v11 = vpop.f32.mrb[1].mxu0  ;;  %v5052_v20 = vld [vmem:[%s5192_s18 + $0x68] sm:$0xff] }
 0x7cb   : > { %v3697_v60 = vmul.f32 %v7397_v55, %v3406_v2  ;;  %v3699_v34 = vmul.f32 %v7397_v55, %v3519_v11  ;;  %v3408_v41 = vpop.f32.mrb[2].mxu1  ;;  %v3521_v30 = vpop.f32.mrb[2].mxu0  ;;  %v4737_v7 = vpack.c.bf16 %v4167_v50, %v4159_v15  ;;  %v5049_v55 = vld [vmem:[%s5192_s18 + $0x38] sm:$0xff] }
 0x7cc   : > { %v3824_v40 = vadd.f32 %v5046_v1, %v3696_v28  ;;  %v3826_v58 = vadd.f32 %v5047_v59, %v3698_v12  ;;  %v3704_v27 = vmul.f32 %v7400_v48, %v3408_v41  ;;  %v3706_v26 = vmul.f32 %v7400_v48, %v3521_v30  ;;  %v3410_v39 = vpop.f32.mrb[3].mxu1  ;;  %v3523_v56 = vpop.f32.mrb[3].mxu0  ;;  %v5053_v50 = vld [vmem:[%s5192_s18 + $0x78] sm:$0xff] }
 0x7cd   : > { %v3825_v54 = vadd.f32 %v5048_v23, %v3697_v60  ;;  %v3827_v18 = vadd.f32 %v5049_v55, %v3699_v34  ;;  %v3705_v24 = vmul.f32 %v7400_v48, %v3410_v39  ;;  %v3707_v31 = vmul.f32 %v7400_v48, %v3523_v56  ;;  %4738 = vmatprep.subr.bf16.mxu1 %v4737_v7  ;;  %v4174_v56 = vld [vmem:[%s7395_s27 + $0x10] sm:$0xff] }
 0x7ce   : > { %v3832_v36 = vadd.f32 %v5050_v16, %v3704_v27  ;;  %v3834_v32 = vadd.f32 %v5051_v25, %v3706_v26  ;;  %4740 = vmatpush1.bf16.xpose.msra.mxu1 %v4739_v62  ;;  %v4048_v47 = vadd.f32 %v7404_v52, %v3824_v40  ;;  %v7676_v28 = vadd.f32 %v7404_v52, %v3826_v58  ;;  %v5056_v25 = vld [vmem:[%s5192_s18 + $0xa8] sm:$0xff] }
 0x7cf   : > { %v3833_v15 = vadd.f32 %v5052_v20, %v3705_v24  ;;  %v3835_v29 = vadd.f32 %v5053_v50, %v3707_v31  ;;  %v4049_v48 = vadd.f32 %v7404_v52, %v3825_v54  ;;  %v7684_v11 = vadd.f32 %v7404_v52, %v3827_v18  ;;  %v5054_v54 = vld [vmem:[%s5192_s18 + $0xa0] sm:$0xff]  ;;  %v5055_v18 = vld [vmem:[%s5192_s18 + $0xb0] sm:$0xff]  ;;  %v5057_v20 = vld [vmem:[%s5192_s18 + $0xb8] sm:$0xff] }
 0x7d0   : > { %v4056_v12 = vadd.f32 %v7406_v14, %v3832_v36  ;;  %v7680_v2 = vadd.f32 %v7406_v14, %v3834_v32 }
 0x7d1   : > { %v4057_v62 = vadd.f32 %v7406_v14, %v3833_v15  ;;  %v7688_v60 = vadd.f32 %v7406_v14, %v3835_v29  ;;  %v3414_v34 = vpop.f32.mrb[4].mxu1  ;;  %v3527_v41 = vpop.f32.mrb[4].mxu0 }
 0x7d2   : > { %v4743_v30 = vpack.c.bf16 %v4056_v12, %v4048_v47  ;;  %v4775_v7 = vpack.c.bf16 %v7680_v2, %v7676_v28  ;;  %v3712_v1 = vmul.f32 %v7408_v35, %v3414_v34  ;;  %v3714_v40 = vmul.f32 %v7408_v35, %v3527_v41  ;;  %v3416_v52 = vpop.f32.mrb[5].mxu1  ;;  %v3529_v59 = vpop.f32.mrb[5].mxu0  ;;  %v4177_v47 = vld [vmem:[%s7395_s27 + $0x28] sm:$0xff]  ;;  %v5058_v12 = vld [vmem:[%s5192_s18 + $0xe0] sm:$0xff] }
 0x7d3   : > { %v3713_v58 = vmul.f32 %v7408_v35, %v3416_v52  ;;  %v3715_v14 = vmul.f32 %v7408_v35, %v3529_v59  ;;  %v3418_v27 = vpop.f32.mrb[6].mxu1  ;;  %v3531_v26 = vpop.f32.mrb[6].mxu0  ;;  %v4741_v39 = vpack.c.bf16 %v4057_v62, %v4049_v48  ;;  %v4773_v23 = vpack.c.bf16 %v7688_v60, %v7684_v11  ;;  %v5059_v62 = vld [vmem:[%s5192_s18 + $0xf0] sm:$0xff]  ;;  %v5060_v41 = vld [vmem:[%s5192_s18 + $0xe8] sm:$0xff] }
 0x7d4   : > { %v3840_v55 = vadd.f32 %v5054_v54, %v3712_v1  ;;  %v3842_v24 = vadd.f32 %v5055_v18, %v3714_v40  ;;  %v3720_v31 = vmul.f32 %v7410_v0, %v3418_v27  ;;  %v3722_v16 = vmul.f32 %v7410_v0, %v3531_v26  ;;  %v3420_v35 = vpop.f32.mrb[7].mxu1  ;;  %v3533_v36 = vpop.f32.mrb[7].mxu0  ;;  %v5061_v40 = vld [vmem:[%s5192_s18 + $0xf8] sm:$0xff]  ;;  %v4178_v11 = vld [vmem:[%s7395_s27 + $0x30] sm:$0xff] }
 0x7d5   : > { %v3841_v32 = vadd.f32 %v5056_v25, %v3713_v58  ;;  %v3843_v15 = vadd.f32 %v5057_v20, %v3715_v14  ;;  %v3721_v50 = vmul.f32 %v7410_v0, %v3420_v35  ;;  %v3723_v29 = vmul.f32 %v7410_v0, %v3533_v36  ;;  %4742 = vmatprep.subr.bf16.mxu1 %v4741_v39 }
 0x7d6   : > { %v3848_v48 = vadd.f32 %v5058_v12, %v3720_v31  ;;  %v3850_v34 = vadd.f32 %v5059_v62, %v3722_v16  ;;  %4315 = vmatmul.mubr.f32.vlgmr.msra.gmra.mrb[32].mxu1 %v4174_v56  ;;  %v4064_v59 = vadd.f32 %v7412_v57, %v3840_v55  ;;  %v7714_v58 = vadd.f32 %v7412_v57, %v3842_v24 }
 0x7d7   : > { %v3849_v1 = vadd.f32 %v5060_v41, %v3721_v50  ;;  %v3851_v52 = vadd.f32 %v5061_v40, %v3723_v29  ;;  %4744 = vmatpush1.bf16.xpose.msra.mxu1 %v4743_v30  ;;  %4384 = vmatprep.mubr.f32.mxu1 %v4177_v47  ;;  %v4065_v27 = vadd.f32 %v7412_v57, %v3841_v32  ;;  %v5063_v29 = vld [vmem:[%s5192_s18 + $0x130] sm:$0xff] }
 0x7d8   : > { %v4072_v14 = vadd.f32 %v7414_v10, %v3848_v48  ;;  %v7718_v0 = vadd.f32 %v7414_v10, %v3850_v34  ;;  %v7722_v26 = vadd.f32 %v7412_v57, %v3843_v15  ;;  %v5062_v15 = vld [vmem:[%s5192_s18 + $0x120] sm:$0xff]  ;;  %v5064_v34 = vld [vmem:[%s5192_s18 + $0x128] sm:$0xff] }
 0x7d9   : > { %v4073_v39 = vadd.f32 %v7414_v10, %v3849_v1  ;;  %v7726_v30 = vadd.f32 %v7414_v10, %v3851_v52  ;;  %v3424_v56 = vpop.f32.mrb[8].mxu1  ;;  %v3537_v54 = vpop.f32.mrb[8].mxu0  ;;  %v5065_v1 = vld [vmem:[%s5192_s18 + $0x138] sm:$0xff] }
 0x7da   : > { %v4747_v55 = vpack.c.bf16 %v4072_v14, %v4064_v59  ;;  %v4779_v18 = vpack.c.bf16 %v7718_v0, %v7714_v58  ;;  %v3728_v24 = vmul.f32 %v7416_v22, %v3424_v56  ;;  %v3730_v31 = vmul.f32 %v7416_v22, %v3537_v54  ;;  %v3426_v16 = vpop.f32.mrb[9].mxu1  ;;  %v3539_v57 = vpop.f32.mrb[9].mxu0  ;;  %v5066_v14 = vld [vmem:[%s5192_s18 + $0x160] sm:$0xff]  ;;  %v5068_v54 = vld [vmem:[%s5192_s18 + $0x168] sm:$0xff] }
 0x7db   : > { %v3729_v35 = vmul.f32 %v7416_v22, %v3426_v16  ;;  %v3731_v10 = vmul.f32 %v7416_v22, %v3539_v57  ;;  %v3428_v36 = vpop.f32.mrb[10].mxu1  ;;  %v3541_v25 = vpop.f32.mrb[10].mxu0  ;;  %v4745_v32 = vpack.c.bf16 %v4073_v39, %v4065_v27  ;;  %v4777_v20 = vpack.c.bf16 %v7726_v30, %v7722_v26  ;;  %v5067_v39 = vld [vmem:[%s5192_s18 + $0x170] sm:$0xff] }
 0x7dc   : > { %v3856_v50 = vadd.f32 %v5062_v15, %v3728_v24  ;;  %v3858_v47 = vadd.f32 %v5063_v29, %v3730_v31  ;;  %v3736_v12 = vmul.f32 %v7418_v13, %v3428_v36  ;;  %v3738_v48 = vmul.f32 %v7418_v13, %v3541_v25  ;;  %v3430_v62 = vpop.f32.mrb[11].mxu1  ;;  %v3543_v22 = vpop.f32.mrb[11].mxu0  ;;  %v5069_v31 = vld [vmem:[%s5192_s18 + $0x178] sm:$0xff] }
 0x7dd   : > { %v3857_v41 = vadd.f32 %v5064_v34, %v3729_v35  ;;  %v3859_v40 = vadd.f32 %v5065_v1, %v3731_v10  ;;  %v3737_v52 = vmul.f32 %v7418_v13, %v3430_v62  ;;  %v3739_v59 = vmul.f32 %v7418_v13, %v3543_v22  ;;  %4746 = vmatprep.subr.bf16.mxu1 %v4745_v32 }
 0x7de   : > { %v3864_v27 = vadd.f32 %v5066_v14, %v3736_v12  ;;  %v3866_v56 = vadd.f32 %v5067_v39, %v3738_v48  ;;  %v4080_v57 = vadd.f32 %v7420_v33, %v3856_v50  ;;  %v7750_v35 = vadd.f32 %v7420_v33, %v3858_v47  ;;  %v5071_v14 = vld [vmem:[%s5192_s18 + $0x1b0] sm:$0xff] }
 0x7df   : > { %v3865_v24 = vadd.f32 %v5068_v54, %v3737_v52  ;;  %v3867_v16 = vadd.f32 %v5069_v31, %v3739_v59  ;;  %4748 = vmatpush1.bf16.xpose.msra.mxu1 %v4747_v55  ;;  %v4081_v13 = vadd.f32 %v7420_v33, %v3857_v41  ;;  %v7758_v25 = vadd.f32 %v7420_v33, %v3859_v40  ;;  %v5070_v52 = vld [vmem:[%s5192_s18 + $0x1a0] sm:$0xff] }
 0x7e0   : > { %v4088_v10 = vadd.f32 %v7423_v44, %v3864_v27  ;;  %v7754_v36 = vadd.f32 %v7423_v44, %v3866_v56 }
 0x7e1   : > { %v4089_v32 = vadd.f32 %v7423_v44, %v3865_v24  ;;  %v7762_v55 = vadd.f32 %v7423_v44, %v3867_v16  ;;  %v3434_v15 = vpop.f32.mrb[12].mxu1  ;;  %v3547_v50 = vpop.f32.mrb[12].mxu0  ;;  %v5072_v24 = vld [vmem:[%s5192_s18 + $0x1a8] sm:$0xff]  ;;  %v5073_v16 = vld [vmem:[%s5192_s18 + $0x1b8] sm:$0xff] }
 0x7e2   : > { %v4751_v29 = vpack.c.bf16 %v4088_v10, %v4080_v57  ;;  %v4783_v47 = vpack.c.bf16 %v7754_v36, %v7750_v35  ;;  %v3744_v12 = vmul.f32 %v7432_v45, %v3434_v15  ;;  %v3746_v48 = vmul.f32 %v7432_v45, %v3547_v50  ;;  %v3436_v62 = vpop.f32.mrb[13].mxu1  ;;  %v3549_v33 = vpop.f32.mrb[13].mxu0  ;;  %v5075_v50 = vld [vmem:[%s5192_s18 + $0x1f0] sm:$0xff] }
 0x7e3   : > { %v3745_v22 = vmul.f32 %v7432_v45, %v3436_v62  ;;  %v3747_v44 = vmul.f32 %v7432_v45, %v3549_v33  ;;  %v3438_v34 = vpop.f32.mrb[14].mxu1  ;;  %v3551_v41 = vpop.f32.mrb[14].mxu0  ;;  %v4749_v1 = vpack.c.bf16 %v4089_v32, %v4081_v13  ;;  %v4781_v40 = vpack.c.bf16 %v7762_v55, %v7758_v25  ;;  %v5074_v32 = vld [vmem:[%s5192_s18 + $0x1e0] sm:$0xff]  ;;  %v5077_v33 = vld [vmem:[%s5192_s18 + $0x1f8] sm:$0xff] }
 0x7e4   : > { %v3872_v59 = vadd.f32 %v5070_v52, %v3744_v12  ;;  %v3874_v27 = vadd.f32 %v5071_v14, %v3746_v48  ;;  %v3752_v39 = vmul.f32 %v7436_v46, %v3438_v34  ;;  %v3754_v56 = vmul.f32 %v7436_v46, %v3551_v41  ;;  %v3440_v54 = vpop.f32.mrb[15].mxu1  ;;  %v3553_v45 = vpop.f32.mrb[15].mxu0  ;;  %v5076_v48 = vld [vmem:[%s5192_s18 + $0x1e8] sm:$0xff] }
 0x7e5   : > { %v3873_v31 = vadd.f32 %v5072_v24, %v3745_v22  ;;  %v3875_v57 = vadd.f32 %v5073_v16, %v3747_v44  ;;  %v3753_v10 = vmul.f32 %v7436_v46, %v3440_v54  ;;  %v3755_v13 = vmul.f32 %v7436_v46, %v3553_v45  ;;  %4750 = vmatprep.subr.bf16.mxu1 %v4749_v1 }
 0x7e6   : > { %v3880_v15 = vadd.f32 %v5074_v32, %v3752_v39  ;;  %v3882_v12 = vadd.f32 %v5075_v50, %v3754_v56  ;;  %v4096_v41 = vadd.f32 %v7446_v6, %v3872_v59  ;;  %v7786_v22 = vadd.f32 %v7446_v6, %v3874_v27  ;;  %v5078_v32 = vld [vmem:[%s5192_s18 + $0x220] sm:$0xff]  ;;  %v5079_v50 = vld [vmem:[%s5192_s18 + $0x230] sm:$0xff] }
 0x7e7   : > { %v3881_v62 = vadd.f32 %v5076_v48, %v3753_v10  ;;  %v3883_v34 = vadd.f32 %v5077_v33, %v3755_v13  ;;  %4752 = vmatpush1.bf16.xpose.msra.mxu1 %v4751_v29  ;;  %v4097_v46 = vadd.f32 %v7446_v6, %v3873_v31  ;;  %v7794_v1 = vadd.f32 %v7446_v6, %v3875_v57 }
 0x7e8   : > { %v4104_v44 = vadd.f32 %v7449_v4, %v3880_v15  ;;  %v7790_v52 = vadd.f32 %v7449_v4, %v3882_v12 }
 0x7e9   : > { %v4105_v14 = vadd.f32 %v7449_v4, %v3881_v62  ;;  %v7798_v29 = vadd.f32 %v7449_v4, %v3883_v34  ;;  %v3444_v59 = vpop.f32.mrb[16].mxu1  ;;  %v3557_v27 = vpop.f32.mrb[16].mxu0  ;;  %v5080_v34 = vld [vmem:[%s5192_s18 + $0x228] sm:$0xff] }
 0x7ea   : > { %v4755_v39 = vpack.c.bf16 %v4104_v44, %v4096_v41  ;;  %v4787_v56 = vpack.c.bf16 %v7790_v52, %v7786_v22  ;;  %v3760_v54 = vmul.f32 %v7458_v9, %v3444_v59  ;;  %v3762_v45 = vmul.f32 %v7458_v9, %v3557_v27  ;;  %v3446_v24 = vpop.f32.mrb[17].mxu1  ;;  %v3559_v6 = vpop.f32.mrb[17].mxu0  ;;  %v5081_v44 = vld [vmem:[%s5192_s18 + $0x238] sm:$0xff]  ;;  %v5082_v27 = vld [vmem:[%s5192_s18 + $0x260] sm:$0xff] }
 0x7eb   : > { %v3761_v31 = vmul.f32 %v7458_v9, %v3446_v24  ;;  %v3763_v4 = vmul.f32 %v7458_v9, %v3559_v6  ;;  %v3448_v16 = vpop.f32.mrb[18].mxu1  ;;  %v3561_v57 = vpop.f32.mrb[18].mxu0  ;;  %v4753_v10 = vpack.c.bf16 %v4105_v14, %v4097_v46  ;;  %v4785_v13 = vpack.c.bf16 %v7798_v29, %v7794_v1  ;;  %v5084_v6 = vld [vmem:[%s5192_s18 + $0x268] sm:$0xff] }
 0x7ec   : > { %v3888_v15 = vadd.f32 %v5078_v32, %v3760_v54  ;;  %v3890_v12 = vadd.f32 %v5079_v50, %v3762_v45  ;;  %v3768_v48 = vmul.f32 %v7462_v17, %v3448_v16  ;;  %v3770_v62 = vmul.f32 %v7462_v17, %v3561_v57  ;;  %v3450_v33 = vpop.f32.mrb[19].mxu1  ;;  %v3563_v9 = vpop.f32.mrb[19].mxu0  ;;  %v5083_v45 = vld [vmem:[%s5192_s18 + $0x270] sm:$0xff]  ;;  %v5085_v32 = vld [vmem:[%s5192_s18 + $0x278] sm:$0xff] }
 0x7ed   : > { %v3889_v41 = vadd.f32 %v5080_v34, %v3761_v31  ;;  %v3891_v46 = vadd.f32 %v5081_v44, %v3763_v4  ;;  %v3769_v14 = vmul.f32 %v7462_v17, %v3450_v33  ;;  %v3771_v59 = vmul.f32 %v7462_v17, %v3563_v9  ;;  %4754 = vmatprep.subr.bf16.mxu1 %v4753_v10  ;;  %v5093_v9 = vld [vmem:[%s5192_s18 + $0x2f8] sm:$0xff] }
 0x7ee   : > { %v3896_v54 = vadd.f32 %v5082_v27, %v3768_v48  ;;  %v3898_v24 = vadd.f32 %v5083_v45, %v3770_v62  ;;  %v4112_v50 = vadd.f32 %v7472_v63, %v3888_v15  ;;  %v7822_v31 = vadd.f32 %v7472_v63, %v3890_v12  ;;  %v5086_v45 = vld [vmem:[%s5192_s18 + $0x2a0] sm:$0xff] }
 0x7ef   : > { %v3897_v16 = vadd.f32 %v5084_v6, %v3769_v14  ;;  %v3899_v57 = vadd.f32 %v5085_v32, %v3771_v59  ;;  %4756 = vmatpush1.bf16.xpose.msra.mxu1 %v4755_v39  ;;  %v4113_v17 = vadd.f32 %v7472_v63, %v3889_v41  ;;  %v7830_v10 = vadd.f32 %v7472_v63, %v3891_v46  ;;  %v5087_v6 = vld [vmem:[%s5192_s18 + $0x2b0] sm:$0xff] }
 0x7f0   : > { %v4120_v4 = vadd.f32 %v7475_v3, %v3896_v54  ;;  %v7826_v33 = vadd.f32 %v7475_v3, %v3898_v24 }
 0x7f1   : > { %v4121_v48 = vadd.f32 %v7475_v3, %v3897_v16  ;;  %v7834_v39 = vadd.f32 %v7475_v3, %v3899_v57  ;;  %v3454_v15 = vpop.f32.mrb[20].mxu1  ;;  %v3567_v12 = vpop.f32.mrb[20].mxu0 }
 0x7f2   : > { %v4759_v62 = vpack.c.bf16 %v4120_v4, %v4112_v50  ;;  %v3776_v34 = vmul.f32 %v7484_v42, %v3454_v15  ;;  %v3778_v41 = vmul.f32 %v7484_v42, %v3567_v12  ;;  %v3456_v44 = vpop.f32.mrb[21].mxu1  ;;  %v3569_v63 = vpop.f32.mrb[21].mxu0  ;;  %v5088_v4 = vld [vmem:[%s5192_s18 + $0x2a8] sm:$0xff] }
 0x7f3   : > { %v3777_v46 = vmul.f32 %v7484_v42, %v3456_v44  ;;  %v3779_v3 = vmul.f32 %v7484_v42, %v3569_v63  ;;  %v3458_v14 = vpop.f32.mrb[22].mxu1  ;;  %v3571_v59 = vpop.f32.mrb[22].mxu0  ;;  %v4757_v27 = vpack.c.bf16 %v4121_v48, %v4113_v17  ;;  %v5089_v17 = vld [vmem:[%s5192_s18 + $0x2b8] sm:$0xff] }
 0x7f4   : > { %v3904_v24 = vadd.f32 %v5086_v45, %v3776_v34  ;;  %v3906_v16 = vadd.f32 %v5087_v6, %v3778_v41  ;;  %v3784_v32 = vmul.f32 %v7488_v43, %v3458_v14  ;;  %v3786_v57 = vmul.f32 %v7488_v43, %v3571_v59  ;;  %v3460_v50 = vpop.f32.mrb[23].mxu1  ;;  %v3573_v42 = vpop.f32.mrb[23].mxu0  ;;  %v5090_v34 = vld [vmem:[%s5192_s18 + $0x2e0] sm:$0xff]  ;;  %v5091_v41 = vld [vmem:[%s5192_s18 + $0x2f0] sm:$0xff]  ;;  %v5092_v6 = vld [vmem:[%s5192_s18 + $0x2e8] sm:$0xff] }
 0x7f5   : > { %v3905_v15 = vadd.f32 %v5088_v4, %v3777_v46  ;;  %v3907_v48 = vadd.f32 %v5089_v17, %v3779_v3  ;;  %v3785_v12 = vmul.f32 %v7488_v43, %v3460_v50  ;;  %v3787_v44 = vmul.f32 %v7488_v43, %v3573_v42  ;;  %4758 = vmatprep.subr.bf16.mxu1 %v4757_v27 }
 0x7f6   : > { %v3912_v63 = vadd.f32 %v5090_v34, %v3784_v32  ;;  %v3914_v45 = vadd.f32 %v5091_v41, %v3786_v57  ;;  %v4128_v54 = vadd.f32 %v7498_v49, %v3904_v24  ;;  %v7858_v46 = vadd.f32 %v7498_v49, %v3906_v16  ;;  %v5094_v34 = vld [vmem:[%s5192_s18 + $0x320] sm:$0xff]  ;;  %v5095_v41 = vld [vmem:[%s5192_s18 + $0x330] sm:$0xff]  ;;  %v5101_v57 = vld [vmem:[%s5192_s18 + $0x378] sm:$0xff] }
 0x7f7   : > { %v3913_v14 = vadd.f32 %v5092_v6, %v3785_v12  ;;  %v3915_v59 = vadd.f32 %v5093_v9, %v3787_v44  ;;  %4760 = vmatpush1.bf16.xpose.msra.mxu1 %v4759_v62  ;;  %v4129_v43 = vadd.f32 %v7498_v49, %v3905_v15  ;;  %v7866_v27 = vadd.f32 %v7498_v49, %v3907_v48 }
 0x7f8   : > { %v4136_v3 = vadd.f32 %v7501_v21, %v3912_v63  ;;  %v7862_v50 = vadd.f32 %v7501_v21, %v3914_v45 }
 0x7f9   : > { %v4137_v32 = vadd.f32 %v7501_v21, %v3913_v14  ;;  %v7870_v62 = vadd.f32 %v7501_v21, %v3915_v59  ;;  %v3464_v9 = vpop.f32.mrb[24].mxu1  ;;  %v3577_v24 = vpop.f32.mrb[24].mxu0 }
 0x7fa   : > { %v4763_v16 = vpack.c.bf16 %v4136_v3, %v4128_v54  ;;  %v3792_v42 = vmul.f32 %v7510_v8, %v3464_v9  ;;  %v3794_v4 = vmul.f32 %v7510_v8, %v3577_v24  ;;  %v3466_v15 = vpop.f32.mrb[25].mxu1  ;;  %v3579_v49 = vpop.f32.mrb[25].mxu0  ;;  %v5096_v3 = vld [vmem:[%s5192_s18 + $0x328] sm:$0xff]  ;;  %v8440_v2 = vpack.c.bf16 %v7862_v50, %v7858_v46 }
 0x7fb   : > { %v3793_v17 = vmul.f32 %v7510_v8, %v3466_v15  ;;  %v3795_v21 = vmul.f32 %v7510_v8, %v3579_v49  ;;  %v3468_v48 = vpop.f32.mrb[26].mxu1  ;;  %v3581_v12 = vpop.f32.mrb[26].mxu0  ;;  %v4761_v44 = vpack.c.bf16 %v4137_v32, %v4129_v43  ;;  %v5097_v43 = vld [vmem:[%s5192_s18 + $0x338] sm:$0xff]  ;;  %v8439_v28 = vpack.c.bf16 %v7870_v62, %v7866_v27 }
 0x7fc   : > { %v3920_v63 = vadd.f32 %v5094_v34, %v3792_v42  ;;  %v3922_v45 = vadd.f32 %v5095_v41, %v3794_v4  ;;  %v3800_v6 = vmul.f32 %v7514_v5, %v3468_v48  ;;  %v3802_v14 = vmul.f32 %v7514_v5, %v3581_v12  ;;  %v3470_v59 = vpop.f32.mrb[27].mxu1  ;;  %v3583_v8 = vpop.f32.mrb[27].mxu0  ;;  %v5098_v42 = vld [vmem:[%s5192_s18 + $0x360] sm:$0xff]  ;;  %v5099_v4 = vld [vmem:[%s5192_s18 + $0x370] sm:$0xff]  ;;  %v5100_v41 = vld [vmem:[%s5192_s18 + $0x368] sm:$0xff] }
 0x7fd   : > { %v3921_v9 = vadd.f32 %v5096_v3, %v3793_v17  ;;  %v3923_v32 = vadd.f32 %v5097_v43, %v3795_v21  ;;  %v3801_v24 = vmul.f32 %v7514_v5, %v3470_v59  ;;  %v3803_v15 = vmul.f32 %v7514_v5, %v3583_v8  ;;  %4762 = vmatprep.subr.bf16.mxu1 %v4761_v44 }
 0x7fe   : > { %v3928_v49 = vadd.f32 %v5098_v42, %v3800_v6  ;;  %v3930_v34 = vadd.f32 %v5099_v4, %v3802_v14  ;;  %v4144_v54 = vadd.f32 %v7524_v51, %v3920_v63  ;;  %v7894_v17 = vadd.f32 %v7524_v51, %v3922_v45  ;;  %v5102_v42 = vld [vmem:[%s5192_s18 + $0x3a0] sm:$0xff]  ;;  %v5103_v4 = vld [vmem:[%s5192_s18 + $0x3b0] sm:$0xff] }
 0x7ff   : > { %v3929_v48 = vadd.f32 %v5100_v41, %v3801_v24  ;;  %v3931_v12 = vadd.f32 %v5101_v57, %v3803_v15  ;;  %4764 = vmatpush1.bf16.xpose.msra.mxu1 %v4763_v16  ;;  %v4145_v5 = vadd.f32 %v7524_v51, %v3921_v9  ;;  %v7902_v44 = vadd.f32 %v7524_v51, %v3923_v32 }
 0x800   : > { %v4152_v21 = vadd.f32 %v7527_v61, %v3928_v49  ;;  %v7898_v59 = vadd.f32 %v7527_v61, %v3930_v34 }
 0x801   : > { %v4153_v6 = vadd.f32 %v7527_v61, %v3929_v48  ;;  %v7906_v16 = vadd.f32 %v7527_v61, %v3931_v12  ;;  %v3474_v57 = vpop.f32.mrb[28].mxu1  ;;  %v3587_v63 = vpop.f32.mrb[28].mxu0 }
 0x802   : > { %v4767_v45 = vpack.c.bf16 %v4152_v21, %v4144_v54  ;;  %v4799_v14 = vpack.c.bf16 %v7898_v59, %v7894_v17  ;;  %v3808_v8 = vmul.f32 %v7536_v53, %v3474_v57  ;;  %v3810_v3 = vmul.f32 %v7536_v53, %v3587_v63  ;;  %v3476_v9 = vpop.f32.mrb[29].mxu1  ;;  %v3589_v51 = vpop.f32.mrb[29].mxu0  ;;  %v5104_v21 = vld [vmem:[%s5192_s18 + $0x3a8] sm:$0xff]  ;;  %v5106_v63 = vld [vmem:[%s5192_s18 + $0x3e0] sm:$0xff] }
 0x803   : > { %v3809_v43 = vmul.f32 %v7536_v53, %v3476_v9  ;;  %v3811_v61 = vmul.f32 %v7536_v53, %v3589_v51  ;;  %v3478_v32 = vpop.f32.mrb[30].mxu1  ;;  %v3591_v24 = vpop.f32.mrb[30].mxu0  ;;  %v4765_v15 = vpack.c.bf16 %v4153_v6, %v4145_v5  ;;  %v4797_v54 = vpack.c.bf16 %v7906_v16, %v7902_v44  ;;  %v5105_v5 = vld [vmem:[%s5192_s18 + $0x3b8] sm:$0xff]  ;;  %v5108_v51 = vld [vmem:[%s5192_s18 + $0x3e8] sm:$0xff] }
 0x804   : > { %v3936_v49 = vadd.f32 %v5102_v42, %v3808_v8  ;;  %v3938_v34 = vadd.f32 %v5103_v4, %v3810_v3  ;;  %v3816_v41 = vmul.f32 %v7540_v19, %v3478_v32  ;;  %v3818_v48 = vmul.f32 %v7540_v19, %v3591_v24  ;;  %v3480_v12 = vpop.f32.mrb[31].mxu1  ;;  %v3593_v53 = vpop.f32.mrb[31].mxu0  ;;  %v5107_v3 = vld [vmem:[%s5192_s18 + $0x3f0] sm:$0xff]  ;;  %v5109_v42 = vld [vmem:[%s5192_s18 + $0x3f8] sm:$0xff]  ;;  %s4535_s18 = sshll.u32 %s8442_s14, 3 }
 0x805   : > { %v3937_v57 = vadd.f32 %v5104_v21, %v3809_v43  ;;  %v3939_v6 = vadd.f32 %v5105_v5, %v3811_v61  ;;  %v3817_v44 = vmul.f32 %v7540_v19, %v3480_v12  ;;  %v3819_v16 = vmul.f32 %v7540_v19, %v3593_v53  ;;  %4766 = vmatprep.subr.bf16.mxu1 %v4765_v15  ;;  %s377_s30 = scalar_lea.vmem %s7995_s10, %s4535_s18 }
 0x806   : > { %v3944_v8 = vadd.f32 %v5106_v63, %v3816_v41  ;;  %v3946_v9 = vadd.f32 %v5107_v3, %v3818_v48  ;;  %v4160_v4 = vadd.f32 %v7551_v38, %v3936_v49  ;;  %v4162_v43 = vadd.f32 %v7551_v38, %v3938_v34  ;;  %v4176_v49 = vld [vmem:[%s7395_s27 + $0x20] sm:$0xff]  ;;  %v4179_v34 = vld [vmem:[%s7395_s27 + $0x38] sm:$0xff] }
 0x807   : > { %v3945_v32 = vadd.f32 %v5108_v51, %v3817_v44  ;;  %v3947_v24 = vadd.f32 %v5109_v42, %v3819_v16  ;;  %4768 = vmatpush1.bf16.xpose.msra.mxu1 %v4767_v45  ;;  %v4161_v15 = vadd.f32 %v7551_v38, %v3937_v57  ;;  %v4163_v41 = vadd.f32 %v7551_v38, %v3939_v6 }
 0x808   : > { %v4168_v61 = vadd.f32 %v7553_v37, %v3944_v8  ;;  %v4170_v19 = vadd.f32 %v7553_v37, %v3946_v9  ;;  %v8437_v38 = vpack.c.bf16 %v7834_v39, %v7830_v10 }
 0x809   : > { %v4169_v48 = vadd.f32 %v7553_v37, %v3945_v32  ;;  %v4171_v12 = vadd.f32 %v7553_v37, %v3947_v24  ;;  %v8438_v37 = vpack.c.bf16 %v7826_v33, %v7822_v31 }
 0x80a   : > { %v4771_v53 = vpack.c.bf16 %v4168_v61, %v4160_v4  ;;  %v4803_v45 = vpack.c.bf16 %v4170_v19, %v4162_v43 }
 0x80b   : > { %v4769_v21 = vpack.c.bf16 %v4169_v48, %v4161_v15  ;;  %v4801_v5 = vpack.c.bf16 %v4171_v12, %v4163_v41 }
 0x80d   : > { %4770 = vmatprep.subr.bf16.mxu1 %v4769_v21 }
 0x80f   : > { %4772 = vmatpush1.bf16.xpose.msra.mxu1 %v4771_v53 }
 0x810   : > { %4774 = vmatprep.subr.bf16.mxu1 %v4773_v23 }
 0x816   : > { %4385 = vmatmul.mubr.f32.vlgmr.msra.gmra.mrb[32].mxu1 %v4176_v49 }
 0x817   : > { %4776 = vmatpush1.bf16.xpose.msra.mxu1 %v4775_v7  ;;  %4454 = vmatprep.mubr.f32.mxu1 %v4179_v34 }
 0x818   : > { %4778 = vmatprep.subr.bf16.mxu1 %v4777_v20 }
 0x81f   : > { %4780 = vmatpush1.bf16.xpose.msra.mxu1 %v4779_v18 }
 0x820   : > { %4782 = vmatprep.subr.bf16.mxu1 %v4781_v40 }
 0x827   : > { %4784 = vmatpush1.bf16.xpose.msra.mxu1 %v4783_v47 }
 0x828   : > { %4786 = vmatprep.subr.bf16.mxu1 %v4785_v13 }
 0x82f   : > { %4788 = vmatpush1.bf16.xpose.msra.mxu1 %v4787_v56 }
 0x830   : > { %4790 = vmatprep.subr.bf16.mxu1 %v8437_v38 }
 0x837   : > { %4792 = vmatpush1.bf16.xpose.msra.mxu1 %v8438_v37 }
 0x838   : > { %4794 = vmatprep.subr.bf16.mxu1 %v8439_v28 }
 0x83f   : > { %4796 = vmatpush1.bf16.xpose.msra.mxu1 %v8440_v2 }
 0x840   : > { %4798 = vmatprep.subr.bf16.mxu1 %v4797_v54 }
 0x847   : > { %4800 = vmatpush1.bf16.xpose.msra.mxu1 %v4799_v14 }
 0x848   : > { %4802 = vmatprep.subr.bf16.mxu1 %v4801_v5 }
 0x84f   : > { %4804 = vmatpush1.bf16.xpose.msra.mxu1 %v4803_v45 }
 0x856   : > { %4455 = vmatmul.mubr.f32.vlgmr.msra.gmra.mrb[32].mxu1 %v4178_v11 }
 0x929   : > { %v4456_v60 = vpop.f32.mrb[32].mxu1 }
 0x92a   : > { %4460 = vst [vmem:[%s377_s30] sm:$0xff] %v4456_v60  ;;  %v4458_v7 = vpop.f32.mrb[33].mxu1 }
 0x92b PF: > { %s20_s13 = sadd.s32 1, %s5116_s13  }
 0x92c   : > { %p17_p4 = scmp.ge.s32.totalorder %s20_s13, 4  }
 0x92e   :  { %19 = sbr.rel (!%p17_p4) target bundleno = 1 (0x1), region = 93 }

// kernel: rel_reasoning_forward.4
= control target key start
LH: loop header
LB: loop body
LE: loop exit
PB: predicated region body
PF: predicated region fallthrough
CT: control target
= control target key end

     0   :  { %s3196_s13 = smov 0   ;;  %s4292_s0 = inlined_call_operand.vmem [shape: f32[2,256,256], index: 0, kind: input, shape index: {}]   ;;  %s4293_s1 = inlined_call_operand.vmem [shape: f32[2,8,256], index: 1, kind: input, shape index: {}]   ;;  %s4294_s2 = inlined_call_operand.vmem [shape: bf16[256,256], index: 2, kind: input, shape index: {}]   ;;  %s4295_s3 = inlined_call_operand.vmem [shape: f32[256,1], index: 3, kind: input, shape index: {}]   ;;  %s4296_s4 = inlined_call_operand.vmem [shape: bf16[128,128], index: 4, kind: input, shape index: {}]   ;;  %s4297_s5 = inlined_call_operand.vmem [shape: f32[1,128], index: 5, kind: input, shape index: {}]   ;;  %s4298_s6 = inlined_call_operand.vmem [shape: bf16[128,128], index: 6, kind: input, shape index: {}]   ;;  %s4299_s7 = inlined_call_operand.vmem [shape: bf16[256,128], index: 7, kind: input, shape index: {}]   ;;  %s4300_s8 = inlined_call_operand.vmem [shape: f32[256,1], index: 8, kind: input, shape index: {}]   ;;  %s4301_s9 = inlined_call_operand.vmem [shape: f32[256,1], index: 9, kind: input, shape index: {}]   ;;  %s4302_s10 = inlined_call_operand.vmem [shape: f32[2,8,256], index: 10, kind: output, shape index: {}]  }
   0x1 LB: > { %s2736_s14 = sadd.s32 4294967295, %s3138_s13   ;;  %p2740_p0 = scmp.ge.s32.totalorder %s3138_s13, 1  ;;  %s3138_s13 = sphi %s3196_s13, %s20_s13  }
   0x2   : > { %p322_p1 = scmp.lt.s32.totalorder %s3138_s13, 3 }
   0x4   : > { %p323_p2 = pnand %p2740_p0, %p322_p1 }
   0x5   : > { %p365_p3 = scmp.lt.s32.totalorder (!%p323_p2), %s2736_s14, 1  ;;  %v525_v0 = vld [vmem:[%s4295_s3 + $0x80] sm:$0xff] (!%p323_p2)  ;;  %v527_v1 = vld [vmem:[%s4295_s3 + $0x90] sm:$0xff] (!%p323_p2)  ;;  %v4303_v2 = vmov (!%p323_p2), 0   ;;  %v526_v3 = vld [vmem:[%s4295_s3 + $0x88] sm:$0xff] (!%p323_p2) }
   0x6   : > { %326 = sbr.rel (%p323_p2) target bundleno = 1992 (0x7c8), region = 60  ;;  %2986 = vset.pattern.permute.xlu0 (!%p323_p2), %v4303_v2  ;;  %2987 = vset.pattern.permute.xlu1 (!%p323_p2), %v4303_v2  ;;  %v528_v4 = vld [vmem:[%s4295_s3 + $0x98] sm:$0xff] (!%p323_p2)  ;;  %v529_v5 = vld [vmem:[%s4295_s3 + $0xa0] sm:$0xff] (!%p323_p2)  ;;  %v530_v9 = vld [vmem:[%s4295_s3 + $0xa8] sm:$0xff] (!%p323_p2) }
   0x7   : > { %623 = vperm.xlu0 (!%p323_p2), %2986, %v525_v0   ;;  %633 = vperm.xlu1 (!%p323_p2), %2987, %v527_v1   ;;  %v531_v24 = vld [vmem:[%s4295_s3 + $0xb0] sm:$0xff] (!%p323_p2)  ;;  %v532_v27 = vld [vmem:[%s4295_s3 + $0xb8] sm:$0xff] (!%p323_p2)  ;;  %v533_v32 = vld [vmem:[%s4295_s3 + $0xc0] sm:$0xff] (!%p323_p2) }
   0x8   : > { %v534_v35 = vld [vmem:[%s4295_s3 + $0xc8] sm:$0xff] (!%p323_p2)  ;;  %v535_v40 = vld [vmem:[%s4295_s3 + $0xd0] sm:$0xff] (!%p323_p2)  ;;  %v536_v43 = vld [vmem:[%s4295_s3 + $0xd8] sm:$0xff] (!%p323_p2) }
   0x9   : > { %v537_v48 = vld [vmem:[%s4295_s3 + $0xe0] sm:$0xff] (!%p323_p2)  ;;  %v538_v51 = vld [vmem:[%s4295_s3 + $0xe8] sm:$0xff] (!%p323_p2)  ;;  %v539_v53 = vld [vmem:[%s4295_s3 + $0xf0] sm:$0xff] (!%p323_p2) }
   0xa   : > { %v540_v54 = vld [vmem:[%s4295_s3 + $0xf8] sm:$0xff] (!%p323_p2)  ;;  %v2990_v60 = vld [vmem:[%s4294_s2 + $0x4] ss:$8 sps:$4 sm:$0xff] (!%p323_p2)  }
   0xb   : > { %628 = vperm.xlu0 (!%p323_p2), %2986, %v526_v3   ;;  %638 = vperm.xlu1 (!%p323_p2), %2987, %v528_v4   ;;  %v509_v62 = vld [vmem:[%s4295_s3] sm:$0xff] (!%p323_p2) }
   0xc   : > { %893 = vmatprep.mubr.bf16.mxu0 (!%p323_p2), %v2990_v60  ;;  %v523_v60 = vld [vmem:[%s4295_s3 + $0x70] sm:$0xff] (!%p323_p2) }
   0xd   : > { %s4319_s14 = smov (!%p365_p3, %s2736_s14), 1 }
   0xe   : > { %s2814_s23 = sshll.u32 %s4319_s14, 9  ;;  %s2815_s17 = sshll.u32 %s4319_s14, 4 }
   0xf   : > { %s3224_s26 = scalar_lea.vmem %s4292_s0, %s2814_s23  ;;  %643 = vperm.xlu0 %2986, %v529_v5   ;;  %648 = vperm.xlu1 %2987, %v530_v9   ;;  %v510_v5 = vld [vmem:[%s4295_s3 + $0x8] sm:$0xff]  ;;  %s4092_s20 = scalar_lea.vmem %s4293_s1, %s2815_s17 }
  0x10   : > { %v382_v6 = vld [vmem:[%s3224_s26 + $0x8] sm:$0xff]  ;;  %v384_v7 = vld [vmem:[%s3224_s26 + $0x18] sm:$0xff]  ;;  %v381_v8 = vld [vmem:[%s3224_s26] sm:$0xff]  ;;  %s379_s23 = scalar_lea.vmem %s4302_s10, %s2815_s17 }
  0x11   : > { %v446_v10 = vpack.c.bf16 %v384_v7, %v382_v6  ;;  %v383_v11 = vld [vmem:[%s3224_s26 + $0x10] sm:$0xff]  ;;  %v386_v12 = vld [vmem:[%s3224_s26 + $0x28] sm:$0xff]  ;;  %v388_v13 = vld [vmem:[%s3224_s26 + $0x38] sm:$0xff] }
  0x12   : > { %v445_v14 = vpack.c.bf16 %v383_v11, %v381_v8  ;;  %v448_v15 = vpack.c.bf16 %v388_v13, %v386_v12  ;;  %v385_v16 = vld [vmem:[%s3224_s26 + $0x20] sm:$0xff]  ;;  %v387_v17 = vld [vmem:[%s3224_s26 + $0x30] sm:$0xff]  ;;  %v390_v18 = vld [vmem:[%s3224_s26 + $0x48] sm:$0xff] }
  0x13   : > { %861 = vmatprep.subr.bf16.mxu0 %v446_v10  ;;  %v392_v19 = vld [vmem:[%s3224_s26 + $0x58] sm:$0xff]  ;;  %v447_v20 = vpack.c.bf16 %v387_v17, %v385_v16  ;;  %v389_v22 = vld [vmem:[%s3224_s26 + $0x40] sm:$0xff]  ;;  %v391_v23 = vld [vmem:[%s3224_s26 + $0x50] sm:$0xff]  ;;  %653 = vperm.xlu0 %2986, %v531_v24  }
  0x14   : > { %862 = vmatpush1.bf16.msra.mxu0 %v445_v14  ;;  %v450_v21 = vpack.c.bf16 %v392_v19, %v390_v18  ;;  %v394_v25 = vld [vmem:[%s3224_s26 + $0x68] sm:$0xff]  ;;  %v396_v26 = vld [vmem:[%s3224_s26 + $0x78] sm:$0xff]  ;;  %v449_v28 = vpack.c.bf16 %v391_v23, %v389_v22  ;;  %v393_v30 = vld [vmem:[%s3224_s26 + $0x60] sm:$0xff]  ;;  %658 = vperm.xlu1 %2987, %v532_v27  }
  0x15   : > { %863 = vmatprep.subr.bf16.mxu0 %v448_v15  ;;  %v452_v29 = vpack.c.bf16 %v396_v26, %v394_v25  ;;  %v395_v31 = vld [vmem:[%s3224_s26 + $0x70] sm:$0xff]  ;;  %v398_v33 = vld [vmem:[%s3224_s26 + $0x88] sm:$0xff]  ;;  %v400_v34 = vld [vmem:[%s3224_s26 + $0x98] sm:$0xff] }
  0x16   : > { %v451_v36 = vpack.c.bf16 %v395_v31, %v393_v30  ;;  %v454_v37 = vpack.c.bf16 %v400_v34, %v398_v33  ;;  %v397_v38 = vld [vmem:[%s3224_s26 + $0x80] sm:$0xff]  ;;  %v399_v39 = vld [vmem:[%s3224_s26 + $0x90] sm:$0xff]  ;;  %v402_v41 = vld [vmem:[%s3224_s26 + $0xa8] sm:$0xff] }
  0x17   : > { %663 = vperm.xlu0 %2986, %v533_v32   ;;  %v404_v42 = vld [vmem:[%s3224_s26 + $0xb8] sm:$0xff]  ;;  %v453_v44 = vpack.c.bf16 %v399_v39, %v397_v38  ;;  %v401_v46 = vld [vmem:[%s3224_s26 + $0xa0] sm:$0xff]  ;;  %v403_v47 = vld [vmem:[%s3224_s26 + $0xb0] sm:$0xff] }
  0x18   : > { %864 = vmatpush1.bf16.msra.mxu0 %v447_v20  ;;  %668 = vperm.xlu1 %2987, %v534_v35   ;;  %v456_v45 = vpack.c.bf16 %v404_v42, %v402_v41  ;;  %v406_v49 = vld [vmem:[%s3224_s26 + $0xc8] sm:$0xff]  ;;  %v408_v50 = vld [vmem:[%s3224_s26 + $0xd8] sm:$0xff]  ;;  %v455_v52 = vpack.c.bf16 %v403_v47, %v401_v46  ;;  %v405_v56 = vld [vmem:[%s3224_s26 + $0xc0] sm:$0xff] }
  0x19   : > { %865 = vmatprep.subr.bf16.mxu0 %v450_v21  ;;  %v458_v55 = vpack.c.bf16 %v408_v50, %v406_v49  ;;  %v407_v57 = vld [vmem:[%s3224_s26 + $0xd0] sm:$0xff]  ;;  %v410_v58 = vld [vmem:[%s3224_s26 + $0xe8] sm:$0xff]  ;;  %v412_v59 = vld [vmem:[%s3224_s26 + $0xf8] sm:$0xff] }
  0x1a   : > { %v457_v61 = vpack.c.bf16 %v407_v57, %v405_v56  ;;  %v460_v63 = vpack.c.bf16 %v412_v59, %v410_v58  ;;  %v409_v0 = vld [vmem:[%s3224_s26 + $0xe0] sm:$0xff]  ;;  %v411_v1 = vld [vmem:[%s3224_s26 + $0xf0] sm:$0xff]  ;;  %v414_v3 = vld [vmem:[%s3224_s26 + $0x108] sm:$0xff] }
  0x1b   : > { %673 = vperm.xlu0 %2986, %v535_v40   ;;  %v416_v4 = vld [vmem:[%s3224_s26 + $0x118] sm:$0xff]  ;;  %v459_v6 = vpack.c.bf16 %v411_v1, %v409_v0  ;;  %v413_v7 = vld [vmem:[%s3224_s26 + $0x100] sm:$0xff]  ;;  %v511_v8 = vld [vmem:[%s4295_s3 + $0x10] sm:$0xff] }
  0x1c   : > { %866 = vmatpush1.bf16.msra.mxu0 %v449_v28  ;;  %678 = vperm.xlu1 %2987, %v536_v43   ;;  %v462_v9 = vpack.c.bf16 %v416_v4, %v414_v3  ;;  %v415_v10 = vld [vmem:[%s3224_s26 + $0x110] sm:$0xff]  ;;  %v418_v11 = vld [vmem:[%s3224_s26 + $0x128] sm:$0xff]  ;;  %v420_v12 = vld [vmem:[%s3224_s26 + $0x138] sm:$0xff] }
  0x1d   : > { %867 = vmatprep.subr.bf16.mxu0 %v452_v29  ;;  %v512_v13 = vld [vmem:[%s4295_s3 + $0x18] sm:$0xff]  ;;  %v461_v14 = vpack.c.bf16 %v415_v10, %v413_v7  ;;  %v417_v15 = vld [vmem:[%s3224_s26 + $0x120] sm:$0xff]  ;;  %v464_v16 = vpack.c.bf16 %v420_v12, %v418_v11  ;;  %v419_v17 = vld [vmem:[%s3224_s26 + $0x130] sm:$0xff] }
  0x1e   : > { %v513_v18 = vld [vmem:[%s4295_s3 + $0x20] sm:$0xff]  ;;  %v422_v19 = vld [vmem:[%s3224_s26 + $0x148] sm:$0xff]  ;;  %v424_v20 = vld [vmem:[%s3224_s26 + $0x158] sm:$0xff]  ;;  %v463_v22 = vpack.c.bf16 %v419_v17, %v417_v15 }
  0x1f   : > { %683 = vperm.xlu0 %2986, %v537_v48   ;;  %v514_v21 = vld [vmem:[%s4295_s3 + $0x28] sm:$0xff]  ;;  %v421_v23 = vld [vmem:[%s3224_s26 + $0x140] sm:$0xff]  ;;  %v423_v24 = vld [vmem:[%s3224_s26 + $0x150] sm:$0xff]  ;;  %v466_v25 = vpack.c.bf16 %v424_v20, %v422_v19 }
  0x20   : > { %868 = vmatpush1.bf16.msra.mxu0 %v451_v36  ;;  %688 = vperm.xlu1 %2987, %v538_v51   ;;  %v426_v26 = vld [vmem:[%s3224_s26 + $0x168] sm:$0xff]  ;;  %v428_v27 = vld [vmem:[%s3224_s26 + $0x178] sm:$0xff]  ;;  %v515_v28 = vld [vmem:[%s4295_s3 + $0x30] sm:$0xff]  ;;  %v465_v30 = vpack.c.bf16 %v423_v24, %v421_v23 }
  0x21   : > { %869 = vmatprep.subr.bf16.mxu0 %v454_v37  ;;  %v516_v29 = vld [vmem:[%s4295_s3 + $0x38] sm:$0xff]  ;;  %v425_v31 = vld [vmem:[%s3224_s26 + $0x160] sm:$0xff]  ;;  %v468_v32 = vpack.c.bf16 %v428_v27, %v426_v26  ;;  %v427_v33 = vld [vmem:[%s3224_s26 + $0x170] sm:$0xff] }
  0x22   : > { %v517_v34 = vld [vmem:[%s4295_s3 + $0x40] sm:$0xff]  ;;  %v430_v35 = vld [vmem:[%s3224_s26 + $0x188] sm:$0xff]  ;;  %v432_v36 = vld [vmem:[%s3224_s26 + $0x198] sm:$0xff]  ;;  %v467_v38 = vpack.c.bf16 %v427_v33, %v425_v31 }
  0x23   : > { %693 = vperm.xlu0 %2986, %v539_v53   ;;  %v518_v37 = vld [vmem:[%s4295_s3 + $0x48] sm:$0xff]  ;;  %v429_v39 = vld [vmem:[%s3224_s26 + $0x180] sm:$0xff]  ;;  %v431_v40 = vld [vmem:[%s3224_s26 + $0x190] sm:$0xff]  ;;  %v470_v41 = vpack.c.bf16 %v432_v36, %v430_v35 }
  0x24   : > { %870 = vmatpush1.bf16.msra.mxu0 %v453_v44  ;;  %698 = vperm.xlu1 %2987, %v540_v54   ;;  %v434_v42 = vld [vmem:[%s3224_s26 + $0x1a8] sm:$0xff]  ;;  %v436_v43 = vld [vmem:[%s3224_s26 + $0x1b8] sm:$0xff]  ;;  %v519_v44 = vld [vmem:[%s4295_s3 + $0x50] sm:$0xff]  ;;  %v469_v46 = vpack.c.bf16 %v431_v40, %v429_v39 }
  0x25   : > { %871 = vmatprep.subr.bf16.mxu0 %v456_v45  ;;  %v520_v45 = vld [vmem:[%s4295_s3 + $0x58] sm:$0xff]  ;;  %v433_v47 = vld [vmem:[%s3224_s26 + $0x1a0] sm:$0xff]  ;;  %v472_v48 = vpack.c.bf16 %v436_v43, %v434_v42  ;;  %v435_v49 = vld [vmem:[%s3224_s26 + $0x1b0] sm:$0xff] }
  0x26   : > { %v521_v50 = vld [vmem:[%s4295_s3 + $0x60] sm:$0xff]  ;;  %v438_v51 = vld [vmem:[%s3224_s26 + $0x1c8] sm:$0xff]  ;;  %v471_v54 = vpack.c.bf16 %v435_v49, %v433_v47  ;;  %v439_v56 = vld [vmem:[%s3224_s26 + $0x1d0] sm:$0xff] }
  0x27   : > { %543 = vperm.xlu0 %2986, %v509_v62   ;;  %v522_v53 = vld [vmem:[%s4295_s3 + $0x68] sm:$0xff]  ;;  %v444_v59 = vld [vmem:[%s3224_s26 + $0x1f8] sm:$0xff]  ;;  %v443_v1 = vld [vmem:[%s3224_s26 + $0x1f0] sm:$0xff] }
  0x28   : > { %872 = vmatpush1.bf16.msra.mxu0 %v455_v52  ;;  %548 = vperm.xlu1 %2987, %v510_v5   ;;  %v440_v52 = vld [vmem:[%s3224_s26 + $0x1d8] sm:$0xff]  ;;  %v442_v58 = vld [vmem:[%s3224_s26 + $0x1e8] sm:$0xff]  ;;  %v2018_v3 = vld [vmem:[%s4300_s8] sm:$0xff] }
  0x29   : > { %873 = vmatprep.subr.bf16.mxu0 %v458_v55  ;;  %v437_v55 = vld [vmem:[%s3224_s26 + $0x1c0] sm:$0xff]  ;;  %v474_v57 = vpack.c.bf16 %v440_v52, %v438_v51  ;;  %v476_v0 = vpack.c.bf16 %v444_v59, %v442_v58  ;;  %v2019_v4 = vld [vmem:[%s4300_s8 + $0x8] sm:$0xff]  ;;  %v2020_v10 = vld [vmem:[%s4300_s8 + $0x10] sm:$0xff] }
  0x2a   : > { %v473_v62 = vpack.c.bf16 %v439_v56, %v437_v55  ;;  %v2339_v7 = vld [vmem:[%s4301_s9 + $0x8] sm:$0xff]  ;;  %v2021_v11 = vld [vmem:[%s4300_s8 + $0x18] sm:$0xff]  ;;  %v2340_v12 = vld [vmem:[%s4301_s9 + $0x10] sm:$0xff] }
  0x2b   : > { %553 = vperm.xlu0 %2986, %v511_v8   ;;  %v2988_v8 = vld [vmem:[%s4294_s2] ss:$8 sps:$4 sm:$0xff]   ;;  %v2994_v15 = vld [vmem:[%s4294_s2 + $0x24] ss:$8 sps:$4 sm:$0xff]   ;;  %v2025_v23 = vld [vmem:[%s4300_s8 + $0x38] sm:$0xff] }
  0x2c   : > { %874 = vmatpush1.bf16.msra.mxu0 %v457_v61  ;;  %558 = vperm.xlu1 %2987, %v512_v13   ;;  %v524_v61 = vld [vmem:[%s4295_s3 + $0x78] sm:$0xff]  ;;  %v2023_v17 = vld [vmem:[%s4300_s8 + $0x28] sm:$0xff]  ;;  %v2344_v24 = vld [vmem:[%s4301_s9 + $0x30] sm:$0xff] }
  0x2d   : > { %875 = vmatprep.subr.bf16.mxu0 %v460_v63  ;;  %v441_v63 = vld [vmem:[%s3224_s26 + $0x1e0] sm:$0xff]  ;;  %v2341_v13 = vld [vmem:[%s4301_s9 + $0x18] sm:$0xff]  ;;  %v2343_v19 = vld [vmem:[%s4301_s9 + $0x28] sm:$0xff] }
  0x2e   : > { %v475_v5 = vpack.c.bf16 %v443_v1, %v441_v63  ;;  %v2996_v20 = vld [vmem:[%s4294_s2 + $0x20] ss:$8 sps:$4 sm:$0xff]   ;;  %v2999_v26 = vld [vmem:[%s4294_s2 + $0x30] ss:$8 sps:$4 sm:$0xff]   ;;  %v3000_v27 = vld [vmem:[%s4294_s2 + $0x44] ss:$8 sps:$4 sm:$0xff]  }
  0x2f   : > { %563 = vperm.xlu0 %2986, %v513_v18   ;;  %v2342_v18 = vld [vmem:[%s4301_s9 + $0x20] sm:$0xff]  ;;  %v2347_v31 = vld [vmem:[%s4301_s9 + $0x48] sm:$0xff]  ;;  %v3003_v33 = vld [vmem:[%s4294_s2 + $0x54] ss:$8 sps:$4 sm:$0xff]  }
  0x30   : > { %876 = vmatpush1.bf16.msra.mxu0 %v459_v6  ;;  %568 = vperm.xlu1 %2987, %v514_v21   ;;  %v2338_v6 = vld [vmem:[%s4301_s9] sm:$0xff]  ;;  %v2997_v21 = vld [vmem:[%s4294_s2 + $0x34] ss:$8 sps:$4 sm:$0xff]   ;;  %v2351_v43 = vld [vmem:[%s4301_s9 + $0x68] sm:$0xff] }
  0x31   : > { %877 = vmatprep.subr.bf16.mxu0 %v462_v9  ;;  %v2991_v9 = vld [vmem:[%s4294_s2 + $0x14] ss:$8 sps:$4 sm:$0xff]   ;;  %v3006_v39 = vld [vmem:[%s4294_s2 + $0x64] ss:$8 sps:$4 sm:$0xff]   ;;  %v3014_v56 = vld [vmem:[%s4294_s2 + $0x80] ss:$8 sps:$4 sm:$0xff]  }
  0x32   : > { %v2029_v35 = vld [vmem:[%s4300_s8 + $0x58] sm:$0xff]  ;;  %v2348_v36 = vld [vmem:[%s4301_s9 + $0x50] sm:$0xff]  ;;  %v2030_v40 = vld [vmem:[%s4300_s8 + $0x60] sm:$0xff] }
  0x33   : > { %573 = vperm.xlu0 %2986, %v515_v28   ;;  %v2026_v28 = vld [vmem:[%s4300_s8 + $0x40] sm:$0xff]  ;;  %v2033_v47 = vld [vmem:[%s4300_s8 + $0x78] sm:$0xff]  ;;  %v2355_v55 = vld [vmem:[%s4301_s9 + $0x88] sm:$0xff] }
  0x34   : > { %878 = vmatpush1.bf16.msra.mxu0 %v461_v14  ;;  %578 = vperm.xlu1 %2987, %v516_v29   ;;  %v2993_v14 = vld [vmem:[%s4294_s2 + $0x10] ss:$8 sps:$4 sm:$0xff]   ;;  %v2027_v29 = vld [vmem:[%s4300_s8 + $0x48] sm:$0xff]  ;;  %v2350_v42 = vld [vmem:[%s4301_s9 + $0x60] sm:$0xff] }
  0x35   : > { %879 = vmatprep.subr.bf16.mxu0 %v464_v16  ;;  %v2022_v16 = vld [vmem:[%s4300_s8 + $0x20] sm:$0xff]  ;;  %v2353_v49 = vld [vmem:[%s4301_s9 + $0x78] sm:$0xff]  ;;  %v2036_v58 = vld [vmem:[%s4300_s8 + $0x90] sm:$0xff] }
  0x36   : > { %v3012_v51 = vld [vmem:[%s4294_s2 + $0x84] ss:$8 sps:$4 sm:$0xff]   ;;  %v2037_v59 = vld [vmem:[%s4300_s8 + $0x98] sm:$0xff] }
  0x37   : > { %583 = vperm.xlu0 %2986, %v517_v34   ;;  %v2028_v34 = vld [vmem:[%s4300_s8 + $0x50] sm:$0xff]  ;;  %v2034_v52 = vld [vmem:[%s4300_s8 + $0x80] sm:$0xff]  ;;  %v2039_v1 = vld [vmem:[%s4300_s8 + $0xa8] sm:$0xff] }
  0x38   : > { %880 = vmatpush1.bf16.msra.mxu0 %v463_v22  ;;  %588 = vperm.xlu1 %2987, %v518_v37   ;;  %v2024_v22 = vld [vmem:[%s4300_s8 + $0x30] sm:$0xff]  ;;  %v2349_v37 = vld [vmem:[%s4301_s9 + $0x58] sm:$0xff]  ;;  %v3018_v63 = vld [vmem:[%s4294_s2 + $0xa4] ss:$8 sps:$4 sm:$0xff]  }
  0x39   : > { %881 = vmatprep.subr.bf16.mxu0 %v466_v25  ;;  %v2345_v25 = vld [vmem:[%s4301_s9 + $0x38] sm:$0xff] }
  0x3b   : > { %593 = vperm.xlu0 %2986, %v519_v44   ;;  %v3008_v44 = vld [vmem:[%s4294_s2 + $0x60] ss:$8 sps:$4 sm:$0xff]  }
  0x3c   : > { %882 = vmatpush1.bf16.msra.mxu0 %v465_v30  ;;  %598 = vperm.xlu1 %2987, %v520_v45   ;;  %v2346_v30 = vld [vmem:[%s4301_s9 + $0x40] sm:$0xff]  ;;  %v3009_v45 = vld [vmem:[%s4294_s2 + $0x74] ss:$8 sps:$4 sm:$0xff]  }
  0x3d   : > { %883 = vmatprep.subr.bf16.mxu0 %v468_v32  ;;  %v3002_v32 = vld [vmem:[%s4294_s2 + $0x40] ss:$8 sps:$4 sm:$0xff]  }
  0x3f   : > { %603 = vperm.xlu0 %2986, %v521_v50   ;;  %v3011_v50 = vld [vmem:[%s4294_s2 + $0x70] ss:$8 sps:$4 sm:$0xff]  }
  0x40   : > { %884 = vmatpush1.bf16.msra.mxu0 %v467_v38  ;;  %608 = vperm.xlu1 %2987, %v522_v53   ;;  %v3005_v38 = vld [vmem:[%s4294_s2 + $0x50] ss:$8 sps:$4 sm:$0xff]   ;;  %v2035_v53 = vld [vmem:[%s4300_s8 + $0x88] sm:$0xff] }
  0x41   : > { %885 = vmatprep.subr.bf16.mxu0 %v470_v41  ;;  %v2031_v41 = vld [vmem:[%s4300_s8 + $0x68] sm:$0xff] }
  0x43   : > { %613 = vperm.xlu0 %2986, %v523_v60   ;;  %v2356_v60 = vld [vmem:[%s4301_s9 + $0x90] sm:$0xff] }
  0x44   : > { %886 = vmatpush1.bf16.msra.mxu0 %v469_v46  ;;  %618 = vperm.xlu1 %2987, %v524_v61   ;;  %v2032_v46 = vld [vmem:[%s4300_s8 + $0x70] sm:$0xff]  ;;  %v2357_v61 = vld [vmem:[%s4301_s9 + $0x98] sm:$0xff] }
  0x45   : > { %887 = vmatprep.subr.bf16.mxu0 %v472_v48  ;;  %v2352_v48 = vld [vmem:[%s4301_s9 + $0x70] sm:$0xff] }
  0x47   : > { %2052 = vperm.xlu0 %2986, %v2018_v3   ;;  %v2358_v3 = vld [vmem:[%s4301_s9 + $0xa0] sm:$0xff] }
  0x48   : > { %888 = vmatpush1.bf16.msra.mxu0 %v471_v54  ;;  %2057 = vperm.xlu1 %2987, %v2019_v4   ;;  %v2354_v54 = vld [vmem:[%s4301_s9 + $0x80] sm:$0xff]  ;;  %v2359_v4 = vld [vmem:[%s4301_s9 + $0xa8] sm:$0xff] }
  0x49   : > { %889 = vmatprep.subr.bf16.mxu0 %v474_v57  ;;  %v3015_v57 = vld [vmem:[%s4294_s2 + $0x94] ss:$8 sps:$4 sm:$0xff]  }
  0x4b   : > { %2372 = vperm.xlu0 %2986, %v2338_v6   ;;  %v3021_v6 = vld [vmem:[%s4294_s2 + $0xb4] ss:$8 sps:$4 sm:$0xff]  }
  0x4c   : > { %890 = vmatpush1.bf16.msra.mxu0 %v473_v62  ;;  %2377 = vperm.xlu1 %2987, %v2339_v7   ;;  %v3017_v62 = vld [vmem:[%s4294_s2 + $0x90] ss:$8 sps:$4 sm:$0xff]  }
  0x4d   : > { %891 = vmatprep.subr.bf16.mxu0 %v476_v0  ;;  %v2038_v0 = vld [vmem:[%s4300_s8 + $0xa0] sm:$0xff]  ;;  %v2040_v7 = vld [vmem:[%s4300_s8 + $0xb0] sm:$0xff] }
  0x4f   : > { %2062 = vperm.xlu0 %2986, %v2020_v10   ;;  %v2361_v10 = vld [vmem:[%s4301_s9 + $0xb8] sm:$0xff] }
  0x50   : > { %892 = vmatpush1.bf16.msra.mxu0 %v475_v5  ;;  %2067 = vperm.xlu1 %2987, %v2021_v11   ;;  %v3020_v5 = vld [vmem:[%s4294_s2 + $0xa0] ss:$8 sps:$4 sm:$0xff]   ;;  %v3023_v11 = vld [vmem:[%s4294_s2 + $0xb0] ss:$8 sps:$4 sm:$0xff]  }
  0x53   : > { %894 = vmatmul.mubr.bf16.vlgmr.msra.gmra.mrb[0].mxu0 %v2988_v8  ;;  %2382 = vperm.xlu0 %2986, %v2340_v12   ;;  %v2041_v8 = vld [vmem:[%s4300_s8 + $0xb8] sm:$0xff]  ;;  %v3024_v12 = vld [vmem:[%s4294_s2 + $0xc4] ss:$8 sps:$4 sm:$0xff]  }
  0x54   : > { %903 = vmatprep.mubr.bf16.mxu0 %v2991_v9  ;;  %2387 = vperm.xlu1 %2987, %v2341_v13   ;;  %v2360_v9 = vld [vmem:[%s4301_s9 + $0xb0] sm:$0xff]  ;;  %v2042_v13 = vld [vmem:[%s4300_s8 + $0xc0] sm:$0xff] }
  0x57   : > { %2072 = vperm.xlu0 %2986, %v2022_v16   ;;  %v2363_v16 = vld [vmem:[%s4301_s9 + $0xc8] sm:$0xff] }
  0x58   : > { %2077 = vperm.xlu1 %2987, %v2023_v17   ;;  %v3026_v17 = vld [vmem:[%s4294_s2 + $0xc0] ss:$8 sps:$4 sm:$0xff]  }
  0x5b   : > { %904 = vmatmul.mubr.bf16.gmra.mrb[4].mxu0 %v2993_v14  ;;  %2392 = vperm.xlu0 %2986, %v2342_v18   ;;  %v2043_v14 = vld [vmem:[%s4300_s8 + $0xc8] sm:$0xff]  ;;  %v3027_v18 = vld [vmem:[%s4294_s2 + $0xd4] ss:$8 sps:$4 sm:$0xff]  }
  0x5c   : > { %913 = vmatprep.mubr.bf16.mxu0 %v2994_v15  ;;  %2397 = vperm.xlu1 %2987, %v2343_v19   ;;  %v2362_v15 = vld [vmem:[%s4301_s9 + $0xc0] sm:$0xff]  ;;  %v2044_v19 = vld [vmem:[%s4300_s8 + $0xd0] sm:$0xff] }
  0x5f   : > { %2082 = vperm.xlu0 %2986, %v2024_v22   ;;  %v2365_v22 = vld [vmem:[%s4301_s9 + $0xd8] sm:$0xff] }
  0x60   : > { %2087 = vperm.xlu1 %2987, %v2025_v23   ;;  %v3029_v23 = vld [vmem:[%s4294_s2 + $0xd0] ss:$8 sps:$4 sm:$0xff]  }
  0x63   : > { %914 = vmatmul.mubr.bf16.gmra.mrb[8].mxu0 %v2996_v20  ;;  %2402 = vperm.xlu0 %2986, %v2344_v24   ;;  %v2045_v20 = vld [vmem:[%s4300_s8 + $0xd8] sm:$0xff]  ;;  %v3030_v24 = vld [vmem:[%s4294_s2 + $0xe4] ss:$8 sps:$4 sm:$0xff]  }
  0x64   : > { %923 = vmatprep.mubr.bf16.mxu0 %v2997_v21  ;;  %2407 = vperm.xlu1 %2987, %v2345_v25   ;;  %v2364_v21 = vld [vmem:[%s4301_s9 + $0xd0] sm:$0xff]  ;;  %v2046_v25 = vld [vmem:[%s4300_s8 + $0xe0] sm:$0xff] }
  0x67   : > { %2092 = vperm.xlu0 %2986, %v2026_v28   ;;  %v2367_v28 = vld [vmem:[%s4301_s9 + $0xe8] sm:$0xff] }
  0x68   : > { %2097 = vperm.xlu1 %2987, %v2027_v29   ;;  %v3032_v29 = vld [vmem:[%s4294_s2 + $0xe0] ss:$8 sps:$4 sm:$0xff]  }
  0x6b   : > { %924 = vmatmul.mubr.bf16.gmra.mrb[12].mxu0 %v2999_v26  ;;  %2412 = vperm.xlu0 %2986, %v2346_v30   ;;  %v2047_v26 = vld [vmem:[%s4300_s8 + $0xe8] sm:$0xff]  ;;  %v3033_v30 = vld [vmem:[%s4294_s2 + $0xf4] ss:$8 sps:$4 sm:$0xff]  }
  0x6c   : > { %933 = vmatprep.mubr.bf16.mxu0 %v3000_v27  ;;  %2417 = vperm.xlu1 %2987, %v2347_v31   ;;  %v2366_v27 = vld [vmem:[%s4301_s9 + $0xe0] sm:$0xff]  ;;  %v2048_v31 = vld [vmem:[%s4300_s8 + $0xf0] sm:$0xff] }
  0x6f   : > { %2102 = vperm.xlu0 %2986, %v2028_v34   ;;  %v2369_v34 = vld [vmem:[%s4301_s9 + $0xf8] sm:$0xff] }
  0x70   : > { %2107 = vperm.xlu1 %2987, %v2029_v35   ;;  %v3035_v35 = vld [vmem:[%s4294_s2 + $0xf0] ss:$8 sps:$4 sm:$0xff]  }
  0x73   : > { %934 = vmatmul.mubr.bf16.gmra.mrb[16].mxu0 %v3002_v32  ;;  %2422 = vperm.xlu0 %2986, %v2348_v36   ;;  %v2049_v32 = vld [vmem:[%s4300_s8 + $0xf8] sm:$0xff] }
  0x74   : > { %943 = vmatprep.mubr.bf16.mxu0 %v3003_v33  ;;  %2427 = vperm.xlu1 %2987, %v2349_v37   ;;  %v2368_v33 = vld [vmem:[%s4301_s9 + $0xf0] sm:$0xff] }
  0x77   : > { %2112 = vperm.xlu0 %2986, %v2030_v40  }
  0x78   : > { %2117 = vperm.xlu1 %2987, %v2031_v41  }
  0x7b   : > { %944 = vmatmul.mubr.bf16.gmra.mrb[20].mxu0 %v3005_v38  ;;  %2432 = vperm.xlu0 %2986, %v2350_v42  }
  0x7c   : > { %953 = vmatprep.mubr.bf16.mxu0 %v3006_v39  ;;  %2437 = vperm.xlu1 %2987, %v2351_v43  }
  0x7f   : > { %2122 = vperm.xlu0 %2986, %v2032_v46  }
  0x80   : > { %2127 = vperm.xlu1 %2987, %v2033_v47  }
  0x83   : > { %954 = vmatmul.mubr.bf16.gmra.mrb[24].mxu0 %v3008_v44  ;;  %2442 = vperm.xlu0 %2986, %v2352_v48  }
  0x84   : > { %963 = vmatprep.mubr.bf16.mxu0 %v3009_v45  ;;  %2447 = vperm.xlu1 %2987, %v2353_v49  }
  0x86   : > { %v3663_v36 = vpop.permute.xlu0 %623  ;;  %v3665_v37 = vpop.permute.xlu1 %633 }
  0x87   : > { %2132 = vperm.xlu0 %2986, %v2034_v52  }
  0x88   : > { %2137 = vperm.xlu1 %2987, %v2035_v53  }
  0x8a   : > { %v3667_v38 = vpop.permute.xlu0 %628  ;;  %v3669_v39 = vpop.permute.xlu1 %638 }
  0x8b   : > { %964 = vmatmul.mubr.bf16.gmra.mrb[28].mxu0 %v3011_v50  ;;  %2452 = vperm.xlu0 %2986, %v2354_v54  }
  0x8c   : > { %973 = vmatprep.mubr.bf16.mxu0 %v3012_v51  ;;  %2457 = vperm.xlu1 %2987, %v2355_v55  }
  0x8e   : > { %v3671_v40 = vpop.permute.xlu0 %643  ;;  %v3673_v41 = vpop.permute.xlu1 %648 }
  0x8f   : > { %2142 = vperm.xlu0 %2986, %v2036_v58  }
  0x90   : > { %2147 = vperm.xlu1 %2987, %v2037_v59  }
  0x92   : > { %v3675_v42 = vpop.permute.xlu0 %653 }
  0x93   : > { %974 = vmatmul.mubr.bf16.gmra.mrb[32].mxu0 %v3014_v56  ;;  %2462 = vperm.xlu0 %2986, %v2356_v60   ;;  %v3677_v43 = vpop.permute.xlu1 %658 }
  0x94   : > { %983 = vmatprep.mubr.bf16.mxu0 %v3015_v57  ;;  %2467 = vperm.xlu1 %2987, %v2357_v61  }
  0x96   : > { %v3679_v44 = vpop.permute.xlu0 %663 }
  0x97   : > { %2152 = vperm.xlu0 %2986, %v2038_v0   ;;  %v3681_v45 = vpop.permute.xlu1 %668 }
  0x98   : > { %2157 = vperm.xlu1 %2987, %v2039_v1  }
  0x9a   : > { %v3683_v46 = vpop.permute.xlu0 %673 }
  0x9b   : > { %984 = vmatmul.mubr.bf16.gmra.mrb[36].mxu0 %v3017_v62  ;;  %2472 = vperm.xlu0 %2986, %v2358_v3   ;;  %v3685_v47 = vpop.permute.xlu1 %678 }
  0x9c   : > { %993 = vmatprep.mubr.bf16.mxu0 %v3018_v63  ;;  %2477 = vperm.xlu1 %2987, %v2359_v4  }
  0x9e   : > { %v3687_v48 = vpop.permute.xlu0 %683 }
  0x9f   : > { %2162 = vperm.xlu0 %2986, %v2040_v7   ;;  %v3689_v49 = vpop.permute.xlu1 %688 }
  0xa0   : > { %2167 = vperm.xlu1 %2987, %v2041_v8  }
  0xa2   : > { %v3691_v50 = vpop.permute.xlu0 %693 }
  0xa3   : > { %994 = vmatmul.mubr.bf16.gmra.mrb[40].mxu0 %v3020_v5  ;;  %2482 = vperm.xlu0 %2986, %v2360_v9   ;;  %v3693_v51 = vpop.permute.xlu1 %698 }
  0xa4   : > { %1003 = vmatprep.mubr.bf16.mxu0 %v3021_v6  ;;  %2487 = vperm.xlu1 %2987, %v2361_v10  }
  0xa6   : > { %v544_v53 = vpop.permute.xlu0 %543 }
  0xa7   : > { %2172 = vperm.xlu0 %2986, %v2042_v13   ;;  %v549_v55 = vpop.permute.xlu1 %548 }
  0xa8   : > { %2177 = vperm.xlu1 %2987, %v2043_v14  }
  0xaa   : > { %v554_v1 = vpop.permute.xlu0 %553 }
  0xab   : > { %1004 = vmatmul.mubr.bf16.gmra.mrb[44].mxu0 %v3023_v11  ;;  %2492 = vperm.xlu0 %2986, %v2362_v15   ;;  %v559_v4 = vpop.permute.xlu1 %558 }
  0xac   : > { %1013 = vmatprep.mubr.bf16.mxu0 %v3024_v12  ;;  %2497 = vperm.xlu1 %2987, %v2363_v16  }
  0xae   : > { %v564_v14 = vpop.permute.xlu0 %563 }
  0xaf   : > { %2182 = vperm.xlu0 %2986, %v2044_v19   ;;  %v569_v16 = vpop.permute.xlu1 %568 }
  0xb0   : > { %2187 = vperm.xlu1 %2987, %v2045_v20  }
  0xb3   : > { %1014 = vmatmul.mubr.bf16.gmra.mrb[48].mxu0 %v3026_v17  ;;  %2502 = vperm.xlu0 %2986, %v2364_v21  }
  0xb4   : > { %1023 = vmatprep.mubr.bf16.mxu0 %v3027_v18  ;;  %2507 = vperm.xlu1 %2987, %v2365_v22  }
  0xb7   : > { %2192 = vperm.xlu0 %2986, %v2046_v25  }
  0xb8   : > { %2197 = vperm.xlu1 %2987, %v2047_v26   ;;  %v574_v26 = vpop.permute.xlu0 %573 }
  0xbb   : > { %1024 = vmatmul.mubr.bf16.gmra.mrb[52].mxu0 %v3029_v23  ;;  %2512 = vperm.xlu0 %2986, %v2366_v27  }
  0xbc   : > { %1033 = vmatprep.mubr.bf16.mxu0 %v3030_v24  ;;  %2517 = vperm.xlu1 %2987, %v2367_v28   ;;  %v579_v28 = vpop.permute.xlu1 %578 }
  0xbf   : > { %2202 = vperm.xlu0 %2986, %v2048_v31  }
  0xc0   : > { %2207 = vperm.xlu1 %2987, %v2049_v32  }
  0xc3   : > { %1034 = vmatmul.mubr.bf16.gmra.mrb[56].mxu0 %v3032_v29  ;;  %2522 = vperm.xlu0 %2986, %v2368_v33  }
  0xc4   : > { %1043 = vmatprep.mubr.bf16.mxu0 %v3033_v30  ;;  %2527 = vperm.xlu1 %2987, %v2369_v34  }
  0xcb   : > { %1044 = vmatmul.mubr.bf16.gmra.mrb[60].mxu0 %v3035_v35 }
  0xcc   : > { %1600 = vmatprep.mubr.bf16.mxu0 %v4303_v2 }
 0x126   : > { %v895_v52 = vpop.f32.mrb[0].mxu0 }
 0x127   : > { %v897_v54 = vpop.f32.mrb[1].mxu0  ;;  %v3695_v57 = vadd.f32 %v895_v52, %v544_v53 }
 0x128   : > { %v899_v56 = vpop.f32.mrb[2].mxu0  ;;  %v898_v60 = vadd.f32 %v897_v54, %v544_v53  ;;  %v584_v54 = vpop.permute.xlu0 %583 }
 0x129   : > { %v3697_v58 = vadd.f32 %v899_v56, %v549_v55  ;;  %v901_v59 = vpop.f32.mrb[3].mxu0  ;;  %v589_v56 = vpop.permute.xlu1 %588 }
 0x12a   : > { %v902_v61 = vadd.f32 %v901_v59, %v549_v55 }
 0x12b   : > { %v1054_v62 = vpack.c.bf16 %v3697_v58, %v3695_v57  ;;  %v3040_v58 = vld [vmem:[%s4296_s4 + $0x20] sm:$0xff]  }
 0x12c   : > { %v1055_v63 = vpack.c.bf16 %v902_v61, %v898_v60 }
 0x12e   : > { %v905_v0 = vpop.f32.mrb[4].mxu0  ;;  %1118 = vmatprep.mubr.bf16.mxu1 %v1055_v63 }
 0x12f   : > { %v907_v3 = vpop.f32.mrb[5].mxu0  ;;  %v3701_v6 = vadd.f32 %v905_v0, %v554_v1 }
 0x130   : > { %v909_v5 = vpop.f32.mrb[6].mxu0  ;;  %v3705_v9 = vadd.f32 %v907_v3, %v554_v1 }
 0x131   : > { %v3703_v7 = vadd.f32 %v909_v5, %v559_v4  ;;  %v911_v8 = vpop.f32.mrb[7].mxu0 }
 0x132   : > { %v3707_v10 = vadd.f32 %v911_v8, %v559_v4  ;;  %v594_v8 = vpop.permute.xlu0 %593 }
 0x133   : > { %v1056_v11 = vpack.c.bf16 %v3703_v7, %v3701_v6 }
 0x134   : > { %v1057_v12 = vpack.c.bf16 %v3707_v10, %v3705_v9 }
 0x136   : > { %v915_v13 = vpop.f32.mrb[8].mxu0 }
 0x137   : > { %v917_v15 = vpop.f32.mrb[9].mxu0  ;;  %v3713_v18 = vadd.f32 %v915_v13, %v564_v14 }
 0x138   : > { %v919_v17 = vpop.f32.mrb[10].mxu0  ;;  %v3717_v21 = vadd.f32 %v917_v15, %v564_v14  ;;  %v599_v14 = vpop.permute.xlu1 %598 }
 0x139   : > { %v3715_v19 = vadd.f32 %v919_v17, %v569_v16  ;;  %v921_v20 = vpop.f32.mrb[11].mxu0 }
 0x13a   : > { %v3719_v22 = vadd.f32 %v921_v20, %v569_v16 }
 0x13c   : > { %v4305_v57 = vpack.c.bf16 %v3719_v22, %v3717_v21 }
 0x13e   : > { %v925_v25 = vpop.f32.mrb[12].mxu0 }
 0x13f   : > { %v927_v27 = vpop.f32.mrb[13].mxu0  ;;  %v3725_v30 = vadd.f32 %v925_v25, %v574_v26 }
 0x140   : > { %v929_v29 = vpop.f32.mrb[14].mxu0  ;;  %v3729_v33 = vadd.f32 %v927_v27, %v574_v26 }
 0x141   : > { %v3727_v31 = vadd.f32 %v929_v29, %v579_v28  ;;  %v931_v32 = vpop.f32.mrb[15].mxu0 }
 0x142   : > { %v3731_v34 = vadd.f32 %v931_v32, %v579_v28  ;;  %v604_v32 = vpop.permute.xlu0 %603 }
 0x143   : > { %v4308_v7 = vpack.c.bf16 %v3727_v31, %v3725_v30  ;;  %v3041_v30 = vld [vmem:[%s4296_s4 + $0x28] sm:$0xff]   ;;  %v3042_v31 = vld [vmem:[%s4296_s4 + $0x30] sm:$0xff]  }
 0x144   : > { %v4307_v6 = vpack.c.bf16 %v3731_v34, %v3729_v33  ;;  %v3043_v33 = vld [vmem:[%s4296_s4 + $0x38] sm:$0xff]  }
 0x146   : > { %v935_v53 = vpop.f32.mrb[16].mxu0 }
 0x147   : > { %v937_v55 = vpop.f32.mrb[17].mxu0  ;;  %v3737_v60 = vadd.f32 %v935_v53, %v584_v54 }
 0x148   : > { %v939_v59 = vpop.f32.mrb[18].mxu0  ;;  %v3741_v0 = vadd.f32 %v937_v55, %v584_v54  ;;  %v609_v54 = vpop.permute.xlu1 %608 }
 0x149   : > { %v3739_v61 = vadd.f32 %v939_v59, %v589_v56  ;;  %v941_v63 = vpop.f32.mrb[19].mxu0 }
 0x14a   : > { %v3743_v1 = vadd.f32 %v941_v63, %v589_v56 }
 0x14b   : > { %v4310_v10 = vpack.c.bf16 %v3739_v61, %v3737_v60 }
 0x14c   : > { %v619_v27 = vpop.permute.xlu1 %618  ;;  %v4309_v9 = vpack.c.bf16 %v3743_v1, %v3741_v0 }
 0x14e   : > { %v945_v5 = vpop.f32.mrb[20].mxu0 }
 0x14f   : > { %v947_v13 = vpop.f32.mrb[21].mxu0  ;;  %v3749_v16 = vadd.f32 %v945_v5, %v594_v8 }
 0x150   : > { %v949_v15 = vpop.f32.mrb[22].mxu0  ;;  %v3753_v25 = vadd.f32 %v947_v13, %v594_v8 }
 0x151   : > { %v3751_v17 = vadd.f32 %v949_v15, %v599_v14  ;;  %v951_v20 = vpop.f32.mrb[23].mxu0 }
 0x152   : > { %v3755_v26 = vadd.f32 %v951_v20, %v599_v14  ;;  %v614_v20 = vpop.permute.xlu0 %613 }
 0x156   : > { %v955_v29 = vpop.f32.mrb[24].mxu0 }
 0x157   : > { %v957_v53 = vpop.f32.mrb[25].mxu0  ;;  %v3761_v56 = vadd.f32 %v955_v29, %v604_v32 }
 0x158   : > { %v959_v55 = vpop.f32.mrb[26].mxu0  ;;  %v3765_v5 = vadd.f32 %v957_v53, %v604_v32 }
 0x159   : > { %v3763_v59 = vadd.f32 %v959_v55, %v609_v54  ;;  %v961_v63 = vpop.f32.mrb[27].mxu0 }
 0x15a   : > { %v3767_v8 = vadd.f32 %v961_v63, %v609_v54 }
 0x15e   : > { %v965_v15 = vpop.f32.mrb[28].mxu0 }
 0x15f   : > { %v967_v2 = vpop.f32.mrb[29].mxu0  ;;  %v3773_v29 = vadd.f32 %v965_v15, %v614_v20 }
 0x160   : > { %v969_v28 = vpop.f32.mrb[30].mxu0  ;;  %v3777_v32 = vadd.f32 %v967_v2, %v614_v20 }
 0x161   : > { %v3775_v55 = vadd.f32 %v969_v28, %v619_v27  ;;  %v971_v3 = vpop.f32.mrb[31].mxu0 }
 0x162   : > { %v3779_v53 = vadd.f32 %v971_v3, %v619_v27 }
 0x163   : > { %v4316_v22 = vpack.c.bf16 %v3775_v55, %v3773_v29 }
 0x164   : > { %v4315_v21 = vpack.c.bf16 %v3779_v53, %v3777_v32 }
 0x166   : > { %v975_v13 = vpop.f32.mrb[32].mxu0 }
 0x167   : > { %v977_v14 = vpop.f32.mrb[33].mxu0  ;;  %v976_v35 = vadd.f32 %v975_v13, %v3663_v36 }
 0x168   : > { %v979_v4 = vpop.f32.mrb[34].mxu0  ;;  %v978_v52 = vadd.f32 %v977_v14, %v3663_v36 }
 0x169   : > { %v980_v15 = vadd.f32 %v979_v4, %v3667_v38  ;;  %v981_v28 = vpop.f32.mrb[35].mxu0 }
 0x16a   : > { %v982_v2 = vadd.f32 %v981_v28, %v3667_v38 }
 0x16b   : > { %v1070_v3 = vpack.c.bf16 %v980_v15, %v976_v35 }
 0x16c   : > { %v1071_v27 = vpack.c.bf16 %v982_v2, %v978_v52 }
 0x16e   : > { %v985_v20 = vpop.f32.mrb[36].mxu0  ;;  %1086 = vmatprep.subr.bf16.mxu1 %v1071_v27  ;;  %1568 = vmatprep.subr.bf16.mxu0 %v1071_v27 }
 0x16f   : > { %v987_v54 = vpop.f32.mrb[37].mxu0  ;;  %1087 = vmatpush1.bf16.xpose.msra.mxu1 %v1070_v3  ;;  %1569 = vmatpush1.bf16.msra.mxu0 %v1070_v3  ;;  %v986_v23 = vadd.f32 %v985_v20, %v3665_v37 }
 0x170   : > { %v989_v63 = vpop.f32.mrb[38].mxu0  ;;  %v988_v4 = vadd.f32 %v987_v54, %v3665_v37 }
 0x171   : > { %v990_v13 = vadd.f32 %v989_v63, %v3669_v39  ;;  %v991_v24 = vpop.f32.mrb[39].mxu0 }
 0x172   : > { %v992_v36 = vadd.f32 %v991_v24, %v3669_v39 }
 0x173   : > { %v1072_v14 = vpack.c.bf16 %v990_v13, %v986_v23 }
 0x174   : > { %v1073_v38 = vpack.c.bf16 %v992_v36, %v988_v4 }
 0x176   : > { %v995_v35 = vpop.f32.mrb[40].mxu0  ;;  %1088 = vmatprep.subr.bf16.mxu1 %v1073_v38  ;;  %1570 = vmatprep.subr.bf16.mxu0 %v1073_v38 }
 0x177   : > { %v997_v52 = vpop.f32.mrb[41].mxu0  ;;  %1089 = vmatpush1.bf16.xpose.msra.mxu1 %v1072_v14  ;;  %1571 = vmatpush1.bf16.msra.mxu0 %v1072_v14  ;;  %v996_v28 = vadd.f32 %v995_v35, %v3671_v40 }
 0x178   : > { %v999_v15 = vpop.f32.mrb[42].mxu0  ;;  %v998_v63 = vadd.f32 %v997_v52, %v3671_v40 }
 0x179   : > { %v1000_v2 = vadd.f32 %v999_v15, %v3673_v41  ;;  %v1001_v3 = vpop.f32.mrb[43].mxu0 }
 0x17a   : > { %v1002_v37 = vadd.f32 %v1001_v3, %v3673_v41 }
 0x17b   : > { %v1074_v54 = vpack.c.bf16 %v1000_v2, %v996_v28 }
 0x17c   : > { %v1075_v39 = vpack.c.bf16 %v1002_v37, %v998_v63 }
 0x17e   : > { %v1005_v23 = vpop.f32.mrb[44].mxu0  ;;  %1090 = vmatprep.subr.bf16.mxu1 %v1075_v39  ;;  %1572 = vmatprep.subr.bf16.mxu0 %v1075_v39 }
 0x17f   : > { %v1007_v24 = vpop.f32.mrb[45].mxu0  ;;  %1091 = vmatpush1.bf16.xpose.msra.mxu1 %v1074_v54  ;;  %1573 = vmatpush1.bf16.msra.mxu0 %v1074_v54  ;;  %v1006_v20 = vadd.f32 %v1005_v23, %v3675_v42 }
 0x180   : > { %v1009_v27 = vpop.f32.mrb[46].mxu0  ;;  %v1008_v36 = vadd.f32 %v1007_v24, %v3675_v42 }
 0x181   : > { %v1010_v13 = vadd.f32 %v1009_v27, %v3677_v43  ;;  %v1011_v4 = vpop.f32.mrb[47].mxu0 }
 0x182   : > { %v1012_v40 = vadd.f32 %v1011_v4, %v3677_v43 }
 0x183   : > { %v1076_v14 = vpack.c.bf16 %v1010_v13, %v1006_v20 }
 0x184   : > { %v1077_v41 = vpack.c.bf16 %v1012_v40, %v1008_v36 }
 0x186   : > { %v1015_v38 = vpop.f32.mrb[48].mxu0  ;;  %1092 = vmatprep.subr.bf16.mxu1 %v1077_v41  ;;  %1574 = vmatprep.subr.bf16.mxu0 %v1077_v41 }
 0x187   : > { %v1017_v35 = vpop.f32.mrb[49].mxu0  ;;  %1093 = vmatpush1.bf16.xpose.msra.mxu1 %v1076_v14  ;;  %1575 = vmatpush1.bf16.msra.mxu0 %v1076_v14  ;;  %v1016_v15 = vadd.f32 %v1015_v38, %v3679_v44 }
 0x188   : > { %v1019_v52 = vpop.f32.mrb[50].mxu0  ;;  %v1018_v3 = vadd.f32 %v1017_v35, %v3679_v44 }
 0x189   : > { %v1020_v28 = vadd.f32 %v1019_v52, %v3681_v45  ;;  %v1021_v2 = vpop.f32.mrb[51].mxu0 }
 0x18a   : > { %v1022_v42 = vadd.f32 %v1021_v2, %v3681_v45 }
 0x18b   : > { %v1078_v63 = vpack.c.bf16 %v1020_v28, %v1016_v15 }
 0x18c   : > { %v1079_v43 = vpack.c.bf16 %v1022_v42, %v1018_v3 }
 0x18e   : > { %v1025_v37 = vpop.f32.mrb[52].mxu0  ;;  %1094 = vmatprep.subr.bf16.mxu1 %v1079_v43  ;;  %1576 = vmatprep.subr.bf16.mxu0 %v1079_v43 }
 0x18f   : > { %v1027_v54 = vpop.f32.mrb[53].mxu0  ;;  %1095 = vmatpush1.bf16.xpose.msra.mxu1 %v1078_v63  ;;  %1577 = vmatpush1.bf16.msra.mxu0 %v1078_v63  ;;  %v1026_v23 = vadd.f32 %v1025_v37, %v3683_v46 }
 0x190   : > { %v1029_v39 = vpop.f32.mrb[54].mxu0  ;;  %v1028_v20 = vadd.f32 %v1027_v54, %v3683_v46  ;;  %v3036_v54 = vld [vmem:[%s4296_s4] sm:$0xff]  }
 0x191   : > { %v1030_v24 = vadd.f32 %v1029_v39, %v3685_v47  ;;  %v1031_v27 = vpop.f32.mrb[55].mxu0  ;;  %v3037_v39 = vld [vmem:[%s4296_s4 + $0x8] sm:$0xff]  }
 0x192   : > { %v1032_v44 = vadd.f32 %v1031_v27, %v3685_v47 }
 0x193   : > { %v1080_v13 = vpack.c.bf16 %v1030_v24, %v1026_v23 }
 0x194   : > { %v1081_v45 = vpack.c.bf16 %v1032_v44, %v1028_v20 }
 0x196   : > { %v1035_v4 = vpop.f32.mrb[56].mxu0  ;;  %1096 = vmatprep.subr.bf16.mxu1 %v1081_v45  ;;  %1578 = vmatprep.subr.bf16.mxu0 %v1081_v45 }
 0x197   : > { %v1037_v36 = vpop.f32.mrb[57].mxu0  ;;  %1097 = vmatpush1.bf16.xpose.msra.mxu1 %v1080_v13  ;;  %1579 = vmatpush1.bf16.msra.mxu0 %v1080_v13  ;;  %v1036_v14 = vadd.f32 %v1035_v4, %v3687_v48 }
 0x198   : > { %v1039_v40 = vpop.f32.mrb[58].mxu0  ;;  %v1038_v35 = vadd.f32 %v1037_v36, %v3687_v48 }
 0x199   : > { %v1040_v41 = vadd.f32 %v1039_v40, %v3689_v49  ;;  %v1041_v38 = vpop.f32.mrb[59].mxu0 }
 0x19a   : > { %v1042_v46 = vadd.f32 %v1041_v38, %v3689_v49 }
 0x19b   : > { %v1082_v52 = vpack.c.bf16 %v1040_v41, %v1036_v14 }
 0x19c   : > { %v1083_v47 = vpack.c.bf16 %v1042_v46, %v1038_v35 }
 0x19e   : > { %v1045_v15 = vpop.f32.mrb[60].mxu0  ;;  %1098 = vmatprep.subr.bf16.mxu1 %v1083_v47  ;;  %1580 = vmatprep.subr.bf16.mxu0 %v1083_v47 }
 0x19f   : > { %v1047_v28 = vpop.f32.mrb[61].mxu0  ;;  %1099 = vmatpush1.bf16.xpose.msra.mxu1 %v1082_v52  ;;  %1581 = vmatpush1.bf16.msra.mxu0 %v1082_v52  ;;  %v1046_v3 = vadd.f32 %v1045_v15, %v3691_v50 }
 0x1a0   : > { %v1049_v2 = vpop.f32.mrb[62].mxu0  ;;  %v1048_v43 = vadd.f32 %v1047_v28, %v3691_v50  ;;  %v3038_v50 = vld [vmem:[%s4296_s4 + $0x10] sm:$0xff]  }
 0x1a1   : > { %v1050_v42 = vadd.f32 %v1049_v2, %v3693_v51  ;;  %v1051_v63 = vpop.f32.mrb[63].mxu0 }
 0x1a2   : > { %v1052_v48 = vadd.f32 %v1051_v63, %v3693_v51  ;;  %v3039_v51 = vld [vmem:[%s4296_s4 + $0x18] sm:$0xff]  }
 0x1a3   : > { %v1084_v37 = vpack.c.bf16 %v1050_v42, %v1046_v3 }
 0x1a4   : > { %v1085_v49 = vpack.c.bf16 %v1052_v48, %v1048_v43  ;;  %v3044_v43 = vld [vmem:[%s4298_s6] sm:$0xff]  }
 0x1a5   : > { %v3925_v48 = vld [vmem:[%s4297_s5] ss:$0 sm:$0xff] }
 0x1a6   : > { %1100 = vmatprep.subr.bf16.mxu1 %v1085_v49  ;;  %1582 = vmatprep.subr.bf16.mxu0 %v1085_v49 }
 0x1a7   : > { %1101 = vmatpush1.bf16.xpose.msra.mxu1 %v1084_v37  ;;  %1583 = vmatpush1.bf16.msra.mxu0 %v1084_v37 }
 0x1a8   : > { %2849 = vmatprep.subr.bf16.mxu1 %v3036_v54 }
 0x1ae   : > { %1119 = vmatmul.mubr.bf16.vlgmr.msra.gmra.mrb[0].mxu1 %v1054_v62  ;;  %v4306_v62 = vpack.c.bf16 %v3715_v19, %v3713_v18  ;;  %v4313_v18 = vpack.c.bf16 %v3767_v8, %v3765_v5  ;;  %v4314_v19 = vpack.c.bf16 %v3763_v59, %v3761_v56 }
 0x1af   : > { %1126 = vmatprep.mubr.bf16.mxu1 %v1057_v12  ;;  %2850 = vmatpush3.bf16.msra.mxu1 %v3036_v54  ;;  %v4312_v12 = vpack.c.bf16 %v3751_v17, %v3749_v16 }
 0x1b0   : > { %2851 = vmatprep.subr.bf16.mxu1 %v3037_v39 }
 0x1b3   : > { %2852 = vmatpush3.bf16.msra.mxu1 %v3037_v39 }
 0x1b4   : > { %2853 = vmatprep.subr.bf16.mxu1 %v3038_v50 }
 0x1b6   : > { %1127 = vmatmul.mubr.bf16.gmra.mrb[4].mxu1 %v1056_v11  ;;  %v4311_v11 = vpack.c.bf16 %v3755_v26, %v3753_v25 }
 0x1b7   : > { %1134 = vmatprep.mubr.bf16.mxu1 %v4305_v57  ;;  %2854 = vmatpush3.bf16.msra.mxu1 %v3038_v50 }
 0x1b8   : > { %2855 = vmatprep.subr.bf16.mxu1 %v3039_v51 }
 0x1bb   : > { %2856 = vmatpush3.bf16.msra.mxu1 %v3039_v51 }
 0x1bc   : > { %2857 = vmatprep.subr.bf16.mxu1 %v3040_v58 }
 0x1be   : > { %1135 = vmatmul.mubr.bf16.gmra.mrb[8].mxu1 %v4306_v62 }
 0x1bf   : > { %1142 = vmatprep.mubr.bf16.mxu1 %v4307_v6  ;;  %2858 = vmatpush3.bf16.msra.mxu1 %v3040_v58 }
 0x1c0   : > { %2859 = vmatprep.subr.bf16.mxu1 %v3041_v30 }
 0x1c3   : > { %2860 = vmatpush3.bf16.msra.mxu1 %v3041_v30 }
 0x1c4   : > { %2861 = vmatprep.subr.bf16.mxu1 %v3042_v31 }
 0x1c6   : > { %1143 = vmatmul.mubr.bf16.gmra.mrb[12].mxu1 %v4308_v7 }
 0x1c7   : > { %1150 = vmatprep.mubr.bf16.mxu1 %v4309_v9  ;;  %2862 = vmatpush3.bf16.msra.mxu1 %v3042_v31 }
 0x1c8   : > { %2863 = vmatprep.subr.bf16.mxu1 %v3043_v33 }
 0x1cb   : > { %2864 = vmatpush3.bf16.msra.mxu1 %v3043_v33 }
 0x1ce   : > { %1151 = vmatmul.mubr.bf16.gmra.mrb[16].mxu1 %v4310_v10 }
 0x1cf   : > { %1158 = vmatprep.mubr.bf16.mxu1 %v4311_v11 }
 0x1d6   : > { %1159 = vmatmul.mubr.bf16.gmra.mrb[20].mxu1 %v4312_v12 }
 0x1d7   : > { %1166 = vmatprep.mubr.bf16.mxu1 %v4313_v18 }
 0x1de   : > { %1167 = vmatmul.mubr.bf16.gmra.mrb[24].mxu1 %v4314_v19 }
 0x1df   : > { %1174 = vmatprep.mubr.bf16.mxu1 %v4315_v21 }
 0x1e6   : > { %1175 = vmatmul.mubr.bf16.gmra.mrb[28].mxu1 %v4316_v22 }
 0x281   : > { %v1120_v34 = vpop.f32.mrb[0].mxu1 }
 0x282   : > { %v1122_v60 = vpop.f32.mrb[1].mxu1 }
 0x283   : > { %v1123_v61 = vpop.f32.mrb[2].mxu1 }
 0x284   : > { %v1183_v0 = vpack.c.bf16 %v1123_v61, %v1120_v34  ;;  %v1125_v1 = vpop.f32.mrb[3].mxu1 }
 0x286   : > { %2865 = vmatprep.mubr.bf16.mxu1 %v1183_v0 }
 0x289   : > { %v1128_v16 = vpop.f32.mrb[4].mxu1 }
 0x28a   : > { %v1130_v17 = vpop.f32.mrb[5].mxu1 }
 0x28b   : > { %v1131_v25 = vpop.f32.mrb[6].mxu1 }
 0x28c   : > { %v1184_v26 = vpack.c.bf16 %v1131_v25, %v1128_v16  ;;  %v1133_v56 = vpop.f32.mrb[7].mxu1 }
 0x28e   : > { %2866 = vmatmul.mubr.bf16.vlgmr.msra.gmra.mrb[32].mxu1 %v1184_v26 }
 0x291   : > { %v3886_v59 = vpop.f32.mrb[8].mxu1 }
 0x292   : > { %v1138_v5 = vpop.f32.mrb[9].mxu1 }
 0x293   : > { %v3888_v8 = vpop.f32.mrb[10].mxu1 }
 0x294   : > { %v1185_v29 = vpack.c.bf16 %v3888_v8, %v3886_v59  ;;  %v1141_v55 = vpop.f32.mrb[11].mxu1 }
 0x296   : > { %2869 = vmatprep.mubr.bf16.mxu1 %v1185_v29 }
 0x299   : > { %v1144_v32 = vpop.f32.mrb[12].mxu1 }
 0x29a   : > { %v1146_v53 = vpop.f32.mrb[13].mxu1 }
 0x29b   : > { %v3892_v23 = vpop.f32.mrb[14].mxu1 }
 0x29c   : > { %v1186_v24 = vpack.c.bf16 %v3892_v23, %v1144_v32  ;;  %v1149_v27 = vpop.f32.mrb[15].mxu1 }
 0x29e   : > { %2870 = vmatmul.mubr.bf16.gmra.mrb[36].mxu1 %v1186_v24 }
 0x2a1   : > { %v3895_v20 = vpop.f32.mrb[16].mxu1 }
 0x2a2   : > { %v1154_v44 = vpop.f32.mrb[17].mxu1 }
 0x2a3   : > { %v3897_v13 = vpop.f32.mrb[18].mxu1 }
 0x2a4   : > { %v1187_v45 = vpack.c.bf16 %v3897_v13, %v3895_v20  ;;  %v1157_v4 = vpop.f32.mrb[19].mxu1 }
 0x2a6   : > { %2873 = vmatprep.mubr.bf16.mxu1 %v1187_v45 }
 0x2a9   : > { %v3901_v36 = vpop.f32.mrb[20].mxu1 }
 0x2aa   : > { %v1162_v40 = vpop.f32.mrb[21].mxu1 }
 0x2ab   : > { %v3903_v14 = vpop.f32.mrb[22].mxu1 }
 0x2ac   : > { %v1188_v41 = vpack.c.bf16 %v3903_v14, %v3901_v36  ;;  %v1165_v38 = vpop.f32.mrb[23].mxu1 }
 0x2ae   : > { %2874 = vmatmul.mubr.bf16.gmra.mrb[40].mxu1 %v1188_v41 }
 0x2b1   : > { %v3907_v35 = vpop.f32.mrb[24].mxu1 }
 0x2b2   : > { %v1170_v46 = vpop.f32.mrb[25].mxu1 }
 0x2b3   : > { %v3909_v52 = vpop.f32.mrb[26].mxu1 }
 0x2b4   : > { %v1189_v47 = vpack.c.bf16 %v3909_v52, %v3907_v35  ;;  %v1173_v15 = vpop.f32.mrb[27].mxu1 }
 0x2b6   : > { %2877 = vmatprep.mubr.bf16.mxu1 %v1189_v47 }
 0x2b9   : > { %v3913_v28 = vpop.f32.mrb[28].mxu1 }
 0x2ba   : > { %v1178_v2 = vpop.f32.mrb[29].mxu1 }
 0x2bb   : > { %v3915_v3 = vpop.f32.mrb[30].mxu1 }
 0x2bc   : > { %v1190_v42 = vpack.c.bf16 %v3915_v3, %v3913_v28  ;;  %v1181_v63 = vpop.f32.mrb[31].mxu1 }
 0x2be   : > { %2878 = vmatmul.mubr.bf16.gmra.mrb[44].mxu1 %v1190_v42 }
 0x2bf   : > { %2897 = vmatprep.mubr.bf16.mxu1 %v3044_v43 }
 0x361   : > { %v2867_v37 = vpop.f32.mrb[32].mxu1 }
 0x362   : > { %v1305_v49 = vadd.f32 %v2867_v37, %v3925_v48  ;;  %v1296_v54 = vpop.f32.mrb[33].mxu1 }
 0x363   : > { %v1297_v39 = vadd.f32 %v3925_v48, %v1296_v54  ;;  %v2868_v50 = vpop.f32.mrb[34].mxu1 }
 0x364   : > { %v1361_v51 = vadd.f32 %v1305_v49, %v1128_v16  ;;  %v1308_v57 = vadd.f32 %v2868_v50, %v3925_v48  ;;  %v1299_v58 = vpop.f32.mrb[35].mxu1 }
 0x365   : > { %v1359_v62 = vadd.f32 %v1297_v39, %v1120_v34  ;;  %v1300_v6 = vadd.f32 %v3925_v48, %v1299_v58 }
 0x366   : > { %v1362_v7 = vadd.f32 %v1308_v57, %v1131_v25  ;;  %v1377_v10 = vmax.f32 %v1361_v51, 0.0 }
 0x367   : > { %v1360_v9 = vadd.f32 %v1300_v6, %v1123_v61  ;;  %v1375_v12 = vmax.f32 %v1359_v62, 0.0 }
 0x368   : > { %v1378_v11 = vmax.f32 %v1362_v7, 0.0 }
 0x369   : > { %v1376_v18 = vmax.f32 %v1360_v9, 0.0 }
 0x36a   : > { %v1408_v19 = vpack.c.bf16 %v1378_v11, %v1377_v10  ;;  %v3050_v11 = vld [vmem:[%s4298_s6 + $0x30] sm:$0xff]  }
 0x36b   : > { %v1407_v21 = vpack.c.bf16 %v1376_v18, %v1375_v12  ;;  %v3051_v12 = vld [vmem:[%s4298_s6 + $0x38] sm:$0xff]   ;;  %v4317_v18 = vmov 0  }
 0x36d   : > { %2881 = vmatprep.subr.bf16.mxu1 %v1407_v21 }
 0x36e   : > { %2882 = vmatpush3.bf16.msra.mxu1 %v1407_v21 }
 0x36f   : > { %2883 = vmatprep.subr.bf16.mxu1 %v1408_v19 }
 0x371   : > { %v2871_v22 = vpop.f32.mrb[36].mxu1 }
 0x372   : > { %v1321_v30 = vadd.f32 %v2871_v22, %v3925_v48  ;;  %v1312_v31 = vpop.f32.mrb[37].mxu1  ;;  %2884 = vmatpush3.bf16.msra.mxu1 %v1408_v19 }
 0x373   : > { %v1313_v33 = vadd.f32 %v3925_v48, %v1312_v31  ;;  %v2872_v34 = vpop.f32.mrb[38].mxu1 }
 0x374   : > { %v1365_v60 = vadd.f32 %v1321_v30, %v1144_v32  ;;  %v1324_v61 = vadd.f32 %v2872_v34, %v3925_v48  ;;  %v1315_v0 = vpop.f32.mrb[39].mxu1 }
 0x375   : > { %v1363_v1 = vadd.f32 %v1313_v33, %v3886_v59  ;;  %v1316_v16 = vadd.f32 %v3925_v48, %v1315_v0 }
 0x376   : > { %v1366_v17 = vadd.f32 %v1324_v61, %v3892_v23  ;;  %v1381_v26 = vmax.f32 %v1365_v60, 0.0 }
 0x377   : > { %v1364_v25 = vadd.f32 %v1316_v16, %v3888_v8  ;;  %v1379_v5 = vmax.f32 %v1363_v1, 0.0 }
 0x378   : > { %v1382_v56 = vmax.f32 %v1366_v17, 0.0 }
 0x379   : > { %v1380_v29 = vmax.f32 %v1364_v25, 0.0 }
 0x37a   : > { %v1410_v55 = vpack.c.bf16 %v1382_v56, %v1381_v26 }
 0x37b   : > { %v1409_v53 = vpack.c.bf16 %v1380_v29, %v1379_v5 }
 0x37d   : > { %2885 = vmatprep.subr.bf16.mxu1 %v1409_v53 }
 0x37e   : > { %2886 = vmatpush3.bf16.msra.mxu1 %v1409_v53 }
 0x37f   : > { %2887 = vmatprep.subr.bf16.mxu1 %v1410_v55 }
 0x381   : > { %v2875_v32 = vpop.f32.mrb[40].mxu1 }
 0x382   : > { %v1337_v24 = vadd.f32 %v2875_v32, %v3925_v48  ;;  %v1328_v27 = vpop.f32.mrb[41].mxu1  ;;  %2888 = vmatpush3.bf16.msra.mxu1 %v1410_v55 }
 0x383   : > { %v1329_v59 = vadd.f32 %v3925_v48, %v1328_v27  ;;  %v2876_v44 = vpop.f32.mrb[42].mxu1 }
 0x384   : > { %v1369_v23 = vadd.f32 %v1337_v24, %v3901_v36  ;;  %v1340_v8 = vadd.f32 %v2876_v44, %v3925_v48  ;;  %v1331_v45 = vpop.f32.mrb[43].mxu1 }
 0x385   : > { %v1367_v4 = vadd.f32 %v1329_v59, %v3895_v20  ;;  %v1332_v40 = vadd.f32 %v3925_v48, %v1331_v45 }
 0x386   : > { %v1370_v41 = vadd.f32 %v1340_v8, %v3903_v14  ;;  %v1385_v46 = vmax.f32 %v1369_v23, 0.0 }
 0x387   : > { %v1368_v38 = vadd.f32 %v1332_v40, %v3897_v13  ;;  %v1383_v15 = vmax.f32 %v1367_v4, 0.0 }
 0x388   : > { %v1386_v47 = vmax.f32 %v1370_v41, 0.0 }
 0x389   : > { %v1384_v2 = vmax.f32 %v1368_v38, 0.0 }
 0x38a   : > { %v1412_v42 = vpack.c.bf16 %v1386_v47, %v1385_v46 }
 0x38b   : > { %v1411_v63 = vpack.c.bf16 %v1384_v2, %v1383_v15 }
 0x38d   : > { %2889 = vmatprep.subr.bf16.mxu1 %v1411_v63 }
 0x38e   : > { %2890 = vmatpush3.bf16.msra.mxu1 %v1411_v63 }
 0x38f   : > { %2891 = vmatprep.subr.bf16.mxu1 %v1412_v42 }
 0x391   : > { %v2879_v36 = vpop.f32.mrb[44].mxu1 }
 0x392   : > { %v1353_v43 = vadd.f32 %v2879_v36, %v3925_v48  ;;  %v1344_v37 = vpop.f32.mrb[45].mxu1  ;;  %2892 = vmatpush3.bf16.msra.mxu1 %v1412_v42 }
 0x393   : > { %v1345_v20 = vadd.f32 %v3925_v48, %v1344_v37  ;;  %v2880_v49 = vpop.f32.mrb[46].mxu1 }
 0x394   : > { %v1373_v14 = vadd.f32 %v1353_v43, %v3913_v28  ;;  %v1356_v13 = vadd.f32 %v2880_v49, %v3925_v48  ;;  %v1347_v54 = vpop.f32.mrb[47].mxu1  ;;  %v3045_v28 = vld [vmem:[%s4298_s6 + $0x8] sm:$0xff]  }
 0x395   : > { %v1371_v39 = vadd.f32 %v1345_v20, %v3907_v35  ;;  %v1348_v50 = vadd.f32 %v3925_v48, %v1347_v54  ;;  %v3046_v35 = vld [vmem:[%s4298_s6 + $0x10] sm:$0xff]   ;;  %v3049_v48 = vld [vmem:[%s4298_s6 + $0x28] sm:$0xff]  }
 0x396   : > { %v1374_v51 = vadd.f32 %v1356_v13, %v3915_v3  ;;  %v1389_v58 = vmax.f32 %v1373_v14, 0.0  ;;  %v3048_v3 = vld [vmem:[%s4298_s6 + $0x20] sm:$0xff]  }
 0x397   : > { %v1372_v57 = vadd.f32 %v1348_v50, %v3909_v52  ;;  %v1387_v6 = vmax.f32 %v1371_v39, 0.0  ;;  %v3047_v52 = vld [vmem:[%s4298_s6 + $0x18] sm:$0xff]  }
 0x398   : > { %v1390_v62 = vmax.f32 %v1374_v51, 0.0 }
 0x399   : > { %v1388_v7 = vmax.f32 %v1372_v57, 0.0 }
 0x39a   : > { %v1414_v9 = vpack.c.bf16 %v1390_v62, %v1389_v58 }
 0x39b   : > { %v1413_v10 = vpack.c.bf16 %v1388_v7, %v1387_v6 }
 0x39d   : > { %2893 = vmatprep.subr.bf16.mxu1 %v1413_v10 }
 0x39e   : > { %2894 = vmatpush3.bf16.msra.mxu1 %v1413_v10 }
 0x39f   : > { %2895 = vmatprep.subr.bf16.mxu1 %v1414_v9 }
 0x3a2   : > { %2896 = vmatpush3.bf16.msra.mxu1 %v1414_v9 }
 0x3a5   : > { %2898 = vmatmul.mubr.bf16.vlgmr.msra.gmra.mrb[48].mxu1 %v3045_v28 }
 0x3a6   : > { %2901 = vmatprep.mubr.bf16.mxu1 %v3046_v35 }
 0x3ad   : > { %2902 = vmatmul.mubr.bf16.gmra.mrb[52].mxu1 %v3047_v52 }
 0x3ae   : > { %2905 = vmatprep.mubr.bf16.mxu1 %v3048_v3 }
 0x3b5   : > { %2906 = vmatmul.mubr.bf16.gmra.mrb[56].mxu1 %v3049_v48 }
 0x3b6   : > { %2909 = vmatprep.mubr.bf16.mxu1 %v3050_v11 }
 0x3bd   : > { %2910 = vmatmul.mubr.bf16.gmra.mrb[60].mxu1 %v3051_v12 }
 0x3be   : > { %1857 = vmatprep.mubr.bf16.mxu1 %v4317_v18 }
 0x478   : > { %v2899_v19 = vpop.f32.mrb[48].mxu1 }
 0x479   : > { %v1497_v21 = vpop.f32.mrb[49].mxu1 }
 0x47a   : > { %v2900_v22 = vpop.f32.mrb[50].mxu1 }
 0x47b   : > { %v1561_v30 = vpack.c.bf16 %v2900_v22, %v2899_v19  ;;  %v1500_v31 = vpop.f32.mrb[51].mxu1 }
 0x47c   : > { %v1560_v33 = vpack.c.bf16 %v1500_v31, %v1497_v21 }
 0x47e   : > { %1601 = vmatmul.mubr.bf16.vlgmr.msra.gmra.mrb[64].mxu0 %v1560_v33 }
 0x47f   : > { %1610 = vmatprep.mubr.bf16.mxu0 %v4317_v18 }
 0x480   : > { %v2903_v34 = vpop.f32.mrb[52].mxu1 }
 0x481   : > { %v1513_v60 = vpop.f32.mrb[53].mxu1 }
 0x482   : > { %v2904_v61 = vpop.f32.mrb[54].mxu1 }
 0x483   : > { %v1563_v0 = vpack.c.bf16 %v2904_v61, %v2903_v34  ;;  %v1516_v1 = vpop.f32.mrb[55].mxu1 }
 0x484   : > { %v1562_v16 = vpack.c.bf16 %v1516_v1, %v1513_v60  ;;  %v3053_v1 = vld [vmem:[%s4299_s7 + $0x8] sm:$0xff]  }
 0x486   : > { %1611 = vmatmul.mubr.bf16.gmra.mrb[68].mxu0 %v1561_v30 }
 0x487   : > { %1620 = vmatprep.mubr.bf16.mxu0 %v4317_v18 }
 0x488   : > { %v2907_v17 = vpop.f32.mrb[56].mxu1 }
 0x489   : > { %v1529_v25 = vpop.f32.mrb[57].mxu1 }
 0x48a   : > { %v2908_v26 = vpop.f32.mrb[58].mxu1 }
 0x48b   : > { %v1565_v56 = vpack.c.bf16 %v2908_v26, %v2907_v17  ;;  %v1532_v5 = vpop.f32.mrb[59].mxu1  ;;  %v3055_v17 = vld [vmem:[%s4299_s7 + $0x18] sm:$0xff]   ;;  %v3057_v26 = vld [vmem:[%s4299_s7 + $0x28] sm:$0xff]  }
 0x48c   : > { %v1564_v29 = vpack.c.bf16 %v1532_v5, %v1529_v25  ;;  %v3056_v25 = vld [vmem:[%s4299_s7 + $0x20] sm:$0xff]   ;;  %v3059_v5 = vld [vmem:[%s4299_s7 + $0x38] sm:$0xff]  }
 0x48e   : > { %1621 = vmatmul.mubr.bf16.gmra.mrb[72].mxu0 %v1562_v16  ;;  %v3054_v16 = vld [vmem:[%s4299_s7 + $0x10] sm:$0xff]  }
 0x48f   : > { %1630 = vmatprep.mubr.bf16.mxu0 %v4317_v18 }
 0x490   : > { %v2911_v55 = vpop.f32.mrb[60].mxu1 }
 0x491   : > { %v1545_v53 = vpop.f32.mrb[61].mxu1 }
 0x492   : > { %v2912_v32 = vpop.f32.mrb[62].mxu1 }
 0x493   : > { %v1567_v24 = vpack.c.bf16 %v2912_v32, %v2911_v55  ;;  %v1548_v27 = vpop.f32.mrb[63].mxu1  ;;  %v3061_v55 = vld [vmem:[%s4299_s7 + $0x48] sm:$0xff]   ;;  %v3063_v32 = vld [vmem:[%s4299_s7 + $0x58] sm:$0xff]  }
 0x494   : > { %v1566_v59 = vpack.c.bf16 %v1548_v27, %v1545_v53  ;;  %v3062_v53 = vld [vmem:[%s4299_s7 + $0x50] sm:$0xff]   ;;  %v3065_v27 = vld [vmem:[%s4299_s7 + $0x68] sm:$0xff]  }
 0x496   : > { %1631 = vmatmul.mubr.bf16.gmra.mrb[76].mxu0 %v1563_v0  ;;  %v3052_v0 = vld [vmem:[%s4299_s7] sm:$0xff]  }
 0x497   : > { %1640 = vmatprep.mubr.bf16.mxu0 %v4317_v18 }
 0x49e   : > { %1641 = vmatmul.mubr.bf16.gmra.mrb[80].mxu0 %v1564_v29  ;;  %v3060_v29 = vld [vmem:[%s4299_s7 + $0x40] sm:$0xff]  }
 0x49f   : > { %1650 = vmatprep.mubr.bf16.mxu0 %v4317_v18 }
 0x4a6   : > { %1651 = vmatmul.mubr.bf16.gmra.mrb[84].mxu0 %v1565_v56  ;;  %v3058_v56 = vld [vmem:[%s4299_s7 + $0x30] sm:$0xff]  }
 0x4a7   : > { %1660 = vmatprep.mubr.bf16.mxu0 %v4317_v18 }
 0x4ae   : > { %1661 = vmatmul.mubr.bf16.gmra.mrb[88].mxu0 %v1566_v59  ;;  %v3066_v59 = vld [vmem:[%s4299_s7 + $0x70] sm:$0xff]  }
 0x4af   : > { %1670 = vmatprep.mubr.bf16.mxu0 %v4317_v18 }
 0x4b6   : > { %1671 = vmatmul.mubr.bf16.gmra.mrb[92].mxu0 %v1567_v24  ;;  %v3064_v24 = vld [vmem:[%s4299_s7 + $0x60] sm:$0xff]  }
 0x551   : > { %v1602_v44 = vpop.f32.mrb[64].mxu0 }
 0x552   : > { %v1604_v23 = vpop.f32.mrb[65].mxu0 }
 0x553   : > { %v1606_v8 = vpop.f32.mrb[66].mxu0 }
 0x554   : > { %v1713_v45 = vpack.c.bf16 %v1606_v8, %v1602_v44  ;;  %v1608_v4 = vpop.f32.mrb[67].mxu0  ;;  %v3067_v44 = vld [vmem:[%s4299_s7 + $0x78] sm:$0xff]   ;;  %v2058_v8 = vpop.permute.xlu1 %2057 }
 0x555   : > { %v1714_v40 = vpack.c.bf16 %v1608_v4, %v1604_v23  ;;  %v2053_v23 = vpop.permute.xlu0 %2052 }
 0x557   : > { %1825 = vmatprep.subr.bf16.mxu1 %v1714_v40 }
 0x558   : > { %1826 = vmatpush1.bf16.msra.mxu1 %v1713_v45  ;;  %v2378_v4 = vpop.permute.xlu1 %2377 }
 0x559   : > { %v1612_v41 = vpop.f32.mrb[68].mxu0  ;;  %v2373_v45 = vpop.permute.xlu0 %2372 }
 0x55a   : > { %v1614_v38 = vpop.f32.mrb[69].mxu0 }
 0x55b   : > { %v1616_v46 = vpop.f32.mrb[70].mxu0 }
 0x55c   : > { %v1715_v47 = vpack.c.bf16 %v1616_v46, %v1612_v41  ;;  %v1618_v15 = vpop.f32.mrb[71].mxu0  ;;  %v2068_v41 = vpop.permute.xlu1 %2067 }
 0x55d   : > { %v1716_v2 = vpack.c.bf16 %v1618_v15, %v1614_v38  ;;  %v2063_v40 = vpop.permute.xlu0 %2062 }
 0x55f   : > { %1827 = vmatprep.subr.bf16.mxu1 %v1716_v2 }
 0x560   : > { %1828 = vmatpush1.bf16.msra.mxu1 %v1715_v47  ;;  %v4048_v46 = vpop.permute.xlu1 %2387 }
 0x561   : > { %v1622_v42 = vpop.f32.mrb[72].mxu0  ;;  %v4046_v38 = vpop.permute.xlu0 %2382 }
 0x562   : > { %v1624_v63 = vpop.f32.mrb[73].mxu0 }
 0x563   : > { %v1626_v36 = vpop.f32.mrb[74].mxu0 }
 0x564   : > { %v1717_v43 = vpack.c.bf16 %v1626_v36, %v1622_v42  ;;  %v1628_v37 = vpop.f32.mrb[75].mxu0  ;;  %v4052_v15 = vpop.permute.xlu1 %2077 }
 0x565   : > { %v1718_v20 = vpack.c.bf16 %v1628_v37, %v1624_v63  ;;  %v4050_v47 = vpop.permute.xlu0 %2072 }
 0x567   : > { %1829 = vmatprep.subr.bf16.mxu1 %v1718_v20 }
 0x568   : > { %1830 = vmatpush1.bf16.msra.mxu1 %v1717_v43  ;;  %v4056_v2 = vpop.permute.xlu1 %2397 }
 0x569   : > { %v1632_v49 = vpop.f32.mrb[76].mxu0 }
 0x56a   : > { %v1634_v14 = vpop.f32.mrb[77].mxu0 }
 0x56b   : > { %v1636_v13 = vpop.f32.mrb[78].mxu0 }
 0x56c   : > { %v1719_v54 = vpack.c.bf16 %v1636_v13, %v1632_v49  ;;  %v1638_v39 = vpop.f32.mrb[79].mxu0  ;;  %v4060_v63 = vpop.permute.xlu1 %2087 }
 0x56d   : > { %v1720_v50 = vpack.c.bf16 %v1638_v39, %v1634_v14 }
 0x56f   : > { %1831 = vmatprep.subr.bf16.mxu1 %v1720_v50 }
 0x570   : > { %1832 = vmatpush1.bf16.msra.mxu1 %v1719_v54  ;;  %v4064_v43 = vpop.permute.xlu1 %2407 }
 0x571   : > { %v1642_v51 = vpop.f32.mrb[80].mxu0 }
 0x572   : > { %v1644_v57 = vpop.f32.mrb[81].mxu0 }
 0x573   : > { %v1646_v58 = vpop.f32.mrb[82].mxu0 }
 0x574   : > { %v1721_v62 = vpack.c.bf16 %v1646_v58, %v1642_v51  ;;  %v1648_v6 = vpop.f32.mrb[83].mxu0  ;;  %v4068_v20 = vpop.permute.xlu1 %2097 }
 0x575   : > { %v1722_v7 = vpack.c.bf16 %v1648_v6, %v1644_v57 }
 0x577   : > { %1833 = vmatprep.subr.bf16.mxu1 %v1722_v7 }
 0x578   : > { %1834 = vmatpush1.bf16.msra.mxu1 %v1721_v62  ;;  %v4072_v14 = vpop.permute.xlu1 %2417  ;;  %v3068_v62 = vld [vmem:[%s3224_s26] sm:$0xff] }
 0x579   : > { %v1652_v9 = vpop.f32.mrb[84].mxu0 }
 0x57a   : > { %v1654_v10 = vpop.f32.mrb[85].mxu0 }
 0x57b   : > { %v1656_v28 = vpop.f32.mrb[86].mxu0 }
 0x57c   : > { %v1723_v35 = vpack.c.bf16 %v1656_v28, %v1652_v9  ;;  %v1658_v52 = vpop.f32.mrb[87].mxu0  ;;  %v4076_v54 = vpop.permute.xlu1 %2107 }
 0x57d   : > { %v1724_v3 = vpack.c.bf16 %v1658_v52, %v1654_v10  ;;  %v3069_v10 = vld [vmem:[%s3224_s26 + $0x8] sm:$0xff] }
 0x57f   : > { %1835 = vmatprep.subr.bf16.mxu1 %v1724_v3  ;;  %v3070_v3 = vld [vmem:[%s3224_s26 + $0x10] sm:$0xff] }
 0x580   : > { %1836 = vmatpush1.bf16.msra.mxu1 %v1723_v35 }
 0x581   : > { %v1662_v48 = vpop.f32.mrb[88].mxu0 }
 0x582   : > { %v1664_v11 = vpop.f32.mrb[89].mxu0 }
 0x583   : > { %v1666_v12 = vpop.f32.mrb[90].mxu0 }
 0x584   : > { %v1725_v19 = vpack.c.bf16 %v1666_v12, %v1662_v48  ;;  %v1668_v21 = vpop.f32.mrb[91].mxu0  ;;  %v3071_v12 = vld [vmem:[%s3224_s26 + $0x18] sm:$0xff] }
 0x585   : > { %v1726_v22 = vpack.c.bf16 %v1668_v21, %v1664_v11  ;;  %v4084_v11 = vpop.permute.xlu1 %2427 }
 0x587   : > { %1837 = vmatprep.subr.bf16.mxu1 %v1726_v22 }
 0x588   : > { %1838 = vmatpush1.bf16.msra.mxu1 %v1725_v19 }
 0x589   : > { %v1672_v30 = vpop.f32.mrb[92].mxu0 }
 0x58a   : > { %v1674_v31 = vpop.f32.mrb[93].mxu0 }
 0x58b   : > { %v1676_v33 = vpop.f32.mrb[94].mxu0 }
 0x58c   : > { %v1727_v34 = vpack.c.bf16 %v1676_v33, %v1672_v30  ;;  %v1678_v60 = vpop.f32.mrb[95].mxu0  ;;  %v2595_v30 = vld [vmem:[%s4092_s20 + $0x8] sm:$0xff] }
 0x58d   : > { %v1728_v61 = vpack.c.bf16 %v1678_v60, %v1674_v31  ;;  %2660 = vmatprep.mubr.f32.mxu0 %v2595_v30 }
 0x58f   : > { %1839 = vmatprep.subr.bf16.mxu1 %v1728_v61 }
 0x590   : > { %1840 = vmatpush1.bf16.msra.mxu1 %v1727_v34 }
 0x593   : > { %1858 = vmatmul.mubr.bf16.vlgmr.msra.gmra.mrb[64].mxu1 %v3052_v0 }
 0x594   : > { %1867 = vmatprep.mubr.bf16.mxu1 %v4317_v18 }
 0x59b   : > { %1868 = vmatmul.mubr.bf16.gmra.mrb[68].mxu1 %v3053_v1 }
 0x59c   : > { %1877 = vmatprep.mubr.bf16.mxu1 %v4317_v18 }
 0x5a3   : > { %1878 = vmatmul.mubr.bf16.gmra.mrb[72].mxu1 %v3054_v16 }
 0x5a4   : > { %1887 = vmatprep.mubr.bf16.mxu1 %v4317_v18 }
 0x5ab   : > { %1888 = vmatmul.mubr.bf16.gmra.mrb[76].mxu1 %v3055_v17 }
 0x5ac   : > { %1897 = vmatprep.mubr.bf16.mxu1 %v4317_v18 }
 0x5b3   : > { %1898 = vmatmul.mubr.bf16.gmra.mrb[80].mxu1 %v3056_v25 }
 0x5b4   : > { %1907 = vmatprep.mubr.bf16.mxu1 %v4317_v18 }
 0x5bb   : > { %1908 = vmatmul.mubr.bf16.gmra.mrb[84].mxu1 %v3057_v26  ;;  %v3072_v26 = vld [vmem:[%s3224_s26 + $0x20] sm:$0xff] }
 0x5bc   : > { %1917 = vmatprep.mubr.bf16.mxu1 %v4317_v18 }
 0x5c3   : > { %1918 = vmatmul.mubr.bf16.gmra.mrb[88].mxu1 %v3058_v56 }
 0x5c4   : > { %1927 = vmatprep.mubr.bf16.mxu1 %v4317_v18 }
 0x5cb   : > { %1928 = vmatmul.mubr.bf16.gmra.mrb[92].mxu1 %v3059_v5 }
 0x5cc   : > { %1937 = vmatprep.mubr.bf16.mxu1 %v4317_v18 }
 0x5d3   : > { %1938 = vmatmul.mubr.bf16.gmra.mrb[96].mxu1 %v3060_v29 }
 0x5d4   : > { %1947 = vmatprep.mubr.bf16.mxu1 %v4317_v18 }
 0x5db   : > { %1948 = vmatmul.mubr.bf16.gmra.mrb[100].mxu1 %v3061_v55  ;;  %v4098_v55 = vpop.permute.xlu1 %2117 }
 0x5dc   : > { %1957 = vmatprep.mubr.bf16.mxu1 %v4317_v18 }
 0x5e3   : > { %1958 = vmatmul.mubr.bf16.gmra.mrb[104].mxu1 %v3062_v53  ;;  %v3073_v53 = vld [vmem:[%s3224_s26 + $0x28] sm:$0xff] }
 0x5e4   : > { %1967 = vmatprep.mubr.bf16.mxu1 %v4317_v18 }
 0x5eb   : > { %1968 = vmatmul.mubr.bf16.gmra.mrb[108].mxu1 %v3063_v32 }
 0x5ec   : > { %1977 = vmatprep.mubr.bf16.mxu1 %v4317_v18 }
 0x5f3   : > { %1978 = vmatmul.mubr.bf16.gmra.mrb[112].mxu1 %v3064_v24 }
 0x5f4   : > { %1987 = vmatprep.mubr.bf16.mxu1 %v4317_v18 }
 0x5fb   : > { %1988 = vmatmul.mubr.bf16.gmra.mrb[116].mxu1 %v3065_v27  ;;  %v3074_v27 = vld [vmem:[%s3224_s26 + $0x30] sm:$0xff] }
 0x5fc   : > { %1997 = vmatprep.mubr.bf16.mxu1 %v4317_v18 }
 0x603   : > { %1998 = vmatmul.mubr.bf16.gmra.mrb[120].mxu1 %v3066_v59 }
 0x604   : > { %2007 = vmatprep.mubr.bf16.mxu1 %v4317_v18  ;;  %v4054_v18 = vpop.permute.xlu0 %2392 }
 0x608   : > { %v4058_v42 = vpop.permute.xlu0 %2082 }
 0x60b   : > { %2008 = vmatmul.mubr.bf16.gmra.mrb[124].mxu1 %v3067_v44  ;;  %v3075_v44 = vld [vmem:[%s3224_s26 + $0x38] sm:$0xff] }
 0x60c   : > { %v4062_v36 = vpop.permute.xlu0 %2402 }
 0x610   : > { %v4066_v37 = vpop.permute.xlu0 %2092 }
 0x614   : > { %v4070_v49 = vpop.permute.xlu0 %2412 }
 0x618   : > { %v4074_v13 = vpop.permute.xlu0 %2102 }
 0x61c   : > { %v4080_v52 = vpop.permute.xlu0 %2422 }
 0x620   : > { %v4095_v25 = vpop.permute.xlu0 %2112 }
 0x666   : > { %v1859_v39 = vpop.f32.mrb[64].mxu1 }
 0x667   : > { %v2210_v50 = vmul.f32 %v2053_v23, %v1859_v39  ;;  %v1861_v51 = vpop.f32.mrb[65].mxu1 }
 0x668   : > { %v2211_v57 = vmul.f32 %v2053_v23, %v1861_v51  ;;  %v1863_v58 = vpop.f32.mrb[66].mxu1 }
 0x669   : > { %v2274_v6 = vadd.f32 %v3068_v62, %v2210_v50  ;;  %v2212_v7 = vmul.f32 %v2058_v8, %v1863_v58  ;;  %v1865_v9 = vpop.f32.mrb[67].mxu1  ;;  %v4107_v50 = vpop.permute.xlu0 %2432 }
 0x66a   : > { %v2275_v28 = vadd.f32 %v3069_v10, %v2211_v57  ;;  %v2213_v35 = vmul.f32 %v2058_v8, %v1865_v9  ;;  %v4110_v58 = vpop.permute.xlu1 %2437  ;;  %v3076_v9 = vld [vmem:[%s3224_s26 + $0x40] sm:$0xff] }
 0x66b   : > { %v2276_v48 = vadd.f32 %v3070_v3, %v2212_v7  ;;  %v2530_v21 = vadd.f32 %v2373_v45, %v2274_v6 }
 0x66c   : > { %v2277_v19 = vadd.f32 %v3071_v12, %v2213_v35  ;;  %v2531_v31 = vadd.f32 %v2373_v45, %v2275_v28  ;;  %v3077_v28 = vld [vmem:[%s3224_s26 + $0x48] sm:$0xff] }
 0x66d   : > { %v2532_v22 = vadd.f32 %v2378_v4, %v2276_v48  ;;  %v3078_v48 = vld [vmem:[%s3224_s26 + $0x50] sm:$0xff] }
 0x66e   : > { %v2533_v33 = vadd.f32 %v2378_v4, %v2277_v19  ;;  %v1869_v34 = vpop.f32.mrb[68].mxu1  ;;  %v3079_v19 = vld [vmem:[%s3224_s26 + $0x58] sm:$0xff] }
 0x66f   : > { %v2915_v60 = vpack.c.bf16 %v2532_v22, %v2530_v21  ;;  %v2214_v61 = vmul.f32 %v2063_v40, %v1869_v34  ;;  %v1871_v0 = vpop.f32.mrb[69].mxu1  ;;  %v4119_v22 = vpop.permute.xlu0 %2122 }
 0x670   : > { %v2215_v1 = vmul.f32 %v2063_v40, %v1871_v0  ;;  %v1873_v16 = vpop.f32.mrb[70].mxu1  ;;  %v2913_v17 = vpack.c.bf16 %v2533_v33, %v2531_v31  ;;  %v4123_v31 = vpop.permute.xlu1 %2127 }
 0x671   : > { %v2278_v56 = vadd.f32 %v3072_v26, %v2214_v61  ;;  %v2216_v5 = vmul.f32 %v2068_v41, %v1873_v16  ;;  %v1875_v29 = vpop.f32.mrb[71].mxu1  ;;  %v3080_v26 = vld [vmem:[%s3224_s26 + $0x60] sm:$0xff] }
 0x672   : > { %v2279_v32 = vadd.f32 %v3073_v53, %v2215_v1  ;;  %v2217_v24 = vmul.f32 %v2068_v41, %v1875_v29  ;;  %2914 = vmatprep.subr.bf16.mxu0 %v2913_v17  ;;  %v3081_v53 = vld [vmem:[%s3224_s26 + $0x68] sm:$0xff] }
 0x673   : > { %v2280_v59 = vadd.f32 %v3074_v27, %v2216_v5  ;;  %2916 = vmatpush1.bf16.xpose.msra.mxu0 %v2915_v60  ;;  %v2534_v8 = vadd.f32 %v4046_v38, %v2278_v56 }
 0x674   : > { %v2281_v23 = vadd.f32 %v3075_v44, %v2217_v24  ;;  %v2535_v4 = vadd.f32 %v4046_v38, %v2279_v32  ;;  %v4133_v32 = vpop.permute.xlu0 %2442  ;;  %v3082_v24 = vld [vmem:[%s3224_s26 + $0x70] sm:$0xff] }
 0x675   : > { %v2536_v45 = vadd.f32 %v4048_v46, %v2280_v59  ;;  %v3083_v59 = vld [vmem:[%s3224_s26 + $0x78] sm:$0xff] }
 0x676   : > { %v2537_v40 = vadd.f32 %v4048_v46, %v2281_v23  ;;  %v1879_v39 = vpop.f32.mrb[72].mxu1 }
 0x677   : > { %v2919_v41 = vpack.c.bf16 %v2536_v45, %v2534_v8  ;;  %v2218_v51 = vmul.f32 %v4050_v47, %v1879_v39  ;;  %v1881_v57 = vpop.f32.mrb[73].mxu1 }
 0x678   : > { %v2219_v62 = vmul.f32 %v4050_v47, %v1881_v57  ;;  %v1883_v6 = vpop.f32.mrb[74].mxu1  ;;  %v2917_v7 = vpack.c.bf16 %v2537_v40, %v2535_v4 }
 0x679   : > { %v2282_v10 = vadd.f32 %v3076_v9, %v2218_v51  ;;  %v2220_v38 = vmul.f32 %v4052_v15, %v1883_v6  ;;  %v1885_v46 = vpop.f32.mrb[75].mxu1  ;;  %v4145_v6 = vpop.permute.xlu0 %2132 }
 0x67a   : > { %v2283_v35 = vadd.f32 %v3077_v28, %v2219_v62  ;;  %v2221_v3 = vmul.f32 %v4052_v15, %v1885_v46  ;;  %2918 = vmatprep.subr.bf16.mxu0 %v2917_v7  ;;  %v3084_v7 = vld [vmem:[%s3224_s26 + $0x80] sm:$0xff] }
 0x67b   : > { %v2284_v12 = vadd.f32 %v3078_v48, %v2220_v38  ;;  %2920 = vmatpush1.bf16.xpose.msra.mxu0 %v2919_v41  ;;  %v2538_v47 = vadd.f32 %v4054_v18, %v2282_v10 }
 0x67c   : > { %v2285_v21 = vadd.f32 %v3079_v19, %v2221_v3  ;;  %v2539_v33 = vadd.f32 %v4054_v18, %v2283_v35  ;;  %v3086_v35 = vld [vmem:[%s3224_s26 + $0x90] sm:$0xff] }
 0x67d   : > { %v2540_v30 = vadd.f32 %v4056_v2, %v2284_v12 }
 0x67e   : > { %v2541_v15 = vadd.f32 %v4056_v2, %v2285_v21  ;;  %v1889_v34 = vpop.f32.mrb[76].mxu1 }
 0x67f   : > { %v2923_v60 = vpack.c.bf16 %v2540_v30, %v2538_v47  ;;  %v2222_v61 = vmul.f32 %v4058_v42, %v1889_v34  ;;  %v1891_v0 = vpop.f32.mrb[77].mxu1 }
 0x680   : > { %v2223_v1 = vmul.f32 %v4058_v42, %v1891_v0  ;;  %v1893_v16 = vpop.f32.mrb[78].mxu1  ;;  %v2921_v17 = vpack.c.bf16 %v2541_v15, %v2539_v33  ;;  %v4136_v42 = vpop.permute.xlu1 %2447 }
 0x681   : > { %v2286_v56 = vadd.f32 %v3080_v26, %v2222_v61  ;;  %v2224_v5 = vmul.f32 %v4060_v63, %v1893_v16  ;;  %v1895_v29 = vpop.f32.mrb[79].mxu1  ;;  %v4159_v33 = vpop.permute.xlu0 %2452  ;;  %v3088_v16 = vld [vmem:[%s3224_s26 + $0xa0] sm:$0xff]  ;;  %v3089_v26 = vld [vmem:[%s3224_s26 + $0xa8] sm:$0xff] }
 0x682   : > { %v2287_v18 = vadd.f32 %v3081_v53, %v2223_v1  ;;  %v2225_v2 = vmul.f32 %v4060_v63, %v1895_v29  ;;  %2922 = vmatprep.subr.bf16.mxu0 %v2921_v17  ;;  %v3090_v29 = vld [vmem:[%s3224_s26 + $0xb0] sm:$0xff] }
 0x683   : > { %v2288_v27 = vadd.f32 %v3082_v24, %v2224_v5  ;;  %2924 = vmatpush1.bf16.xpose.msra.mxu0 %v2923_v60  ;;  %v2542_v23 = vadd.f32 %v4062_v36, %v2286_v56 }
 0x684   : > { %v2289_v44 = vadd.f32 %v3083_v59, %v2225_v2  ;;  %v2543_v45 = vadd.f32 %v4062_v36, %v2287_v18  ;;  %v4149_v38 = vpop.permute.xlu1 %2137  ;;  %v3091_v18 = vld [vmem:[%s3224_s26 + $0xb8] sm:$0xff] }
 0x685   : > { %v2544_v8 = vadd.f32 %v4064_v43, %v2288_v27  ;;  %v4171_v24 = vpop.permute.xlu0 %2142 }
 0x686   : > { %v2545_v63 = vadd.f32 %v4064_v43, %v2289_v44  ;;  %v1899_v4 = vpop.f32.mrb[80].mxu1  ;;  %v3085_v43 = vld [vmem:[%s3224_s26 + $0x88] sm:$0xff] }
 0x687   : > { %v2927_v40 = vpack.c.bf16 %v2544_v8, %v2542_v23  ;;  %v2226_v39 = vmul.f32 %v4066_v37, %v1899_v4  ;;  %v1901_v41 = vpop.f32.mrb[81].mxu1 }
 0x688   : > { %v2227_v51 = vmul.f32 %v4066_v37, %v1901_v41  ;;  %v1903_v57 = vpop.f32.mrb[82].mxu1  ;;  %v2925_v62 = vpack.c.bf16 %v2545_v63, %v2543_v45  ;;  %v3087_v37 = vld [vmem:[%s3224_s26 + $0x98] sm:$0xff]  ;;  %v4162_v60 = vpop.permute.xlu1 %2457  ;;  %v3092_v41 = vld [vmem:[%s3224_s26 + $0xc0] sm:$0xff] }
 0x689   : > { %v2290_v9 = vadd.f32 %v3084_v7, %v2226_v39  ;;  %v2228_v10 = vmul.f32 %v4068_v20, %v1903_v57  ;;  %v1905_v36 = vpop.f32.mrb[83].mxu1  ;;  %v3093_v7 = vld [vmem:[%s3224_s26 + $0xc8] sm:$0xff] }
 0x68a   : > { %v2291_v46 = vadd.f32 %v3085_v43, %v2227_v51  ;;  %v2229_v28 = vmul.f32 %v4068_v20, %v1905_v36  ;;  %2926 = vmatprep.subr.bf16.mxu0 %v2925_v62  ;;  %v3095_v43 = vld [vmem:[%s3224_s26 + $0xd8] sm:$0xff] }
 0x68b   : > { %v2292_v3 = vadd.f32 %v3086_v35, %v2228_v10  ;;  %2928 = vmatpush1.bf16.xpose.msra.mxu0 %v2927_v40  ;;  %v2546_v12 = vadd.f32 %v4070_v49, %v2290_v9  ;;  %v4185_v9 = vpop.permute.xlu0 %2462  ;;  %v3094_v10 = vld [vmem:[%s3224_s26 + $0xd0] sm:$0xff] }
 0x68c   : > { %v2293_v48 = vadd.f32 %v3087_v37, %v2229_v28  ;;  %v2547_v21 = vadd.f32 %v4070_v49, %v2291_v46  ;;  %v4175_v59 = vpop.permute.xlu1 %2147 }
 0x68d   : > { %v2548_v19 = vadd.f32 %v4072_v14, %v2292_v3 }
 0x68e   : > { %v2549_v47 = vadd.f32 %v4072_v14, %v2293_v48  ;;  %v1909_v30 = vpop.f32.mrb[84].mxu1 }
 0x68f   : > { %v2931_v20 = vpack.c.bf16 %v2548_v19, %v2546_v12  ;;  %v2230_v15 = vmul.f32 %v4074_v13, %v1909_v30  ;;  %v1911_v34 = vpop.f32.mrb[85].mxu1 }
 0x690   : > { %v2231_v61 = vmul.f32 %v4074_v13, %v1911_v34  ;;  %v1913_v0 = vpop.f32.mrb[86].mxu1  ;;  %v2929_v1 = vpack.c.bf16 %v2549_v47, %v2547_v21 }
 0x691   : > { %v2294_v17 = vadd.f32 %v3088_v16, %v2230_v15  ;;  %v2232_v49 = vmul.f32 %v4076_v54, %v1913_v0  ;;  %v1915_v14 = vpop.f32.mrb[87].mxu1  ;;  %v3096_v15 = vld [vmem:[%s3224_s26 + $0xe0] sm:$0xff] }
 0x692   : > { %v2295_v56 = vadd.f32 %v3089_v26, %v2231_v61  ;;  %v2233_v5 = vmul.f32 %v4076_v54, %v1915_v14  ;;  %2930 = vmatprep.subr.bf16.mxu0 %v2929_v1 }
 0x693   : > { %v2296_v53 = vadd.f32 %v3090_v29, %v2232_v49  ;;  %2932 = vmatpush1.bf16.xpose.msra.mxu0 %v2931_v20  ;;  %v2550_v13 = vadd.f32 %v4080_v52, %v2294_v17  ;;  %v4197_v20 = vpop.permute.xlu0 %2152  ;;  %v3098_v17 = vld [vmem:[%s3224_s26 + $0xf0] sm:$0xff] }
 0x694   : > { %v2297_v2 = vadd.f32 %v3091_v18, %v2233_v5  ;;  %v2551_v44 = vadd.f32 %v4080_v52, %v2295_v56 }
 0x695   : > { %v2552_v27 = vadd.f32 %v4084_v11, %v2296_v53 }
 0x696   : > { %v2553_v54 = vadd.f32 %v4084_v11, %v2297_v2  ;;  %v1919_v23 = vpop.f32.mrb[88].mxu1 }
 0x697   : > { %v2935_v8 = vpack.c.bf16 %v2552_v27, %v2550_v13  ;;  %v2234_v45 = vmul.f32 %v4095_v25, %v1919_v23  ;;  %v1921_v63 = vpop.f32.mrb[89].mxu1  ;;  %v4211_v18 = vpop.permute.xlu0 %2472 }
 0x698   : > { %v2235_v4 = vmul.f32 %v4095_v25, %v1921_v63  ;;  %v1923_v40 = vpop.f32.mrb[90].mxu1  ;;  %v2933_v39 = vpack.c.bf16 %v2553_v54, %v2551_v44  ;;  %v4188_v25 = vpop.permute.xlu1 %2467  ;;  %v3101_v63 = vld [vmem:[%s3224_s26 + $0x108] sm:$0xff] }
 0x699   : > { %v2298_v51 = vadd.f32 %v3092_v41, %v2234_v45  ;;  %v2236_v57 = vmul.f32 %v4098_v55, %v1923_v40  ;;  %v1925_v62 = vpop.f32.mrb[91].mxu1 }
 0x69a   : > { %v2299_v52 = vadd.f32 %v3093_v7, %v2235_v4  ;;  %v2237_v11 = vmul.f32 %v4098_v55, %v1925_v62  ;;  %2934 = vmatprep.subr.bf16.mxu0 %v2933_v39  ;;  %v3102_v39 = vld [vmem:[%s3224_s26 + $0x110] sm:$0xff] }
 0x69b   : > { %v2300_v36 = vadd.f32 %v3094_v10, %v2236_v57  ;;  %2936 = vmatpush1.bf16.xpose.msra.mxu0 %v2935_v8  ;;  %v2554_v28 = vadd.f32 %v4107_v50, %v2298_v51  ;;  %v3100_v8 = vld [vmem:[%s3224_s26 + $0x100] sm:$0xff]  ;;  %v3103_v51 = vld [vmem:[%s3224_s26 + $0x118] sm:$0xff]  ;;  %v4223_v62 = vpop.permute.xlu0 %2162 }
 0x69c   : > { %v2301_v46 = vadd.f32 %v3095_v43, %v2237_v11  ;;  %v2555_v3 = vadd.f32 %v4107_v50, %v2299_v52  ;;  %v4201_v0 = vpop.permute.xlu1 %2157 }
 0x69d   : > { %v2556_v35 = vadd.f32 %v4110_v58, %v2300_v36 }
 0x69e   : > { %v2557_v55 = vadd.f32 %v4110_v58, %v2301_v46  ;;  %v1929_v37 = vpop.f32.mrb[92].mxu1  ;;  %v3097_v58 = vld [vmem:[%s3224_s26 + $0xe8] sm:$0xff] }
 0x69f   : > { %v2939_v48 = vpack.c.bf16 %v2556_v35, %v2554_v28  ;;  %v2238_v12 = vmul.f32 %v4119_v22, %v1929_v37  ;;  %v1931_v19 = vpop.f32.mrb[93].mxu1 }
 0x6a0   : > { %v2239_v21 = vmul.f32 %v4119_v22, %v1931_v19  ;;  %v1933_v47 = vpop.f32.mrb[94].mxu1  ;;  %v2937_v30 = vpack.c.bf16 %v2557_v55, %v2555_v3  ;;  %v3099_v22 = vld [vmem:[%s3224_s26 + $0xf8] sm:$0xff]  ;;  %v4214_v27 = vpop.permute.xlu1 %2477  ;;  %v3104_v55 = vld [vmem:[%s3224_s26 + $0x120] sm:$0xff]  ;;  %v3105_v19 = vld [vmem:[%s3224_s26 + $0x128] sm:$0xff] }
 0x6a1   : > { %v2302_v34 = vadd.f32 %v3096_v15, %v2238_v12  ;;  %v2240_v61 = vmul.f32 %v4123_v31, %v1933_v47  ;;  %v1935_v50 = vpop.f32.mrb[95].mxu1  ;;  %v3106_v47 = vld [vmem:[%s3224_s26 + $0x130] sm:$0xff]  ;;  %v3107_v15 = vld [vmem:[%s3224_s26 + $0x138] sm:$0xff] }
 0x6a2   : > { %v2303_v1 = vadd.f32 %v3097_v58, %v2239_v21  ;;  %v2241_v16 = vmul.f32 %v4123_v31, %v1935_v50  ;;  %2938 = vmatprep.subr.bf16.mxu0 %v2937_v30  ;;  %v4237_v21 = vpop.permute.xlu0 %2482 }
 0x6a3   : > { %v2304_v49 = vadd.f32 %v3098_v17, %v2240_v61  ;;  %2940 = vmatpush1.bf16.xpose.msra.mxu0 %v2939_v48  ;;  %v2558_v26 = vadd.f32 %v4133_v32, %v2302_v34 }
 0x6a4   : > { %v2305_v14 = vadd.f32 %v3099_v22, %v2241_v16  ;;  %v2559_v5 = vadd.f32 %v4133_v32, %v2303_v1  ;;  %v4227_v52 = vpop.permute.xlu1 %2167 }
 0x6a5   : > { %v2560_v56 = vadd.f32 %v4136_v42, %v2304_v49 }
 0x6a6   : > { %v2561_v29 = vadd.f32 %v4136_v42, %v2305_v14  ;;  %v1939_v53 = vpop.f32.mrb[96].mxu1 }
 0x6a7   : > { %v2943_v31 = vpack.c.bf16 %v2560_v56, %v2558_v26  ;;  %v2242_v2 = vmul.f32 %v4145_v6, %v1939_v53  ;;  %v1941_v13 = vpop.f32.mrb[97].mxu1  ;;  %v2173_v56 = vpop.permute.xlu0 %2172 }
 0x6a8   : > { %v2243_v44 = vmul.f32 %v4145_v6, %v1941_v13  ;;  %v1943_v54 = vpop.f32.mrb[98].mxu1  ;;  %v2941_v23 = vpack.c.bf16 %v2561_v29, %v2559_v5  ;;  %v3108_v5 = vld [vmem:[%s3224_s26 + $0x140] sm:$0xff] }
 0x6a9   : > { %v2306_v45 = vadd.f32 %v3100_v8, %v2242_v2  ;;  %v2244_v32 = vmul.f32 %v4149_v38, %v1943_v54  ;;  %v1945_v42 = vpop.f32.mrb[99].mxu1  ;;  %v3109_v2 = vld [vmem:[%s3224_s26 + $0x148] sm:$0xff] }
 0x6aa   : > { %v2307_v4 = vadd.f32 %v3101_v63, %v2243_v44  ;;  %v2245_v40 = vmul.f32 %v4149_v38, %v1945_v42  ;;  %2942 = vmatprep.subr.bf16.mxu0 %v2941_v23  ;;  %v3110_v44 = vld [vmem:[%s3224_s26 + $0x150] sm:$0xff] }
 0x6ab   : > { %v2308_v41 = vadd.f32 %v3102_v39, %v2244_v32  ;;  %2944 = vmatpush1.bf16.xpose.msra.mxu0 %v2943_v31  ;;  %v2562_v6 = vadd.f32 %v4159_v33, %v2306_v45 }
 0x6ac   : > { %v2309_v57 = vadd.f32 %v3103_v51, %v2245_v40  ;;  %v2563_v11 = vadd.f32 %v4159_v33, %v2307_v4  ;;  %v2493_v4 = vpop.permute.xlu0 %2492 }
 0x6ad   : > { %v2564_v7 = vadd.f32 %v4162_v60, %v2308_v41 }
 0x6ae   : > { %v2565_v38 = vadd.f32 %v4162_v60, %v2309_v57  ;;  %v1949_v10 = vpop.f32.mrb[100].mxu1 }
 0x6af   : > { %v2947_v36 = vpack.c.bf16 %v2564_v7, %v2562_v6  ;;  %v2246_v43 = vmul.f32 %v4171_v24, %v1949_v10  ;;  %v1951_v46 = vpop.f32.mrb[101].mxu1  ;;  %v3112_v7 = vld [vmem:[%s3224_s26 + $0x160] sm:$0xff]  ;;  %v3113_v10 = vld [vmem:[%s3224_s26 + $0x168] sm:$0xff] }
 0x6b0   : > { %v2247_v28 = vmul.f32 %v4171_v24, %v1951_v46  ;;  %v1953_v35 = vpop.f32.mrb[102].mxu1  ;;  %v2945_v3 = vpack.c.bf16 %v2565_v38, %v2563_v11  ;;  %v2488_v24 = vpop.permute.xlu1 %2487 }
 0x6b1   : > { %v2310_v37 = vadd.f32 %v3104_v55, %v2246_v43  ;;  %v2248_v48 = vmul.f32 %v4175_v59, %v1953_v35  ;;  %v1955_v12 = vpop.f32.mrb[103].mxu1  ;;  %v3114_v43 = vld [vmem:[%s3224_s26 + $0x170] sm:$0xff] }
 0x6b2   : > { %v2311_v33 = vadd.f32 %v3105_v19, %v2247_v28  ;;  %v2249_v60 = vmul.f32 %v4175_v59, %v1955_v12  ;;  %2946 = vmatprep.subr.bf16.mxu0 %v2945_v3  ;;  %v3115_v28 = vld [vmem:[%s3224_s26 + $0x178] sm:$0xff]  ;;  %v2183_v3 = vpop.permute.xlu0 %2182 }
 0x6b3   : > { %v2312_v30 = vadd.f32 %v3106_v47, %v2248_v48  ;;  %2948 = vmatpush1.bf16.xpose.msra.mxu0 %v2947_v36  ;;  %v2566_v61 = vadd.f32 %v4185_v9, %v2310_v37 }
 0x6b4   : > { %v2313_v34 = vadd.f32 %v3107_v15, %v2249_v60  ;;  %v2567_v58 = vadd.f32 %v4185_v9, %v2311_v33  ;;  %v2178_v9 = vpop.permute.xlu1 %2177 }
 0x6b5   : > { %v2568_v50 = vadd.f32 %v4188_v25, %v2312_v30 }
 0x6b6   : > { %v2569_v1 = vadd.f32 %v4188_v25, %v2313_v34  ;;  %v1959_v59 = vpop.f32.mrb[104].mxu1  ;;  %v3116_v34 = vld [vmem:[%s3224_s26 + $0x180] sm:$0xff] }
 0x6b7   : > { %v2951_v16 = vpack.c.bf16 %v2568_v50, %v2566_v61  ;;  %v2250_v17 = vmul.f32 %v4197_v20, %v1959_v59  ;;  %v1961_v49 = vpop.f32.mrb[105].mxu1 }
 0x6b8   : > { %v2251_v22 = vmul.f32 %v4197_v20, %v1961_v49  ;;  %v1963_v14 = vpop.f32.mrb[106].mxu1  ;;  %v2949_v26 = vpack.c.bf16 %v2569_v1, %v2567_v58  ;;  %v3111_v20 = vld [vmem:[%s3224_s26 + $0x158] sm:$0xff]  ;;  %v2498_v41 = vpop.permute.xlu1 %2497  ;;  %v3117_v1 = vld [vmem:[%s3224_s26 + $0x188] sm:$0xff] }
 0x6b9   : > { %v2314_v29 = vadd.f32 %v3108_v5, %v2250_v17  ;;  %v2252_v53 = vmul.f32 %v4201_v0, %v1963_v14  ;;  %v1965_v31 = vpop.f32.mrb[107].mxu1  ;;  %v2503_v17 = vpop.permute.xlu0 %2502 }
 0x6ba   : > { %v2315_v25 = vadd.f32 %v3109_v2, %v2251_v22  ;;  %v2253_v13 = vmul.f32 %v4201_v0, %v1965_v31  ;;  %2950 = vmatprep.subr.bf16.mxu0 %v2949_v26  ;;  %v3119_v22 = vld [vmem:[%s3224_s26 + $0x198] sm:$0xff] }
 0x6bb   : > { %v2316_v54 = vadd.f32 %v3110_v44, %v2252_v53  ;;  %2952 = vmatpush1.bf16.xpose.msra.mxu0 %v2951_v16  ;;  %v2570_v8 = vadd.f32 %v4211_v18, %v2314_v29 }
 0x6bc   : > { %v2317_v23 = vadd.f32 %v3111_v20, %v2253_v13  ;;  %v2571_v32 = vadd.f32 %v4211_v18, %v2315_v25  ;;  %v2188_v37 = vpop.permute.xlu1 %2187  ;;  %v3120_v20 = vld [vmem:[%s3224_s26 + $0x1a0] sm:$0xff] }
 0x6bd   : > { %v2572_v45 = vadd.f32 %v4214_v27, %v2316_v54  ;;  %v2193_v54 = vpop.permute.xlu0 %2192 }
 0x6be   : > { %v2573_v42 = vadd.f32 %v4214_v27, %v2317_v23  ;;  %v1969_v63 = vpop.f32.mrb[108].mxu1 }
 0x6bf   : > { %v2955_v0 = vpack.c.bf16 %v2572_v45, %v2570_v8  ;;  %v2254_v40 = vmul.f32 %v4223_v62, %v1969_v63  ;;  %v1971_v39 = vpop.f32.mrb[109].mxu1 }
 0x6c0   : > { %v2255_v51 = vmul.f32 %v4223_v62, %v1971_v39  ;;  %v1973_v57 = vpop.f32.mrb[110].mxu1  ;;  %v2953_v6 = vpack.c.bf16 %v2573_v42, %v2571_v32  ;;  %v2508_v49 = vpop.permute.xlu1 %2507  ;;  %v3121_v42 = vld [vmem:[%s3224_s26 + $0x1a8] sm:$0xff]  ;;  %v3123_v39 = vld [vmem:[%s3224_s26 + $0x1b8] sm:$0xff] }
 0x6c1   : > { %v2318_v11 = vadd.f32 %v3112_v7, %v2254_v40  ;;  %v2256_v38 = vmul.f32 %v4227_v52, %v1973_v57  ;;  %v1975_v18 = vpop.f32.mrb[111].mxu1 }
 0x6c2   : > { %v2319_v27 = vadd.f32 %v3113_v10, %v2255_v51  ;;  %v2257_v36 = vmul.f32 %v4227_v52, %v1975_v18  ;;  %2954 = vmatprep.subr.bf16.mxu0 %v2953_v6 }
 0x6c3   : > { %v2320_v46 = vadd.f32 %v3114_v43, %v2256_v38  ;;  %2956 = vmatpush1.bf16.xpose.msra.mxu0 %v2955_v0  ;;  %v2574_v62 = vadd.f32 %v4237_v21, %v2318_v11  ;;  %v2513_v38 = vpop.permute.xlu0 %2512 }
 0x6c4   : > { %v2321_v35 = vadd.f32 %v3115_v28, %v2257_v36  ;;  %v2575_v48 = vadd.f32 %v4237_v21, %v2319_v27  ;;  %v3118_v21 = vld [vmem:[%s3224_s26 + $0x190] sm:$0xff]  ;;  %v2198_v32 = vpop.permute.xlu1 %2197 }
 0x6c5   : > { %v2576_v55 = vadd.f32 %v2488_v24, %v2320_v46 }
 0x6c6   : > { %v2577_v12 = vadd.f32 %v2488_v24, %v2321_v35  ;;  %v1979_v19 = vpop.f32.mrb[112].mxu1  ;;  %v3124_v35 = vld [vmem:[%s3224_s26 + $0x1c0] sm:$0xff] }
 0x6c7   : > { %v2959_v33 = vpack.c.bf16 %v2576_v55, %v2574_v62  ;;  %v2258_v52 = vmul.f32 %v2173_v56, %v1979_v19  ;;  %v1981_v60 = vpop.f32.mrb[113].mxu1  ;;  %v3126_v19 = vld [vmem:[%s3224_s26 + $0x1d0] sm:$0xff] }
 0x6c8   : > { %v2259_v47 = vmul.f32 %v2173_v56, %v1981_v60  ;;  %v1983_v30 = vpop.f32.mrb[114].mxu1  ;;  %v2957_v15 = vpack.c.bf16 %v2577_v12, %v2575_v48  ;;  %v2518_v36 = vpop.permute.xlu1 %2517 }
 0x6c9   : > { %v2322_v61 = vadd.f32 %v3116_v34, %v2258_v52  ;;  %v2260_v50 = vmul.f32 %v2178_v9, %v1983_v30  ;;  %v1985_v58 = vpop.f32.mrb[115].mxu1  ;;  %v3127_v52 = vld [vmem:[%s3224_s26 + $0x1d8] sm:$0xff] }
 0x6ca   : > { %v2323_v59 = vadd.f32 %v3117_v1, %v2259_v47  ;;  %v2261_v16 = vmul.f32 %v2178_v9, %v1985_v58  ;;  %2958 = vmatprep.subr.bf16.mxu0 %v2957_v15  ;;  %v2203_v47 = vpop.permute.xlu0 %2202 }
 0x6cb   : > { %v2324_v24 = vadd.f32 %v3118_v21, %v2260_v50  ;;  %2960 = vmatpush1.bf16.xpose.msra.mxu0 %v2959_v33  ;;  %v2578_v26 = vadd.f32 %v2493_v4, %v2322_v61 }
 0x6cc   : > { %v2325_v14 = vadd.f32 %v3119_v22, %v2261_v16  ;;  %v2579_v5 = vadd.f32 %v2493_v4, %v2323_v59  ;;  %v3122_v4 = vld [vmem:[%s3224_s26 + $0x1b0] sm:$0xff]  ;;  %v2208_v34 = vpop.permute.xlu1 %2207 }
 0x6cd   : > { %v2580_v56 = vadd.f32 %v2498_v41, %v2324_v24 }
 0x6ce   : > { %v2581_v29 = vadd.f32 %v2498_v41, %v2325_v14  ;;  %v1989_v53 = vpop.f32.mrb[116].mxu1 }
 0x6cf   : > { %v2963_v31 = vpack.c.bf16 %v2580_v56, %v2578_v26  ;;  %v2262_v2 = vmul.f32 %v2183_v3, %v1989_v53  ;;  %v1991_v25 = vpop.f32.mrb[117].mxu1  ;;  %v3129_v56 = vld [vmem:[%s3224_s26 + $0x1e8] sm:$0xff]  ;;  %v3130_v53 = vld [vmem:[%s3224_s26 + $0x1f0] sm:$0xff] }
 0x6d0   : > { %v2263_v9 = vmul.f32 %v2183_v3, %v1991_v25  ;;  %v1993_v13 = vpop.f32.mrb[118].mxu1  ;;  %v2961_v44 = vpack.c.bf16 %v2581_v29, %v2579_v5  ;;  %v2528_v25 = vpop.permute.xlu1 %2527 }
 0x6d1   : > { %v2326_v23 = vadd.f32 %v3120_v20, %v2262_v2  ;;  %v2264_v8 = vmul.f32 %v2188_v37, %v1993_v13  ;;  %v1995_v45 = vpop.f32.mrb[119].mxu1  ;;  %v2523_v2 = vpop.permute.xlu0 %2522 }
 0x6d2   : > { %v2327_v63 = vadd.f32 %v3121_v42, %v2263_v9  ;;  %v2265_v0 = vmul.f32 %v2188_v37, %v1995_v45  ;;  %2962 = vmatprep.subr.bf16.mxu0 %v2961_v44  ;;  %v3125_v37 = vld [vmem:[%s3224_s26 + $0x1c8] sm:$0xff]  ;;  %v3131_v9 = vld [vmem:[%s3224_s26 + $0x1f8] sm:$0xff] }
 0x6d3   : > { %v2328_v40 = vadd.f32 %v3122_v4, %v2264_v8  ;;  %2964 = vmatpush1.bf16.xpose.msra.mxu0 %v2963_v31  ;;  %v2582_v51 = vadd.f32 %v2503_v17, %v2326_v23 }
 0x6d4   : > { %v2329_v41 = vadd.f32 %v3123_v39, %v2265_v0  ;;  %v2583_v6 = vadd.f32 %v2503_v17, %v2327_v63 }
 0x6d5   : > { %v2584_v57 = vadd.f32 %v2508_v49, %v2328_v40 }
 0x6d6   : > { %v2585_v7 = vadd.f32 %v2508_v49, %v2329_v41  ;;  %v1999_v11 = vpop.f32.mrb[120].mxu1  ;;  %v3128_v49 = vld [vmem:[%s3224_s26 + $0x1e0] sm:$0xff] }
 0x6d7   : > { %v2967_v18 = vpack.c.bf16 %v2584_v57, %v2582_v51  ;;  %v2266_v10 = vmul.f32 %v2193_v54, %v1999_v11  ;;  %v2001_v27 = vpop.f32.mrb[121].mxu1 }
 0x6d8   : > { %v2267_v43 = vmul.f32 %v2193_v54, %v2001_v27  ;;  %v2003_v46 = vpop.f32.mrb[122].mxu1  ;;  %v2965_v28 = vpack.c.bf16 %v2585_v7, %v2583_v6 }
 0x6d9   : > { %v2330_v3 = vadd.f32 %v3124_v35, %v2266_v10  ;;  %v2268_v62 = vmul.f32 %v2198_v32, %v2003_v46  ;;  %v2005_v55 = vpop.f32.mrb[123].mxu1 }
 0x6da   : > { %v2331_v48 = vadd.f32 %v3125_v37, %v2267_v43  ;;  %v2269_v12 = vmul.f32 %v2198_v32, %v2005_v55  ;;  %2966 = vmatprep.subr.bf16.mxu0 %v2965_v28  ;;  %v2594_v32 = vld [vmem:[%s4092_s20] sm:$0xff] }
 0x6db   : > { %v2332_v33 = vadd.f32 %v3126_v19, %v2268_v62  ;;  %2968 = vmatpush1.bf16.xpose.msra.mxu0 %v2967_v18  ;;  %v2586_v30 = vadd.f32 %v2513_v38, %v2330_v3 }
 0x6dc   : > { %v2333_v60 = vadd.f32 %v3127_v52, %v2269_v12  ;;  %v2587_v61 = vadd.f32 %v2513_v38, %v2331_v48 }
 0x6dd   : > { %v2588_v15 = vadd.f32 %v2518_v36, %v2332_v33 }
 0x6de   : > { %v2589_v50 = vadd.f32 %v2518_v36, %v2333_v60  ;;  %v2009_v58 = vpop.f32.mrb[124].mxu1 }
 0x6df   : > { %v2971_v1 = vpack.c.bf16 %v2588_v15, %v2586_v30  ;;  %v2270_v59 = vmul.f32 %v2203_v47, %v2009_v58  ;;  %v2011_v16 = vpop.f32.mrb[125].mxu1 }
 0x6e0   : > { %v2271_v17 = vmul.f32 %v2203_v47, %v2011_v16  ;;  %v2013_v21 = vpop.f32.mrb[126].mxu1  ;;  %v2969_v24 = vpack.c.bf16 %v2589_v50, %v2587_v61 }
 0x6e1   : > { %v2334_v22 = vadd.f32 %v3128_v49, %v2270_v59  ;;  %v2272_v14 = vmul.f32 %v2208_v34, %v2013_v21  ;;  %v2015_v26 = vpop.f32.mrb[127].mxu1 }
 0x6e2   : > { %v2335_v5 = vadd.f32 %v3129_v56, %v2271_v17  ;;  %v2273_v29 = vmul.f32 %v2208_v34, %v2015_v26  ;;  %2970 = vmatprep.subr.bf16.mxu0 %v2969_v24 }
 0x6e3   : > { %v2336_v31 = vadd.f32 %v3130_v53, %v2272_v14  ;;  %2972 = vmatpush1.bf16.xpose.msra.mxu0 %v2971_v1  ;;  %v2590_v44 = vadd.f32 %v2523_v2, %v2334_v22 }
 0x6e4   : > { %v2337_v13 = vadd.f32 %v3131_v9, %v2273_v29  ;;  %v2591_v20 = vadd.f32 %v2523_v2, %v2335_v5 }
 0x6e5   : > { %v2592_v54 = vadd.f32 %v2528_v25, %v2336_v31 }
 0x6e6   : > { %v2593_v23 = vadd.f32 %v2528_v25, %v2337_v13 }
 0x6e7   : > { %v2975_v8 = vpack.c.bf16 %v2592_v54, %v2590_v44 }
 0x6e8   : > { %v2973_v45 = vpack.c.bf16 %v2593_v23, %v2591_v20 }
 0x6ea   : > { %2974 = vmatprep.subr.bf16.mxu0 %v2973_v45 }
 0x6eb   : > { %2976 = vmatpush1.bf16.xpose.msra.mxu0 %v2975_v8 }
 0x6f2   : > { %2661 = vmatmul.mubr.f32.vlgmr.msra.gmra.mrb[96].mxu0 %v2594_v32 }
 0x7c5   : > { %v2662_v42 = vpop.f32.mrb[96].mxu0 }
 0x7c6   : > { %2667 = vst [vmem:[%s379_s23] sm:$0xff] %v2662_v42  ;;  %v2664_v63 = vpop.f32.mrb[97].mxu0 }
 0x7c7   : > { %2668 = vst [vmem:[%s379_s23 + $0x8] sm:$0xff] %v2664_v63 }
 0x7c8 PF: > { %s20_s13 = sadd.s32 1, %s3138_s13  }
 0x7c9   : > { %p17_p4 = scmp.ge.s32.totalorder %s20_s13, 4  }
 0x7cb   :  { %19 = sbr.rel (!%p17_p4) target bundleno = 1 (0x1), region = 93 }

// kernel: rel_reasoning_forward.5
= control target key start
LH: loop header
LB: loop body
LE: loop exit
PB: predicated region body
PF: predicated region fallthrough
CT: control target
= control target key end

     0   :  { %s5130_s13 = smov 0   ;;  %s7018_s0 = inlined_call_operand.vmem [shape: f32[2,512,64], index: 0, kind: input, shape index: {}]   ;;  %s7019_s1 = inlined_call_operand.vmem [shape: f32[2,8,64], index: 1, kind: input, shape index: {}]   ;;  %s7020_s2 = inlined_call_operand.vmem [shape: bf16[256,512], index: 2, kind: input, shape index: {}]   ;;  %s7021_s3 = inlined_call_operand.vmem [shape: f32[256,1], index: 3, kind: input, shape index: {}]   ;;  %s7022_s4 = inlined_call_operand.vmem [shape: bf16[128,128], index: 4, kind: input, shape index: {}]   ;;  %s7023_s5 = inlined_call_operand.vmem [shape: f32[1,128], index: 5, kind: input, shape index: {}]   ;;  %s7024_s6 = inlined_call_operand.vmem [shape: bf16[128,128], index: 6, kind: input, shape index: {}]   ;;  %s7025_s7 = inlined_call_operand.vmem [shape: bf16[512,128], index: 7, kind: input, shape index: {}]   ;;  %s7026_s8 = inlined_call_operand.vmem [shape: f32[512,1], index: 8, kind: input, shape index: {}]   ;;  %s7027_s9 = inlined_call_operand.vmem [shape: f32[512,1], index: 9, kind: input, shape index: {}]   ;;  %s7028_s10 = inlined_call_operand.vmem [shape: f32[2,8,512], index: 10, kind: output, shape index: {}]  }
   0x1 LB: > { %s3938_s14 = sadd.s32 4294967295, %s5072_s13   ;;  %p3942_p0 = scmp.ge.s32.totalorder %s5072_s13, 1  ;;  %s5072_s13 = sphi %s5130_s13, %s20_s13  }
   0x2   : > { %p321_p1 = scmp.lt.s32.totalorder %s5072_s13, 3 }
   0x4   : > { %p322_p2 = pnand %p3942_p0, %p321_p1 }
   0x6   : > { %325 = sbr.rel (%p322_p2) target bundleno = 1943 (0x797), region = 60 }
   0xd   : > { %v556_v0 = vld [vmem:[%s7021_s3 + $0x90] sm:$0xff]  ;;  %v554_v1 = vld [vmem:[%s7021_s3 + $0x80] sm:$0xff]  ;;  %p363_p3 = scmp.lt.s32.totalorder %s3938_s14, 1  ;;  %v5074_v2 = vmov 0   ;;  %v557_v3 = vld [vmem:[%s7021_s3 + $0x98] sm:$0xff]  ;;  %vm1388_vm0 = vcmask 523264  }
   0xe   : > { %4857 = vset.pattern.permute.xlu1 %v5074_v2  ;;  %4856 = vset.pattern.permute.xlu0 %v5074_v2  ;;  %v555_v4 = vld [vmem:[%s7021_s3 + $0x88] sm:$0xff]  ;;  %v558_v9 = vld [vmem:[%s7021_s3 + $0xa0] sm:$0xff]  ;;  %v561_v23 = vld [vmem:[%s7021_s3 + $0xb8] sm:$0xff] }
   0xf   : > { %662 = vperm.xlu1 %4857, %v556_v0   ;;  %652 = vperm.xlu0 %4856, %v554_v1   ;;  %s7161_s14 = smov (!%p363_p3, %s3938_s14), 1  ;;  %v559_v5 = vld [vmem:[%s7021_s3 + $0xa8] sm:$0xff]  ;;  %v560_v26 = vld [vmem:[%s7021_s3 + $0xb0] sm:$0xff]  ;;  %v562_v47 = vld [vmem:[%s7021_s3 + $0xc0] sm:$0xff] }
  0x10   : > { %s4137_s23 = sshll.u32 %s7161_s14, 9  ;;  %v563_v46 = vld [vmem:[%s7021_s3 + $0xc8] sm:$0xff]  ;;  %v565_v61 = vld [vmem:[%s7021_s3 + $0xd8] sm:$0xff]  ;;  %v564_v62 = vld [vmem:[%s7021_s3 + $0xd0] sm:$0xff]  ;;  %s3945_s20 = sshll.u32 %s7161_s14, 3 }
  0x11   : > { %s5156_s26 = scalar_lea.vmem %s7018_s0, %s4137_s23  ;;  %s371_s23 = scalar_lea.vmem %s7019_s1, %s3945_s20  ;;  %vm6659_vm1 = vmpackc.low %vm1388_vm0, %vm1388_vm0 }
  0x12   : > { %v394_v6 = vld [vmem:[%s5156_s26 + $0x80] sm:$0xff]  ;;  %v395_v7 = vld [vmem:[%s5156_s26 + $0x88] sm:$0xff]  ;;  %v396_v18 = vld [vmem:[%s5156_s26 + $0x90] sm:$0xff] }
  0x13   : > { %667 = vperm.xlu1 %4857, %v557_v3   ;;  %657 = vperm.xlu0 %4856, %v555_v4   ;;  %v426_v8 = vld [vmem:[%s5156_s26 + $0x180] sm:$0xff]  ;;  %v450_v10 = vpack.c.bf16 %v395_v7, %v394_v6  ;;  %v427_v11 = vld [vmem:[%s5156_s26 + $0x188] sm:$0xff]  ;;  %v397_v20 = vld [vmem:[%s5156_s26 + $0x98] sm:$0xff] }
  0x14   : > { %v378_v12 = vld [vmem:[%s5156_s26] sm:$0xff]  ;;  %v379_v13 = vld [vmem:[%s5156_s26 + $0x8] sm:$0xff]  ;;  %v466_v14 = vpack.c.bf16 %v427_v11, %v426_v8  ;;  %v428_v21 = vld [vmem:[%s5156_s26 + $0x190] sm:$0xff]  ;;  %v451_v24 = vpack.c.bf16 %v397_v20, %v396_v18 }
  0x15   : > { %v442_v15 = vpack.c.bf16 %v379_v13, %v378_v12  ;;  %v410_v16 = vld [vmem:[%s5156_s26 + $0x100] sm:$0xff]  ;;  %v411_v17 = vld [vmem:[%s5156_s26 + $0x108] sm:$0xff]  ;;  %4139 = vmatprep.subr.bf16.mxu0 %v450_v10  ;;  %v429_v22 = vld [vmem:[%s5156_s26 + $0x198] sm:$0xff] }
  0x16   : > { %v458_v19 = vpack.c.bf16 %v411_v17, %v410_v16  ;;  %4251 = vmatprep.subr.bf16.mxu1 %v466_v14  ;;  %v467_v25 = vpack.c.bf16 %v429_v22, %v428_v21  ;;  %v380_v27 = vld [vmem:[%s5156_s26 + $0x10] sm:$0xff]  ;;  %v381_v28 = vld [vmem:[%s5156_s26 + $0x18] sm:$0xff]  ;;  %v398_v32 = vld [vmem:[%s5156_s26 + $0xa0] sm:$0xff] }
  0x17   : > { %677 = vperm.xlu1 %4857, %v559_v5   ;;  %v412_v29 = vld [vmem:[%s5156_s26 + $0x110] sm:$0xff]  ;;  %672 = vperm.xlu0 %4856, %v558_v9   ;;  %v443_v30 = vpack.c.bf16 %v381_v28, %v380_v27  ;;  %v413_v31 = vld [vmem:[%s5156_s26 + $0x118] sm:$0xff]  ;;  %v399_v33 = vld [vmem:[%s5156_s26 + $0xa8] sm:$0xff] }
  0x18   : > { %4140 = vmatpush3.bf16.msra.mxu0 %v442_v15  ;;  %4252 = vmatpush3.bf16.msra.mxu1 %v458_v19  ;;  %v459_v34 = vpack.c.bf16 %v413_v31, %v412_v29  ;;  %v452_v35 = vpack.c.bf16 %v399_v33, %v398_v32  ;;  %v430_v36 = vld [vmem:[%s5156_s26 + $0x1a0] sm:$0xff]  ;;  %v431_v37 = vld [vmem:[%s5156_s26 + $0x1a8] sm:$0xff]  ;;  %v400_v43 = vld [vmem:[%s5156_s26 + $0xb0] sm:$0xff] }
  0x19   : > { %4141 = vmatprep.subr.bf16.mxu0 %v451_v24  ;;  %v382_v38 = vld [vmem:[%s5156_s26 + $0x20] sm:$0xff]  ;;  %4253 = vmatprep.subr.bf16.mxu1 %v467_v25  ;;  %v468_v39 = vpack.c.bf16 %v431_v37, %v430_v36  ;;  %v383_v40 = vld [vmem:[%s5156_s26 + $0x28] sm:$0xff]  ;;  %v401_v44 = vld [vmem:[%s5156_s26 + $0xb8] sm:$0xff] }
  0x1a   : > { %v414_v41 = vld [vmem:[%s5156_s26 + $0x120] sm:$0xff]  ;;  %v415_v42 = vld [vmem:[%s5156_s26 + $0x128] sm:$0xff]  ;;  %v432_v45 = vld [vmem:[%s5156_s26 + $0x1b0] sm:$0xff]  ;;  %v444_v48 = vpack.c.bf16 %v383_v40, %v382_v38  ;;  %v453_v51 = vpack.c.bf16 %v401_v44, %v400_v43 }
  0x1b   : > { %687 = vperm.xlu1 %4857, %v561_v23   ;;  %682 = vperm.xlu0 %4856, %v560_v26   ;;  %v433_v49 = vld [vmem:[%s5156_s26 + $0x1b8] sm:$0xff]  ;;  %v460_v50 = vpack.c.bf16 %v415_v42, %v414_v41  ;;  %v384_v52 = vld [vmem:[%s5156_s26 + $0x30] sm:$0xff]  ;;  %v402_v57 = vld [vmem:[%s5156_s26 + $0xc0] sm:$0xff] }
  0x1c   : > { %4142 = vmatpush3.bf16.msra.mxu0 %v443_v30  ;;  %4254 = vmatpush3.bf16.msra.mxu1 %v459_v34  ;;  %v385_v53 = vld [vmem:[%s5156_s26 + $0x38] sm:$0xff]  ;;  %v416_v54 = vld [vmem:[%s5156_s26 + $0x130] sm:$0xff]  ;;  %v469_v55 = vpack.c.bf16 %v433_v49, %v432_v45  ;;  %v403_v58 = vld [vmem:[%s5156_s26 + $0xc8] sm:$0xff] }
  0x1d   : > { %4143 = vmatprep.subr.bf16.mxu0 %v452_v35  ;;  %4255 = vmatprep.subr.bf16.mxu1 %v468_v39  ;;  %v417_v56 = vld [vmem:[%s5156_s26 + $0x138] sm:$0xff]  ;;  %v434_v59 = vld [vmem:[%s5156_s26 + $0x1c0] sm:$0xff]  ;;  %v435_v60 = vld [vmem:[%s5156_s26 + $0x1c8] sm:$0xff]  ;;  %v445_v63 = vpack.c.bf16 %v385_v53, %v384_v52  ;;  %v454_v1 = vpack.c.bf16 %v403_v58, %v402_v57 }
  0x1e   : > { %v461_v0 = vpack.c.bf16 %v417_v56, %v416_v54  ;;  %v386_v2 = vld [vmem:[%s5156_s26 + $0x40] sm:$0xff]  ;;  %v387_v3 = vld [vmem:[%s5156_s26 + $0x48] sm:$0xff]  ;;  %v470_v5 = vpack.c.bf16 %v435_v60, %v434_v59  ;;  %v404_v7 = vld [vmem:[%s5156_s26 + $0xd0] sm:$0xff] }
  0x1f   : > { %697 = vperm.xlu1 %4857, %v563_v46   ;;  %692 = vperm.xlu0 %4856, %v562_v47   ;;  %v418_v4 = vld [vmem:[%s5156_s26 + $0x140] sm:$0xff]  ;;  %v419_v6 = vld [vmem:[%s5156_s26 + $0x148] sm:$0xff]  ;;  %v405_v8 = vld [vmem:[%s5156_s26 + $0xd8] sm:$0xff]  ;;  %v446_v13 = vpack.c.bf16 %v387_v3, %v386_v2 }
  0x20   : > { %4144 = vmatpush3.bf16.msra.mxu0 %v444_v48  ;;  %4256 = vmatpush3.bf16.msra.mxu1 %v460_v50  ;;  %v436_v9 = vld [vmem:[%s5156_s26 + $0x1d0] sm:$0xff]  ;;  %v437_v10 = vld [vmem:[%s5156_s26 + $0x1d8] sm:$0xff]  ;;  %v567_v11 = vld [vmem:[%s7021_s3 + $0xe8] sm:$0xff]  ;;  %v462_v15 = vpack.c.bf16 %v419_v6, %v418_v4  ;;  %v455_v16 = vpack.c.bf16 %v405_v8, %v404_v7 }
  0x21   : > { %4145 = vmatprep.subr.bf16.mxu0 %v453_v51  ;;  %4257 = vmatprep.subr.bf16.mxu1 %v469_v55  ;;  %v566_v12 = vld [vmem:[%s7021_s3 + $0xe0] sm:$0xff]  ;;  %v388_v14 = vld [vmem:[%s5156_s26 + $0x50] sm:$0xff]  ;;  %v389_v17 = vld [vmem:[%s5156_s26 + $0x58] sm:$0xff]  ;;  %v471_v20 = vpack.c.bf16 %v437_v10, %v436_v9 }
  0x22   : > { %v420_v18 = vld [vmem:[%s5156_s26 + $0x150] sm:$0xff]  ;;  %v421_v19 = vld [vmem:[%s5156_s26 + $0x158] sm:$0xff]  ;;  %v406_v22 = vld [vmem:[%s5156_s26 + $0xe0] sm:$0xff]  ;;  %v447_v29 = vpack.c.bf16 %v389_v17, %v388_v14 }
  0x23   : > { %707 = vperm.xlu1 %4857, %v565_v61   ;;  %702 = vperm.xlu0 %4856, %v564_v62   ;;  %v569_v21 = vld [vmem:[%s7021_s3 + $0xf8] sm:$0xff]  ;;  %v407_v23 = vld [vmem:[%s5156_s26 + $0xe8] sm:$0xff]  ;;  %v438_v24 = vld [vmem:[%s5156_s26 + $0x1e0] sm:$0xff]  ;;  %v463_v33 = vpack.c.bf16 %v421_v19, %v420_v18 }
  0x24   : > { %4146 = vmatpush3.bf16.msra.mxu0 %v445_v63  ;;  %4258 = vmatpush3.bf16.msra.mxu1 %v461_v0  ;;  %v568_v25 = vld [vmem:[%s7021_s3 + $0xf0] sm:$0xff]  ;;  %v439_v26 = vld [vmem:[%s5156_s26 + $0x1e8] sm:$0xff]  ;;  %v390_v27 = vld [vmem:[%s5156_s26 + $0x60] sm:$0xff]  ;;  %v456_v34 = vpack.c.bf16 %v407_v23, %v406_v22 }
  0x25   : > { %4147 = vmatprep.subr.bf16.mxu0 %v454_v1  ;;  %4259 = vmatprep.subr.bf16.mxu1 %v470_v5  ;;  %v391_v28 = vld [vmem:[%s5156_s26 + $0x68] sm:$0xff]  ;;  %v422_v30 = vld [vmem:[%s5156_s26 + $0x160] sm:$0xff]  ;;  %v408_v32 = vld [vmem:[%s5156_s26 + $0xf0] sm:$0xff]  ;;  %v472_v36 = vpack.c.bf16 %v439_v26, %v438_v24 }
  0x26   : > { %v423_v31 = vld [vmem:[%s5156_s26 + $0x168] sm:$0xff]  ;;  %v409_v35 = vld [vmem:[%s5156_s26 + $0xf8] sm:$0xff]  ;;  %v4860_v38 = vld [vmem:[%s7020_s2 + $0x4] ss:$16 sps:$4 sm:$0xff]   ;;  %v448_v43 = vpack.c.bf16 %v391_v28, %v390_v27 }
  0x27   : > { %717 = vperm.xlu1 %4857, %v567_v11   ;;  %712 = vperm.xlu0 %4856, %v566_v12   ;;  %v539_v37 = vld [vmem:[%s7021_s3 + $0x8] sm:$0xff]  ;;  %v440_v39 = vld [vmem:[%s5156_s26 + $0x1f0] sm:$0xff]  ;;  %v441_v40 = vld [vmem:[%s5156_s26 + $0x1f8] sm:$0xff]  ;;  %v464_v46 = vpack.c.bf16 %v423_v31, %v422_v30  ;;  %v457_v47 = vpack.c.bf16 %v409_v35, %v408_v32 }
  0x28   : > { %4148 = vmatpush3.bf16.msra.mxu0 %v446_v13  ;;  %4260 = vmatpush3.bf16.msra.mxu1 %v462_v15  ;;  %v4863_v41 = vld [vmem:[%s7020_s2 + $0xc] ss:$16 sps:$4 sm:$0xff]   ;;  %v538_v42 = vld [vmem:[%s7021_s3] sm:$0xff]  ;;  %v392_v44 = vld [vmem:[%s5156_s26 + $0x70] sm:$0xff]  ;;  %v473_v49 = vpack.c.bf16 %v441_v40, %v440_v39 }
  0x29   : > { %4149 = vmatprep.subr.bf16.mxu0 %v455_v16  ;;  %4261 = vmatprep.subr.bf16.mxu1 %v471_v20  ;;  %v393_v45 = vld [vmem:[%s5156_s26 + $0x78] sm:$0xff]  ;;  %v424_v48 = vld [vmem:[%s5156_s26 + $0x170] sm:$0xff]  ;;  %v543_v57 = vld [vmem:[%s7021_s3 + $0x28] sm:$0xff] }
  0x2a   : > { %v425_v50 = vld [vmem:[%s5156_s26 + $0x178] sm:$0xff]  ;;  %1082 = vmatprep.mubr.bf16.mxu0 %v4860_v38  ;;  %1243 = vmatprep.mubr.bf16.mxu1 %v4863_v41  ;;  %v449_v52 = vpack.c.bf16 %v393_v45, %v392_v44  ;;  %v540_v53 = vld [vmem:[%s7021_s3 + $0x10] sm:$0xff]  ;;  %v542_v58 = vld [vmem:[%s7021_s3 + $0x20] sm:$0xff] }
  0x2b   : > { %727 = vperm.xlu1 %4857, %v569_v21   ;;  %722 = vperm.xlu0 %4856, %v568_v25   ;;  %v541_v51 = vld [vmem:[%s7021_s3 + $0x18] sm:$0xff]  ;;  %v465_v54 = vpack.c.bf16 %v425_v50, %v424_v48  ;;  %v4858_v55 = vld [vmem:[%s7020_s2] ss:$16 sps:$4 sm:$0xff]   ;;  %v4864_v59 = vld [vmem:[%s7020_s2 + $0x24] ss:$16 sps:$4 sm:$0xff]  }
  0x2c   : > { %4150 = vmatpush3.bf16.msra.mxu0 %v447_v29  ;;  %4262 = vmatpush3.bf16.msra.mxu1 %v463_v33  ;;  %v4861_v56 = vld [vmem:[%s7020_s2 + $0x8] ss:$16 sps:$4 sm:$0xff]   ;;  %v4866_v60 = vld [vmem:[%s7020_s2 + $0x2c] ss:$16 sps:$4 sm:$0xff]   ;;  %v544_v62 = vld [vmem:[%s7021_s3 + $0x30] sm:$0xff] }
  0x2d   : > { %4151 = vmatprep.subr.bf16.mxu0 %v456_v34  ;;  %4263 = vmatprep.subr.bf16.mxu1 %v472_v36  ;;  %v545_v61 = vld [vmem:[%s7021_s3 + $0x38] sm:$0xff]  ;;  %v4868_v63 = vld [vmem:[%s7020_s2 + $0x20] ss:$16 sps:$4 sm:$0xff]   ;;  %v547_v1 = vld [vmem:[%s7021_s3 + $0x48] sm:$0xff] }
  0x2e   : > { %v4869_v0 = vld [vmem:[%s7020_s2 + $0x28] ss:$16 sps:$4 sm:$0xff]   ;;  %v546_v2 = vld [vmem:[%s7021_s3 + $0x40] sm:$0xff]  ;;  %v4872_v4 = vld [vmem:[%s7020_s2 + $0x4c] ss:$16 sps:$4 sm:$0xff]  }
  0x2f   : > { %577 = vperm.xlu1 %4857, %v539_v37   ;;  %572 = vperm.xlu0 %4856, %v538_v42   ;;  %v4870_v3 = vld [vmem:[%s7020_s2 + $0x44] ss:$16 sps:$4 sm:$0xff]   ;;  %v549_v5 = vld [vmem:[%s7021_s3 + $0x58] sm:$0xff]  ;;  %v4874_v7 = vld [vmem:[%s7020_s2 + $0x40] ss:$16 sps:$4 sm:$0xff]  }
  0x30   : > { %4152 = vmatpush3.bf16.msra.mxu0 %v448_v43  ;;  %4264 = vmatpush3.bf16.msra.mxu1 %v464_v46  ;;  %v548_v6 = vld [vmem:[%s7021_s3 + $0x50] sm:$0xff]  ;;  %v4875_v8 = vld [vmem:[%s7020_s2 + $0x48] ss:$16 sps:$4 sm:$0xff]   ;;  %v550_v10 = vld [vmem:[%s7021_s3 + $0x60] sm:$0xff] }
  0x31   : > { %4153 = vmatprep.subr.bf16.mxu0 %v457_v47  ;;  %4265 = vmatprep.subr.bf16.mxu1 %v473_v49  ;;  %v551_v9 = vld [vmem:[%s7021_s3 + $0x68] sm:$0xff]  ;;  %v4876_v11 = vld [vmem:[%s7020_s2 + $0x64] ss:$16 sps:$4 sm:$0xff]   ;;  %v553_v13 = vld [vmem:[%s7021_s3 + $0x78] sm:$0xff] }
  0x32   : > { %v4878_v12 = vld [vmem:[%s7020_s2 + $0x6c] ss:$16 sps:$4 sm:$0xff]   ;;  %v552_v14 = vld [vmem:[%s7021_s3 + $0x70] sm:$0xff]  ;;  %v4881_v16 = vld [vmem:[%s7020_s2 + $0x68] ss:$16 sps:$4 sm:$0xff]  }
  0x33   : > { %587 = vperm.xlu1 %4857, %v541_v51   ;;  %582 = vperm.xlu0 %4856, %v540_v53   ;;  %v4880_v15 = vld [vmem:[%s7020_s2 + $0x60] ss:$16 sps:$4 sm:$0xff]   ;;  %v2570_v17 = vld [vmem:[%s7026_s8 + $0x8] sm:$0xff]  ;;  %v4882_v19 = vld [vmem:[%s7020_s2 + $0x84] ss:$16 sps:$4 sm:$0xff]  }
  0x34   : > { %4154 = vmatpush3.bf16.msra.mxu0 %v449_v52  ;;  %4266 = vmatpush3.bf16.msra.mxu1 %v465_v54  ;;  %v2569_v18 = vld [vmem:[%s7026_s8] sm:$0xff]  ;;  %v4884_v20 = vld [vmem:[%s7020_s2 + $0x8c] ss:$16 sps:$4 sm:$0xff]   ;;  %v2571_v22 = vld [vmem:[%s7026_s8 + $0x10] sm:$0xff] }
  0x35   : > { %v2572_v21 = vld [vmem:[%s7026_s8 + $0x18] sm:$0xff]  ;;  %v4886_v23 = vld [vmem:[%s7020_s2 + $0x80] ss:$16 sps:$4 sm:$0xff]   ;;  %v2574_v25 = vld [vmem:[%s7026_s8 + $0x28] sm:$0xff] }
  0x36   : > { %v4887_v24 = vld [vmem:[%s7020_s2 + $0x88] ss:$16 sps:$4 sm:$0xff]   ;;  %v2573_v26 = vld [vmem:[%s7026_s8 + $0x20] sm:$0xff]  ;;  %v4890_v28 = vld [vmem:[%s7020_s2 + $0xac] ss:$16 sps:$4 sm:$0xff]  }
  0x37   : > { %1083 = vmatmul.mubr.bf16.vlgmr.msra.gmra.mrb[0].mxu0 %v4858_v55  ;;  %597 = vperm.xlu1 %4857, %v543_v57   ;;  %v4888_v27 = vld [vmem:[%s7020_s2 + $0xa4] ss:$16 sps:$4 sm:$0xff]   ;;  %v2576_v29 = vld [vmem:[%s7026_s8 + $0x38] sm:$0xff]  ;;  %v4892_v31 = vld [vmem:[%s7020_s2 + $0xa0] ss:$16 sps:$4 sm:$0xff]  }
  0x38   : > { %1244 = vmatmul.mubr.bf16.vlgmr.msra.gmra.mrb[0].mxu1 %v4861_v56  ;;  %592 = vperm.xlu0 %4856, %v542_v58   ;;  %v2575_v30 = vld [vmem:[%s7026_s8 + $0x30] sm:$0xff]  ;;  %v4893_v32 = vld [vmem:[%s7020_s2 + $0xa8] ss:$16 sps:$4 sm:$0xff]   ;;  %v2577_v34 = vld [vmem:[%s7026_s8 + $0x40] sm:$0xff] }
  0x39   : > { %1090 = vmatprep.mubr.bf16.mxu0 %v4864_v59  ;;  %1251 = vmatprep.mubr.bf16.mxu1 %v4866_v60  ;;  %v2578_v33 = vld [vmem:[%s7026_s8 + $0x48] sm:$0xff]  ;;  %v4894_v35 = vld [vmem:[%s7020_s2 + $0xc4] ss:$16 sps:$4 sm:$0xff]   ;;  %v2580_v37 = vld [vmem:[%s7026_s8 + $0x58] sm:$0xff] }
  0x3a   : > { %v4896_v36 = vld [vmem:[%s7020_s2 + $0xcc] ss:$16 sps:$4 sm:$0xff]   ;;  %v2579_v38 = vld [vmem:[%s7026_s8 + $0x50] sm:$0xff]  ;;  %v4899_v40 = vld [vmem:[%s7020_s2 + $0xc8] ss:$16 sps:$4 sm:$0xff]  }
  0x3b   : > { %607 = vperm.xlu1 %4857, %v545_v61   ;;  %v4898_v39 = vld [vmem:[%s7020_s2 + $0xc0] ss:$16 sps:$4 sm:$0xff]   ;;  %v2582_v41 = vld [vmem:[%s7026_s8 + $0x68] sm:$0xff]  ;;  %v4900_v43 = vld [vmem:[%s7020_s2 + $0xe4] ss:$16 sps:$4 sm:$0xff]  }
  0x3c   : > { %602 = vperm.xlu0 %4856, %v544_v62   ;;  %v2581_v42 = vld [vmem:[%s7026_s8 + $0x60] sm:$0xff]  ;;  %v4902_v44 = vld [vmem:[%s7020_s2 + $0xec] ss:$16 sps:$4 sm:$0xff]   ;;  %v2583_v46 = vld [vmem:[%s7026_s8 + $0x70] sm:$0xff] }
  0x3d   : > { %v2584_v45 = vld [vmem:[%s7026_s8 + $0x78] sm:$0xff]  ;;  %v4904_v47 = vld [vmem:[%s7020_s2 + $0xe0] ss:$16 sps:$4 sm:$0xff]   ;;  %v2586_v49 = vld [vmem:[%s7026_s8 + $0x88] sm:$0xff] }
  0x3e   : > { %v4905_v48 = vld [vmem:[%s7020_s2 + $0xe8] ss:$16 sps:$4 sm:$0xff]   ;;  %v2585_v50 = vld [vmem:[%s7026_s8 + $0x80] sm:$0xff]  ;;  %v4908_v52 = vld [vmem:[%s7020_s2 + $0x10c] ss:$16 sps:$4 sm:$0xff]  }
  0x3f   : > { %1091 = vmatmul.mubr.bf16.gmra.mrb[4].mxu0 %v4868_v63  ;;  %617 = vperm.xlu1 %4857, %v547_v1   ;;  %v4906_v51 = vld [vmem:[%s7020_s2 + $0x104] ss:$16 sps:$4 sm:$0xff]   ;;  %v2588_v53 = vld [vmem:[%s7026_s8 + $0x98] sm:$0xff]  ;;  %v4910_v55 = vld [vmem:[%s7020_s2 + $0x100] ss:$16 sps:$4 sm:$0xff]  }
  0x40   : > { %1252 = vmatmul.mubr.bf16.gmra.mrb[4].mxu1 %v4869_v0  ;;  %612 = vperm.xlu0 %4856, %v546_v2   ;;  %v2587_v54 = vld [vmem:[%s7026_s8 + $0x90] sm:$0xff]  ;;  %v4911_v56 = vld [vmem:[%s7020_s2 + $0x108] ss:$16 sps:$4 sm:$0xff]   ;;  %v2589_v58 = vld [vmem:[%s7026_s8 + $0xa0] sm:$0xff] }
  0x41   : > { %1098 = vmatprep.mubr.bf16.mxu0 %v4870_v3  ;;  %1259 = vmatprep.mubr.bf16.mxu1 %v4872_v4  ;;  %v2590_v57 = vld [vmem:[%s7026_s8 + $0xa8] sm:$0xff]  ;;  %v4912_v59 = vld [vmem:[%s7020_s2 + $0x124] ss:$16 sps:$4 sm:$0xff]   ;;  %v2592_v61 = vld [vmem:[%s7026_s8 + $0xb8] sm:$0xff] }
  0x42   : > { %v4915_v60 = vld [vmem:[%s7020_s2 + $0x12c] ss:$16 sps:$4 sm:$0xff]   ;;  %v2591_v62 = vld [vmem:[%s7026_s8 + $0xb0] sm:$0xff]  ;;  %v4917_v1 = vld [vmem:[%s7020_s2 + $0x128] ss:$16 sps:$4 sm:$0xff]  }
  0x43   : > { %627 = vperm.xlu1 %4857, %v549_v5   ;;  %v4914_v63 = vld [vmem:[%s7020_s2 + $0x120] ss:$16 sps:$4 sm:$0xff]   ;;  %v2594_v0 = vld [vmem:[%s7026_s8 + $0xc8] sm:$0xff]  ;;  %v4918_v3 = vld [vmem:[%s7020_s2 + $0x144] ss:$16 sps:$4 sm:$0xff]  }
  0x44   : > { %622 = vperm.xlu0 %4856, %v548_v6   ;;  %v2593_v2 = vld [vmem:[%s7026_s8 + $0xc0] sm:$0xff]  ;;  %v4921_v4 = vld [vmem:[%s7020_s2 + $0x14c] ss:$16 sps:$4 sm:$0xff]  }
  0x45   : > { %v3098_v5 = vld [vmem:[%s7027_s9 + $0x88] sm:$0xff]  ;;  %v3097_v6 = vld [vmem:[%s7027_s9 + $0x80] sm:$0xff] }
  0x47   : > { %1099 = vmatmul.mubr.bf16.gmra.mrb[8].mxu0 %v4874_v7  ;;  %637 = vperm.xlu1 %4857, %v551_v9   ;;  %v4920_v7 = vld [vmem:[%s7020_s2 + $0x140] ss:$16 sps:$4 sm:$0xff]   ;;  %v4923_v9 = vld [vmem:[%s7020_s2 + $0x148] ss:$16 sps:$4 sm:$0xff]  }
  0x48   : > { %1260 = vmatmul.mubr.bf16.gmra.mrb[8].mxu1 %v4875_v8  ;;  %632 = vperm.xlu0 %4856, %v550_v10   ;;  %v3082_v8 = vld [vmem:[%s7027_s9 + $0x8] sm:$0xff]  ;;  %v3081_v10 = vld [vmem:[%s7027_s9] sm:$0xff] }
  0x49   : > { %1106 = vmatprep.mubr.bf16.mxu0 %v4876_v11  ;;  %1267 = vmatprep.mubr.bf16.mxu1 %v4878_v12  ;;  %v4924_v11 = vld [vmem:[%s7020_s2 + $0x164] ss:$16 sps:$4 sm:$0xff]   ;;  %v4927_v12 = vld [vmem:[%s7020_s2 + $0x16c] ss:$16 sps:$4 sm:$0xff]  }
  0x4b   : > { %647 = vperm.xlu1 %4857, %v553_v13   ;;  %v3100_v13 = vld [vmem:[%s7027_s9 + $0x98] sm:$0xff] }
  0x4c   : > { %642 = vperm.xlu0 %4856, %v552_v14   ;;  %v3099_v14 = vld [vmem:[%s7027_s9 + $0x90] sm:$0xff] }
  0x4f   : > { %1107 = vmatmul.mubr.bf16.gmra.mrb[12].mxu0 %v4880_v15  ;;  %2640 = vperm.xlu1 %4857, %v2570_v17   ;;  %v4926_v15 = vld [vmem:[%s7020_s2 + $0x160] ss:$16 sps:$4 sm:$0xff]   ;;  %v4929_v17 = vld [vmem:[%s7020_s2 + $0x168] ss:$16 sps:$4 sm:$0xff]  }
  0x50   : > { %1268 = vmatmul.mubr.bf16.gmra.mrb[12].mxu1 %v4881_v16  ;;  %2635 = vperm.xlu0 %4856, %v2569_v18   ;;  %v3084_v16 = vld [vmem:[%s7027_s9 + $0x18] sm:$0xff]  ;;  %v3083_v18 = vld [vmem:[%s7027_s9 + $0x10] sm:$0xff] }
  0x51   : > { %1114 = vmatprep.mubr.bf16.mxu0 %v4882_v19  ;;  %1275 = vmatprep.mubr.bf16.mxu1 %v4884_v20  ;;  %v4930_v19 = vld [vmem:[%s7020_s2 + $0x184] ss:$16 sps:$4 sm:$0xff]   ;;  %v4933_v20 = vld [vmem:[%s7020_s2 + $0x18c] ss:$16 sps:$4 sm:$0xff]  }
  0x53   : > { %2650 = vperm.xlu1 %4857, %v2572_v21  }
  0x54   : > { %2645 = vperm.xlu0 %4856, %v2571_v22  }
  0x57   : > { %1115 = vmatmul.mubr.bf16.gmra.mrb[16].mxu0 %v4886_v23  ;;  %2660 = vperm.xlu1 %4857, %v2574_v25   ;;  %v3102_v23 = vld [vmem:[%s7027_s9 + $0xa8] sm:$0xff]  ;;  %v4932_v25 = vld [vmem:[%s7020_s2 + $0x180] ss:$16 sps:$4 sm:$0xff]  }
  0x58   : > { %1276 = vmatmul.mubr.bf16.gmra.mrb[16].mxu1 %v4887_v24  ;;  %2655 = vperm.xlu0 %4856, %v2573_v26   ;;  %v3101_v24 = vld [vmem:[%s7027_s9 + $0xa0] sm:$0xff] }
  0x59   : > { %1122 = vmatprep.mubr.bf16.mxu0 %v4888_v27  ;;  %1283 = vmatprep.mubr.bf16.mxu1 %v4890_v28  ;;  %v3086_v28 = vld [vmem:[%s7027_s9 + $0x28] sm:$0xff] }
  0x5b   : > { %2670 = vperm.xlu1 %4857, %v2576_v29   ;;  %v4935_v29 = vld [vmem:[%s7020_s2 + $0x188] ss:$16 sps:$4 sm:$0xff]  }
  0x5c   : > { %2665 = vperm.xlu0 %4856, %v2575_v30   ;;  %v3085_v30 = vld [vmem:[%s7027_s9 + $0x20] sm:$0xff] }
  0x5f   : > { %1123 = vmatmul.mubr.bf16.gmra.mrb[20].mxu0 %v4892_v31  ;;  %2680 = vperm.xlu1 %4857, %v2578_v33   ;;  %v4936_v31 = vld [vmem:[%s7020_s2 + $0x1a4] ss:$16 sps:$4 sm:$0xff]  }
  0x60   : > { %1284 = vmatmul.mubr.bf16.gmra.mrb[20].mxu1 %v4893_v32  ;;  %2675 = vperm.xlu0 %4856, %v2577_v34   ;;  %v4939_v32 = vld [vmem:[%s7020_s2 + $0x1ac] ss:$16 sps:$4 sm:$0xff]  }
  0x61   : > { %1130 = vmatprep.mubr.bf16.mxu0 %v4894_v35  ;;  %1291 = vmatprep.mubr.bf16.mxu1 %v4896_v36  ;;  %v3104_v35 = vld [vmem:[%s7027_s9 + $0xb8] sm:$0xff]  ;;  %v3103_v36 = vld [vmem:[%s7027_s9 + $0xb0] sm:$0xff] }
  0x63   : > { %2690 = vperm.xlu1 %4857, %v2580_v37  }
  0x64   : > { %2685 = vperm.xlu0 %4856, %v2579_v38  }
  0x67   : > { %1131 = vmatmul.mubr.bf16.gmra.mrb[24].mxu0 %v4898_v39  ;;  %2700 = vperm.xlu1 %4857, %v2582_v41   ;;  %v4938_v39 = vld [vmem:[%s7020_s2 + $0x1a0] ss:$16 sps:$4 sm:$0xff]   ;;  %v4941_v41 = vld [vmem:[%s7020_s2 + $0x1a8] ss:$16 sps:$4 sm:$0xff]  }
  0x68   : > { %1292 = vmatmul.mubr.bf16.gmra.mrb[24].mxu1 %v4899_v40  ;;  %2695 = vperm.xlu0 %4856, %v2581_v42   ;;  %v3088_v40 = vld [vmem:[%s7027_s9 + $0x38] sm:$0xff]  ;;  %v3087_v42 = vld [vmem:[%s7027_s9 + $0x30] sm:$0xff] }
  0x69   : > { %1138 = vmatprep.mubr.bf16.mxu0 %v4900_v43  ;;  %1299 = vmatprep.mubr.bf16.mxu1 %v4902_v44  ;;  %v4942_v43 = vld [vmem:[%s7020_s2 + $0x1c4] ss:$16 sps:$4 sm:$0xff]   ;;  %v4945_v44 = vld [vmem:[%s7020_s2 + $0x1cc] ss:$16 sps:$4 sm:$0xff]  }
  0x6b   : > { %2710 = vperm.xlu1 %4857, %v2584_v45  }
  0x6c   : > { %2705 = vperm.xlu0 %4856, %v2583_v46  }
  0x6f   : > { %1139 = vmatmul.mubr.bf16.gmra.mrb[28].mxu0 %v4904_v47  ;;  %2720 = vperm.xlu1 %4857, %v2586_v49   ;;  %v3106_v47 = vld [vmem:[%s7027_s9 + $0xc8] sm:$0xff]  ;;  %v4944_v49 = vld [vmem:[%s7020_s2 + $0x1c0] ss:$16 sps:$4 sm:$0xff]  }
  0x70   : > { %1300 = vmatmul.mubr.bf16.gmra.mrb[28].mxu1 %v4905_v48  ;;  %2715 = vperm.xlu0 %4856, %v2585_v50   ;;  %v3105_v48 = vld [vmem:[%s7027_s9 + $0xc0] sm:$0xff] }
  0x71   : > { %1146 = vmatprep.mubr.bf16.mxu0 %v4906_v51  ;;  %1307 = vmatprep.mubr.bf16.mxu1 %v4908_v52  ;;  %v3090_v51 = vld [vmem:[%s7027_s9 + $0x48] sm:$0xff] }
  0x72   : > { %v4947_v52 = vld [vmem:[%s7020_s2 + $0x1c8] ss:$16 sps:$4 sm:$0xff]  }
  0x73   : > { %2730 = vperm.xlu1 %4857, %v2588_v53  }
  0x74   : > { %2725 = vperm.xlu0 %4856, %v2587_v54   ;;  %v3089_v54 = vld [vmem:[%s7027_s9 + $0x40] sm:$0xff] }
  0x77   : > { %1147 = vmatmul.mubr.bf16.gmra.mrb[32].mxu0 %v4910_v55  ;;  %2740 = vperm.xlu1 %4857, %v2590_v57   ;;  %v4948_v55 = vld [vmem:[%s7020_s2 + $0x1e4] ss:$16 sps:$4 sm:$0xff]   ;;  %v2596_v57 = vld [vmem:[%s7026_s8 + $0xd8] sm:$0xff] }
  0x78   : > { %1308 = vmatmul.mubr.bf16.gmra.mrb[32].mxu1 %v4911_v56  ;;  %2735 = vperm.xlu0 %4856, %v2589_v58   ;;  %v4951_v56 = vld [vmem:[%s7020_s2 + $0x1ec] ss:$16 sps:$4 sm:$0xff]   ;;  %v2595_v58 = vld [vmem:[%s7026_s8 + $0xd0] sm:$0xff] }
  0x79   : > { %1154 = vmatprep.mubr.bf16.mxu0 %v4912_v59  ;;  %1315 = vmatprep.mubr.bf16.mxu1 %v4915_v60 }
  0x7b   : > { %2750 = vperm.xlu1 %4857, %v2592_v61   ;;  %v4950_v61 = vld [vmem:[%s7020_s2 + $0x1e0] ss:$16 sps:$4 sm:$0xff]  }
  0x7c   : > { %2745 = vperm.xlu0 %4856, %v2591_v62   ;;  %v3108_v62 = vld [vmem:[%s7027_s9 + $0xd8] sm:$0xff] }
  0x7f   : > { %1155 = vmatmul.mubr.bf16.gmra.mrb[36].mxu0 %v4914_v63  ;;  %2760 = vperm.xlu1 %4857, %v2594_v0   ;;  %v4953_v63 = vld [vmem:[%s7020_s2 + $0x1e8] ss:$16 sps:$4 sm:$0xff]   ;;  %v3107_v0 = vld [vmem:[%s7027_s9 + $0xd0] sm:$0xff] }
  0x80   : > { %2755 = vperm.xlu0 %4856, %v2593_v2   ;;  %1316 = vmatmul.mubr.bf16.gmra.mrb[36].mxu1 %v4917_v1  ;;  %v3092_v2 = vld [vmem:[%s7027_s9 + $0x58] sm:$0xff] }
  0x81   : > { %1162 = vmatprep.mubr.bf16.mxu0 %v4918_v3  ;;  %1323 = vmatprep.mubr.bf16.mxu1 %v4921_v4  ;;  %v3091_v4 = vld [vmem:[%s7027_s9 + $0x50] sm:$0xff] }
  0x83   : > { %3232 = vperm.xlu1 %4857, %v3098_v5   ;;  %v2598_v5 = vld [vmem:[%s7026_s8 + $0xe8] sm:$0xff] }
  0x84   : > { %3227 = vperm.xlu0 %4856, %v3097_v6   ;;  %v2597_v6 = vld [vmem:[%s7026_s8 + $0xe0] sm:$0xff] }
  0x87   : > { %1163 = vmatmul.mubr.bf16.gmra.mrb[40].mxu0 %v4920_v7  ;;  %3152 = vperm.xlu1 %4857, %v3082_v8  }
  0x88   : > { %3147 = vperm.xlu0 %4856, %v3081_v10   ;;  %1324 = vmatmul.mubr.bf16.gmra.mrb[40].mxu1 %v4923_v9  ;;  %v3110_v9 = vld [vmem:[%s7027_s9 + $0xe8] sm:$0xff]  ;;  %v4954_v10 = vld [vmem:[%s7022_s4] sm:$0xff]  }
  0x89   : > { %1170 = vmatprep.mubr.bf16.mxu0 %v4924_v11  ;;  %1331 = vmatprep.mubr.bf16.mxu1 %v4927_v12  ;;  %v3109_v11 = vld [vmem:[%s7027_s9 + $0xe0] sm:$0xff] }
  0x8a   : > { %4567 = vmatprep.subr.bf16.mxu1 %v4954_v10 }
  0x8b   : > { %3242 = vperm.xlu1 %4857, %v3100_v13   ;;  %4568 = vmatpush3.bf16.msra.mxu1 %v4954_v10  ;;  %v3094_v13 = vld [vmem:[%s7027_s9 + $0x68] sm:$0xff] }
  0x8c   : > { %3237 = vperm.xlu0 %4856, %v3099_v14   ;;  %v4955_v14 = vld [vmem:[%s7022_s4 + $0x8] sm:$0xff]  }
  0x8d   : > { %4569 = vmatprep.subr.bf16.mxu1 %v4955_v14 }
  0x8e   : > { %v5558_v21 = vpop.permute.xlu1 %662  ;;  %v5560_v22 = vpop.permute.xlu0 %652 }
  0x8f   : > { %1171 = vmatmul.mubr.bf16.gmra.mrb[44].mxu0 %v4926_v15  ;;  %3162 = vperm.xlu1 %4857, %v3084_v16   ;;  %v3093_v16 = vld [vmem:[%s7027_s9 + $0x60] sm:$0xff] }
  0x90   : > { %3157 = vperm.xlu0 %4856, %v3083_v18   ;;  %1332 = vmatmul.mubr.bf16.gmra.mrb[44].mxu1 %v4929_v17  ;;  %v2600_v17 = vld [vmem:[%s7026_s8 + $0xf8] sm:$0xff]  ;;  %v4956_v18 = vld [vmem:[%s7022_s4 + $0x10] sm:$0xff]  }
  0x91   : > { %1178 = vmatprep.mubr.bf16.mxu0 %v4930_v19  ;;  %1339 = vmatprep.mubr.bf16.mxu1 %v4933_v20  ;;  %v2599_v19 = vld [vmem:[%s7026_s8 + $0xf0] sm:$0xff] }
  0x92   : > { %v5571_v26 = vpop.permute.xlu1 %667  ;;  %v5573_v27 = vpop.permute.xlu0 %657  ;;  %4570 = vmatpush3.bf16.msra.mxu1 %v4955_v14 }
  0x93   : > { %3252 = vperm.xlu1 %4857, %v3102_v23   ;;  %4571 = vmatprep.subr.bf16.mxu1 %v4956_v18 }
  0x94   : > { %3247 = vperm.xlu0 %4856, %v3101_v24   ;;  %v3112_v24 = vld [vmem:[%s7027_s9 + $0xf8] sm:$0xff] }
  0x96   : > { %v5590_v33 = vpop.permute.xlu1 %677  ;;  %v5592_v34 = vpop.permute.xlu0 %672  ;;  %4572 = vmatpush3.bf16.msra.mxu1 %v4956_v18  ;;  %v2621_v18 = vld [vmem:[%s7026_s8 + $0x1a0] sm:$0xff] }
  0x97   : > { %1179 = vmatmul.mubr.bf16.gmra.mrb[48].mxu0 %v4932_v25  ;;  %3172 = vperm.xlu1 %4857, %v3086_v28   ;;  %v4957_v25 = vld [vmem:[%s7022_s4 + $0x18] sm:$0xff]   ;;  %v3111_v28 = vld [vmem:[%s7027_s9 + $0xf0] sm:$0xff] }
  0x98   : > { %3167 = vperm.xlu0 %4856, %v3085_v30   ;;  %1340 = vmatmul.mubr.bf16.gmra.mrb[48].mxu1 %v4935_v29  ;;  %v3096_v30 = vld [vmem:[%s7027_s9 + $0x78] sm:$0xff] }
  0x99   : > { %1186 = vmatprep.mubr.bf16.mxu0 %v4936_v31  ;;  %1347 = vmatprep.mubr.bf16.mxu1 %v4939_v32  ;;  %v4958_v31 = vld [vmem:[%s7022_s4 + $0x20] sm:$0xff]  }
  0x9a   : > { %v5600_v37 = vpop.permute.xlu1 %687  ;;  %v5602_v38 = vpop.permute.xlu0 %682  ;;  %4573 = vmatprep.subr.bf16.mxu1 %v4957_v25 }
  0x9b   : > { %3262 = vperm.xlu1 %4857, %v3104_v35   ;;  %4574 = vmatpush3.bf16.msra.mxu1 %v4957_v25  ;;  %v3095_v35 = vld [vmem:[%s7027_s9 + $0x70] sm:$0xff] }
  0x9c   : > { %3257 = vperm.xlu0 %4856, %v3103_v36   ;;  %4575 = vmatprep.subr.bf16.mxu1 %v4958_v31  ;;  %v2618_v36 = vld [vmem:[%s7026_s8 + $0x188] sm:$0xff] }
  0x9e   : > { %v5622_v45 = vpop.permute.xlu1 %697  ;;  %v5624_v46 = vpop.permute.xlu0 %692 }
  0x9f   : > { %1187 = vmatmul.mubr.bf16.gmra.mrb[52].mxu0 %v4938_v39  ;;  %3182 = vperm.xlu1 %4857, %v3088_v40   ;;  %v4959_v39 = vld [vmem:[%s7022_s4 + $0x28] sm:$0xff]   ;;  %v2617_v40 = vld [vmem:[%s7026_s8 + $0x180] sm:$0xff] }
  0xa0   : > { %3177 = vperm.xlu0 %4856, %v3087_v42   ;;  %1348 = vmatmul.mubr.bf16.gmra.mrb[52].mxu1 %v4941_v41 }
  0xa1   : > { %1194 = vmatprep.mubr.bf16.mxu0 %v4942_v43  ;;  %1355 = vmatprep.mubr.bf16.mxu1 %v4945_v44  ;;  %v2602_v43 = vld [vmem:[%s7026_s8 + $0x108] sm:$0xff]  ;;  %v4960_v44 = vld [vmem:[%s7022_s4 + $0x30] sm:$0xff]  }
  0xa2   : > { %v5635_v50 = vpop.permute.xlu1 %707  ;;  %v5643_v53 = vpop.permute.xlu0 %702  ;;  %4576 = vmatpush3.bf16.msra.mxu1 %v4958_v31  ;;  %v3133_v31 = vld [vmem:[%s7027_s9 + $0x1a0] sm:$0xff] }
  0xa3   : > { %3272 = vperm.xlu1 %4857, %v3106_v47   ;;  %4577 = vmatprep.subr.bf16.mxu1 %v4959_v39  ;;  %v2601_v47 = vld [vmem:[%s7026_s8 + $0x100] sm:$0xff] }
  0xa4   : > { %3267 = vperm.xlu0 %4856, %v3105_v48  }
  0xa6   : > { %v5660_v59 = vpop.permute.xlu1 %717  ;;  %v5662_v60 = vpop.permute.xlu0 %712  ;;  %4578 = vmatpush3.bf16.msra.mxu1 %v4959_v39 }
  0xa7   : > { %1195 = vmatmul.mubr.bf16.gmra.mrb[56].mxu0 %v4944_v49  ;;  %3192 = vperm.xlu1 %4857, %v3090_v51   ;;  %v3130_v49 = vld [vmem:[%s7027_s9 + $0x188] sm:$0xff] }
  0xa8   : > { %3187 = vperm.xlu0 %4856, %v3089_v54   ;;  %1356 = vmatmul.mubr.bf16.gmra.mrb[56].mxu1 %v4947_v52  ;;  %v3129_v52 = vld [vmem:[%s7027_s9 + $0x180] sm:$0xff]  ;;  %v4961_v54 = vld [vmem:[%s7022_s4 + $0x38] sm:$0xff]  }
  0xa9   : > { %1202 = vmatprep.mubr.bf16.mxu0 %v4948_v55  ;;  %1363 = vmatprep.mubr.bf16.mxu1 %v4951_v56  ;;  %v3114_v55 = vld [vmem:[%s7027_s9 + $0x108] sm:$0xff]  ;;  %v3113_v56 = vld [vmem:[%s7027_s9 + $0x100] sm:$0xff] }
  0xaa   : > { %v5676_v1 = vpop.permute.xlu1 %727  ;;  %v5681_v3 = vpop.permute.xlu0 %722  ;;  %4579 = vmatprep.subr.bf16.mxu1 %v4960_v44 }
  0xab   : > { %2770 = vperm.xlu1 %4857, %v2596_v57   ;;  %4580 = vmatpush3.bf16.msra.mxu1 %v4960_v44  ;;  %v2623_v44 = vld [vmem:[%s7026_s8 + $0x1b0] sm:$0xff] }
  0xac   : > { %2765 = vperm.xlu0 %4856, %v2595_v58   ;;  %4581 = vmatprep.subr.bf16.mxu1 %v4961_v54 }
  0xae   : > { %v5692_v7 = vpop.permute.xlu1 %577  ;;  %v5694_v8 = vpop.permute.xlu0 %572 }
  0xaf   : > { %1203 = vmatmul.mubr.bf16.gmra.mrb[60].mxu0 %v4950_v61  ;;  %3282 = vperm.xlu1 %4857, %v3108_v62   ;;  %v2620_v61 = vld [vmem:[%s7026_s8 + $0x198] sm:$0xff]  ;;  %v2619_v62 = vld [vmem:[%s7026_s8 + $0x190] sm:$0xff] }
  0xb0   : > { %3277 = vperm.xlu0 %4856, %v3107_v0   ;;  %1364 = vmatmul.mubr.bf16.gmra.mrb[60].mxu1 %v4953_v63  ;;  %v2604_v0 = vld [vmem:[%s7026_s8 + $0x118] sm:$0xff] }
  0xb1   : > { %4582 = vmatpush3.bf16.msra.mxu1 %v4961_v54  ;;  %v2607_v54 = vld [vmem:[%s7026_s8 + $0x130] sm:$0xff] }
  0xb2   : > { %v5705_v12 = vpop.permute.xlu1 %587  ;;  %v5713_v15 = vpop.permute.xlu0 %582 }
  0xb3   : > { %3202 = vperm.xlu1 %4857, %v3092_v2  }
  0xb4   : > { %3197 = vperm.xlu0 %4856, %v3091_v4   ;;  %v2603_v4 = vld [vmem:[%s7026_s8 + $0x110] sm:$0xff] }
  0xb6   : > { %v5727_v20 = vpop.permute.xlu1 %597 }
  0xb7   : > { %2780 = vperm.xlu1 %4857, %v2598_v5   ;;  %v5729_v23 = vpop.permute.xlu0 %592  ;;  %v3132_v5 = vld [vmem:[%s7027_s9 + $0x198] sm:$0xff] }
  0xb8   : > { %2775 = vperm.xlu0 %4856, %v2597_v6   ;;  %v3131_v6 = vld [vmem:[%s7027_s9 + $0x190] sm:$0xff] }
  0xba   : > { %v5740_v29 = vpop.permute.xlu1 %607 }
  0xbb   : > { %3292 = vperm.xlu1 %4857, %v3110_v9   ;;  %v5748_v32 = vpop.permute.xlu0 %602 }
  0xbc   : > { %3287 = vperm.xlu0 %4856, %v3109_v11   ;;  %v3116_v11 = vld [vmem:[%s7027_s9 + $0x118] sm:$0xff] }
  0xbe   : > { %v5762_v41 = vpop.permute.xlu1 %617 }
  0xbf   : > { %3212 = vperm.xlu1 %4857, %v3094_v13   ;;  %v5764_v42 = vpop.permute.xlu0 %612  ;;  %v3115_v13 = vld [vmem:[%s7027_s9 + $0x110] sm:$0xff] }
  0xc0   : > { %3207 = vperm.xlu0 %4856, %v3093_v16   ;;  %v2622_v16 = vld [vmem:[%s7026_s8 + $0x1a8] sm:$0xff] }
  0xc2   : > { %v5775_v48 = vpop.permute.xlu1 %627 }
  0xc3   : > { %2790 = vperm.xlu1 %4857, %v2600_v17   ;;  %v5780_v51 = vpop.permute.xlu0 %622 }
  0xc4   : > { %2785 = vperm.xlu0 %4856, %v2599_v19   ;;  %v2606_v19 = vld [vmem:[%s7026_s8 + $0x128] sm:$0xff] }
  0xc6   : > { %v5794_v57 = vpop.permute.xlu1 %637 }
  0xc7   : > { %3302 = vperm.xlu1 %4857, %v3112_v24   ;;  %v5796_v58 = vpop.permute.xlu0 %632  ;;  %v2605_v24 = vld [vmem:[%s7026_s8 + $0x120] sm:$0xff] }
  0xc8   : > { %3297 = vperm.xlu0 %4856, %v3111_v28  }
  0xca   : > { %v5804_v63 = vpop.permute.xlu1 %647 }
  0xcb   : > { %3222 = vperm.xlu1 %4857, %v3096_v30   ;;  %v5809_v2 = vpop.permute.xlu0 %642  ;;  %v3134_v30 = vld [vmem:[%s7027_s9 + $0x1a8] sm:$0xff] }
  0xcc   : > { %3217 = vperm.xlu0 %4856, %v3095_v35  }
  0xce   : > { %v5820_v9 = vpop.permute.xlu1 %2640 }
  0xcf   : > { %2880 = vperm.xlu1 %4857, %v2618_v36   ;;  %v5822_v10 = vpop.permute.xlu0 %2635  ;;  %v3118_v36 = vld [vmem:[%s7027_s9 + $0x128] sm:$0xff] }
  0xd0   : > { %2875 = vperm.xlu0 %4856, %v2617_v40   ;;  %v3117_v40 = vld [vmem:[%s7027_s9 + $0x120] sm:$0xff] }
  0xd2   : > { %v5830_v14 = vpop.permute.xlu1 %2650 }
  0xd3   : > { %2800 = vperm.xlu1 %4857, %v2602_v43   ;;  %v5835_v17 = vpop.permute.xlu0 %2645  ;;  %v2624_v43 = vld [vmem:[%s7026_s8 + $0x1b8] sm:$0xff] }
  0xd4   : > { %2795 = vperm.xlu0 %4856, %v2601_v47  }
  0xd6   : > { %v5846_v25 = vpop.permute.xlu1 %2660 }
  0xd7   : > { %3392 = vperm.xlu1 %4857, %v3130_v49   ;;  %v5848_v28 = vpop.permute.xlu0 %2655 }
  0xd8   : > { %3387 = vperm.xlu0 %4856, %v3129_v52   ;;  %v2608_v52 = vld [vmem:[%s7026_s8 + $0x138] sm:$0xff] }
  0xda   : > { %v5856_v35 = vpop.permute.xlu1 %2670 }
  0xdb   : > { %3312 = vperm.xlu1 %4857, %v3114_v55   ;;  %v5861_v39 = vpop.permute.xlu0 %2665 }
  0xdc   : > { %3307 = vperm.xlu0 %4856, %v3113_v56   ;;  %v3136_v56 = vld [vmem:[%s7027_s9 + $0x1b8] sm:$0xff] }
  0xde   : > { %v5872_v47 = vpop.permute.xlu1 %2680 }
  0xdf   : > { %2890 = vperm.xlu1 %4857, %v2620_v61   ;;  %7031 = vst [vmem:[#allocation2_spill] sm:$0xff] %v5872_v47  ;;  %v5874_v49 = vpop.permute.xlu0 %2675 }
  0xe0   : > { %2885 = vperm.xlu0 %4856, %v2619_v62   ;;  %v3135_v62 = vld [vmem:[%s7027_s9 + $0x1b0] sm:$0xff] }
  0xe2   : > { %v5882_v55 = vpop.permute.xlu1 %2690 }
  0xe3   : > { %2810 = vperm.xlu1 %4857, %v2604_v0   ;;  %7032 = vst [vmem:[#allocation3_spill] sm:$0xff] %v5882_v55  ;;  %v5887_v61 = vpop.permute.xlu0 %2685  ;;  %v3120_v0 = vld [vmem:[%s7027_s9 + $0x138] sm:$0xff] }
  0xe4   : > { %2805 = vperm.xlu0 %4856, %v2603_v4   ;;  %v3119_v4 = vld [vmem:[%s7027_s9 + $0x130] sm:$0xff] }
  0xe7   : > { %3402 = vperm.xlu1 %4857, %v3132_v5   ;;  %v5898_v5 = vpop.permute.xlu1 %2700 }
  0xe8   : > { %3397 = vperm.xlu0 %4856, %v3131_v6   ;;  %7033 = vst [vmem:[#allocation4_spill] sm:$0xff] %v5898_v5 }
  0xeb   : > { %3322 = vperm.xlu1 %4857, %v3116_v11   ;;  %v5900_v11 = vpop.permute.xlu0 %2695 }
  0xec   : > { %3317 = vperm.xlu0 %4856, %v3115_v13   ;;  %7034 = vst [vmem:[#allocation5_spill] sm:$0xff] %v5900_v11 }
  0xef   : > { %2900 = vperm.xlu1 %4857, %v2622_v16  }
  0xf0   : > { %2895 = vperm.xlu0 %4856, %v2621_v18  }
  0xf3   : > { %2820 = vperm.xlu1 %4857, %v2606_v19   ;;  %v2626_v19 = vld [vmem:[%s7026_s8 + $0x1c8] sm:$0xff] }
  0xf4   : > { %2815 = vperm.xlu0 %4856, %v2605_v24  }
  0xf7   : > { %3412 = vperm.xlu1 %4857, %v3134_v30  }
  0xf8   : > { %3407 = vperm.xlu0 %4856, %v3133_v31  }
  0xfb   : > { %3332 = vperm.xlu1 %4857, %v3118_v36  }
  0xfc   : > { %3327 = vperm.xlu0 %4856, %v3117_v40   ;;  %v2625_v40 = vld [vmem:[%s7026_s8 + $0x1c0] sm:$0xff] }
  0xff   : > { %2910 = vperm.xlu1 %4857, %v2624_v43  }
 0x100   : > { %2905 = vperm.xlu0 %4856, %v2623_v44  }
 0x103   : > { %2830 = vperm.xlu1 %4857, %v2608_v52  }
 0x104   : > { %2825 = vperm.xlu0 %4856, %v2607_v54  }
 0x107   : > { %3422 = vperm.xlu1 %4857, %v3136_v56  }
 0x108   : > { %3417 = vperm.xlu0 %4856, %v3135_v62   ;;  %v2610_v62 = vld [vmem:[%s7026_s8 + $0x148] sm:$0xff] }
 0x10a   : > { %v4155_v6 = vpop.f32.mrb[0].mxu0 }
 0x10b   : > { %v4267_v13 = vpop.f32.mrb[0].mxu1  ;;  %3342 = vperm.xlu1 %4857, %v3120_v0   ;;  %v4156_v16 = vpop.f32.mrb[1].mxu0 }
 0x10c   : > { %v4268_v18 = vpop.f32.mrb[1].mxu1  ;;  %3337 = vperm.xlu0 %4856, %v3119_v4   ;;  %v4157_v24 = vadd.f32 %v4156_v16, %v4155_v6  ;;  %v4158_v31 = vpop.f32.mrb[2].mxu0  ;;  %v2609_v6 = vld [vmem:[%s7026_s8 + $0x140] sm:$0xff] }
 0x10d   : > { %v4269_v30 = vadd.f32 %v4268_v18, %v4267_v13  ;;  %v4270_v36 = vpop.f32.mrb[2].mxu1  ;;  %v4159_v43 = vpop.f32.mrb[3].mxu0 }
 0x10e   : > { %v4271_v44 = vpop.f32.mrb[3].mxu1  ;;  %v1085_v52 = vadd.f32 %v4157_v24, %v5694_v8  ;;  %v4160_v54 = vadd.f32 %v4159_v43, %v4158_v31  ;;  %v5916_v16 = vpop.permute.xlu1 %2710  ;;  %v3137_v43 = vld [vmem:[%s7027_s9 + $0x1c0] sm:$0xff] }
 0x10f   : > { %v4272_v56 = vadd.f32 %v4271_v44, %v4270_v36  ;;  %2920 = vperm.xlu1 %4857, %v2626_v19   ;;  %7035 = vst [vmem:[#allocation6_spill] sm:$0xff] %v5916_v16  ;;  %v5918_v24 = vpop.permute.xlu0 %2705 }
 0x110   : > { %2915 = vperm.xlu0 %4856, %v2625_v40   ;;  %v1246_v0 = vadd.f32 %v4269_v30, %v1085_v52  ;;  %v1088_v4 = vadd.f32 %v4160_v54, %v5692_v7  ;;  %7036 = vst [vmem:[#allocation7_spill] sm:$0xff] %v5918_v24  ;;  %v3138_v30 = vld [vmem:[%s7027_s9 + $0x1c8] sm:$0xff] }
 0x112   : > { %v4161_v13 = vpop.f32.mrb[4].mxu0  ;;  %v1249_v18 = vadd.f32 %v4272_v56, %v1088_v4 }
 0x113   : > { %v4273_v8 = vpop.f32.mrb[4].mxu1  ;;  %2840 = vperm.xlu1 %4857, %v2610_v62   ;;  %v4162_v19 = vpop.f32.mrb[5].mxu0 }
 0x114   : > { %2835 = vperm.xlu0 %4856, %v2609_v6   ;;  %v1372_v7 = vpack.c.bf16 %v1249_v18, %v1246_v0  ;;  %v4163_v31 = vadd.f32 %v4162_v19, %v4161_v13  ;;  %v4274_v36 = vpop.f32.mrb[5].mxu1  ;;  %v4164_v40 = vpop.f32.mrb[6].mxu0  ;;  %v3122_v0 = vld [vmem:[%s7027_s9 + $0x148] sm:$0xff] }
 0x115   : > { %v4275_v44 = vadd.f32 %v4274_v36, %v4273_v8  ;;  %v4276_v52 = vpop.f32.mrb[6].mxu1  ;;  %v4165_v54 = vpop.f32.mrb[7].mxu0  ;;  %v3121_v8 = vld [vmem:[%s7027_s9 + $0x140] sm:$0xff] }
 0x116   : > { %v1093_v56 = vadd.f32 %v4163_v31, %v5713_v15  ;;  %v4166_v62 = vadd.f32 %v4165_v54, %v4164_v40  ;;  %v4277_v4 = vpop.f32.mrb[7].mxu1  ;;  %4551 = vmatprep.mubr.msk.bf16.mxu0 %vm1388_vm0, %v1372_v7  ;;  %v5937_v19 = vpop.permute.xlu1 %2720  ;;  %v2628_v40 = vld [vmem:[%s7026_s8 + $0x1d8] sm:$0xff]  ;;  %v2627_v54 = vld [vmem:[%s7026_s8 + $0x1d0] sm:$0xff] }
 0x117   : > { %3432 = vperm.xlu1 %4857, %v3138_v30   ;;  %v4278_v6 = vadd.f32 %v4277_v4, %v4276_v52  ;;  %7037 = vst [vmem:[#allocation8_spill] sm:$0xff] %v5937_v19  ;;  %v5941_v7 = vpop.permute.xlu0 %2715 }
 0x118   : > { %3427 = vperm.xlu0 %4856, %v3137_v43   ;;  %v5931_v13 = vadd.f32 %v4275_v44, %v1093_v56  ;;  %v1096_v18 = vadd.f32 %v4166_v62, %v5705_v12  ;;  %7038 = vst [vmem:[#allocation9_spill] sm:$0xff] %v5941_v7 }
 0x11a   : > { %v4167_v15 = vpop.f32.mrb[8].mxu0  ;;  %v5939_v31 = vadd.f32 %v4278_v6, %v1096_v18  ;;  %v5961_v19 = vpop.permute.xlu1 %2730 }
 0x11b   : > { %v4279_v30 = vpop.f32.mrb[8].mxu1  ;;  %3352 = vperm.xlu1 %4857, %v3122_v0   ;;  %v4168_v36 = vpop.f32.mrb[9].mxu0  ;;  %7039 = vst [vmem:[#allocation10_spill] sm:$0xff] %v5961_v19 }
 0x11c   : > { %3347 = vperm.xlu0 %4856, %v3121_v8   ;;  %v4169_v43 = vadd.f32 %v4168_v36, %v4167_v15  ;;  %v4280_v44 = vpop.f32.mrb[9].mxu1  ;;  %v4170_v52 = vpop.f32.mrb[10].mxu0  ;;  %v2612_v15 = vld [vmem:[%s7026_s8 + $0x158] sm:$0xff] }
 0x11d   : > { %v4281_v56 = vadd.f32 %v4280_v44, %v4279_v30  ;;  %v4282_v62 = vpop.f32.mrb[10].mxu1  ;;  %v4171_v4 = vpop.f32.mrb[11].mxu0  ;;  %v2611_v30 = vld [vmem:[%s7026_s8 + $0x150] sm:$0xff] }
 0x11e   : > { %v1101_v6 = vadd.f32 %v4169_v43, %v5729_v23  ;;  %v4172_v0 = vadd.f32 %v4171_v4, %v4170_v52  ;;  %v4283_v18 = vpop.f32.mrb[11].mxu1  ;;  %v5965_v43 = vpop.permute.xlu0 %2725 }
 0x11f   : > { %2930 = vperm.xlu1 %4857, %v2628_v40   ;;  %v4284_v8 = vadd.f32 %v4283_v18, %v4282_v62  ;;  %7040 = vst [vmem:[#allocation11_spill] sm:$0xff] %v5965_v43  ;;  %v5985_v7 = vpop.permute.xlu1 %2740 }
 0x120   : > { %2925 = vperm.xlu0 %4856, %v2627_v54   ;;  %v5955_v36 = vadd.f32 %v4281_v56, %v1101_v6  ;;  %v1104_v12 = vadd.f32 %v4172_v0, %v5727_v20  ;;  %v3140_v54 = vld [vmem:[%s7027_s9 + $0x1d8] sm:$0xff]  ;;  %7041 = vst [vmem:[#allocation12_spill] sm:$0xff] %v5985_v7 }
 0x122   : > { %v4173_v44 = vpop.f32.mrb[12].mxu0  ;;  %v5963_v23 = vadd.f32 %v4284_v8, %v1104_v12  ;;  %v3139_v12 = vld [vmem:[%s7027_s9 + $0x1d0] sm:$0xff] }
 0x123   : > { %v4285_v40 = vpop.f32.mrb[12].mxu1  ;;  %2850 = vperm.xlu1 %4857, %v2612_v15   ;;  %v4174_v52 = vpop.f32.mrb[13].mxu0 }
 0x124   : > { %2845 = vperm.xlu0 %4856, %v2611_v30   ;;  %v4175_v56 = vadd.f32 %v4174_v52, %v4173_v44  ;;  %v4286_v62 = vpop.f32.mrb[13].mxu1  ;;  %v4176_v4 = vpop.f32.mrb[14].mxu0  ;;  %v3124_v44 = vld [vmem:[%s7027_s9 + $0x158] sm:$0xff] }
 0x125   : > { %v4287_v6 = vadd.f32 %v4286_v62, %v4285_v40  ;;  %v4288_v0 = vpop.f32.mrb[14].mxu1  ;;  %v4177_v18 = vpop.f32.mrb[15].mxu0  ;;  %v3123_v40 = vld [vmem:[%s7027_s9 + $0x150] sm:$0xff] }
 0x126   : > { %v1109_v8 = vadd.f32 %v4175_v56, %v5748_v32  ;;  %v4178_v15 = vadd.f32 %v4177_v18, %v4176_v4  ;;  %v4289_v30 = vpop.f32.mrb[15].mxu1  ;;  %v5989_v56 = vpop.permute.xlu0 %2735 }
 0x127   : > { %3442 = vperm.xlu1 %4857, %v3140_v54   ;;  %v4290_v19 = vadd.f32 %v4289_v30, %v4288_v0  ;;  %7042 = vst [vmem:[#allocation13_spill] sm:$0xff] %v5989_v56  ;;  %v6009_v56 = vpop.permute.xlu1 %2750 }
 0x128   : > { %3437 = vperm.xlu0 %4856, %v3139_v12   ;;  %v5979_v52 = vadd.f32 %v4287_v6, %v1109_v8  ;;  %v1112_v20 = vadd.f32 %v4178_v15, %v5740_v29  ;;  %v2630_v12 = vld [vmem:[%s7026_s8 + $0x1e8] sm:$0xff]  ;;  %7043 = vst [vmem:[#allocation14_spill] sm:$0xff] %v6009_v56 }
 0x12a   : > { %v4179_v62 = vpop.f32.mrb[16].mxu0  ;;  %v5987_v32 = vadd.f32 %v4290_v19, %v1112_v20  ;;  %v2629_v19 = vld [vmem:[%s7026_s8 + $0x1e0] sm:$0xff] }
 0x12b   : > { %v4291_v54 = vpop.f32.mrb[16].mxu1  ;;  %3362 = vperm.xlu1 %4857, %v3124_v44   ;;  %v4180_v4 = vpop.f32.mrb[17].mxu0 }
 0x12c   : > { %3357 = vperm.xlu0 %4856, %v3123_v40   ;;  %v4181_v6 = vadd.f32 %v4180_v4, %v4179_v62  ;;  %v4292_v0 = vpop.f32.mrb[17].mxu1  ;;  %v4182_v18 = vpop.f32.mrb[18].mxu0  ;;  %v2614_v62 = vld [vmem:[%s7026_s8 + $0x168] sm:$0xff] }
 0x12d   : > { %v4293_v20 = vadd.f32 %v4292_v0, %v4291_v54  ;;  %v4294_v8 = vpop.f32.mrb[18].mxu1  ;;  %v4183_v15 = vpop.f32.mrb[19].mxu0  ;;  %v2613_v54 = vld [vmem:[%s7026_s8 + $0x160] sm:$0xff] }
 0x12e   : > { %v1117_v30 = vadd.f32 %v4181_v6, %v5764_v42  ;;  %v4184_v44 = vadd.f32 %v4183_v15, %v4182_v18  ;;  %v4295_v40 = vpop.f32.mrb[19].mxu1  ;;  %v6013_v6 = vpop.permute.xlu0 %2745 }
 0x12f   : > { %2940 = vperm.xlu1 %4857, %v2630_v12   ;;  %v4296_v7 = vadd.f32 %v4295_v40, %v4294_v8  ;;  %7044 = vst [vmem:[#allocation15_spill] sm:$0xff] %v6013_v6  ;;  %v6033_v6 = vpop.permute.xlu1 %2760 }
 0x130   : > { %2935 = vperm.xlu0 %4856, %v2629_v19   ;;  %v6003_v4 = vadd.f32 %v4293_v20, %v1117_v30  ;;  %v1120_v29 = vadd.f32 %v4184_v44, %v5762_v41  ;;  %v3142_v19 = vld [vmem:[%s7027_s9 + $0x1e8] sm:$0xff]  ;;  %7045 = vst [vmem:[#allocation16_spill] sm:$0xff] %v6033_v6 }
 0x132   : > { %v4185_v0 = vpop.f32.mrb[20].mxu0  ;;  %v6011_v42 = vadd.f32 %v4296_v7, %v1120_v29  ;;  %v3141_v7 = vld [vmem:[%s7027_s9 + $0x1e0] sm:$0xff] }
 0x133   : > { %v4297_v12 = vpop.f32.mrb[20].mxu1  ;;  %2860 = vperm.xlu1 %4857, %v2614_v62   ;;  %v4186_v18 = vpop.f32.mrb[21].mxu0 }
 0x134   : > { %2855 = vperm.xlu0 %4856, %v2613_v54   ;;  %v4187_v20 = vadd.f32 %v4186_v18, %v4185_v0  ;;  %v4298_v8 = vpop.f32.mrb[21].mxu1  ;;  %v4188_v15 = vpop.f32.mrb[22].mxu0  ;;  %v3126_v0 = vld [vmem:[%s7027_s9 + $0x168] sm:$0xff] }
 0x135   : > { %v4299_v29 = vadd.f32 %v4298_v8, %v4297_v12  ;;  %v4300_v30 = vpop.f32.mrb[22].mxu1  ;;  %v4189_v44 = vpop.f32.mrb[23].mxu0  ;;  %v3125_v12 = vld [vmem:[%s7027_s9 + $0x160] sm:$0xff] }
 0x136   : > { %v1125_v40 = vadd.f32 %v4187_v20, %v5780_v51  ;;  %v4190_v62 = vadd.f32 %v4189_v44, %v4188_v15  ;;  %v4301_v54 = vpop.f32.mrb[23].mxu1  ;;  %v6037_v20 = vpop.permute.xlu0 %2755 }
 0x137   : > { %3452 = vperm.xlu1 %4857, %v3142_v19   ;;  %v4302_v56 = vadd.f32 %v4301_v54, %v4300_v30  ;;  %7046 = vst [vmem:[#allocation17_spill] sm:$0xff] %v6037_v20  ;;  %v6057_v20 = vpop.permute.xlu1 %3232 }
 0x138   : > { %3447 = vperm.xlu0 %4856, %v3141_v7   ;;  %v6027_v18 = vadd.f32 %v4299_v29, %v1125_v40  ;;  %v1128_v41 = vadd.f32 %v4190_v62, %v5775_v48  ;;  %v2632_v7 = vld [vmem:[%s7026_s8 + $0x1f8] sm:$0xff]  ;;  %7047 = vst [vmem:[#allocation18_spill] sm:$0xff] %v6057_v20 }
 0x13a   : > { %v4191_v8 = vpop.f32.mrb[24].mxu0  ;;  %v6035_v51 = vadd.f32 %v4302_v56, %v1128_v41  ;;  %v2631_v56 = vld [vmem:[%s7026_s8 + $0x1f0] sm:$0xff] }
 0x13b   : > { %v4303_v19 = vpop.f32.mrb[24].mxu1  ;;  %3372 = vperm.xlu1 %4857, %v3126_v0   ;;  %v4192_v15 = vpop.f32.mrb[25].mxu0 }
 0x13c   : > { %3367 = vperm.xlu0 %4856, %v3125_v12   ;;  %v4193_v29 = vadd.f32 %v4192_v15, %v4191_v8  ;;  %v4304_v30 = vpop.f32.mrb[25].mxu1  ;;  %v4194_v44 = vpop.f32.mrb[26].mxu0  ;;  %v2616_v8 = vld [vmem:[%s7026_s8 + $0x178] sm:$0xff] }
 0x13d   : > { %v4305_v41 = vadd.f32 %v4304_v30, %v4303_v19  ;;  %v4306_v40 = vpop.f32.mrb[26].mxu1  ;;  %v4195_v62 = vpop.f32.mrb[27].mxu0  ;;  %v2615_v19 = vld [vmem:[%s7026_s8 + $0x170] sm:$0xff] }
 0x13e   : > { %v1133_v54 = vadd.f32 %v4193_v29, %v5796_v58  ;;  %v4196_v0 = vadd.f32 %v4195_v62, %v4194_v44  ;;  %v4307_v12 = vpop.f32.mrb[27].mxu1  ;;  %v6061_v29 = vpop.permute.xlu0 %3227 }
 0x13f   : > { %2950 = vperm.xlu1 %4857, %v2632_v7   ;;  %v4308_v6 = vadd.f32 %v4307_v12, %v4306_v40  ;;  %7048 = vst [vmem:[#allocation19_spill] sm:$0xff] %v6061_v29  ;;  %v6081_v29 = vpop.permute.xlu1 %3152 }
 0x140   : > { %2945 = vperm.xlu0 %4856, %v2631_v56   ;;  %v6051_v15 = vadd.f32 %v4305_v41, %v1133_v54  ;;  %v1136_v48 = vadd.f32 %v4196_v0, %v5794_v57  ;;  %v3144_v56 = vld [vmem:[%s7027_s9 + $0x1f8] sm:$0xff] }
 0x142   : > { %v4197_v30 = vpop.f32.mrb[28].mxu0  ;;  %v6059_v58 = vadd.f32 %v4308_v6, %v1136_v48  ;;  %v3143_v6 = vld [vmem:[%s7027_s9 + $0x1f0] sm:$0xff] }
 0x143   : > { %v4309_v7 = vpop.f32.mrb[28].mxu1  ;;  %2870 = vperm.xlu1 %4857, %v2616_v8   ;;  %v4198_v44 = vpop.f32.mrb[29].mxu0 }
 0x144   : > { %2865 = vperm.xlu0 %4856, %v2615_v19   ;;  %v4199_v41 = vadd.f32 %v4198_v44, %v4197_v30  ;;  %v4310_v40 = vpop.f32.mrb[29].mxu1  ;;  %v4200_v62 = vpop.f32.mrb[30].mxu0  ;;  %v3128_v30 = vld [vmem:[%s7027_s9 + $0x178] sm:$0xff] }
 0x145   : > { %v4311_v48 = vadd.f32 %v4310_v40, %v4309_v7  ;;  %v4312_v54 = vpop.f32.mrb[30].mxu1  ;;  %v4201_v0 = vpop.f32.mrb[31].mxu0  ;;  %v3127_v7 = vld [vmem:[%s7027_s9 + $0x170] sm:$0xff] }
 0x146   : > { %v1141_v12 = vadd.f32 %v4199_v41, %v5809_v2  ;;  %v4202_v8 = vadd.f32 %v4201_v0, %v4200_v62  ;;  %v4313_v19 = vpop.f32.mrb[31].mxu1  ;;  %v6085_v41 = vpop.permute.xlu0 %3147 }
 0x147   : > { %3462 = vperm.xlu1 %4857, %v3144_v56   ;;  %v4314_v20 = vadd.f32 %v4313_v19, %v4312_v54 }
 0x148   : > { %3457 = vperm.xlu0 %4856, %v3143_v6   ;;  %v6075_v44 = vadd.f32 %v4311_v48, %v1141_v12  ;;  %v1144_v57 = vadd.f32 %v4202_v8, %v5804_v63 }
 0x14a   : > { %v4203_v40 = vpop.f32.mrb[32].mxu0  ;;  %v6083_v2 = vadd.f32 %v4314_v20, %v1144_v57 }
 0x14b   : > { %v4315_v56 = vpop.f32.mrb[32].mxu1  ;;  %3382 = vperm.xlu1 %4857, %v3128_v30   ;;  %v4204_v62 = vpop.f32.mrb[33].mxu0 }
 0x14c   : > { %3377 = vperm.xlu0 %4856, %v3127_v7   ;;  %v4205_v48 = vadd.f32 %v4204_v62, %v4203_v40  ;;  %v4316_v63 = vpop.f32.mrb[33].mxu1  ;;  %v4206_v54 = vpop.f32.mrb[34].mxu0 }
 0x14d   : > { %v4317_v0 = vadd.f32 %v4316_v63, %v4315_v56  ;;  %v4318_v12 = vpop.f32.mrb[34].mxu1  ;;  %v4207_v8 = vpop.f32.mrb[35].mxu0 }
 0x14e   : > { %v1149_v19 = vadd.f32 %v4205_v48, %v5560_v22  ;;  %v4208_v43 = vadd.f32 %v4207_v8, %v4206_v54  ;;  %v4319_v20 = vpop.f32.mrb[35].mxu1 }
 0x14f   : > { %v4320_v57 = vadd.f32 %v4319_v20, %v4318_v12 }
 0x150   : > { %v1310_v5 = vadd.f32 %v4317_v0, %v1149_v19  ;;  %v1152_v30 = vadd.f32 %v4208_v43, %v5573_v27 }
 0x152   : > { %v4209_v16 = vpop.f32.mrb[36].mxu0  ;;  %v1313_v11 = vadd.f32 %v4320_v57, %v1152_v30 }
 0x153   : > { %v4210_v7 = vpop.f32.mrb[37].mxu0  ;;  %v4321_v40 = vpop.f32.mrb[36].mxu1 }
 0x154   : > { %v4211_v24 = vadd.f32 %v4210_v7, %v4209_v16  ;;  %v4212_v47 = vpop.f32.mrb[38].mxu0  ;;  %v6091_v6 = vpack.c.bf16 %v1313_v11, %v1310_v5  ;;  %v4322_v55 = vpop.f32.mrb[37].mxu1 }
 0x155   : > { %v4213_v62 = vpop.f32.mrb[39].mxu0  ;;  %v4323_v22 = vadd.f32 %v4322_v55, %v4321_v40  ;;  %v4324_v48 = vpop.f32.mrb[38].mxu1 }
 0x156   : > { %v1157_v56 = vadd.f32 %v4211_v24, %v5558_v21  ;;  %v4214_v63 = vadd.f32 %v4213_v62, %v4212_v47  ;;  %4839 = vmatprep.subr.msk.bf16.mxu0 %vm1388_vm0, %v6091_v6  ;;  %4631 = vmatprep.subr.bf16.mxu1 %v6091_v6  ;;  %v1414_v27 = vsel %vm1388_vm0, %v6091_v6, 0  ;;  %v4325_v5 = vpop.f32.mrb[39].mxu1 }
 0x157   : > { %4536 = vmatpush3.bf16.xpose.msra.mxu0 %v1414_v27  ;;  %v4326_v43 = vadd.f32 %v4325_v5, %v4324_v48 }
 0x158   : > { %v1160_v16 = vadd.f32 %v4214_v63, %v5571_v26  ;;  %v1318_v11 = vadd.f32 %v4323_v22, %v1157_v56 }
 0x15a   : > { %v4215_v54 = vpop.f32.mrb[40].mxu0  ;;  %v1321_v21 = vadd.f32 %v4326_v43, %v1160_v16 }
 0x15b   : > { %v4216_v47 = vpop.f32.mrb[41].mxu0  ;;  %v4327_v12 = vpop.f32.mrb[40].mxu1 }
 0x15c   : > { %v4217_v24 = vadd.f32 %v4216_v47, %v4215_v54  ;;  %v4218_v55 = vpop.f32.mrb[42].mxu0  ;;  %v6100_v0 = vpack.c.bf16 %v1321_v21, %v1318_v11  ;;  %v4328_v57 = vpop.f32.mrb[41].mxu1 }
 0x15d   : > { %v4219_v8 = vpop.f32.mrb[43].mxu0  ;;  %v4329_v30 = vadd.f32 %v4328_v57, %v4327_v12  ;;  %v4330_v7 = vpop.f32.mrb[42].mxu1 }
 0x15e   : > { %v1165_v19 = vadd.f32 %v4217_v24, %v5592_v34  ;;  %v4220_v20 = vadd.f32 %v4219_v8, %v4218_v55  ;;  %4840 = vmatprep.subr.msk.bf16.mxu0 %vm1388_vm0, %v6100_v0  ;;  %v1417_v26 = vsel %vm1388_vm0, %v6100_v0, 0  ;;  %v4331_v62 = vpop.f32.mrb[43].mxu1 }
 0x15f   : > { %4538 = vmatpush3.bf16.xpose.msra.mxu0 %v1417_v26  ;;  %v4332_v63 = vadd.f32 %v4331_v62, %v4330_v7 }
 0x160   : > { %v1168_v40 = vadd.f32 %v4220_v20, %v5590_v33  ;;  %v1326_v56 = vadd.f32 %v4329_v30, %v1165_v19 }
 0x162   : > { %v4221_v22 = vpop.f32.mrb[44].mxu0  ;;  %v1329_v48 = vadd.f32 %v4332_v63, %v1168_v40 }
 0x163   : > { %v4222_v27 = vpop.f32.mrb[45].mxu0  ;;  %v4333_v11 = vpop.f32.mrb[44].mxu1 }
 0x164   : > { %v4223_v34 = vadd.f32 %v4222_v27, %v4221_v22  ;;  %v4224_v16 = vpop.f32.mrb[46].mxu0  ;;  %v6108_v5 = vpack.c.bf16 %v1329_v48, %v1326_v56  ;;  %v4334_v47 = vpop.f32.mrb[45].mxu1 }
 0x165   : > { %v4225_v43 = vpop.f32.mrb[47].mxu0  ;;  %v4335_v24 = vadd.f32 %v4334_v47, %v4333_v11  ;;  %v4336_v55 = vpop.f32.mrb[46].mxu1 }
 0x166   : > { %v1173_v54 = vadd.f32 %v4223_v34, %v5602_v38  ;;  %v4226_v21 = vadd.f32 %v4225_v43, %v4224_v16  ;;  %4841 = vmatprep.subr.msk.bf16.mxu0 %vm1388_vm0, %v6108_v5  ;;  %v1420_v33 = vsel %vm1388_vm0, %v6108_v5, 0  ;;  %v4337_v8 = vpop.f32.mrb[47].mxu1 }
 0x167   : > { %4540 = vmatpush3.bf16.xpose.msra.mxu0 %v1420_v33  ;;  %v4338_v20 = vadd.f32 %v4337_v8, %v4336_v55 }
 0x168   : > { %v1176_v12 = vadd.f32 %v4226_v21, %v5600_v37  ;;  %v1334_v19 = vadd.f32 %v4335_v24, %v1173_v54 }
 0x16a   : > { %v4227_v57 = vpop.f32.mrb[48].mxu0  ;;  %v1337_v30 = vadd.f32 %v4338_v20, %v1176_v12 }
 0x16b   : > { %v4228_v7 = vpop.f32.mrb[49].mxu0  ;;  %v4339_v62 = vpop.f32.mrb[48].mxu1 }
 0x16c   : > { %v4229_v38 = vadd.f32 %v4228_v7, %v4227_v57  ;;  %v4230_v26 = vpop.f32.mrb[50].mxu0  ;;  %v6116_v40 = vpack.c.bf16 %v1337_v30, %v1334_v19  ;;  %v4340_v48 = vpop.f32.mrb[49].mxu1 }
 0x16d   : > { %v4231_v56 = vpop.f32.mrb[51].mxu0  ;;  %v4341_v27 = vadd.f32 %v4340_v48, %v4339_v62  ;;  %v4342_v34 = vpop.f32.mrb[50].mxu1 }
 0x16e   : > { %v1181_v63 = vadd.f32 %v4229_v38, %v5624_v46  ;;  %v4232_v22 = vadd.f32 %v4231_v56, %v4230_v26  ;;  %4842 = vmatprep.subr.msk.bf16.mxu0 %vm1388_vm0, %v6116_v40  ;;  %v1423_v37 = vsel %vm1388_vm0, %v6116_v40, 0  ;;  %v4343_v11 = vpop.f32.mrb[51].mxu1 }
 0x16f   : > { %4542 = vmatpush3.bf16.xpose.msra.mxu0 %v1423_v37  ;;  %v4344_v54 = vadd.f32 %v4343_v11, %v4342_v34 }
 0x170   : > { %v1184_v16 = vadd.f32 %v4232_v22, %v5622_v45  ;;  %v1342_v43 = vadd.f32 %v4341_v27, %v1181_v63 }
 0x172   : > { %v4233_v21 = vpop.f32.mrb[52].mxu0  ;;  %v1345_v47 = vadd.f32 %v4344_v54, %v1184_v16 }
 0x173   : > { %v4234_v24 = vpop.f32.mrb[53].mxu0  ;;  %v4345_v12 = vpop.f32.mrb[52].mxu1 }
 0x174   : > { %v4235_v46 = vadd.f32 %v4234_v24, %v4233_v21  ;;  %v4236_v55 = vpop.f32.mrb[54].mxu0  ;;  %v6124_v33 = vpack.c.bf16 %v1345_v47, %v1342_v43  ;;  %v4346_v57 = vpop.f32.mrb[53].mxu1 }
 0x175   : > { %v4237_v8 = vpop.f32.mrb[55].mxu0  ;;  %v4347_v30 = vadd.f32 %v4346_v57, %v4345_v12  ;;  %v4348_v7 = vpop.f32.mrb[54].mxu1 }
 0x176   : > { %v1189_v19 = vadd.f32 %v4235_v46, %v5643_v53  ;;  %v4238_v20 = vadd.f32 %v4237_v8, %v4236_v55  ;;  %4843 = vmatprep.subr.msk.bf16.mxu0 %vm1388_vm0, %v6124_v33  ;;  %v1426_v45 = vsel %vm1388_vm0, %v6124_v33, 0  ;;  %v4349_v26 = vpop.f32.mrb[55].mxu1 }
 0x177   : > { %4544 = vmatpush3.bf16.xpose.msra.mxu0 %v1426_v45  ;;  %v4350_v56 = vadd.f32 %v4349_v26, %v4348_v7 }
 0x178   : > { %v1192_v38 = vadd.f32 %v4238_v20, %v5635_v50  ;;  %v1350_v62 = vadd.f32 %v4347_v30, %v1189_v19 }
 0x17a   : > { %v4239_v63 = vpop.f32.mrb[56].mxu0  ;;  %v1353_v22 = vadd.f32 %v4350_v56, %v1192_v38 }
 0x17b   : > { %v4240_v48 = vpop.f32.mrb[57].mxu0  ;;  %v4351_v37 = vpop.f32.mrb[56].mxu1 }
 0x17c   : > { %v4241_v53 = vadd.f32 %v4240_v48, %v4239_v63  ;;  %v4242_v27 = vpop.f32.mrb[58].mxu0  ;;  %v6132_v34 = vpack.c.bf16 %v1353_v22, %v1350_v62  ;;  %v4352_v54 = vpop.f32.mrb[57].mxu1 }
 0x17d   : > { %v4243_v16 = vpop.f32.mrb[59].mxu0  ;;  %v4353_v21 = vadd.f32 %v4352_v54, %v4351_v37  ;;  %v4354_v47 = vpop.f32.mrb[58].mxu1  ;;  %v7052_v54 = vpack.c.bf16 %v6011_v42, %v6003_v4 }
 0x17e   : > { %v1197_v11 = vadd.f32 %v4241_v53, %v5662_v60  ;;  %v4244_v43 = vadd.f32 %v4243_v16, %v4242_v27  ;;  %4844 = vmatprep.subr.msk.bf16.mxu0 %vm1388_vm0, %v6132_v34  ;;  %v1429_v50 = vsel %vm1388_vm0, %v6132_v34, 0  ;;  %v4355_v46 = vpop.f32.mrb[59].mxu1 }
 0x17f   : > { %4546 = vmatpush3.bf16.xpose.msra.mxu0 %v1429_v50  ;;  %v4356_v12 = vadd.f32 %v4355_v46, %v4354_v47 }
 0x180   : > { %v1200_v24 = vadd.f32 %v4244_v43, %v5660_v59  ;;  %v1358_v55 = vadd.f32 %v4353_v21, %v1197_v11  ;;  %v7049_v11 = vpack.c.bf16 %v5939_v31, %v5931_v13  ;;  %v7050_v43 = vpack.c.bf16 %v5963_v23, %v5955_v36 }
 0x181   : > { %v7053_v13 = vpack.c.bf16 %v6035_v51, %v6027_v18  ;;  %v7054_v31 = vpack.c.bf16 %v6059_v58, %v6051_v15  ;;  %v7055_v36 = vpack.c.bf16 %v6083_v2, %v6075_v44 }
 0x182   : > { %v4245_v8 = vpop.f32.mrb[60].mxu0  ;;  %v1361_v19 = vadd.f32 %v4356_v12, %v1200_v24 }
 0x183   : > { %v4246_v20 = vpop.f32.mrb[61].mxu0  ;;  %v4357_v7 = vpop.f32.mrb[60].mxu1 }
 0x184   : > { %v4247_v60 = vadd.f32 %v4246_v20, %v4245_v8  ;;  %v4248_v57 = vpop.f32.mrb[62].mxu0  ;;  %v6140_v30 = vpack.c.bf16 %v1361_v19, %v1358_v55  ;;  %v4358_v62 = vpop.f32.mrb[61].mxu1  ;;  %v6233_v20 = vld [vmem:[%s7023_s5] ss:$0 sm:$0xff] }
 0x185   : > { %v4249_v45 = vpop.f32.mrb[63].mxu0  ;;  %v4359_v56 = vadd.f32 %v4358_v62, %v4357_v7  ;;  %v4360_v63 = vpop.f32.mrb[62].mxu1 }
 0x186   : > { %v1205_v38 = vadd.f32 %v4247_v60, %v5681_v3  ;;  %v4250_v26 = vadd.f32 %v4249_v45, %v4248_v57  ;;  %4845 = vmatprep.subr.msk.bf16.mxu0 %vm1388_vm0, %v6140_v30  ;;  %v1432_v59 = vsel %vm1388_vm0, %v6140_v30, 0  ;;  %v4361_v48 = vpop.f32.mrb[63].mxu1 }
 0x187   : > { %4548 = vmatpush3.bf16.xpose.msra.mxu0 %v1432_v59  ;;  %v4362_v27 = vadd.f32 %v4361_v48, %v4360_v63 }
 0x188   : > { %v1208_v22 = vadd.f32 %v4250_v26, %v5676_v1  ;;  %v1366_v53 = vadd.f32 %v4359_v56, %v1205_v38  ;;  %v7051_v1 = vpack.c.bf16 %v5987_v32, %v5979_v52 }
 0x18a   : > { %v1369_v37 = vadd.f32 %v4362_v27, %v1208_v22 }
 0x18c   : > { %v1387_v16 = vpack.c.bf16 %v1369_v37, %v1366_v53 }
 0x18e   : > { %4846 = vmatprep.subr.msk.bf16.mxu0 %vm1388_vm0, %v1387_v16  ;;  %v1435_v3 = vsel %vm1388_vm0, %v1387_v16, 0 }
 0x18f   : > { %4550 = vmatpush3.bf16.xpose.msra.mxu0 %v1435_v3 }
 0x196   : > { %4552 = vmatmul.mubr.msk.bf16.vlgmr.msra.gmra.mrb[64].mxu0 %vm1388_vm0, %v7049_v11 }
 0x197   : > { %4555 = vmatprep.mubr.msk.bf16.mxu0 %vm1388_vm0, %v7050_v43 }
 0x19e   : > { %4556 = vmatmul.mubr.msk.bf16.gmra.mrb[68].mxu0 %vm1388_vm0, %v7051_v1 }
 0x19f   : > { %4559 = vmatprep.mubr.msk.bf16.mxu0 %vm1388_vm0, %v7052_v54 }
 0x1a6   : > { %4560 = vmatmul.mubr.msk.bf16.gmra.mrb[72].mxu0 %vm1388_vm0, %v7053_v13 }
 0x1a7   : > { %4563 = vmatprep.mubr.msk.bf16.mxu0 %vm1388_vm0, %v7054_v31 }
 0x1ae   : > { %4564 = vmatmul.mubr.msk.bf16.gmra.mrb[76].mxu0 %vm1388_vm0, %v7055_v36 }
 0x269   : > { %v4553_v23 = vpop.f32.mrb[64].mxu0 }
 0x26a   : > { %v1471_v52 = vpop.f32.mrb[65].mxu0 }
 0x26b   : > { %v4554_v32 = vpop.f32.mrb[66].mxu0 }
 0x26c   : > { %v1535_v4 = vpack.c.bf16 %v4554_v32, %v4553_v23  ;;  %v1474_v42 = vpop.f32.mrb[67].mxu0 }
 0x26d   : > { %v1534_v21 = vpack.c.bf16 %v1474_v42, %v1471_v52 }
 0x26f   : > { %4583 = vmatprep.mubr.bf16.mxu1 %v1534_v21 }
 0x270   : > { %4584 = vmatmul.mubr.bf16.vlgmr.msra.gmra.mrb[64].mxu1 %v1535_v4 }
 0x271   : > { %4632 = vmatpush3.bf16.msra.mxu1 %v6091_v6  ;;  %v6179_v18 = vpop.f32.mrb[68].mxu0 }
 0x272   : > { %4633 = vmatprep.subr.bf16.mxu1 %v6100_v0  ;;  %v6182_v51 = vpop.f32.mrb[69].mxu0 }
 0x273   : > { %v6184_v15 = vpop.f32.mrb[70].mxu0 }
 0x274   : > { %v1537_v58 = vpack.c.bf16 %v6184_v15, %v6179_v18  ;;  %v6188_v44 = vpop.f32.mrb[71].mxu0 }
 0x275   : > { %v1536_v2 = vpack.c.bf16 %v6188_v44, %v6182_v51  ;;  %4634 = vmatpush3.bf16.msra.mxu1 %v6100_v0 }
 0x276   : > { %4635 = vmatprep.subr.bf16.mxu1 %v6108_v5 }
 0x277   : > { %4587 = vmatprep.mubr.bf16.mxu1 %v1536_v2 }
 0x278   : > { %4588 = vmatmul.mubr.bf16.gmra.mrb[68].mxu1 %v1537_v58 }
 0x279   : > { %4636 = vmatpush3.bf16.msra.mxu1 %v6108_v5  ;;  %v6195_v6 = vpop.f32.mrb[72].mxu0 }
 0x27a   : > { %4637 = vmatprep.subr.bf16.mxu1 %v6116_v40  ;;  %v6198_v47 = vpop.f32.mrb[73].mxu0 }
 0x27b   : > { %v6200_v50 = vpop.f32.mrb[74].mxu0 }
 0x27c   : > { %v1539_v24 = vpack.c.bf16 %v6200_v50, %v6195_v6  ;;  %v6204_v46 = vpop.f32.mrb[75].mxu0 }
 0x27d   : > { %v1538_v0 = vpack.c.bf16 %v6204_v46, %v6198_v47  ;;  %4638 = vmatpush3.bf16.msra.mxu1 %v6116_v40 }
 0x27e   : > { %4639 = vmatprep.subr.bf16.mxu1 %v6124_v33 }
 0x27f   : > { %4591 = vmatprep.mubr.bf16.mxu1 %v1538_v0 }
 0x280   : > { %4592 = vmatmul.mubr.bf16.gmra.mrb[72].mxu1 %v1539_v24 }
 0x281   : > { %4640 = vmatpush3.bf16.msra.mxu1 %v6124_v33  ;;  %v6211_v5 = vpop.f32.mrb[76].mxu0  ;;  %v4962_v33 = vld [vmem:[%s7024_s6] sm:$0xff]  }
 0x282   : > { %4641 = vmatprep.subr.bf16.mxu1 %v6132_v34  ;;  %v6214_v55 = vpop.f32.mrb[77].mxu0  ;;  %4615 = vmatprep.mubr.bf16.mxu0 %v4962_v33 }
 0x283   : > { %v6216_v12 = vpop.f32.mrb[78].mxu0 }
 0x284   : > { %v1541_v8 = vpack.c.bf16 %v6216_v12, %v6211_v5  ;;  %v6220_v19 = vpop.f32.mrb[79].mxu0 }
 0x285   : > { %v1540_v40 = vpack.c.bf16 %v6220_v19, %v6214_v55  ;;  %4642 = vmatpush3.bf16.msra.mxu1 %v6132_v34 }
 0x286   : > { %4643 = vmatprep.subr.bf16.mxu1 %v6140_v30 }
 0x287   : > { %4595 = vmatprep.mubr.bf16.mxu1 %v1540_v40 }
 0x288   : > { %4596 = vmatmul.mubr.bf16.gmra.mrb[76].mxu1 %v1541_v8 }
 0x289   : > { %4644 = vmatpush3.bf16.msra.mxu1 %v6140_v30 }
 0x28a   : > { %4645 = vmatprep.subr.bf16.mxu1 %v1387_v16 }
 0x28d   : > { %4646 = vmatpush3.bf16.msra.mxu1 %v1387_v16 }
 0x343   : > { %v4585_v60 = vpop.f32.mrb[64].mxu1 }
 0x344   : > { %v1656_v34 = vadd.f32 %v4585_v60, %v6233_v20  ;;  %v1647_v57 = vpop.f32.mrb[65].mxu1 }
 0x345   : > { %v1648_v7 = vadd.f32 %v6233_v20, %v1647_v57  ;;  %v4586_v45 = vpop.f32.mrb[66].mxu1 }
 0x346   : > { %v1712_v30 = vadd.f32 %v4553_v23, %v1656_v34  ;;  %v1659_v38 = vadd.f32 %v4586_v45, %v6233_v20  ;;  %v1650_v26 = vpop.f32.mrb[67].mxu1 }
 0x347   : > { %v1710_v62 = vadd.f32 %v1648_v7, %v1471_v52  ;;  %v1651_v56 = vadd.f32 %v6233_v20, %v1650_v26 }
 0x348   : > { %v1713_v63 = vadd.f32 %v4554_v32, %v1659_v38  ;;  %v1728_v22 = vmax.f32 %v1712_v30, 0.0 }
 0x349   : > { %v1711_v59 = vadd.f32 %v1651_v56, %v1474_v42  ;;  %v1726_v53 = vmax.f32 %v1710_v62, 0.0 }
 0x34a   : > { %v1729_v48 = vmax.f32 %v1713_v63, 0.0 }
 0x34b   : > { %v1727_v27 = vmax.f32 %v1711_v59, 0.0  ;;  %v4589_v37 = vpop.f32.mrb[68].mxu1 }
 0x34c   : > { %v1672_v16 = vadd.f32 %v4589_v37, %v6233_v20  ;;  %v1663_v3 = vpop.f32.mrb[69].mxu1  ;;  %v1759_v11 = vpack.c.bf16 %v1729_v48, %v1728_v22 }
 0x34d   : > { %v1664_v43 = vadd.f32 %v6233_v20, %v1663_v3  ;;  %v4590_v1 = vpop.f32.mrb[70].mxu1  ;;  %v1758_v54 = vpack.c.bf16 %v1727_v27, %v1726_v53 }
 0x34e   : > { %v1716_v13 = vadd.f32 %v6179_v18, %v1672_v16  ;;  %v1675_v31 = vadd.f32 %v4590_v1, %v6233_v20  ;;  %v1666_v36 = vpop.f32.mrb[71].mxu1 }
 0x34f   : > { %v1714_v23 = vadd.f32 %v1664_v43, %v6182_v51  ;;  %v1667_v52 = vadd.f32 %v6233_v20, %v1666_v36  ;;  %4599 = vmatprep.subr.bf16.mxu0 %v1758_v54  ;;  %v4968_v36 = vld [vmem:[%s7024_s6 + $0x30] sm:$0xff]  }
 0x350   : > { %v1717_v32 = vadd.f32 %v6184_v15, %v1675_v31  ;;  %4600 = vmatpush3.bf16.msra.mxu0 %v1758_v54  ;;  %v1732_v42 = vmax.f32 %v1716_v13, 0.0  ;;  %v4967_v31 = vld [vmem:[%s7024_s6 + $0x28] sm:$0xff]  }
 0x351   : > { %v1715_v4 = vadd.f32 %v1667_v52, %v6188_v44  ;;  %4601 = vmatprep.subr.bf16.mxu0 %v1759_v11  ;;  %v1730_v58 = vmax.f32 %v1714_v23, 0.0  ;;  %v4969_v23 = vld [vmem:[%s7024_s6 + $0x38] sm:$0xff]  }
 0x352   : > { %v1733_v21 = vmax.f32 %v1717_v32, 0.0 }
 0x353   : > { %v1731_v2 = vmax.f32 %v1715_v4, 0.0  ;;  %v4593_v24 = vpop.f32.mrb[72].mxu1 }
 0x354   : > { %v1688_v18 = vadd.f32 %v4593_v24, %v6233_v20  ;;  %v1679_v0 = vpop.f32.mrb[73].mxu1  ;;  %4602 = vmatpush3.bf16.msra.mxu0 %v1759_v11  ;;  %v1761_v8 = vpack.c.bf16 %v1733_v21, %v1732_v42 }
 0x355   : > { %v1680_v51 = vadd.f32 %v6233_v20, %v1679_v0  ;;  %v4594_v40 = vpop.f32.mrb[74].mxu1  ;;  %v1760_v33 = vpack.c.bf16 %v1731_v2, %v1730_v58 }
 0x356   : > { %v1720_v15 = vadd.f32 %v6195_v6, %v1688_v18  ;;  %v1691_v60 = vadd.f32 %v4594_v40, %v6233_v20  ;;  %v1682_v44 = vpop.f32.mrb[75].mxu1 }
 0x357   : > { %v1718_v34 = vadd.f32 %v1680_v51, %v6198_v47  ;;  %v1683_v57 = vadd.f32 %v6233_v20, %v1682_v44  ;;  %4603 = vmatprep.subr.bf16.mxu0 %v1760_v33 }
 0x358   : > { %v1721_v7 = vadd.f32 %v6200_v50, %v1691_v60  ;;  %4604 = vmatpush3.bf16.msra.mxu0 %v1760_v33  ;;  %v1736_v30 = vmax.f32 %v1720_v15, 0.0 }
 0x359   : > { %v1719_v45 = vadd.f32 %v1683_v57, %v6204_v46  ;;  %4605 = vmatprep.subr.bf16.mxu0 %v1761_v8  ;;  %v1734_v26 = vmax.f32 %v1718_v34, 0.0 }
 0x35a   : > { %v1737_v38 = vmax.f32 %v1721_v7, 0.0 }
 0x35b   : > { %v1735_v62 = vmax.f32 %v1719_v45, 0.0  ;;  %v4597_v56 = vpop.f32.mrb[76].mxu1 }
 0x35c   : > { %v1704_v6 = vadd.f32 %v4597_v56, %v6233_v20  ;;  %v1695_v63 = vpop.f32.mrb[77].mxu1  ;;  %4606 = vmatpush3.bf16.msra.mxu0 %v1761_v8  ;;  %v1763_v59 = vpack.c.bf16 %v1737_v38, %v1736_v30 }
 0x35d   : > { %v1696_v47 = vadd.f32 %v6233_v20, %v1695_v63  ;;  %v4598_v22 = vpop.f32.mrb[78].mxu1  ;;  %v1762_v48 = vpack.c.bf16 %v1735_v62, %v1734_v26  ;;  %v4970_v62 = vld [vmem:[%s7025_s7] sm:$0xff]  }
 0x35e   : > { %v1724_v50 = vadd.f32 %v6211_v5, %v1704_v6  ;;  %v1707_v53 = vadd.f32 %v4598_v22, %v6233_v20  ;;  %v1698_v46 = vpop.f32.mrb[79].mxu1 }
 0x35f   : > { %v1722_v27 = vadd.f32 %v1696_v47, %v6214_v55  ;;  %v1699_v37 = vadd.f32 %v6233_v20, %v1698_v46  ;;  %4607 = vmatprep.subr.bf16.mxu0 %v1762_v48  ;;  %v4963_v55 = vld [vmem:[%s7024_s6 + $0x8] sm:$0xff]   ;;  %v4966_v20 = vld [vmem:[%s7024_s6 + $0x20] sm:$0xff]  }
 0x360   : > { %v1725_v16 = vadd.f32 %v6216_v12, %v1707_v53  ;;  %4608 = vmatpush3.bf16.msra.mxu0 %v1762_v48  ;;  %v1740_v11 = vmax.f32 %v1724_v50, 0.0  ;;  %v4964_v12 = vld [vmem:[%s7024_s6 + $0x10] sm:$0xff]  }
 0x361   : > { %v1723_v3 = vadd.f32 %v1699_v37, %v6220_v19  ;;  %4609 = vmatprep.subr.bf16.mxu0 %v1763_v59  ;;  %v1738_v1 = vmax.f32 %v1722_v27, 0.0  ;;  %v4965_v19 = vld [vmem:[%s7024_s6 + $0x18] sm:$0xff]  }
 0x362   : > { %v1741_v43 = vmax.f32 %v1725_v16, 0.0 }
 0x363   : > { %v1739_v54 = vmax.f32 %v1723_v3, 0.0 }
 0x364   : > { %4610 = vmatpush3.bf16.msra.mxu0 %v1763_v59  ;;  %v1765_v5 = vpack.c.bf16 %v1741_v43, %v1740_v11 }
 0x365   : > { %v1764_v13 = vpack.c.bf16 %v1739_v54, %v1738_v1 }
 0x367   : > { %4611 = vmatprep.subr.bf16.mxu0 %v1764_v13 }
 0x368   : > { %4612 = vmatpush3.bf16.msra.mxu0 %v1764_v13 }
 0x369   : > { %4613 = vmatprep.subr.bf16.mxu0 %v1765_v5 }
 0x36c   : > { %4614 = vmatpush3.bf16.msra.mxu0 %v1765_v5 }
 0x36f   : > { %4616 = vmatmul.mubr.bf16.vlgmr.msra.gmra.mrb[80].mxu0 %v4963_v55 }
 0x370   : > { %4619 = vmatprep.mubr.bf16.mxu0 %v4964_v12 }
 0x377   : > { %4620 = vmatmul.mubr.bf16.gmra.mrb[84].mxu0 %v4965_v19 }
 0x378   : > { %4623 = vmatprep.mubr.bf16.mxu0 %v4966_v20 }
 0x37f   : > { %4624 = vmatmul.mubr.bf16.gmra.mrb[88].mxu0 %v4967_v31  ;;  %v4971_v31 = vld [vmem:[%s7025_s7 + $0x8] sm:$0xff]  }
 0x380   : > { %4627 = vmatprep.mubr.bf16.mxu0 %v4968_v36  ;;  %v4972_v36 = vld [vmem:[%s7025_s7 + $0x10] sm:$0xff]  }
 0x387   : > { %4628 = vmatmul.mubr.bf16.gmra.mrb[92].mxu0 %v4969_v23  ;;  %v4973_v23 = vld [vmem:[%s7025_s7 + $0x18] sm:$0xff]  }
 0x388   : > { %4679 = vmatprep.mubr.bf16.mxu0 %v4970_v62  ;;  %v4985_v62 = vld [vmem:[%s7025_s7 + $0x78] sm:$0xff]  }
 0x442   : > { %v4617_v52 = vpop.f32.mrb[80].mxu0 }
 0x443   : > { %v1848_v32 = vpop.f32.mrb[81].mxu0 }
 0x444   : > { %v4618_v4 = vpop.f32.mrb[82].mxu0 }
 0x445   : > { %v1912_v42 = vpack.c.bf16 %v4618_v4, %v4617_v52  ;;  %v1851_v21 = vpop.f32.mrb[83].mxu0  ;;  %v4974_v52 = vld [vmem:[%s7025_s7 + $0x20] sm:$0xff]   ;;  %v4976_v4 = vld [vmem:[%s7025_s7 + $0x30] sm:$0xff]  }
 0x446   : > { %v1911_v58 = vpack.c.bf16 %v1851_v21, %v1848_v32  ;;  %v4975_v32 = vld [vmem:[%s7025_s7 + $0x28] sm:$0xff]   ;;  %v6307_v21 = vpop.permute.xlu0 %3237 }
 0x448   : > { %4647 = vmatprep.mubr.bf16.mxu1 %v1911_v58  ;;  %v4977_v58 = vld [vmem:[%s7025_s7 + $0x38] sm:$0xff]  }
 0x449   : > { %4648 = vmatmul.mubr.bf16.vlgmr.msra.gmra.mrb[80].mxu1 %v1912_v42  ;;  %v6305_v42 = vpop.permute.xlu1 %3242 }
 0x44a   : > { %v4621_v2 = vpop.f32.mrb[84].mxu0 }
 0x44b   : > { %v1864_v24 = vpop.f32.mrb[85].mxu0 }
 0x44c   : > { %v4622_v18 = vpop.f32.mrb[86].mxu0 }
 0x44d   : > { %v1914_v0 = vpack.c.bf16 %v4622_v18, %v4621_v2  ;;  %v1867_v8 = vpop.f32.mrb[87].mxu0  ;;  %v4978_v2 = vld [vmem:[%s7025_s7 + $0x40] sm:$0xff]   ;;  %v6317_v18 = vpop.permute.xlu0 %3157 }
 0x44e   : > { %v1913_v51 = vpack.c.bf16 %v1867_v8, %v1864_v24  ;;  %v6315_v24 = vpop.permute.xlu1 %3162  ;;  %v4979_v8 = vld [vmem:[%s7025_s7 + $0x48] sm:$0xff]  }
 0x450   : > { %4651 = vmatprep.mubr.bf16.mxu1 %v1913_v51 }
 0x451   : > { %4652 = vmatmul.mubr.bf16.gmra.mrb[84].mxu1 %v1914_v0  ;;  %v6324_v51 = vpop.permute.xlu0 %3247 }
 0x452   : > { %v4625_v40 = vpop.f32.mrb[88].mxu0  ;;  %v6319_v0 = vpop.permute.xlu1 %3252 }
 0x453   : > { %v1880_v33 = vpop.f32.mrb[89].mxu0 }
 0x454   : > { %v4626_v15 = vpop.f32.mrb[90].mxu0 }
 0x455   : > { %v1916_v60 = vpack.c.bf16 %v4626_v15, %v4625_v40  ;;  %v1883_v44 = vpop.f32.mrb[91].mxu0  ;;  %v4980_v40 = vld [vmem:[%s7025_s7 + $0x50] sm:$0xff]   ;;  %v6331_v15 = vpop.permute.xlu0 %3167 }
 0x456   : > { %v1915_v34 = vpack.c.bf16 %v1883_v44, %v1880_v33  ;;  %v6329_v33 = vpop.permute.xlu1 %3172  ;;  %v4982_v44 = vld [vmem:[%s7025_s7 + $0x60] sm:$0xff]  }
 0x458   : > { %4655 = vmatprep.mubr.bf16.mxu1 %v1915_v34 }
 0x459   : > { %4656 = vmatmul.mubr.bf16.gmra.mrb[88].mxu1 %v1916_v60  ;;  %v4981_v60 = vld [vmem:[%s7025_s7 + $0x58] sm:$0xff]  }
 0x45a   : > { %v4629_v57 = vpop.f32.mrb[92].mxu0  ;;  %v6339_v34 = vpop.permute.xlu1 %3262 }
 0x45b   : > { %v1896_v7 = vpop.f32.mrb[93].mxu0 }
 0x45c   : > { %v4630_v45 = vpop.f32.mrb[94].mxu0 }
 0x45d   : > { %v1918_v30 = vpack.c.bf16 %v4630_v45, %v4629_v57  ;;  %v1899_v38 = vpop.f32.mrb[95].mxu0  ;;  %v6341_v57 = vpop.permute.xlu0 %3257  ;;  %v4984_v45 = vld [vmem:[%s7025_s7 + $0x70] sm:$0xff]  }
 0x45e   : > { %v1917_v26 = vpack.c.bf16 %v1899_v38, %v1896_v7  ;;  %v4983_v7 = vld [vmem:[%s7025_s7 + $0x68] sm:$0xff]  }
 0x460   : > { %4659 = vmatprep.mubr.bf16.mxu1 %v1917_v26 }
 0x461   : > { %4660 = vmatmul.mubr.bf16.gmra.mrb[92].mxu1 %v1918_v30  ;;  %v6349_v30 = vpop.permute.xlu1 %3182  ;;  %v6351_v38 = vpop.permute.xlu0 %3177 }
 0x465   : > { %v6353_v26 = vpop.permute.xlu1 %3272 }
 0x51c   : > { %v4649_v56 = vpop.f32.mrb[80].mxu1 }
 0x51d   : > { %v1953_v6 = vpop.f32.mrb[81].mxu1 }
 0x51e   : > { %v4650_v63 = vpop.f32.mrb[82].mxu1 }
 0x51f   : > { %v2081_v59 = vpack.c.bf16 %v4650_v63, %v4649_v56  ;;  %v1956_v47 = vpop.f32.mrb[83].mxu1  ;;  %v6358_v56 = vpop.permute.xlu0 %3267 }
 0x520   : > { %v2080_v22 = vpack.c.bf16 %v1956_v47, %v1953_v6  ;;  %v4986_v6 = vld [vmem:[%s7025_s7 + $0x80] sm:$0xff]   ;;  %v6363_v63 = vpop.permute.xlu1 %3192  ;;  %v4987_v47 = vld [vmem:[%s7025_s7 + $0x88] sm:$0xff]  }
 0x522   : > { %4663 = vmatprep.subr.bf16.mxu0 %v2080_v22 }
 0x523   : > { %4664 = vmatpush3.bf16.msra.mxu0 %v2080_v22  ;;  %v4988_v22 = vld [vmem:[%s7025_s7 + $0x90] sm:$0xff]  }
 0x524   : > { %v4653_v48 = vpop.f32.mrb[84].mxu1  ;;  %4665 = vmatprep.subr.bf16.mxu0 %v2081_v59 }
 0x525   : > { %v1969_v50 = vpop.f32.mrb[85].mxu1 }
 0x526   : > { %v4654_v53 = vpop.f32.mrb[86].mxu1 }
 0x527   : > { %v2083_v46 = vpack.c.bf16 %v4654_v53, %v4653_v48  ;;  %v1972_v27 = vpop.f32.mrb[87].mxu1  ;;  %4666 = vmatpush3.bf16.msra.mxu0 %v2081_v59  ;;  %v6365_v59 = vpop.permute.xlu0 %3187  ;;  %v4989_v53 = vld [vmem:[%s7025_s7 + $0x98] sm:$0xff]  }
 0x528   : > { %v2082_v37 = vpack.c.bf16 %v1972_v27, %v1969_v50  ;;  %v6373_v48 = vpop.permute.xlu1 %2770 }
 0x52a   : > { %4667 = vmatprep.subr.bf16.mxu0 %v2082_v37 }
 0x52b   : > { %4668 = vmatpush3.bf16.msra.mxu0 %v2082_v37  ;;  %v6375_v50 = vpop.permute.xlu0 %2765 }
 0x52c   : > { %v4657_v16 = vpop.f32.mrb[88].mxu1  ;;  %4669 = vmatprep.subr.bf16.mxu0 %v2083_v46  ;;  %v6383_v27 = vpop.permute.xlu1 %3282 }
 0x52d   : > { %v1985_v3 = vpop.f32.mrb[89].mxu1 }
 0x52e   : > { %v4658_v11 = vpop.f32.mrb[90].mxu1 }
 0x52f   : > { %v2085_v43 = vpack.c.bf16 %v4658_v11, %v4657_v16  ;;  %v1988_v1 = vpop.f32.mrb[91].mxu1  ;;  %4670 = vmatpush3.bf16.msra.mxu0 %v2083_v46  ;;  %v4990_v46 = vld [vmem:[%s7025_s7 + $0xa0] sm:$0xff]   ;;  %v6385_v37 = vpop.permute.xlu0 %3277 }
 0x530   : > { %v2084_v54 = vpack.c.bf16 %v1988_v1, %v1985_v3  ;;  %v6387_v16 = vpop.permute.xlu1 %3202  ;;  %v4991_v3 = vld [vmem:[%s7025_s7 + $0xa8] sm:$0xff]  }
 0x532   : > { %4671 = vmatprep.subr.bf16.mxu0 %v2084_v54 }
 0x533   : > { %4672 = vmatpush3.bf16.msra.mxu0 %v2084_v54  ;;  %v6392_v11 = vpop.permute.xlu0 %3197 }
 0x534   : > { %v4661_v5 = vpop.f32.mrb[92].mxu1  ;;  %4673 = vmatprep.subr.bf16.mxu0 %v2085_v43  ;;  %v6397_v1 = vpop.permute.xlu1 %2780 }
 0x535   : > { %v2001_v13 = vpop.f32.mrb[93].mxu1 }
 0x536   : > { %v4662_v55 = vpop.f32.mrb[94].mxu1 }
 0x537   : > { %v2087_v12 = vpack.c.bf16 %v4662_v55, %v4661_v5  ;;  %v2004_v19 = vpop.f32.mrb[95].mxu1  ;;  %4674 = vmatpush3.bf16.msra.mxu0 %v2085_v43  ;;  %v4992_v43 = vld [vmem:[%s7025_s7 + $0xb0] sm:$0xff]   ;;  %v6399_v54 = vpop.permute.xlu0 %2775  ;;  %v4993_v5 = vld [vmem:[%s7025_s7 + $0xb8] sm:$0xff]  }
 0x538   : > { %v2086_v20 = vpack.c.bf16 %v2004_v19, %v2001_v13  ;;  %v4994_v13 = vld [vmem:[%s7025_s7 + $0xc0] sm:$0xff]   ;;  %v6407_v55 = vpop.permute.xlu1 %3292  ;;  %v4995_v19 = vld [vmem:[%s7025_s7 + $0xc8] sm:$0xff]  }
 0x53a   : > { %4675 = vmatprep.subr.bf16.mxu0 %v2086_v20 }
 0x53b   : > { %4676 = vmatpush3.bf16.msra.mxu0 %v2086_v20  ;;  %v4996_v20 = vld [vmem:[%s7025_s7 + $0xd0] sm:$0xff]  }
 0x53c   : > { %4677 = vmatprep.subr.bf16.mxu0 %v2087_v12 }
 0x53f   : > { %4678 = vmatpush3.bf16.msra.mxu0 %v2087_v12  ;;  %v6409_v12 = vpop.permute.xlu0 %3287 }
 0x542   : > { %4680 = vmatmul.mubr.bf16.vlgmr.msra.gmra.mrb[96].mxu0 %v4971_v31  ;;  %v6417_v31 = vpop.permute.xlu1 %3212 }
 0x543   : > { %4683 = vmatprep.mubr.bf16.mxu0 %v4972_v36  ;;  %v6419_v36 = vpop.permute.xlu0 %3207 }
 0x54a   : > { %4684 = vmatmul.mubr.bf16.gmra.mrb[100].mxu0 %v4973_v23  ;;  %v6421_v23 = vpop.permute.xlu1 %2790 }
 0x54b   : > { %4687 = vmatprep.mubr.bf16.mxu0 %v4974_v52  ;;  %v4997_v52 = vld [vmem:[%s7025_s7 + $0xd8] sm:$0xff]  }
 0x552   : > { %4688 = vmatmul.mubr.bf16.gmra.mrb[104].mxu0 %v4975_v32  ;;  %v6426_v32 = vpop.permute.xlu0 %2785 }
 0x553   : > { %4691 = vmatprep.mubr.bf16.mxu0 %v4976_v4  ;;  %v4998_v4 = vld [vmem:[%s7025_s7 + $0xe0] sm:$0xff]  }
 0x55a   : > { %4692 = vmatmul.mubr.bf16.gmra.mrb[108].mxu0 %v4977_v58  ;;  %v6431_v58 = vpop.permute.xlu1 %3302 }
 0x55b   : > { %4695 = vmatprep.mubr.bf16.mxu0 %v4978_v2  ;;  %v6433_v2 = vpop.permute.xlu0 %3297 }
 0x562   : > { %4696 = vmatmul.mubr.bf16.gmra.mrb[112].mxu0 %v4979_v8  ;;  %v4999_v8 = vld [vmem:[%s7025_s7 + $0xe8] sm:$0xff]  }
 0x563   : > { %4699 = vmatprep.mubr.bf16.mxu0 %v4980_v40  ;;  %v5000_v40 = vld [vmem:[%s7025_s7 + $0xf0] sm:$0xff]  }
 0x56a   : > { %4700 = vmatmul.mubr.bf16.gmra.mrb[116].mxu0 %v4981_v60  ;;  %v6441_v60 = vpop.permute.xlu1 %3222 }
 0x56b   : > { %4703 = vmatprep.mubr.bf16.mxu0 %v4982_v44  ;;  %v6443_v44 = vpop.permute.xlu0 %3217 }
 0x572   : > { %4704 = vmatmul.mubr.bf16.gmra.mrb[120].mxu0 %v4983_v7  ;;  %v5001_v7 = vld [vmem:[%s7025_s7 + $0xf8] sm:$0xff]  }
 0x573   : > { %4707 = vmatprep.mubr.bf16.mxu0 %v4984_v45  ;;  %v6448_v45 = vpop.permute.xlu1 %2880 }
 0x574   : > { %7056 = vst [vmem:[#allocation20_spill] sm:$0xff] %v6448_v45 }
 0x57a   : > { %4708 = vmatmul.mubr.bf16.gmra.mrb[124].mxu0 %v4985_v62  ;;  %v6450_v62 = vpop.permute.xlu0 %2875 }
 0x57b   : > { %4711 = vmatprep.mubr.bf16.mxu0 %v4986_v6  ;;  %7057 = vst [vmem:[#allocation21_spill] sm:$0xff] %v6450_v62  ;;  %v6452_v6 = vpop.permute.xlu1 %2800 }
 0x57c   : > { %7058 = vst [vmem:[#allocation22_spill] sm:$0xff] %v6452_v6  ;;  %v5004_v6 = vld [vmem:[%s5156_s26 + $0x18] sm:$0xff] }
 0x582   : > { %4712 = vmatmul.mubr.bf16.gmra.mrb[128].mxu0 %v4987_v47  ;;  %v6454_v47 = vpop.permute.xlu0 %2795 }
 0x583   : > { %4715 = vmatprep.mubr.bf16.mxu0 %v4988_v22  ;;  %v6456_v22 = vpop.permute.xlu1 %3392 }
 0x584   : > { %7059 = vst [vmem:[#allocation23_spill] sm:$0xff] %v6456_v22 }
 0x58a   : > { %4716 = vmatmul.mubr.bf16.gmra.mrb[132].mxu0 %v4989_v53  ;;  %v6458_v53 = vpop.permute.xlu0 %3387 }
 0x58b   : > { %4719 = vmatprep.mubr.bf16.mxu0 %v4990_v46  ;;  %7060 = vst [vmem:[#allocation24_spill] sm:$0xff] %v6458_v53  ;;  %v6460_v46 = vpop.permute.xlu1 %3312 }
 0x58c   : > { %7061 = vst [vmem:[#allocation25_spill] sm:$0xff] %v6460_v46 }
 0x592   : > { %4720 = vmatmul.mubr.bf16.gmra.mrb[136].mxu0 %v4991_v3  ;;  %v6462_v3 = vpop.permute.xlu0 %3307 }
 0x593   : > { %4723 = vmatprep.mubr.bf16.mxu0 %v4992_v43  ;;  %7062 = vst [vmem:[#allocation26_spill] sm:$0xff] %v6462_v3  ;;  %v6464_v43 = vpop.permute.xlu1 %2890 }
 0x594   : > { %7063 = vst [vmem:[#allocation27_spill] sm:$0xff] %v6464_v43 }
 0x59a   : > { %4724 = vmatmul.mubr.bf16.gmra.mrb[140].mxu0 %v4993_v5  ;;  %v6466_v5 = vpop.permute.xlu0 %2885 }
 0x59b   : > { %4727 = vmatprep.mubr.bf16.mxu0 %v4994_v13  ;;  %7064 = vst [vmem:[#allocation28_spill] sm:$0xff] %v6466_v5  ;;  %v6468_v13 = vpop.permute.xlu1 %2810 }
 0x59c   : > { %7065 = vst [vmem:[#allocation29_spill] sm:$0xff] %v6468_v13 }
 0x5a2   : > { %4728 = vmatmul.mubr.bf16.gmra.mrb[144].mxu0 %v4995_v19  ;;  %v6470_v19 = vpop.permute.xlu0 %2805 }
 0x5a3   : > { %4731 = vmatprep.mubr.bf16.mxu0 %v4996_v20  ;;  %v6472_v20 = vpop.permute.xlu1 %3402 }
 0x5a4   : > { %7066 = vst [vmem:[#allocation30_spill] sm:$0xff] %v6472_v20 }
 0x5aa   : > { %4732 = vmatmul.mubr.bf16.gmra.mrb[148].mxu0 %v4997_v52  ;;  %v6474_v52 = vpop.permute.xlu0 %3397 }
 0x5ab   : > { %4735 = vmatprep.mubr.bf16.mxu0 %v4998_v4  ;;  %7067 = vst [vmem:[#allocation31_spill] sm:$0xff] %v6474_v52  ;;  %v6476_v4 = vpop.permute.xlu1 %3322 }
 0x5ac   : > { %7068 = vst [vmem:[#allocation32_spill] sm:$0xff] %v6476_v4 }
 0x5b2   : > { %4736 = vmatmul.mubr.bf16.gmra.mrb[152].mxu0 %v4999_v8  ;;  %v6478_v8 = vpop.permute.xlu0 %3317 }
 0x5b3   : > { %4739 = vmatprep.mubr.bf16.mxu0 %v5000_v40  ;;  %7069 = vst [vmem:[#allocation33_spill] sm:$0xff] %v6478_v8  ;;  %v6480_v40 = vpop.permute.xlu1 %2900 }
 0x5b4   : > { %7070 = vst [vmem:[#allocation34_spill] sm:$0xff] %v6480_v40 }
 0x5b7   : > { %v6484_v22 = vpop.permute.xlu1 %2820 }
 0x5b8   : > { %7072 = vst [vmem:[#allocation36_spill] sm:$0xff] %v6484_v22 }
 0x5ba   : > { %4740 = vmatmul.mubr.bf16.gmra.mrb[156].mxu0 %v5001_v7  ;;  %v6482_v7 = vpop.permute.xlu0 %2895 }
 0x5bb   : > { %7071 = vst [vmem:[#allocation35_spill] sm:$0xff] %v6482_v7  ;;  %v6488_v45 = vpop.permute.xlu1 %3412  ;;  %v6504_v7 = vld [vmem:[%s371_s23] sm:$0xff] }
 0x5bc   : > { %7074 = vst [vmem:[#allocation38_spill] sm:$0xff] %v6488_v45  ;;  %7080 = vst [vmem:[#allocation44_spill] sm:$0xff] %v6504_v7  ;;  %4499 = vmatprep.mubr.msk.f32.mxu1 %vm1388_vm0, %v6504_v7 }
 0x5be   : > { %v6486_v53 = vpop.permute.xlu0 %2815 }
 0x5bf   : > { %7073 = vst [vmem:[#allocation37_spill] sm:$0xff] %v6486_v53  ;;  %v6492_v62 = vpop.permute.xlu1 %3332 }
 0x5c0   : > { %7076 = vst [vmem:[#allocation40_spill] sm:$0xff] %v6492_v62 }
 0x5c2   : > { %v6490_v43 = vpop.permute.xlu0 %3407 }
 0x5c3   : > { %7075 = vst [vmem:[#allocation39_spill] sm:$0xff] %v6490_v43  ;;  %v6497_v52 = vpop.permute.xlu1 %2910 }
 0x5c4   : > { %7078 = vst [vmem:[#allocation42_spill] sm:$0xff] %v6497_v52 }
 0x5c6   : > { %v6494_v20 = vpop.permute.xlu0 %3327 }
 0x5c7   : > { %7077 = vst [vmem:[#allocation41_spill] sm:$0xff] %v6494_v20  ;;  %v6508_v45 = vpop.permute.xlu1 %2830 }
 0x5c8   : > { %7081 = vst [vmem:[#allocation45_spill] sm:$0xff] %v6508_v45 }
 0x5ca   : > { %v6502_v40 = vpop.permute.xlu0 %2905 }
 0x5cb   : > { %7079 = vst [vmem:[#allocation43_spill] sm:$0xff] %v6502_v40  ;;  %v6512_v5 = vpop.permute.xlu1 %3422 }
 0x5cc   : > { %7083 = vst [vmem:[#allocation47_spill] sm:$0xff] %v6512_v5 }
 0x5ce   : > { %v6510_v43 = vpop.permute.xlu0 %2825 }
 0x5cf   : > { %7082 = vst [vmem:[#allocation46_spill] sm:$0xff] %v6510_v43  ;;  %v6516_v62 = vpop.permute.xlu1 %3342  ;;  %v5002_v43 = vld [vmem:[%s5156_s26 + $0x10] sm:$0xff] }
 0x5d0   : > { %7085 = vst [vmem:[#allocation49_spill] sm:$0xff] %v6516_v62  ;;  %v5003_v62 = vld [vmem:[%s5156_s26] sm:$0xff] }
 0x5d2   : > { %v6514_v52 = vpop.permute.xlu0 %3417 }
 0x5d3   : > { %7084 = vst [vmem:[#allocation48_spill] sm:$0xff] %v6514_v52  ;;  %v6522_v46 = vpop.permute.xlu1 %2920 }
 0x5d4   : > { %7087 = vst [vmem:[#allocation51_spill] sm:$0xff] %v6522_v46 }
 0x5d6   : > { %v6518_v20 = vpop.permute.xlu0 %3337 }
 0x5d7   : > { %7086 = vst [vmem:[#allocation50_spill] sm:$0xff] %v6518_v20 }
 0x5da   : > { %v6526_v4 = vpop.permute.xlu0 %2915 }
 0x5db   : > { %7088 = vst [vmem:[#allocation52_spill] sm:$0xff] %v6526_v4 }
 0x615   : > { %v4681_v40 = vpop.f32.mrb[96].mxu0 }
 0x616   : > { %v2955_v22 = vmul.f32 %v4681_v40, %v5835_v17  ;;  %v2314_v53 = vpop.f32.mrb[97].mxu0  ;;  %v5005_v17 = vld [vmem:[%s5156_s26 + $0x8] sm:$0xff] }
 0x617   : > { %v2953_v7 = vmul.f32 %v5822_v10, %v2314_v53  ;;  %v4682_v45 = vpop.f32.mrb[98].mxu0 }
 0x618   : > { %v3019_v3 = vadd.f32 %v5002_v43, %v2955_v22  ;;  %v2956_v5 = vmul.f32 %v4682_v45, %v5830_v14  ;;  %v2317_v52 = vpop.f32.mrb[99].mxu0  ;;  %v5006_v43 = vld [vmem:[%s5156_s26 + $0x30] sm:$0xff] }
 0x619   : > { %v3017_v8 = vadd.f32 %v5003_v62, %v2953_v7  ;;  %v2954_v20 = vmul.f32 %v5820_v9, %v2317_v52  ;;  %v6544_v9 = vpop.permute.xlu1 %2840  ;;  %v5007_v52 = vld [vmem:[%s5156_s26 + $0x20] sm:$0xff] }
 0x61a   : > { %v3020_v13 = vadd.f32 %v5004_v6, %v2956_v5  ;;  %v6533_v10 = vadd.f32 %v6317_v18, %v3019_v3 }
 0x61b   : > { %v3018_v40 = vadd.f32 %v5005_v17, %v2954_v20  ;;  %v6539_v14 = vadd.f32 %v6085_v41, %v3017_v8  ;;  %v5008_v17 = vld [vmem:[%s5156_s26 + $0x38] sm:$0xff] }
 0x61c   : > { %v6536_v53 = vadd.f32 %v6315_v24, %v3020_v13  ;;  %v6549_v24 = vpop.permute.xlu0 %2835 }
 0x61d   : > { %v6542_v45 = vadd.f32 %v6081_v29, %v3018_v40  ;;  %v4685_v62 = vpop.f32.mrb[100].mxu0  ;;  %v5009_v40 = vld [vmem:[%s5156_s26 + $0x28] sm:$0xff]  ;;  %v6560_v6 = vpop.permute.xlu1 %3432 }
 0x61e   : > { %v2959_v18 = vmul.f32 %v4685_v62, %v5861_v39  ;;  %v2330_v22 = vpop.f32.mrb[101].mxu0  ;;  %7089 = vst [vmem:[#allocation53_spill] sm:$0xff] %v6560_v6 }
 0x61f   : > { %v2957_v3 = vmul.f32 %v5848_v28, %v2330_v22  ;;  %v4686_v29 = vpop.f32.mrb[102].mxu0 }
 0x620   : > { %v3023_v5 = vadd.f32 %v5006_v43, %v2959_v18  ;;  %v2960_v13 = vmul.f32 %v4686_v29, %v5856_v35  ;;  %v2333_v20 = vpop.f32.mrb[103].mxu0  ;;  %v6568_v35 = vpop.permute.xlu0 %3427 }
 0x621   : > { %v3021_v8 = vadd.f32 %v5007_v52, %v2957_v3  ;;  %v2958_v7 = vmul.f32 %v5846_v25, %v2333_v20  ;;  %7090 = vst [vmem:[#allocation54_spill] sm:$0xff] %v6568_v35  ;;  %v7091_v20 = vld [vmem:[#allocation3_spill] sm:$0xff] }
 0x622   : > { %v3024_v39 = vadd.f32 %v5008_v17, %v2960_v13  ;;  %v6563_v41 = vadd.f32 %v6351_v38, %v3023_v5  ;;  %v7092_v17 = vld [vmem:[#allocation2_spill] sm:$0xff]  ;;  %v5013_v3 = vld [vmem:[%s5156_s26 + $0x48] sm:$0xff] }
 0x623   : > { %v3022_v62 = vadd.f32 %v5009_v40, %v2958_v7  ;;  %v6571_v18 = vadd.f32 %v6331_v15, %v3021_v8  ;;  %v5010_v15 = vld [vmem:[%s5156_s26 + $0x50] sm:$0xff]  ;;  %v5011_v8 = vld [vmem:[%s5156_s26 + $0x40] sm:$0xff]  ;;  %v6586_v40 = vpop.permute.xlu1 %3352 }
 0x624   : > { %v6566_v28 = vadd.f32 %v6349_v30, %v3024_v39 }
 0x625   : > { %v6574_v25 = vadd.f32 %v6329_v33, %v3022_v62  ;;  %v4689_v22 = vpop.f32.mrb[104].mxu0 }
 0x626   : > { %v2963_v38 = vmul.f32 %v4689_v22, %v5887_v61  ;;  %v2346_v29 = vpop.f32.mrb[105].mxu0  ;;  %v5012_v61 = vld [vmem:[%s5156_s26 + $0x58] sm:$0xff]  ;;  %v6589_v22 = vpop.permute.xlu0 %3347 }
 0x627   : > { %v2961_v43 = vmul.f32 %v5874_v49, %v2346_v29  ;;  %v4690_v5 = vpop.f32.mrb[106].mxu0 }
 0x628   : > { %v3027_v13 = vadd.f32 %v5010_v15, %v2963_v38  ;;  %v2964_v33 = vmul.f32 %v4690_v5, %v7091_v20  ;;  %v2349_v52 = vpop.f32.mrb[107].mxu0  ;;  %v7093_v20 = vld [vmem:[#allocation7_spill] sm:$0xff] }
 0x629   : > { %v3025_v7 = vadd.f32 %v5011_v8, %v2961_v43  ;;  %v2962_v39 = vmul.f32 %v7092_v17, %v2349_v52  ;;  %v5014_v8 = vld [vmem:[%s5156_s26 + $0x70] sm:$0xff] }
 0x62a   : > { %v3028_v62 = vadd.f32 %v5012_v61, %v2964_v33  ;;  %v6593_v49 = vadd.f32 %v6392_v11, %v3027_v13  ;;  %v7094_v11 = vld [vmem:[#allocation5_spill] sm:$0xff]  ;;  %v5015_v61 = vld [vmem:[%s5156_s26 + $0x60] sm:$0xff] }
 0x62b   : > { %v3026_v30 = vadd.f32 %v5013_v3, %v2962_v39  ;;  %v6599_v29 = vadd.f32 %v6365_v59, %v3025_v7  ;;  %v6610_v59 = vpop.permute.xlu1 %2930  ;;  %v6614_v39 = vpop.permute.xlu0 %2925 }
 0x62c   : > { %v6596_v38 = vadd.f32 %v6387_v16, %v3028_v62  ;;  %7095 = vst [vmem:[#allocation3_spill] sm:$0xff] %v6610_v59  ;;  %7097 = vst [vmem:[#allocation2_spill] sm:$0xff] %v6614_v39  ;;  %v5016_v16 = vld [vmem:[%s5156_s26 + $0x78] sm:$0xff] }
 0x62d   : > { %v6602_v43 = vadd.f32 %v6363_v63, %v3026_v30  ;;  %v4693_v5 = vpop.f32.mrb[108].mxu0  ;;  %v7096_v30 = vld [vmem:[#allocation6_spill] sm:$0xff]  ;;  %v5020_v59 = vld [vmem:[%s5156_s26 + $0x98] sm:$0xff] }
 0x62e   : > { %v2967_v3 = vmul.f32 %v4693_v5, %v7093_v20  ;;  %v2362_v33 = vpop.f32.mrb[109].mxu0  ;;  %v7098_v5 = vld [vmem:[#allocation4_spill] sm:$0xff] }
 0x62f   : > { %v2965_v13 = vmul.f32 %v7094_v11, %v2362_v33  ;;  %v4694_v52 = vpop.f32.mrb[110].mxu0  ;;  %v5017_v11 = vld [vmem:[%s5156_s26 + $0x68] sm:$0xff] }
 0x630   : > { %v3031_v63 = vadd.f32 %v5014_v8, %v2967_v3  ;;  %v2968_v7 = vmul.f32 %v4694_v52, %v7096_v30  ;;  %v2365_v17 = vpop.f32.mrb[111].mxu0  ;;  %v6632_v8 = vpop.permute.xlu1 %2850 }
 0x631   : > { %v3029_v62 = vadd.f32 %v5015_v61, %v2965_v13  ;;  %v2966_v20 = vmul.f32 %v7098_v5, %v2365_v17 }
 0x632   : > { %v6619_v15 = vadd.f32 %v6443_v44, %v3031_v63  ;;  %v3032_v33 = vadd.f32 %v5016_v16, %v2968_v7  ;;  %v7099_v16 = vld [vmem:[#allocation11_spill] sm:$0xff]  ;;  %v7100_v7 = vld [vmem:[#allocation9_spill] sm:$0xff]  ;;  %v7102_v44 = vld [vmem:[#allocation8_spill] sm:$0xff] }
 0x633   : > { %v3030_v6 = vadd.f32 %v5017_v11, %v2966_v20  ;;  %v6627_v3 = vadd.f32 %v6419_v36, %v3029_v62  ;;  %v7101_v62 = vld [vmem:[#allocation10_spill] sm:$0xff] }
 0x634   : > { %v6624_v35 = vadd.f32 %v6441_v60, %v3032_v33  ;;  %v6637_v60 = vpop.permute.xlu0 %2845  ;;  %v5019_v33 = vld [vmem:[%s5156_s26 + $0x80] sm:$0xff]  ;;  %v6648_v39 = vpop.permute.xlu1 %3442 }
 0x635   : > { %v6630_v52 = vadd.f32 %v6417_v31, %v3030_v6  ;;  %v4697_v13 = vpop.f32.mrb[112].mxu0  ;;  %v5018_v6 = vld [vmem:[%s5156_s26 + $0x90] sm:$0xff]  ;;  %7103 = vst [vmem:[#allocation7_spill] sm:$0xff] %v6648_v39  ;;  %v5024_v39 = vld [vmem:[%s5156_s26 + $0xb8] sm:$0xff] }
 0x636   : > { %v2971_v63 = vmul.f32 %v4697_v13, %v7099_v16  ;;  %v2378_v30 = vpop.f32.mrb[113].mxu0  ;;  %v5021_v16 = vld [vmem:[%s5156_s26 + $0x88] sm:$0xff] }
 0x637   : > { %v2969_v17 = vmul.f32 %v7100_v7, %v2378_v30  ;;  %v4698_v31 = vpop.f32.mrb[114].mxu0  ;;  %v7104_v7 = vld [vmem:[#allocation19_spill] sm:$0xff] }
 0x638   : > { %v3035_v61 = vadd.f32 %v5018_v6, %v2971_v63  ;;  %v2972_v5 = vmul.f32 %v4698_v31, %v7101_v62  ;;  %v2381_v20 = vpop.f32.mrb[115].mxu0  ;;  %v6652_v63 = vpop.permute.xlu0 %3437  ;;  %v7105_v6 = vld [vmem:[#allocation18_spill] sm:$0xff] }
 0x639   : > { %v3033_v11 = vadd.f32 %v5019_v33, %v2969_v17  ;;  %v2970_v46 = vmul.f32 %v7102_v44, %v2381_v20  ;;  %v7106_v20 = vld [vmem:[#allocation15_spill] sm:$0xff] }
 0x63a   : > { %v3036_v13 = vadd.f32 %v5020_v59, %v2972_v5  ;;  %v3483_v36 = vadd.f32 %v6307_v21, %v3035_v61  ;;  %v7109_v21 = vld [vmem:[#allocation13_spill] sm:$0xff] }
 0x63b   : > { %v3034_v4 = vadd.f32 %v5021_v16, %v2970_v46  ;;  %v3481_v31 = vadd.f32 %v7104_v7, %v3033_v11  ;;  %v5022_v11 = vld [vmem:[%s5156_s26 + $0xb0] sm:$0xff] }
 0x63c   : > { %v3484_v30 = vadd.f32 %v6305_v42, %v3036_v13 }
 0x63d   : > { %v3482_v17 = vadd.f32 %v7105_v6, %v3034_v4  ;;  %v4701_v62 = vpop.f32.mrb[116].mxu0  ;;  %v7110_v4 = vld [vmem:[#allocation14_spill] sm:$0xff]  ;;  %v7111_v6 = vld [vmem:[#allocation12_spill] sm:$0xff] }
 0x63e   : > { %v4749_v44 = vpack.c.bf16 %v3484_v30, %v3483_v36  ;;  %v2975_v59 = vmul.f32 %v4701_v62, %v7106_v20  ;;  %v2394_v5 = vpop.f32.mrb[117].mxu0  ;;  %v5023_v30 = vld [vmem:[%s5156_s26 + $0xa0] sm:$0xff]  ;;  %v6670_v20 = vpop.permute.xlu1 %3362 }
 0x63f   : > { %v4743_v42 = vpack.c.bf16 %v3482_v17, %v3481_v31  ;;  %v2973_v61 = vmul.f32 %v7109_v21, %v2394_v5  ;;  %v4702_v33 = vpop.f32.mrb[118].mxu0  ;;  %v7112_v17 = vpack.c.bf16 %v6542_v45, %v6539_v14  ;;  %v5025_v5 = vld [vmem:[%s5156_s26 + $0xa8] sm:$0xff] }
 0x640   : > { %v3039_v13 = vadd.f32 %v5022_v11, %v2975_v59  ;;  %v2976_v16 = vmul.f32 %v4702_v33, %v7110_v4  ;;  %v2397_v36 = vpop.f32.mrb[119].mxu0  ;;  %v6678_v59 = vpop.permute.xlu0 %3357 }
 0x641   : > { %v3037_v7 = vadd.f32 %v5023_v30, %v2973_v61  ;;  %v2974_v62 = vmul.f32 %v7111_v6, %v2397_v36  ;;  %4745 = vmatprep.subr.msk.bf16.mxu1 %vm6659_vm1, %v4743_v42  ;;  %v7113_v36 = vld [vmem:[#allocation17_spill] sm:$0xff] }
 0x642   : > { %v3040_v31 = vadd.f32 %v5024_v39, %v2976_v16  ;;  %4748 = vmatpush3.bf16.xpose.msk.msra.mxu1 %vm6659_vm1, %v7112_v17  ;;  %v3487_v42 = vadd.f32 %v6341_v57, %v3039_v13  ;;  %v6689_v6 = vpop.permute.xlu1 %2940  ;;  %v5026_v57 = vld [vmem:[%s5156_s26 + $0xd0] sm:$0xff] }
 0x643   : > { %v3038_v21 = vadd.f32 %v5025_v5, %v2974_v62  ;;  %4751 = vmatprep.subr.msk.bf16.mxu1 %vm6659_vm1, %v4749_v44  ;;  %v3485_v39 = vadd.f32 %v6324_v51, %v3037_v7 }
 0x644   : > { %v3488_v61 = vadd.f32 %v6339_v34, %v3040_v31  ;;  %v6693_v7 = vpop.permute.xlu0 %2935  ;;  %v7114_v31 = vld [vmem:[#allocation16_spill] sm:$0xff] }
 0x645   : > { %v3486_v14 = vadd.f32 %v6319_v0, %v3038_v21  ;;  %v4705_v45 = vpop.f32.mrb[120].mxu0  ;;  %v5027_v0 = vld [vmem:[%s5156_s26 + $0xc0] sm:$0xff]  ;;  %v7115_v21 = vpack.c.bf16 %v6536_v53, %v6533_v10 }
 0x646   : > { %v4761_v33 = vpack.c.bf16 %v3488_v61, %v3487_v42  ;;  %v2979_v11 = vmul.f32 %v4705_v45, %v6375_v50  ;;  %v2410_v4 = vpop.f32.mrb[121].mxu0  ;;  %v5028_v50 = vld [vmem:[%s5156_s26 + $0xd8] sm:$0xff]  ;;  %v5029_v42 = vld [vmem:[%s5156_s26 + $0xc8] sm:$0xff]  ;;  %v6714_v45 = vpop.permute.xlu1 %2860 }
 0x647   : > { %v4755_v16 = vpack.c.bf16 %v3486_v14, %v3485_v39  ;;  %v2977_v30 = vmul.f32 %v7113_v36, %v2410_v4  ;;  %v4706_v44 = vpop.f32.mrb[122].mxu0 }
 0x648   : > { %v3043_v34 = vadd.f32 %v5026_v57, %v2979_v11  ;;  %v2980_v13 = vmul.f32 %v4706_v44, %v6373_v48  ;;  %v2413_v51 = vpop.f32.mrb[123].mxu0 }
 0x649   : > { %v3041_v62 = vadd.f32 %v5027_v0, %v2977_v30  ;;  %v2978_v17 = vmul.f32 %v7114_v31, %v2413_v51  ;;  %v7116_v31 = vpack.c.bf16 %v6574_v25, %v6571_v18 }
 0x64a   : > { %v3044_v5 = vadd.f32 %v5028_v50, %v2980_v13  ;;  %4754 = vmatpush3.bf16.xpose.msk.msra.mxu1 %vm6659_vm1, %v7115_v21  ;;  %v6707_v48 = vadd.f32 %v6385_v37, %v3043_v34  ;;  %v6719_v37 = vpop.permute.xlu0 %2855  ;;  %v5031_v34 = vld [vmem:[%s5156_s26 + $0xe0] sm:$0xff] }
 0x64b   : > { %v3042_v61 = vadd.f32 %v5029_v42, %v2978_v17  ;;  %4757 = vmatprep.subr.msk.bf16.mxu1 %vm6659_vm1, %v4755_v16  ;;  %v3489_v14 = vadd.f32 %v6358_v56, %v3041_v62  ;;  %v5030_v56 = vld [vmem:[%s5156_s26 + $0xf0] sm:$0xff] }
 0x64c   : > { %v6710_v39 = vadd.f32 %v6383_v27, %v3044_v5 }
 0x64d   : > { %v3490_v10 = vadd.f32 %v6353_v26, %v3042_v61  ;;  %v4709_v53 = vpop.f32.mrb[124].mxu0 }
 0x64e   : > { %v4773_v11 = vpack.c.bf16 %v6710_v39, %v6707_v48  ;;  %v2983_v4 = vmul.f32 %v4709_v53, %v6426_v32  ;;  %v2426_v16 = vpop.f32.mrb[125].mxu0  ;;  %v5032_v32 = vld [vmem:[%s5156_s26 + $0xf8] sm:$0xff] }
 0x64f   : > { %v4767_v27 = vpack.c.bf16 %v3490_v10, %v3489_v14  ;;  %v2981_v36 = vmul.f32 %v6399_v54, %v2426_v16  ;;  %v4710_v30 = vpop.f32.mrb[126].mxu0  ;;  %v5033_v54 = vld [vmem:[%s5156_s26 + $0xe8] sm:$0xff]  ;;  %v7117_v10 = vld [vmem:[#allocation29_spill] sm:$0xff] }
 0x650   : > { %v3047_v44 = vadd.f32 %v5030_v56, %v2983_v4  ;;  %v2984_v26 = vmul.f32 %v4710_v30, %v6421_v23  ;;  %v2429_v57 = vpop.f32.mrb[127].mxu0  ;;  %v6738_v23 = vpop.permute.xlu1 %3452  ;;  %v5035_v4 = vld [vmem:[%s5156_s26 + $0x100] sm:$0xff] }
 0x651   : > { %v3045_v13 = vadd.f32 %v5031_v34, %v2981_v36  ;;  %v2982_v51 = vmul.f32 %v6397_v1, %v2429_v57  ;;  %v7118_v36 = vld [vmem:[#allocation22_spill] sm:$0xff]  ;;  %v5037_v57 = vld [vmem:[%s5156_s26 + $0x108] sm:$0xff] }
 0x652   : > { %v6727_v0 = vadd.f32 %v6433_v2, %v3047_v44  ;;  %v3048_v62 = vadd.f32 %v5032_v32, %v2984_v26  ;;  %4760 = vmatpush3.bf16.xpose.msk.msra.mxu1 %vm6659_vm1, %v7116_v31  ;;  %v6743_v2 = vpop.permute.xlu0 %3447  ;;  %v7119_v26 = vpack.c.bf16 %v6566_v28, %v6563_v41  ;;  %v7121_v32 = vld [vmem:[#allocation32_spill] sm:$0xff]  ;;  %v7122_v31 = vld [vmem:[#allocation26_spill] sm:$0xff]  ;;  %v7123_v28 = vld [vmem:[#allocation25_spill] sm:$0xff] }
 0x653   : > { %v3046_v17 = vadd.f32 %v5033_v54, %v2982_v51  ;;  %4763 = vmatprep.subr.msk.bf16.mxu1 %vm6659_vm1, %v4761_v33  ;;  %v6746_v50 = vadd.f32 %v6409_v12, %v3045_v13  ;;  %v5034_v12 = vld [vmem:[%s5156_s26 + $0x110] sm:$0xff]  ;;  %v7120_v13 = vld [vmem:[#allocation33_spill] sm:$0xff] }
 0x654   : > { %v6741_v1 = vadd.f32 %v6431_v58, %v3048_v62  ;;  %v6761_v56 = vpop.permute.xlu1 %3372 }
 0x655   : > { %v6749_v18 = vadd.f32 %v6407_v55, %v3046_v17  ;;  %v4713_v25 = vpop.f32.mrb[128].mxu0 }
 0x656   : > { %v4785_v5 = vpack.c.bf16 %v6741_v1, %v6727_v0  ;;  %v2987_v33 = vmul.f32 %v4713_v25, %v6470_v19  ;;  %v2442_v21 = vpop.f32.mrb[129].mxu0  ;;  %v5036_v19 = vld [vmem:[%s5156_s26 + $0x118] sm:$0xff]  ;;  %v7135_v0 = vld [vmem:[#allocation28_spill] sm:$0xff] }
 0x657   : > { %v4779_v58 = vpack.c.bf16 %v6749_v18, %v6746_v50  ;;  %v2985_v42 = vmul.f32 %v6454_v47, %v2442_v21  ;;  %v4714_v61 = vpop.f32.mrb[130].mxu0  ;;  %v6769_v47 = vpop.permute.xlu0 %3367 }
 0x658   : > { %v3051_v14 = vadd.f32 %v5034_v12, %v2987_v33  ;;  %v2988_v55 = vmul.f32 %v4714_v61, %v7117_v10  ;;  %v2445_v53 = vpop.f32.mrb[131].mxu0  ;;  %v7124_v33 = vld [vmem:[#allocation46_spill] sm:$0xff]  ;;  %v7125_v61 = vld [vmem:[#allocation37_spill] sm:$0xff]  ;;  %v6792_v10 = vpop.permute.xlu1 %2950 }
 0x659   : > { %v3049_v16 = vadd.f32 %v5035_v4, %v2985_v42  ;;  %v2986_v30 = vmul.f32 %v7118_v36, %v2445_v53  ;;  %v7126_v4 = vld [vmem:[#allocation45_spill] sm:$0xff] }
 0x65a   : > { %v3052_v44 = vadd.f32 %v5036_v19, %v2988_v55  ;;  %4766 = vmatpush3.bf16.xpose.msk.msra.mxu1 %vm6659_vm1, %v7119_v26  ;;  %v6775_v51 = vadd.f32 %v7120_v13, %v3051_v14  ;;  %v5038_v55 = vld [vmem:[%s5156_s26 + $0x130] sm:$0xff]  ;;  %v5039_v19 = vld [vmem:[%s5156_s26 + $0x120] sm:$0xff] }
 0x65b   : > { %v3050_v34 = vadd.f32 %v5037_v57, %v2986_v30  ;;  %4769 = vmatprep.subr.msk.bf16.mxu1 %vm6659_vm1, %v4767_v27  ;;  %v6781_v41 = vadd.f32 %v7122_v31, %v3049_v16  ;;  %v6796_v30 = vpop.permute.xlu0 %2945  ;;  %v7127_v26 = vld [vmem:[#allocation36_spill] sm:$0xff]  ;;  %v5041_v31 = vld [vmem:[%s5156_s26 + $0x128] sm:$0xff] }
 0x65c   : > { %v6778_v62 = vadd.f32 %v7121_v32, %v3052_v44  ;;  %v7128_v32 = vpack.c.bf16 %v6602_v43, %v6599_v29  ;;  %v7132_v43 = vld [vmem:[#allocation40_spill] sm:$0xff] }
 0x65d   : > { %v6784_v54 = vadd.f32 %v7123_v28, %v3050_v34  ;;  %v4717_v17 = vpop.f32.mrb[132].mxu0  ;;  %v5040_v34 = vld [vmem:[%s5156_s26 + $0x138] sm:$0xff] }
 0x65e   : > { %v4800_v25 = vpack.c.bf16 %v6778_v62, %v6775_v51  ;;  %v2991_v27 = vmul.f32 %v4717_v17, %v7124_v33  ;;  %v2458_v21 = vpop.f32.mrb[133].mxu0  ;;  %v7129_v17 = vld [vmem:[#allocation50_spill] sm:$0xff] }
 0x65f   : > { %v4794_v42 = vpack.c.bf16 %v6784_v54, %v6781_v41  ;;  %v2989_v12 = vmul.f32 %v7125_v61, %v2458_v21  ;;  %v4718_v14 = vpop.f32.mrb[134].mxu0  ;;  %v7131_v61 = vld [vmem:[#allocation41_spill] sm:$0xff]  ;;  %v7152_v41 = vld [vmem:[#allocation38_spill] sm:$0xff] }
 0x660   : > { %v3055_v53 = vadd.f32 %v5038_v55, %v2991_v27  ;;  %v2992_v16 = vmul.f32 %v4718_v14, %v7126_v4  ;;  %v2461_v36 = vpop.f32.mrb[135].mxu0  ;;  %v7130_v27 = vld [vmem:[#allocation49_spill] sm:$0xff]  ;;  %v2871_v55 = vpop.permute.xlu1 %2870 }
 0x661   : > { %v3053_v44 = vadd.f32 %v5039_v19, %v2989_v12  ;;  %v2990_v57 = vmul.f32 %v7127_v26, %v2461_v36  ;;  %v5042_v19 = vld [vmem:[%s5156_s26 + $0x150] sm:$0xff] }
 0x662   : > { %v3056_v13 = vadd.f32 %v5040_v34, %v2992_v16  ;;  %4772 = vmatpush3.bf16.xpose.msk.msra.mxu1 %vm6659_vm1, %v7128_v32  ;;  %v6813_v33 = vadd.f32 %v7129_v17, %v3055_v53  ;;  %v2866_v53 = vpop.permute.xlu0 %2865  ;;  %v5043_v34 = vld [vmem:[%s5156_s26 + $0x140] sm:$0xff]  ;;  %v5045_v17 = vld [vmem:[%s5156_s26 + $0x148] sm:$0xff] }
 0x663   : > { %v3054_v28 = vadd.f32 %v5041_v31, %v2990_v57  ;;  %4775 = vmatprep.subr.msk.bf16.mxu1 %vm6659_vm1, %v4773_v11  ;;  %v6819_v29 = vadd.f32 %v7131_v61, %v3053_v44  ;;  %v5044_v31 = vld [vmem:[%s5156_s26 + $0x158] sm:$0xff] }
 0x664   : > { %v6816_v21 = vadd.f32 %v7130_v27, %v3056_v13 }
 0x665   : > { %v6822_v12 = vadd.f32 %v7132_v43, %v3054_v28  ;;  %v4721_v14 = vpop.f32.mrb[136].mxu0  ;;  %v7133_v28 = vpack.c.bf16 %v6596_v38, %v6593_v49 }
 0x666   : > { %v4812_v48 = vpack.c.bf16 %v6816_v21, %v6813_v33  ;;  %v2995_v39 = vmul.f32 %v4721_v14, %v6637_v60  ;;  %v2474_v11 = vpop.f32.mrb[137].mxu0  ;;  %v6854_v38 = vpop.permute.xlu0 %3457 }
 0x667   : > { %v4806_v4 = vpack.c.bf16 %v6822_v12, %v6819_v29  ;;  %v2993_v16 = vmul.f32 %v6549_v24, %v2474_v11  ;;  %v4722_v36 = vpop.f32.mrb[138].mxu0 }
 0x668   : > { %v3059_v44 = vadd.f32 %v5042_v19, %v2995_v39  ;;  %v2996_v26 = vmul.f32 %v4722_v36, %v6632_v8  ;;  %v2477_v57 = vpop.f32.mrb[139].mxu0  ;;  %v6846_v8 = vpop.permute.xlu1 %3462  ;;  %v5046_v39 = vld [vmem:[%s5156_s26 + $0x170] sm:$0xff]  ;;  %v5047_v36 = vld [vmem:[%s5156_s26 + $0x160] sm:$0xff] }
 0x669   : > { %v3057_v13 = vadd.f32 %v5043_v34, %v2993_v16  ;;  %v2994_v32 = vmul.f32 %v6544_v9, %v2477_v57  ;;  %v5049_v34 = vld [vmem:[%s5156_s26 + $0x168] sm:$0xff] }
 0x66a   : > { %v3060_v60 = vadd.f32 %v5044_v31, %v2996_v26  ;;  %4778 = vmatpush3.bf16.xpose.msk.msra.mxu1 %vm6659_vm1, %v7133_v28  ;;  %v6849_v9 = vadd.f32 %v6678_v59, %v3059_v44  ;;  %v5048_v44 = vld [vmem:[%s5156_s26 + $0x178] sm:$0xff] }
 0x66b   : > { %v3058_v24 = vadd.f32 %v5045_v17, %v2994_v32  ;;  %4781 = vmatprep.subr.msk.bf16.mxu1 %vm6659_vm1, %v4779_v58  ;;  %v6857_v27 = vadd.f32 %v6589_v22, %v3057_v13  ;;  %v7136_v28 = vld [vmem:[#allocation21_spill] sm:$0xff] }
 0x66c   : > { %v6852_v49 = vadd.f32 %v6670_v20, %v3060_v60  ;;  %v3383_v57 = vpop.permute.xlu1 %3382 }
 0x66d   : > { %v6860_v50 = vadd.f32 %v6586_v40, %v3058_v24  ;;  %v4725_v18 = vpop.f32.mrb[140].mxu0 }
 0x66e   : > { %v4824_v58 = vpack.c.bf16 %v6852_v49, %v6849_v9  ;;  %v2999_v61 = vmul.f32 %v4725_v18, %v2866_v53  ;;  %v2490_v59 = vpop.f32.mrb[141].mxu0  ;;  %v7134_v53 = vpack.c.bf16 %v6630_v52, %v6627_v3 }
 0x66f   : > { %v4818_v20 = vpack.c.bf16 %v6860_v50, %v6857_v27  ;;  %v2997_v43 = vmul.f32 %v6719_v37, %v2490_v59  ;;  %v4726_v14 = vpop.f32.mrb[142].mxu0  ;;  %v3378_v37 = vpop.permute.xlu0 %3377 }
 0x670   : > { %v3063_v22 = vadd.f32 %v5046_v39, %v2999_v61  ;;  %v3000_v11 = vmul.f32 %v4726_v14, %v2871_v55  ;;  %v2493_v16 = vpop.f32.mrb[143].mxu0  ;;  %v7137_v61 = vld [vmem:[#allocation27_spill] sm:$0xff]  ;;  %v7138_v39 = vld [vmem:[#allocation20_spill] sm:$0xff] }
 0x671   : > { %v3061_v40 = vadd.f32 %v5047_v36, %v2997_v43  ;;  %v2998_v19 = vmul.f32 %v6714_v45, %v2493_v16  ;;  %v5051_v43 = vld [vmem:[%s5156_s26 + $0x180] sm:$0xff]  ;;  %v7139_v36 = vpack.c.bf16 %v6624_v35, %v6619_v15 }
 0x672   : > { %v3064_v26 = vadd.f32 %v5048_v44, %v3000_v11  ;;  %4784 = vmatpush3.bf16.xpose.msk.msra.mxu1 %vm6659_vm1, %v7134_v53  ;;  %v6882_v45 = vadd.f32 %v3378_v37, %v3063_v22  ;;  %v5052_v11 = vld [vmem:[%s5156_s26 + $0x198] sm:$0xff]  ;;  %v7140_v44 = vld [vmem:[#allocation31_spill] sm:$0xff]  ;;  %v7141_v53 = vld [vmem:[#allocation30_spill] sm:$0xff] }
 0x673   : > { %v3062_v13 = vadd.f32 %v5049_v34, %v2998_v19  ;;  %4787 = vmatprep.subr.msk.bf16.mxu1 %vm6659_vm1, %v4785_v5  ;;  %v6887_v3 = vadd.f32 %v6769_v47, %v3061_v40  ;;  %v5050_v47 = vld [vmem:[%s5156_s26 + $0x190] sm:$0xff]  ;;  %v5053_v40 = vld [vmem:[%s5156_s26 + $0x188] sm:$0xff] }
 0x674   : > { %v6884_v55 = vadd.f32 %v3383_v57, %v3064_v26  ;;  %v7142_v37 = vld [vmem:[#allocation24_spill] sm:$0xff] }
 0x675   : > { %v6890_v52 = vadd.f32 %v6761_v56, %v3062_v13  ;;  %v4729_v32 = vpop.f32.mrb[144].mxu0  ;;  %v7143_v13 = vld [vmem:[#allocation23_spill] sm:$0xff] }
 0x676   : > { %v4836_v31 = vpack.c.bf16 %v6884_v55, %v6882_v45  ;;  %v3003_v1 = vmul.f32 %v4729_v32, %v7135_v0  ;;  %v2506_v5 = vpop.f32.mrb[145].mxu0 }
 0x677   : > { %v4830_v60 = vpack.c.bf16 %v6890_v52, %v6887_v3  ;;  %v3001_v17 = vmul.f32 %v7136_v28, %v2506_v5  ;;  %v4730_v24 = vpop.f32.mrb[146].mxu0  ;;  %v7144_v5 = vld [vmem:[#allocation43_spill] sm:$0xff] }
 0x678   : > { %v3067_v18 = vadd.f32 %v5050_v47, %v3003_v1  ;;  %v3004_v59 = vmul.f32 %v4730_v24, %v7137_v61  ;;  %v2509_v56 = vpop.f32.mrb[147].mxu0  ;;  %v5054_v61 = vld [vmem:[%s5156_s26 + $0x1b0] sm:$0xff] }
 0x679   : > { %v3065_v14 = vadd.f32 %v5051_v43, %v3001_v17  ;;  %v3002_v22 = vmul.f32 %v7138_v39, %v2509_v56  ;;  %v7145_v17 = vld [vmem:[#allocation35_spill] sm:$0xff]  ;;  %v5055_v39 = vld [vmem:[%s5156_s26 + $0x1a0] sm:$0xff] }
 0x67a   : > { %v3068_v16 = vadd.f32 %v5052_v11, %v3004_v59  ;;  %4790 = vmatpush3.bf16.xpose.msk.msra.mxu1 %vm6659_vm1, %v7139_v36  ;;  %v3515_v26 = vadd.f32 %v7140_v44, %v3067_v18  ;;  %v7146_v18 = vld [vmem:[#allocation42_spill] sm:$0xff]  ;;  %v5056_v36 = vld [vmem:[%s5156_s26 + $0x1b8] sm:$0xff] }
 0x67b   : > { %v3066_v19 = vadd.f32 %v5053_v40, %v3002_v22  ;;  %v3513_v34 = vadd.f32 %v7142_v37, %v3065_v14  ;;  %v7147_v22 = vld [vmem:[#allocation34_spill] sm:$0xff] }
 0x67c   : > { %v3516_v57 = vadd.f32 %v7141_v53, %v3068_v16  ;;  %v7148_v16 = vld [vmem:[#allocation44_spill] sm:$0xff] }
 0x67d   : > { %v3514_v32 = vadd.f32 %v7143_v13, %v3066_v19  ;;  %v4733_v0 = vpop.f32.mrb[148].mxu0  ;;  %v5057_v19 = vld [vmem:[%s5156_s26 + $0x1a8] sm:$0xff] }
 0x67e   : > { %v4797_v1 = vpack.c.bf16 %v3516_v57, %v3515_v26  ;;  %v3007_v28 = vmul.f32 %v4733_v0, %v7144_v5  ;;  %v2522_v35 = vpop.f32.mrb[149].mxu0  ;;  %v7149_v26 = vld [vmem:[#allocation48_spill] sm:$0xff]  ;;  %v7150_v57 = vld [vmem:[#allocation47_spill] sm:$0xff]  ;;  %v7153_v0 = vld [vmem:[#allocation2_spill] sm:$0xff] }
 0x67f   : > { %v4791_v15 = vpack.c.bf16 %v3514_v32, %v3513_v34  ;;  %v3005_v24 = vmul.f32 %v7145_v17, %v2522_v35  ;;  %v4734_v47 = vpop.f32.mrb[150].mxu0  ;;  %v7151_v34 = vld [vmem:[#allocation39_spill] sm:$0xff] }
 0x680   : > { %v3071_v59 = vadd.f32 %v5054_v61, %v3007_v28  ;;  %v3008_v56 = vmul.f32 %v4734_v47, %v7146_v18  ;;  %v2525_v43 = vpop.f32.mrb[151].mxu0  ;;  %v7155_v61 = vld [vmem:[#allocation3_spill] sm:$0xff] }
 0x681   : > { %v3069_v14 = vadd.f32 %v5055_v39, %v3005_v24  ;;  %v3006_v11 = vmul.f32 %v7147_v22, %v2525_v43  ;;  %4793 = vmatprep.subr.msk.bf16.mxu1 %vm6659_vm1, %v4791_v15  ;;  %4500 = vmatmul.mubr.msk.f32.vlgmr.msra.gmra.mrb[96].mxu1 %vm1388_vm0, %v7148_v16  ;;  %v7154_v15 = vld [vmem:[#allocation52_spill] sm:$0xff]  ;;  %v7156_v39 = vld [vmem:[#allocation51_spill] sm:$0xff]  ;;  %v5060_v22 = vld [vmem:[%s5156_s26 + $0x1d8] sm:$0xff] }
 0x682   : > { %v3072_v40 = vadd.f32 %v5056_v36, %v3008_v56  ;;  %4796 = vmatpush3.bf16.xpose.msk.msra.mxu1 %vm6659_vm1, %v4794_v42  ;;  %4533 = vmatprep.mubr.msk.f32.mxu1 %vm1388_vm0, %v7148_v16  ;;  %v3519_v53 = vadd.f32 %v7149_v26, %v3071_v59  ;;  %v5058_v24 = vld [vmem:[%s5156_s26 + $0x1d0] sm:$0xff]  ;;  %v5059_v56 = vld [vmem:[%s5156_s26 + $0x1c0] sm:$0xff]  ;;  %v5061_v36 = vld [vmem:[%s5156_s26 + $0x1c8] sm:$0xff] }
 0x683   : > { %v3070_v44 = vadd.f32 %v5057_v19, %v3006_v11  ;;  %4799 = vmatprep.subr.msk.bf16.mxu1 %vm6659_vm1, %v4797_v1  ;;  %v3517_v13 = vadd.f32 %v7151_v34, %v3069_v14 }
 0x684   : > { %v3520_v37 = vadd.f32 %v7150_v57, %v3072_v40 }
 0x685   : > { %v3518_v54 = vadd.f32 %v7152_v41, %v3070_v44  ;;  %v4737_v42 = vpop.f32.mrb[152].mxu0  ;;  %v7157_v44 = vld [vmem:[#allocation7_spill] sm:$0xff] }
 0x686   : > { %v4809_v32 = vpack.c.bf16 %v3520_v37, %v3519_v53  ;;  %v3011_v5 = vmul.f32 %v4737_v42, %v7153_v0  ;;  %v2538_v28 = vpop.f32.mrb[153].mxu0  ;;  %v7158_v53 = vld [vmem:[#allocation54_spill] sm:$0xff]  ;;  %v7159_v37 = vld [vmem:[#allocation53_spill] sm:$0xff]  ;;  %v5062_v0 = vld [vmem:[%s5156_s26 + $0x1f0] sm:$0xff] }
 0x687   : > { %v4803_v35 = vpack.c.bf16 %v3518_v54, %v3517_v13  ;;  %v3009_v17 = vmul.f32 %v7154_v15, %v2538_v28  ;;  %v4738_v1 = vpop.f32.mrb[154].mxu0 }
 0x688   : > { %v3075_v47 = vadd.f32 %v5058_v24, %v3011_v5  ;;  %v3012_v59 = vmul.f32 %v4738_v1, %v7155_v61  ;;  %v2541_v18 = vpop.f32.mrb[155].mxu0  ;;  %v5064_v1 = vld [vmem:[%s5156_s26 + $0x1f8] sm:$0xff] }
 0x689   : > { %v3073_v43 = vadd.f32 %v5059_v56, %v3009_v17  ;;  %v3010_v14 = vmul.f32 %v7156_v39, %v2541_v18 }
 0x68a   : > { %v3076_v11 = vadd.f32 %v5060_v22, %v3012_v59  ;;  %4802 = vmatpush3.bf16.xpose.msk.msra.mxu1 %vm6659_vm1, %v4800_v25  ;;  %v3523_v19 = vadd.f32 %v6652_v63, %v3075_v47 }
 0x68b   : > { %v3074_v40 = vadd.f32 %v5061_v36, %v3010_v14  ;;  %4805 = vmatprep.subr.msk.bf16.mxu1 %vm6659_vm1, %v4803_v35  ;;  %v3521_v57 = vadd.f32 %v7158_v53, %v3073_v43  ;;  %v5063_v35 = vld [vmem:[%s5156_s26 + $0x1e0] sm:$0xff] }
 0x68c   : > { %v3524_v26 = vadd.f32 %v7157_v44, %v3076_v11 }
 0x68d   : > { %v3522_v34 = vadd.f32 %v7159_v37, %v3074_v40  ;;  %v4741_v51 = vpop.f32.mrb[156].mxu0 }
 0x68e   : > { %v4821_v62 = vpack.c.bf16 %v3524_v26, %v3523_v19  ;;  %v3015_v25 = vmul.f32 %v4741_v51, %v6796_v30  ;;  %v2554_v13 = vpop.f32.mrb[157].mxu0  ;;  %v5065_v30 = vld [vmem:[%s5156_s26 + $0x1e8] sm:$0xff]  ;;  %s4138_s26 = sshll.u32 %s7161_s14, 5 }
 0x68f   : > { %v4815_v41 = vpack.c.bf16 %v3522_v34, %v3521_v57  ;;  %v3013_v54 = vmul.f32 %v6693_v7, %v2554_v13  ;;  %v4742_v42 = vpop.f32.mrb[158].mxu0  ;;  %s376_s27 = scalar_lea.vmem %s7028_s10, %s4138_s26 }
 0x690   : > { %v3079_v5 = vadd.f32 %v5062_v0, %v3015_v25  ;;  %v3016_v63 = vmul.f32 %v4742_v42, %v6792_v10  ;;  %v2557_v28 = vpop.f32.mrb[159].mxu0 }
 0x691   : > { %v3077_v15 = vadd.f32 %v5063_v35, %v3013_v54  ;;  %v3014_v17 = vmul.f32 %v6689_v6, %v2557_v28 }
 0x692   : > { %v3080_v24 = vadd.f32 %v5064_v1, %v3016_v63  ;;  %4808 = vmatpush3.bf16.xpose.msk.msra.mxu1 %vm6659_vm1, %v4806_v4  ;;  %v3527_v10 = vadd.f32 %v6854_v38, %v3079_v5 }
 0x693   : > { %v3078_v7 = vadd.f32 %v5065_v30, %v3014_v17  ;;  %4811 = vmatprep.subr.msk.bf16.mxu1 %vm6659_vm1, %v4809_v32  ;;  %v3525_v6 = vadd.f32 %v6743_v2, %v3077_v15 }
 0x694   : > { %v3528_v47 = vadd.f32 %v6846_v8, %v3080_v24 }
 0x695   : > { %v3526_v61 = vadd.f32 %v6738_v23, %v3078_v7 }
 0x696   : > { %v4833_v59 = vpack.c.bf16 %v3528_v47, %v3527_v10 }
 0x697   : > { %v4827_v18 = vpack.c.bf16 %v3526_v61, %v3525_v6 }
 0x69a   : > { %4814 = vmatpush3.bf16.xpose.msk.msra.mxu1 %vm6659_vm1, %v4812_v48 }
 0x69b   : > { %4817 = vmatprep.subr.msk.bf16.mxu1 %vm6659_vm1, %v4815_v41 }
 0x6a2   : > { %4820 = vmatpush3.bf16.xpose.msk.msra.mxu1 %vm6659_vm1, %v4818_v20 }
 0x6a3   : > { %4823 = vmatprep.subr.msk.bf16.mxu1 %vm6659_vm1, %v4821_v62 }
 0x6aa   : > { %4826 = vmatpush3.bf16.xpose.msk.msra.mxu1 %vm6659_vm1, %v4824_v58 }
 0x6ab   : > { %4829 = vmatprep.subr.msk.bf16.mxu1 %vm6659_vm1, %v4827_v18 }
 0x6b2   : > { %4832 = vmatpush3.bf16.xpose.msk.msra.mxu1 %vm6659_vm1, %v4830_v60 }
 0x6b3   : > { %4835 = vmatprep.subr.msk.bf16.mxu1 %vm6659_vm1, %v4833_v59 }
 0x6ba   : > { %4838 = vmatpush3.bf16.xpose.msk.msra.mxu1 %vm6659_vm1, %v4836_v31 }
 0x6c1   : > { %4534 = vmatmul.mubr.msk.f32.vlgmr.msra.gmra.mrb[98].mxu1 %vm1388_vm0, %v7148_v16 }
 0x754   : > { %v3791_v23 = vpop.f32.mrb[96].mxu1 }
 0x755   : > { %3867 = vst [vmem:[%s376_s27] sm:$0xff] %v3791_v23  ;;  %v3793_v2 = vpop.f32.mrb[97].mxu1 }
 0x756   : > { %3868 = vst [vmem:[%s376_s27 + $0x8] sm:$0xff] %v3793_v2 }
 0x794   : > { %v3862_v33 = vpop.f32.mrb[98].mxu1 }
 0x795   : > { %3869 = vst [vmem:[%s376_s27 + $0x10] sm:$0xff] %v3862_v33  ;;  %v3864_v21 = vpop.f32.mrb[99].mxu1 }
 0x796   : > { %3870 = vst [vmem:[%s376_s27 + $0x18] sm:$0xff] %v3864_v21 }
 0x797 PF: > { %s20_s13 = sadd.s32 1, %s5072_s13  }
 0x798   : > { %p17_p4 = scmp.ge.s32.totalorder %s20_s13, 4  }
 0x79a   :  { %19 = sbr.rel (!%p17_p4) target bundleno = 1 (0x1), region = 93 }

</bundles_post_ra>
